<compile_context>
chip_gen: v6e
topology: v6e:2x2x1
jax: 0.10.0
libtpu: 0.0.40
codegen_flags: <defaults>
</compile_context>

<pallas_src>
import math

import jax
import jax.numpy as jnp
from jax import lax
from jax.experimental import pallas as pl
from jax.experimental.pallas import tpu as pltpu


def _sig(x):
    # exact sigmoid via a single EUP tanh: sigmoid(x) = 0.5*tanh(0.5*x) + 0.5
    return 0.5 * jnp.tanh(0.5 * x) + 0.5


# ------------------- kernel 1: word BiLSTM + masked mean pooling -------------------
def word_pool_kernel(x_ref, mask_ref, wih_ref, b_ref, whh_ref, out_ref, gin_ref):
    # x_ref   : (L, TN, D)   bf16  time-major token activations
    # mask_ref: (L, TN, 1)   f32   attention mask, time-major column layout
    # wih_ref : (D, 8H)      bf16  stacked input weights, cols [i_f i_b f_f f_b g_f g_b o_f o_b]
    # b_ref   : (1, 8H)      f32   combined biases (b_ih + b_hh), same column layout
    # whh_ref : (2H, 8H)     bf16  block-diagonal recurrent weights, rows [h_f ; h_b]
    # out_ref : (TN, 2H)     f32   masked-mean pooled sentence embedding [fwd | bwd]
    # gin_ref : (L, TN, 8H)  bf16  scratch: hoisted input projection (+ bias)
    L, TN, D = x_ref.shape
    H8 = wih_ref.shape[1]
    H2 = H8 // 4
    H = H2 // 2

    # ---- hoisted input projection: one big MXU matmul for all L timesteps ----
    # bias folded in, stored bf16 (halves scratch footprint + its vst/vld traffic)
    x2 = x_ref[...].reshape(L * TN, D)
    gin = jnp.dot(x2, wih_ref[...], preferred_element_type=jnp.float32) + b_ref[...]
    gin_ref[...] = gin.reshape(L, TN, H8).astype(jnp.bfloat16)

    whh = whh_ref[...]                                     # (2H, 8H) bf16

    # direction-selection lane masks (built once, outside the serial loop)
    lane2 = lax.broadcasted_iota(jnp.int32, (1, H2), 1)
    fwd2 = lane2 < H                                       # (1, 2H) bool
    fwd8 = jnp.tile(lane2, (1, 4)) < H                     # (1, 8H) bool

    zeros = jnp.zeros((TN, H2), jnp.float32)

    def step(t, carry):
        h_cat, c_cat, pool = carry                         # all (TN, 2H) f32, [fwd | bwd]
        r = L - 1 - t
        # single stacked recurrent matmul (bf16 operands, f32 accumulation)
        rec = jnp.dot(h_cat.astype(jnp.bfloat16), whh, preferred_element_type=jnp.float32)
        # forward gates take the t-th input projection, backward gates the (L-1-t)-th:
        # single select per vreg; the scratch loads are carry-independent (prefetchable)
        g_in = jnp.where(fwd8, gin_ref[t], gin_ref[r])
        gates = g_in.astype(jnp.float32) + rec
        i = _sig(gates[:, 0 * H2:1 * H2])
        f = _sig(gates[:, 1 * H2:2 * H2])
        g = jnp.tanh(gates[:, 2 * H2:3 * H2])
        o = _sig(gates[:, 3 * H2:4 * H2])
        c_cat = f * c_cat + i * g
        h_cat = o * jnp.tanh(c_cat)
        # masked-mean accumulation: mask columns are plain (TN, 1) loads, no XLU work
        m = jnp.where(fwd2, mask_ref[t], mask_ref[r])      # (TN, 2H)
        pool = pool + m * h_cat
        return (h_cat, c_cat, pool)

    unroll = True if L <= 32 else 8                        # avoid vreg-pressure cliff at big L
    _, _, pool = lax.fori_loop(0, L, step, (zeros, zeros, zeros), unroll=unroll)

    count = jnp.sum(mask_ref[...], axis=0)                 # (TN, 1) valid-token count
    # fully-masked sentences -> zeros (pool is 0, denom clamped to 1), like the reference
    out_ref[...] = pool / jnp.maximum(count, 1.0)


def _pick_block_n(n, target=128):
    assert n % 16 == 0, "batch*num_sentences must be a multiple of 16 (bf16 sublane tiling)"
    bn = min(target, n)
    bn -= bn % 16
    while bn > 16 and n % bn != 0:
        bn -= 16
    bn = max(bn, 16)
    # keep grid >= 2 so both v7x TensorCores get work
    if n // bn < 2:
        half = bn // 2
        if half >= 16 and half % 16 == 0 and n % half == 0:
            bn = half
    return bn


def _vmem_limit_bytes():
    # budget against the actual chip: ~3/4 of physical VMEM, capped at 100 MiB
    # (v7x: 64 MiB/TC -> ~48 MiB; v5e/v6e: 128 MiB -> 96 MiB)
    try:
        cap = int(pltpu.get_tpu_info().vmem_capacity_bytes)
    except Exception:
        cap = 64 * 1024 * 1024
    return max(32 * 1024 * 1024, min(cap * 3 // 4, 100 * 1024 * 1024))


def word_pool_call(x, mask3, wih, b, whh, *, block_n=128):
    L, N, D = x.shape
    H8 = wih.shape[1]
    H2 = H8 // 4
    bn = _pick_block_n(N, block_n)
    grid = (N // bn,)
    return pl.pallas_call(
        word_pool_kernel,
        out_shape=jax.ShapeDtypeStruct((N, H2), jnp.float32),
        grid_spec=pltpu.PrefetchScalarGridSpec(
            num_scalar_prefetch=0,
            grid=grid,
            in_specs=[
                pl.BlockSpec((L, bn, D), lambda i: (0, i, 0)),   # activations (time-major)
                pl.BlockSpec((L, bn, 1), lambda i: (0, i, 0)),   # mask columns (time-major)
                pl.BlockSpec((D, H8), lambda i: (0, 0)),         # stacked W_ih (bf16)
                pl.BlockSpec((1, H8), lambda i: (0, 0)),         # combined biases
                pl.BlockSpec((H2, H8), lambda i: (0, 0)),        # stacked block-diag W_hh (bf16)
            ],
            out_specs=pl.BlockSpec((bn, H2), lambda i: (i, 0)),
            scratch_shapes=[pltpu.VMEM((L, bn, H8), jnp.bfloat16)],   # hoisted projection
        ),
        compiler_params=pltpu.CompilerParams(
            dimension_semantics=("parallel",),               # shards across v7x's two TCs
            vmem_limit_bytes=_vmem_limit_bytes(),
        ),
    )(x, mask3, wih, b, whh)


# --------- kernel 2: sentence BiLSTM (last step) + linear classifier (padded) ---------
def sentence_cls_kernel(x_ref, wih_f_ref, whh_f_ref, b_f_ref,
                        wih_b_ref, b_b_ref, wc_ref, bc_ref, out_ref, gif_ref):
    # x_ref : (S*Bp, 2H) f32, rows ordered time-major (s outer, padded batch Bp inner).
    # gif_ref: (S*Bp, 4H) f32 scratch for the hoisted forward-direction input projection.
    SB, _ = x_ref.shape
    Bp, _ = out_ref.shape
    S = SB // Bp
    H4 = wih_f_ref.shape[1]
    H = H4 // 4

    # hoisted forward input projection (+bias) for all S steps in one MXU matmul
    gif_ref[...] = (jnp.dot(x_ref[...].astype(jnp.bfloat16), wih_f_ref[...],
                            preferred_element_type=jnp.float32) + b_f_ref[...])

    whh_f = whh_f_ref[...]

    def cell(gates, c):
        i = _sig(gates[:, 0 * H:1 * H])
        f = _sig(gates[:, 1 * H:2 * H])
        g = jnp.tanh(gates[:, 2 * H:3 * H])
        o = _sig(gates[:, 3 * H:4 * H])
        c_new = f * c + i * g
        return o * jnp.tanh(c_new), c_new

    zeros = jnp.zeros((Bp, H), jnp.float32)

    def step(s, carry):
        h, c = carry
        off = pl.multiple_of(s * Bp, Bp)                   # aligned sublane slice
        gates = gif_ref[pl.ds(off, Bp), :] + jnp.dot(h.astype(jnp.bfloat16), whh_f,
                                                     preferred_element_type=jnp.float32)
        return cell(gates, c)

    h_f, _ = lax.fori_loop(0, S, step, (zeros, zeros), unroll=True if S <= 32 else 8)

    # Reference uses sentence_lstm_output[:, -1, :]: the backward direction at the last
    # index has only processed x[S-1] (zero initial state), so one cell step suffices.
    x_last = x_ref[(S - 1) * Bp:SB, :]                     # static (Bp, 2H) slice
    gates_b = (jnp.dot(x_last.astype(jnp.bfloat16), wih_b_ref[...],
                       preferred_element_type=jnp.float32) + b_b_ref[...])
    h_b, _ = cell(gates_b, zeros)

    # nn.Dropout is identity at inference; classifier output is lane-padded to 128 so the
    # store is unmasked (the wrapper slices back to num_classes).
    out_ref[...] = (jnp.dot(h_f, wc_ref[0:H, :], preferred_element_type=jnp.float32)
                    + jnp.dot(h_b, wc_ref[H:2 * H, :], preferred_element_type=jnp.float32)
                    + bc_ref[...])


def sentence_cls_call(sent_seq, wih_f, whh_f, b_f, wih_b, b_b, wc, bc):
    S, B, H2 = sent_seq.shape
    Bp = ((B + 7) // 8) * 8                                # pad batch to a sublane multiple
    if Bp != B:
        sent_seq = jnp.pad(sent_seq, ((0, 0), (0, Bp - B), (0, 0)))
    x2d = sent_seq.reshape(S * Bp, H2)
    H4 = wih_f.shape[1]
    CP = wc.shape[-1]
    vmem = pl.BlockSpec(memory_space=pltpu.MemorySpace.VMEM)
    out = pl.pallas_call(
        sentence_cls_kernel,
        out_shape=jax.ShapeDtypeStruct((Bp, CP), jnp.float32),
        in_specs=[vmem] * 8,
        out_specs=vmem,
        scratch_shapes=[pltpu.VMEM((S * Bp, H4), jnp.float32)],
    )(x2d, wih_f, whh_f, b_f, wih_b, b_b, wc, bc)
    return out[:B]


# ------------------------------ parameter setup ------------------------------
def _xavier_uniform(key, shape):
    fan_out, fan_in = shape
    bound = math.sqrt(6.0 / (fan_in + fan_out))
    return jax.random.uniform(key, shape, jnp.float32, -bound, bound)


def _lstm_dir_raw(key, input_size, hidden):
    # PyTorch-layout parameters for one LSTM direction; bias = b_ih + b_hh
    # (forget slice = 1 + 1 = 2 under the reference init).
    k1, k2 = jax.random.split(key)
    w_ih = _xavier_uniform(k1, (4 * hidden, input_size))     # (4H, in), rows [i;f;g;o]
    w_hh = _xavier_uniform(k2, (4 * hidden, hidden))         # (4H, H)
    b = jnp.zeros((4 * hidden,), jnp.float32).at[hidden:2 * hidden].set(2.0)
    return w_ih, w_hh, b


def _pack_word_weights(w_ih_f, w_hh_f, b_f, w_ih_b, w_hh_b, b_b, hidden):
    # Stack both directions into the interleaved column layout
    # [i_f i_b | f_f f_b | g_f g_b | o_f o_b] (each block H wide); W_hh is block-diagonal
    # over the [h_f ; h_b] rows. Stored in bf16 (f32 accumulation in-kernel).
    H = hidden
    D = w_ih_f.shape[1]
    wih = jnp.zeros((D, 8 * H), jnp.float32)
    whh = jnp.zeros((2 * H, 8 * H), jnp.float32)
    bias = jnp.zeros((1, 8 * H), jnp.float32)
    per_dir = [(0, 0, w_ih_f, w_hh_f, b_f), (1, H, w_ih_b, w_hh_b, b_b)]
    for gate in range(4):                                    # PyTorch gate order i, f, g, o
        for d, row0, w_ih, w_hh, b in per_dir:
            col = (2 * gate + d) * H
            wih = wih.at[:, col:col + H].set(w_ih[gate * H:(gate + 1) * H, :].T)
            whh = whh.at[row0:row0 + H, col:col + H].set(w_hh[gate * H:(gate + 1) * H, :].T)
            bias = bias.at[0, col:col + H].set(b[gate * H:(gate + 1) * H])
    return wih.astype(jnp.bfloat16), whh.astype(jnp.bfloat16), bias


def init_params(key, vocab_size, hidden_size, lstm_hidden, num_classes, cls_pad=128):
    keys = jax.random.split(key, 8)
    H = lstm_hidden
    params = {}
    # TODO(synk): the pretrained transformer base model has no Pallas equivalent here;
    # a deterministic embedding lookup stands in for last_hidden_state.
    params["emb"] = jax.random.normal(keys[0], (vocab_size, hidden_size), jnp.float32) * 0.02

    wf = _lstm_dir_raw(keys[1], hidden_size, H)
    wb = _lstm_dir_raw(keys[2], hidden_size, H)
    params["word_wih"], params["word_whh"], params["word_b"] = _pack_word_weights(*wf, *wb, H)

    sf = _lstm_dir_raw(keys[3], 2 * H, H)
    sb = _lstm_dir_raw(keys[4], 2 * H, H)
    params["sent_wih_f"] = sf[0].T.astype(jnp.bfloat16)       # (2H, 4H)
    params["sent_whh_f"] = sf[1].T.astype(jnp.bfloat16)       # (H, 4H)
    params["sent_b_f"] = sf[2][None, :]                       # (1, 4H) f32
    params["sent_wih_b"] = sb[0].T.astype(jnp.bfloat16)       # backward needs only one step
    params["sent_b_b"] = sb[2][None, :]

    wc = jax.random.uniform(keys[5], (num_classes, 2 * H), jnp.float32, -0.1, 0.1)
    bc = jax.random.uniform(keys[6], (num_classes,), jnp.float32, -0.1, 0.1)
    params["cls_w_pad"] = jnp.zeros((2 * H, cls_pad), jnp.float32).at[:, :num_classes].set(wc.T)
    params["cls_b_pad"] = jnp.zeros((1, cls_pad), jnp.float32).at[0, :num_classes].set(bc)
    return params


# ------------------------------- full forward -------------------------------
def long_seq_classifier_forward(params, input_ids, attention_mask, num_classes):
    B, S, L = input_ids.shape
    N = B * S

    ids = input_ids.reshape(N, L)
    # mask in time-major (L, N, 1) column layout: each recurrent step reads a plain
    # (TN, 1) slice in-kernel (no per-step XLU select/reduce on the critical chain)
    mask3 = jnp.transpose(attention_mask.reshape(N, L).astype(jnp.float32), (1, 0))[:, :, None]

    # TODO(synk): fusing this gather into kernel 1 (scalar-prefetch / row-gather) would
    # remove one HBM round trip of the largest tensor; kept in XLA for simplicity.
    hidden = jnp.take(params["emb"], ids.T, axis=0).astype(jnp.bfloat16)      # (L, N, D)

    sent_emb = word_pool_call(hidden, mask3,
                              params["word_wih"], params["word_b"], params["word_whh"])  # (N, 2H)

    H2 = sent_emb.shape[-1]
    sent_seq = jnp.transpose(sent_emb.reshape(B, S, H2), (1, 0, 2))            # (S, B, 2H), small

    logits_pad = sentence_cls_call(sent_seq,
                                   params["sent_wih_f"], params["sent_whh_f"], params["sent_b_f"],
                                   params["sent_wih_b"], params["sent_b_b"],
                                   params["cls_w_pad"], params["cls_b_pad"])   # (B, 128)
    return logits_pad[:, :num_classes]


# ----------------------------------- main -----------------------------------
if __name__ == "__main__":
    # Small, forward-consistent, lane-friendly shapes.
    batch = 2
    num_sentences = 16     # N = batch * num_sentences = 32 -> grid of 2 blocks of 16
    seq_len = 16           # tokens per sentence (L)
    hidden_size = 128      # base_model.config.hidden_size (stand-in)
    lstm_hidden = 64       # lstm_hidden_size (2H = 128 -> lane-dense output)
    num_classes = 4
    vocab_size = 1000

    key = jax.random.PRNGKey(0)
    k_param, k_ids, k_len = jax.random.split(key, 3)

    params = init_params(k_param, vocab_size, hidden_size, lstm_hidden, num_classes)

    input_ids = jax.random.randint(k_ids, (batch, num_sentences, seq_len), 0, vocab_size,
                                   dtype=jnp.int32)
    # variable-length sentences: mask out the tail of each sentence
    lengths = jax.random.randint(k_len, (batch, num_sentences, 1), 1, seq_len + 1)
    attention_mask = (jnp.arange(seq_len)[None, None, :] < lengths).astype(jnp.int32)

    logits = long_seq_classifier_forward(params, input_ids, attention_mask, num_classes)
    logits = jax.block_until_ready(logits)

    assert logits.shape == (batch, num_classes)
    assert bool(jnp.all(jnp.isfinite(logits)))
    print("KERNEL_OK")
</pallas_src>

<mosaic_0001>
module attributes {stable_mosaic.version = 11 : i64} {
  func.func @word_pool_kernel(%arg0: i32, %arg1: memref<16x16x128xbf16, #tpu.memory_space<vmem>>, %arg2: memref<16x16x1xf32, #tpu.memory_space<vmem>>, %arg3: memref<128x512xbf16, #tpu.memory_space<vmem>>, %arg4: memref<1x512xf32, #tpu.memory_space<vmem>>, %arg5: memref<128x512xbf16, #tpu.memory_space<vmem>>, %arg6: memref<16x128xf32, #tpu.memory_space<vmem>>, %arg7: memref<16x16x512xbf16, #tpu.memory_space<vmem>>) attributes {dimension_semantics = [#tpu.dimension_semantics<parallel>], iteration_bounds = array<i64: 2>, scalar_prefetch = 0 : i64, scratch_operands = 1 : i64, tpu.core_type = #tpu.core_type<tc>, window_params = [{transform_indices = @transform_0, window_bounds = array<i64: 16, 16, 128>}, {transform_indices = @transform_1, window_bounds = array<i64: 16, 16, 1>}, {pipeline_mode = #tpu.pipeline_mode<synchronous>, transform_indices = @transform_2, window_bounds = array<i64: 128, 512>}, {pipeline_mode = #tpu.pipeline_mode<synchronous>, transform_indices = @transform_3, window_bounds = array<i64: 1, 512>}, {pipeline_mode = #tpu.pipeline_mode<synchronous>, transform_indices = @transform_4, window_bounds = array<i64: 128, 512>}, {transform_indices = @transform_5, window_bounds = array<i64: 16, 128>}]} {
    %c0 = arith.constant 0 : index
    %c0_0 = arith.constant 0 : index
    %c0_1 = arith.constant 0 : index
    %0 = vector.load %arg1[%c0, %c0_0, %c0_1] : memref<16x16x128xbf16, #tpu.memory_space<vmem>>, vector<16x16x128xbf16>
    %1 = vector.shape_cast %0 : vector<16x16x128xbf16> to vector<256x128xbf16>
    %c0_2 = arith.constant 0 : index
    %c0_3 = arith.constant 0 : index
    %2 = vector.load %arg3[%c0_2, %c0_3] : memref<128x512xbf16, #tpu.memory_space<vmem>>, vector<128x512xbf16>
    %cst = arith.constant dense<0.000000e+00> : vector<256x512xf32>
    %3 = tpu.matmul %1, %2, %cst {dimension_numbers = #tpu.dot_dimension_numbers<[1], [0], [0], [1], [0, 0, 1, 1], [], []>} : vector<256x128xbf16>, vector<128x512xbf16>, vector<256x512xf32> -> vector<256x512xf32>
    %c0_4 = arith.constant 0 : index
    %c0_5 = arith.constant 0 : index
    %4 = vector.load %arg4[%c0_4, %c0_5] : memref<1x512xf32, #tpu.memory_space<vmem>>, vector<1x512xf32>
    %5 = vector.broadcast %4 : vector<1x512xf32> to vector<256x512xf32>
    %6 = arith.addf %3, %5 : vector<256x512xf32>
    %7 = vector.shape_cast %6 : vector<256x512xf32> to vector<16x16x512xf32>
    %8 = arith.truncf %7 : vector<16x16x512xf32> to vector<16x16x512xbf16>
    %c0_6 = arith.constant 0 : index
    %c0_7 = arith.constant 0 : index
    %c0_8 = arith.constant 0 : index
    %9 = vector.load %arg7[%c0_6, %c0_7, %c0_8] : memref<16x16x512xbf16, #tpu.memory_space<vmem>>, vector<16x16x512xbf16>
    tpu.vector_store %arg7[%c0_6, %c0_7, %c0_8], %8 {strides = array<i32>} : memref<16x16x512xbf16, #tpu.memory_space<vmem>>, vector<16x16x512xbf16>,
    %c0_9 = arith.constant 0 : index
    %c0_10 = arith.constant 0 : index
    %10 = vector.load %arg5[%c0_9, %c0_10] : memref<128x512xbf16, #tpu.memory_space<vmem>>, vector<128x512xbf16>
    %11 = tpu.iota {dimensions = array<i32: 1>} : vector<1x128xi32>
    %c64_i32 = arith.constant 64 : i32
    %12 = vector.broadcast %c64_i32 : i32 to vector<1x128xi32>
    %13 = arith.cmpi slt, %11, %12 : vector<1x128xi32>
    %14 = tpu.concatenate %11, %11, %11, %11 in 1 : vector<1x128xi32>, vector<1x128xi32>, vector<1x128xi32>, vector<1x128xi32> -> vector<1x512xi32>
    %c64_i32_11 = arith.constant 64 : i32
    %15 = vector.broadcast %c64_i32_11 : i32 to vector<1x512xi32>
    %16 = arith.cmpi slt, %14, %15 : vector<1x512xi32>
    %cst_12 = arith.constant 0.000000e+00 : f32
    %17 = vector.broadcast %cst_12 : f32 to vector<16x128xf32>
    %c0_i32 = arith.constant 0 : i32
    %c15_i32 = arith.constant 15 : i32
    %18 = arith.subi %c15_i32, %c0_i32 : i32
    %19 = arith.truncf %17 : vector<16x128xf32> to vector<16x128xbf16>
    %cst_13 = arith.constant dense<0.000000e+00> : vector<16x512xf32>
    %20 = tpu.matmul %19, %10, %cst_13 {dimension_numbers = #tpu.dot_dimension_numbers<[1], [0], [0], [1], [0, 0, 1, 1], [], []>} : vector<16x128xbf16>, vector<128x512xbf16>, vector<16x512xf32> -> vector<16x512xf32>
    %21 = arith.index_cast %c0_i32 : i32 to index
    %c0_14 = arith.constant 0 : index
    %c0_15 = arith.constant 0 : index
    %22 = vector.load %arg7[%21, %c0_14, %c0_15] : memref<16x16x512xbf16, #tpu.memory_space<vmem>>, vector<1x16x512xbf16>
    %23 = vector.shape_cast %22 : vector<1x16x512xbf16> to vector<16x512xbf16>
    %24 = arith.index_cast %18 : i32 to index
    %c0_16 = arith.constant 0 : index
    %c0_17 = arith.constant 0 : index
    %25 = vector.load %arg7[%24, %c0_16, %c0_17] : memref<16x16x512xbf16, #tpu.memory_space<vmem>>, vector<1x16x512xbf16>
    %26 = vector.shape_cast %25 : vector<1x16x512xbf16> to vector<16x512xbf16>
    %27 = vector.shape_cast %16 : vector<1x512xi1> to vector<1x512xi1>
    %28 = vector.broadcast %27 : vector<1x512xi1> to vector<16x512xi1>
    %29 = arith.select %28, %23, %26 : vector<16x512xi1>, vector<16x512xbf16>
    %30 = arith.extf %29 : vector<16x512xbf16> to vector<16x512xf32>
    %31 = arith.addf %30, %20 : vector<16x512xf32>
    %32 = vector.extract_strided_slice %31 {offsets = [0, 0], sizes = [16, 128], strides = [1, 1]} : vector<16x512xf32> to vector<16x128xf32>
    %cst_18 = arith.constant 5.000000e-01 : f32
    %33 = vector.broadcast %cst_18 : f32 to vector<16x128xf32>
    %34 = arith.mulf %33, %32 : vector<16x128xf32>
    %35 = math.tanh %34 : vector<16x128xf32>
    %cst_19 = arith.constant 5.000000e-01 : f32
    %36 = vector.broadcast %cst_19 : f32 to vector<16x128xf32>
    %37 = arith.mulf %36, %35 : vector<16x128xf32>
    %cst_20 = arith.constant 5.000000e-01 : f32
    %38 = vector.broadcast %cst_20 : f32 to vector<16x128xf32>
    %39 = arith.addf %37, %38 : vector<16x128xf32>
    %40 = vector.extract_strided_slice %31 {offsets = [0, 128], sizes = [16, 128], strides = [1, 1]} : vector<16x512xf32> to vector<16x128xf32>
    %cst_21 = arith.constant 5.000000e-01 : f32
    %41 = vector.broadcast %cst_21 : f32 to vector<16x128xf32>
    %42 = arith.mulf %41, %40 : vector<16x128xf32>
    %43 = math.tanh %42 : vector<16x128xf32>
    %cst_22 = arith.constant 5.000000e-01 : f32
    %44 = vector.broadcast %cst_22 : f32 to vector<16x128xf32>
    %45 = arith.mulf %44, %43 : vector<16x128xf32>
    %cst_23 = arith.constant 5.000000e-01 : f32
    %46 = vector.broadcast %cst_23 : f32 to vector<16x128xf32>
    %47 = arith.addf %45, %46 : vector<16x128xf32>
    %48 = vector.extract_strided_slice %31 {offsets = [0, 256], sizes = [16, 128], strides = [1, 1]} : vector<16x512xf32> to vector<16x128xf32>
    %49 = math.tanh %48 : vector<16x128xf32>
    %50 = vector.extract_strided_slice %31 {offsets = [0, 384], sizes = [16, 128], strides = [1, 1]} : vector<16x512xf32> to vector<16x128xf32>
    %cst_24 = arith.constant 5.000000e-01 : f32
    %51 = vector.broadcast %cst_24 : f32 to vector<16x128xf32>
    %52 = arith.mulf %51, %50 : vector<16x128xf32>
    %53 = math.tanh %52 : vector<16x128xf32>
    %cst_25 = arith.constant 5.000000e-01 : f32
    %54 = vector.broadcast %cst_25 : f32 to vector<16x128xf32>
    %55 = arith.mulf %54, %53 : vector<16x128xf32>
    %cst_26 = arith.constant 5.000000e-01 : f32
    %56 = vector.broadcast %cst_26 : f32 to vector<16x128xf32>
    %57 = arith.addf %55, %56 : vector<16x128xf32>
    %58 = arith.mulf %47, %17 : vector<16x128xf32>
    %59 = arith.mulf %39, %49 : vector<16x128xf32>
    %60 = arith.addf %58, %59 : vector<16x128xf32>
    %61 = math.tanh %60 : vector<16x128xf32>
    %62 = arith.mulf %57, %61 : vector<16x128xf32>
    %63 = arith.index_cast %c0_i32 : i32 to index
    %c0_27 = arith.constant 0 : index
    %c0_28 = arith.constant 0 : index
    %64 = vector.load %arg2[%63, %c0_27, %c0_28] : memref<16x16x1xf32, #tpu.memory_space<vmem>>, vector<1x16x1xf32>
    %65 = vector.shape_cast %64 : vector<1x16x1xf32> to vector<16x1xf32>
    %66 = arith.index_cast %18 : i32 to index
    %c0_29 = arith.constant 0 : index
    %c0_30 = arith.constant 0 : index
    %67 = vector.load %arg2[%66, %c0_29, %c0_30] : memref<16x16x1xf32, #tpu.memory_space<vmem>>, vector<1x16x1xf32>
    %68 = vector.shape_cast %67 : vector<1x16x1xf32> to vector<16x1xf32>
    %69 = vector.shape_cast %13 : vector<1x128xi1> to vector<1x128xi1>
    %70 = vector.broadcast %69 : vector<1x128xi1> to vector<16x128xi1>
    %71 = vector.shape_cast %65 : vector<16x1xf32> to vector<16x1xf32>
    %72 = vector.broadcast %71 : vector<16x1xf32> to vector<16x128xf32>
    %73 = vector.shape_cast %68 : vector<16x1xf32> to vector<16x1xf32>
    %74 = vector.broadcast %73 : vector<16x1xf32> to vector<16x128xf32>
    %75 = arith.select %70, %72, %74 : vector<16x128xi1>, vector<16x128xf32>
    %76 = arith.mulf %75, %62 : vector<16x128xf32>
    %77 = arith.addf %17, %76 : vector<16x128xf32>
    %c1_i32 = arith.constant 1 : i32
    %c15_i32_31 = arith.constant 15 : i32
    %78 = arith.subi %c15_i32_31, %c1_i32 : i32
    %79 = arith.truncf %62 : vector<16x128xf32> to vector<16x128xbf16>
    %cst_32 = arith.constant dense<0.000000e+00> : vector<16x512xf32>
    %80 = tpu.matmul %79, %10, %cst_32 {dimension_numbers = #tpu.dot_dimension_numbers<[1], [0], [0], [1], [0, 0, 1, 1], [], []>} : vector<16x128xbf16>, vector<128x512xbf16>, vector<16x512xf32> -> vector<16x512xf32>
    %81 = arith.index_cast %c1_i32 : i32 to index
    %c0_33 = arith.constant 0 : index
    %c0_34 = arith.constant 0 : index
    %82 = vector.load %arg7[%81, %c0_33, %c0_34] : memref<16x16x512xbf16, #tpu.memory_space<vmem>>, vector<1x16x512xbf16>
    %83 = vector.shape_cast %82 : vector<1x16x512xbf16> to vector<16x512xbf16>
    %84 = arith.index_cast %78 : i32 to index
    %c0_35 = arith.constant 0 : index
    %c0_36 = arith.constant 0 : index
    %85 = vector.load %arg7[%84, %c0_35, %c0_36] : memref<16x16x512xbf16, #tpu.memory_space<vmem>>, vector<1x16x512xbf16>
    %86 = vector.shape_cast %85 : vector<1x16x512xbf16> to vector<16x512xbf16>
    %87 = vector.shape_cast %16 : vector<1x512xi1> to vector<1x512xi1>
    %88 = vector.broadcast %87 : vector<1x512xi1> to vector<16x512xi1>
    %89 = arith.select %88, %83, %86 : vector<16x512xi1>, vector<16x512xbf16>
    %90 = arith.extf %89 : vector<16x512xbf16> to vector<16x512xf32>
    %91 = arith.addf %90, %80 : vector<16x512xf32>
    %92 = vector.extract_strided_slice %91 {offsets = [0, 0], sizes = [16, 128], strides = [1, 1]} : vector<16x512xf32> to vector<16x128xf32>
    %cst_37 = arith.constant 5.000000e-01 : f32
    %93 = vector.broadcast %cst_37 : f32 to vector<16x128xf32>
    %94 = arith.mulf %93, %92 : vector<16x128xf32>
    %95 = math.tanh %94 : vector<16x128xf32>
    %cst_38 = arith.constant 5.000000e-01 : f32
    %96 = vector.broadcast %cst_38 : f32 to vector<16x128xf32>
    %97 = arith.mulf %96, %95 : vector<16x128xf32>
    %cst_39 = arith.constant 5.000000e-01 : f32
    %98 = vector.broadcast %cst_39 : f32 to vector<16x128xf32>
    %99 = arith.addf %97, %98 : vector<16x128xf32>
    %100 = vector.extract_strided_slice %91 {offsets = [0, 128], sizes = [16, 128], strides = [1, 1]} : vector<16x512xf32> to vector<16x128xf32>
    %cst_40 = arith.constant 5.000000e-01 : f32
    %101 = vector.broadcast %cst_40 : f32 to vector<16x128xf32>
    %102 = arith.mulf %101, %100 : vector<16x128xf32>
    %103 = math.tanh %102 : vector<16x128xf32>
    %cst_41 = arith.constant 5.000000e-01 : f32
    %104 = vector.broadcast %cst_41 : f32 to vector<16x128xf32>
    %105 = arith.mulf %104, %103 : vector<16x128xf32>
    %cst_42 = arith.constant 5.000000e-01 : f32
    %106 = vector.broadcast %cst_42 : f32 to vector<16x128xf32>
    %107 = arith.addf %105, %106 : vector<16x128xf32>
    %108 = vector.extract_strided_slice %91 {offsets = [0, 256], sizes = [16, 128], strides = [1, 1]} : vector<16x512xf32> to vector<16x128xf32>
    %109 = math.tanh %108 : vector<16x128xf32>
    %110 = vector.extract_strided_slice %91 {offsets = [0, 384], sizes = [16, 128], strides = [1, 1]} : vector<16x512xf32> to vector<16x128xf32>
    %cst_43 = arith.constant 5.000000e-01 : f32
    %111 = vector.broadcast %cst_43 : f32 to vector<16x128xf32>
    %112 = arith.mulf %111, %110 : vector<16x128xf32>
    %113 = math.tanh %112 : vector<16x128xf32>
    %cst_44 = arith.constant 5.000000e-01 : f32
    %114 = vector.broadcast %cst_44 : f32 to vector<16x128xf32>
    %115 = arith.mulf %114, %113 : vector<16x128xf32>
    %cst_45 = arith.constant 5.000000e-01 : f32
    %116 = vector.broadcast %cst_45 : f32 to vector<16x128xf32>
    %117 = arith.addf %115, %116 : vector<16x128xf32>
    %118 = arith.mulf %107, %60 : vector<16x128xf32>
    %119 = arith.mulf %99, %109 : vector<16x128xf32>
    %120 = arith.addf %118, %119 : vector<16x128xf32>
    %121 = math.tanh %120 : vector<16x128xf32>
    %122 = arith.mulf %117, %121 : vector<16x128xf32>
    %123 = arith.index_cast %c1_i32 : i32 to index
    %c0_46 = arith.constant 0 : index
    %c0_47 = arith.constant 0 : index
    %124 = vector.load %arg2[%123, %c0_46, %c0_47] : memref<16x16x1xf32, #tpu.memory_space<vmem>>, vector<1x16x1xf32>
    %125 = vector.shape_cast %124 : vector<1x16x1xf32> to vector<16x1xf32>
    %126 = arith.index_cast %78 : i32 to index
    %c0_48 = arith.constant 0 : index
    %c0_49 = arith.constant 0 : index
    %127 = vector.load %arg2[%126, %c0_48, %c0_49] : memref<16x16x1xf32, #tpu.memory_space<vmem>>, vector<1x16x1xf32>
    %128 = vector.shape_cast %127 : vector<1x16x1xf32> to vector<16x1xf32>
    %129 = vector.shape_cast %13 : vector<1x128xi1> to vector<1x128xi1>
    %130 = vector.broadcast %129 : vector<1x128xi1> to vector<16x128xi1>
    %131 = vector.shape_cast %125 : vector<16x1xf32> to vector<16x1xf32>
    %132 = vector.broadcast %131 : vector<16x1xf32> to vector<16x128xf32>
    %133 = vector.shape_cast %128 : vector<16x1xf32> to vector<16x1xf32>
    %134 = vector.broadcast %133 : vector<16x1xf32> to vector<16x128xf32>
    %135 = arith.select %130, %132, %134 : vector<16x128xi1>, vector<16x128xf32>
    %136 = arith.mulf %135, %122 : vector<16x128xf32>
    %137 = arith.addf %77, %136 : vector<16x128xf32>
    %c2_i32 = arith.constant 2 : i32
    %c15_i32_50 = arith.constant 15 : i32
    %138 = arith.subi %c15_i32_50, %c2_i32 : i32
    %139 = arith.truncf %122 : vector<16x128xf32> to vector<16x128xbf16>
    %cst_51 = arith.constant dense<0.000000e+00> : vector<16x512xf32>
    %140 = tpu.matmul %139, %10, %cst_51 {dimension_numbers = #tpu.dot_dimension_numbers<[1], [0], [0], [1], [0, 0, 1, 1], [], []>} : vector<16x128xbf16>, vector<128x512xbf16>, vector<16x512xf32> -> vector<16x512xf32>
    %141 = arith.index_cast %c2_i32 : i32 to index
    %c0_52 = arith.constant 0 : index
    %c0_53 = arith.constant 0 : index
    %142 = vector.load %arg7[%141, %c0_52, %c0_53] : memref<16x16x512xbf16, #tpu.memory_space<vmem>>, vector<1x16x512xbf16>
    %143 = vector.shape_cast %142 : vector<1x16x512xbf16> to vector<16x512xbf16>
    %144 = arith.index_cast %138 : i32 to index
    %c0_54 = arith.constant 0 : index
    %c0_55 = arith.constant 0 : index
    %145 = vector.load %arg7[%144, %c0_54, %c0_55] : memref<16x16x512xbf16, #tpu.memory_space<vmem>>, vector<1x16x512xbf16>
    %146 = vector.shape_cast %145 : vector<1x16x512xbf16> to vector<16x512xbf16>
    %147 = vector.shape_cast %16 : vector<1x512xi1> to vector<1x512xi1>
    %148 = vector.broadcast %147 : vector<1x512xi1> to vector<16x512xi1>
    %149 = arith.select %148, %143, %146 : vector<16x512xi1>, vector<16x512xbf16>
    %150 = arith.extf %149 : vector<16x512xbf16> to vector<16x512xf32>
    %151 = arith.addf %150, %140 : vector<16x512xf32>
    %152 = vector.extract_strided_slice %151 {offsets = [0, 0], sizes = [16, 128], strides = [1, 1]} : vector<16x512xf32> to vector<16x128xf32>
    %cst_56 = arith.constant 5.000000e-01 : f32
    %153 = vector.broadcast %cst_56 : f32 to vector<16x128xf32>
    %154 = arith.mulf %153, %152 : vector<16x128xf32>
    %155 = math.tanh %154 : vector<16x128xf32>
    %cst_57 = arith.constant 5.000000e-01 : f32
    %156 = vector.broadcast %cst_57 : f32 to vector<16x128xf32>
    %157 = arith.mulf %156, %155 : vector<16x128xf32>
    %cst_58 = arith.constant 5.000000e-01 : f32
    %158 = vector.broadcast %cst_58 : f32 to vector<16x128xf32>
    %159 = arith.addf %157, %158 : vector<16x128xf32>
    %160 = vector.extract_strided_slice %151 {offsets = [0, 128], sizes = [16, 128], strides = [1, 1]} : vector<16x512xf32> to vector<16x128xf32>
    %cst_59 = arith.constant 5.000000e-01 : f32
    %161 = vector.broadcast %cst_59 : f32 to vector<16x128xf32>
    %162 = arith.mulf %161, %160 : vector<16x128xf32>
    %163 = math.tanh %162 : vector<16x128xf32>
    %cst_60 = arith.constant 5.000000e-01 : f32
    %164 = vector.broadcast %cst_60 : f32 to vector<16x128xf32>
    %165 = arith.mulf %164, %163 : vector<16x128xf32>
    %cst_61 = arith.constant 5.000000e-01 : f32
    %166 = vector.broadcast %cst_61 : f32 to vector<16x128xf32>
    %167 = arith.addf %165, %166 : vector<16x128xf32>
    %168 = vector.extract_strided_slice %151 {offsets = [0, 256], sizes = [16, 128], strides = [1, 1]} : vector<16x512xf32> to vector<16x128xf32>
    %169 = math.tanh %168 : vector<16x128xf32>
    %170 = vector.extract_strided_slice %151 {offsets = [0, 384], sizes = [16, 128], strides = [1, 1]} : vector<16x512xf32> to vector<16x128xf32>
    %cst_62 = arith.constant 5.000000e-01 : f32
    %171 = vector.broadcast %cst_62 : f32 to vector<16x128xf32>
    %172 = arith.mulf %171, %170 : vector<16x128xf32>
    %173 = math.tanh %172 : vector<16x128xf32>
    %cst_63 = arith.constant 5.000000e-01 : f32
    %174 = vector.broadcast %cst_63 : f32 to vector<16x128xf32>
    %175 = arith.mulf %174, %173 : vector<16x128xf32>
    %cst_64 = arith.constant 5.000000e-01 : f32
    %176 = vector.broadcast %cst_64 : f32 to vector<16x128xf32>
    %177 = arith.addf %175, %176 : vector<16x128xf32>
    %178 = arith.mulf %167, %120 : vector<16x128xf32>
    %179 = arith.mulf %159, %169 : vector<16x128xf32>
    %180 = arith.addf %178, %179 : vector<16x128xf32>
    %181 = math.tanh %180 : vector<16x128xf32>
    %182 = arith.mulf %177, %181 : vector<16x128xf32>
    %183 = arith.index_cast %c2_i32 : i32 to index
    %c0_65 = arith.constant 0 : index
    %c0_66 = arith.constant 0 : index
    %184 = vector.load %arg2[%183, %c0_65, %c0_66] : memref<16x16x1xf32, #tpu.memory_space<vmem>>, vector<1x16x1xf32>
    %185 = vector.shape_cast %184 : vector<1x16x1xf32> to vector<16x1xf32>
    %186 = arith.index_cast %138 : i32 to index
    %c0_67 = arith.constant 0 : index
    %c0_68 = arith.constant 0 : index
    %187 = vector.load %arg2[%186, %c0_67, %c0_68] : memref<16x16x1xf32, #tpu.memory_space<vmem>>, vector<1x16x1xf32>
    %188 = vector.shape_cast %187 : vector<1x16x1xf32> to vector<16x1xf32>
    %189 = vector.shape_cast %13 : vector<1x128xi1> to vector<1x128xi1>
    %190 = vector.broadcast %189 : vector<1x128xi1> to vector<16x128xi1>
    %191 = vector.shape_cast %185 : vector<16x1xf32> to vector<16x1xf32>
    %192 = vector.broadcast %191 : vector<16x1xf32> to vector<16x128xf32>
    %193 = vector.shape_cast %188 : vector<16x1xf32> to vector<16x1xf32>
    %194 = vector.broadcast %193 : vector<16x1xf32> to vector<16x128xf32>
    %195 = arith.select %190, %192, %194 : vector<16x128xi1>, vector<16x128xf32>
    %196 = arith.mulf %195, %182 : vector<16x128xf32>
    %197 = arith.addf %137, %196 : vector<16x128xf32>
    %c3_i32 = arith.constant 3 : i32
    %c15_i32_69 = arith.constant 15 : i32
    %198 = arith.subi %c15_i32_69, %c3_i32 : i32
    %199 = arith.truncf %182 : vector<16x128xf32> to vector<16x128xbf16>
    %cst_70 = arith.constant dense<0.000000e+00> : vector<16x512xf32>
    %200 = tpu.matmul %199, %10, %cst_70 {dimension_numbers = #tpu.dot_dimension_numbers<[1], [0], [0], [1], [0, 0, 1, 1], [], []>} : vector<16x128xbf16>, vector<128x512xbf16>, vector<16x512xf32> -> vector<16x512xf32>
    %201 = arith.index_cast %c3_i32 : i32 to index
    %c0_71 = arith.constant 0 : index
    %c0_72 = arith.constant 0 : index
    %202 = vector.load %arg7[%201, %c0_71, %c0_72] : memref<16x16x512xbf16, #tpu.memory_space<vmem>>, vector<1x16x512xbf16>
    %203 = vector.shape_cast %202 : vector<1x16x512xbf16> to vector<16x512xbf16>
    %204 = arith.index_cast %198 : i32 to index
    %c0_73 = arith.constant 0 : index
    %c0_74 = arith.constant 0 : index
    %205 = vector.load %arg7[%204, %c0_73, %c0_74] : memref<16x16x512xbf16, #tpu.memory_space<vmem>>, vector<1x16x512xbf16>
    %206 = vector.shape_cast %205 : vector<1x16x512xbf16> to vector<16x512xbf16>
    %207 = vector.shape_cast %16 : vector<1x512xi1> to vector<1x512xi1>
    %208 = vector.broadcast %207 : vector<1x512xi1> to vector<16x512xi1>
    %209 = arith.select %208, %203, %206 : vector<16x512xi1>, vector<16x512xbf16>
    %210 = arith.extf %209 : vector<16x512xbf16> to vector<16x512xf32>
    %211 = arith.addf %210, %200 : vector<16x512xf32>
    %212 = vector.extract_strided_slice %211 {offsets = [0, 0], sizes = [16, 128], strides = [1, 1]} : vector<16x512xf32> to vector<16x128xf32>
    %cst_75 = arith.constant 5.000000e-01 : f32
    %213 = vector.broadcast %cst_75 : f32 to vector<16x128xf32>
    %214 = arith.mulf %213, %212 : vector<16x128xf32>
    %215 = math.tanh %214 : vector<16x128xf32>
    %cst_76 = arith.constant 5.000000e-01 : f32
    %216 = vector.broadcast %cst_76 : f32 to vector<16x128xf32>
    %217 = arith.mulf %216, %215 : vector<16x128xf32>
    %cst_77 = arith.constant 5.000000e-01 : f32
    %218 = vector.broadcast %cst_77 : f32 to vector<16x128xf32>
    %219 = arith.addf %217, %218 : vector<16x128xf32>
    %220 = vector.extract_strided_slice %211 {offsets = [0, 128], sizes = [16, 128], strides = [1, 1]} : vector<16x512xf32> to vector<16x128xf32>
    %cst_78 = arith.constant 5.000000e-01 : f32
    %221 = vector.broadcast %cst_78 : f32 to vector<16x128xf32>
    %222 = arith.mulf %221, %220 : vector<16x128xf32>
    %223 = math.tanh %222 : vector<16x128xf32>
    %cst_79 = arith.constant 5.000000e-01 : f32
    %224 = vector.broadcast %cst_79 : f32 to vector<16x128xf32>
    %225 = arith.mulf %224, %223 : vector<16x128xf32>
    %cst_80 = arith.constant 5.000000e-01 : f32
    %226 = vector.broadcast %cst_80 : f32 to vector<16x128xf32>
    %227 = arith.addf %225, %226 : vector<16x128xf32>
    %228 = vector.extract_strided_slice %211 {offsets = [0, 256], sizes = [16, 128], strides = [1, 1]} : vector<16x512xf32> to vector<16x128xf32>
    %229 = math.tanh %228 : vector<16x128xf32>
    %230 = vector.extract_strided_slice %211 {offsets = [0, 384], sizes = [16, 128], strides = [1, 1]} : vector<16x512xf32> to vector<16x128xf32>
    %cst_81 = arith.constant 5.000000e-01 : f32
    %231 = vector.broadcast %cst_81 : f32 to vector<16x128xf32>
    %232 = arith.mulf %231, %230 : vector<16x128xf32>
    %233 = math.tanh %232 : vector<16x128xf32>
    %cst_82 = arith.constant 5.000000e-01 : f32
    %234 = vector.broadcast %cst_82 : f32 to vector<16x128xf32>
    %235 = arith.mulf %234, %233 : vector<16x128xf32>
    %cst_83 = arith.constant 5.000000e-01 : f32
    %236 = vector.broadcast %cst_83 : f32 to vector<16x128xf32>
    %237 = arith.addf %235, %236 : vector<16x128xf32>
    %238 = arith.mulf %227, %180 : vector<16x128xf32>
    %239 = arith.mulf %219, %229 : vector<16x128xf32>
    %240 = arith.addf %238, %239 : vector<16x128xf32>
    %241 = math.tanh %240 : vector<16x128xf32>
    %242 = arith.mulf %237, %241 : vector<16x128xf32>
    %243 = arith.index_cast %c3_i32 : i32 to index
    %c0_84 = arith.constant 0 : index
    %c0_85 = arith.constant 0 : index
    %244 = vector.load %arg2[%243, %c0_84, %c0_85] : memref<16x16x1xf32, #tpu.memory_space<vmem>>, vector<1x16x1xf32>
    %245 = vector.shape_cast %244 : vector<1x16x1xf32> to vector<16x1xf32>
    %246 = arith.index_cast %198 : i32 to index
    %c0_86 = arith.constant 0 : index
    %c0_87 = arith.constant 0 : index
    %247 = vector.load %arg2[%246, %c0_86, %c0_87] : memref<16x16x1xf32, #tpu.memory_space<vmem>>, vector<1x16x1xf32>
    %248 = vector.shape_cast %247 : vector<1x16x1xf32> to vector<16x1xf32>
    %249 = vector.shape_cast %13 : vector<1x128xi1> to vector<1x128xi1>
    %250 = vector.broadcast %249 : vector<1x128xi1> to vector<16x128xi1>
    %251 = vector.shape_cast %245 : vector<16x1xf32> to vector<16x1xf32>
    %252 = vector.broadcast %251 : vector<16x1xf32> to vector<16x128xf32>
    %253 = vector.shape_cast %248 : vector<16x1xf32> to vector<16x1xf32>
    %254 = vector.broadcast %253 : vector<16x1xf32> to vector<16x128xf32>
    %255 = arith.select %250, %252, %254 : vector<16x128xi1>, vector<16x128xf32>
    %256 = arith.mulf %255, %242 : vector<16x128xf32>
    %257 = arith.addf %197, %256 : vector<16x128xf32>
    %c4_i32 = arith.constant 4 : i32
    %c15_i32_88 = arith.constant 15 : i32
    %258 = arith.subi %c15_i32_88, %c4_i32 : i32
    %259 = arith.truncf %242 : vector<16x128xf32> to vector<16x128xbf16>
    %cst_89 = arith.constant dense<0.000000e+00> : vector<16x512xf32>
    %260 = tpu.matmul %259, %10, %cst_89 {dimension_numbers = #tpu.dot_dimension_numbers<[1], [0], [0], [1], [0, 0, 1, 1], [], []>} : vector<16x128xbf16>, vector<128x512xbf16>, vector<16x512xf32> -> vector<16x512xf32>
    %261 = arith.index_cast %c4_i32 : i32 to index
    %c0_90 = arith.constant 0 : index
    %c0_91 = arith.constant 0 : index
    %262 = vector.load %arg7[%261, %c0_90, %c0_91] : memref<16x16x512xbf16, #tpu.memory_space<vmem>>, vector<1x16x512xbf16>
    %263 = vector.shape_cast %262 : vector<1x16x512xbf16> to vector<16x512xbf16>
    %264 = arith.index_cast %258 : i32 to index
    %c0_92 = arith.constant 0 : index
    %c0_93 = arith.constant 0 : index
    %265 = vector.load %arg7[%264, %c0_92, %c0_93] : memref<16x16x512xbf16, #tpu.memory_space<vmem>>, vector<1x16x512xbf16>
    %266 = vector.shape_cast %265 : vector<1x16x512xbf16> to vector<16x512xbf16>
    %267 = vector.shape_cast %16 : vector<1x512xi1> to vector<1x512xi1>
    %268 = vector.broadcast %267 : vector<1x512xi1> to vector<16x512xi1>
    %269 = arith.select %268, %263, %266 : vector<16x512xi1>, vector<16x512xbf16>
    %270 = arith.extf %269 : vector<16x512xbf16> to vector<16x512xf32>
    %271 = arith.addf %270, %260 : vector<16x512xf32>
    %272 = vector.extract_strided_slice %271 {offsets = [0, 0], sizes = [16, 128], strides = [1, 1]} : vector<16x512xf32> to vector<16x128xf32>
    %cst_94 = arith.constant 5.000000e-01 : f32
    %273 = vector.broadcast %cst_94 : f32 to vector<16x128xf32>
    %274 = arith.mulf %273, %272 : vector<16x128xf32>
    %275 = math.tanh %274 : vector<16x128xf32>
    %cst_95 = arith.constant 5.000000e-01 : f32
    %276 = vector.broadcast %cst_95 : f32 to vector<16x128xf32>
    %277 = arith.mulf %276, %275 : vector<16x128xf32>
    %cst_96 = arith.constant 5.000000e-01 : f32
    %278 = vector.broadcast %cst_96 : f32 to vector<16x128xf32>
    %279 = arith.addf %277, %278 : vector<16x128xf32>
    %280 = vector.extract_strided_slice %271 {offsets = [0, 128], sizes = [16, 128], strides = [1, 1]} : vector<16x512xf32> to vector<16x128xf32>
    %cst_97 = arith.constant 5.000000e-01 : f32
    %281 = vector.broadcast %cst_97 : f32 to vector<16x128xf32>
    %282 = arith.mulf %281, %280 : vector<16x128xf32>
    %283 = math.tanh %282 : vector<16x128xf32>
    %cst_98 = arith.constant 5.000000e-01 : f32
    %284 = vector.broadcast %cst_98 : f32 to vector<16x128xf32>
    %285 = arith.mulf %284, %283 : vector<16x128xf32>
    %cst_99 = arith.constant 5.000000e-01 : f32
    %286 = vector.broadcast %cst_99 : f32 to vector<16x128xf32>
    %287 = arith.addf %285, %286 : vector<16x128xf32>
    %288 = vector.extract_strided_slice %271 {offsets = [0, 256], sizes = [16, 128], strides = [1, 1]} : vector<16x512xf32> to vector<16x128xf32>
    %289 = math.tanh %288 : vector<16x128xf32>
    %290 = vector.extract_strided_slice %271 {offsets = [0, 384], sizes = [16, 128], strides = [1, 1]} : vector<16x512xf32> to vector<16x128xf32>
    %cst_100 = arith.constant 5.000000e-01 : f32
    %291 = vector.broadcast %cst_100 : f32 to vector<16x128xf32>
    %292 = arith.mulf %291, %290 : vector<16x128xf32>
    %293 = math.tanh %292 : vector<16x128xf32>
    %cst_101 = arith.constant 5.000000e-01 : f32
    %294 = vector.broadcast %cst_101 : f32 to vector<16x128xf32>
    %295 = arith.mulf %294, %293 : vector<16x128xf32>
    %cst_102 = arith.constant 5.000000e-01 : f32
    %296 = vector.broadcast %cst_102 : f32 to vector<16x128xf32>
    %297 = arith.addf %295, %296 : vector<16x128xf32>
    %298 = arith.mulf %287, %240 : vector<16x128xf32>
    %299 = arith.mulf %279, %289 : vector<16x128xf32>
    %300 = arith.addf %298, %299 : vector<16x128xf32>
    %301 = math.tanh %300 : vector<16x128xf32>
    %302 = arith.mulf %297, %301 : vector<16x128xf32>
    %303 = arith.index_cast %c4_i32 : i32 to index
    %c0_103 = arith.constant 0 : index
    %c0_104 = arith.constant 0 : index
    %304 = vector.load %arg2[%303, %c0_103, %c0_104] : memref<16x16x1xf32, #tpu.memory_space<vmem>>, vector<1x16x1xf32>
    %305 = vector.shape_cast %304 : vector<1x16x1xf32> to vector<16x1xf32>
    %306 = arith.index_cast %258 : i32 to index
    %c0_105 = arith.constant 0 : index
    %c0_106 = arith.constant 0 : index
    %307 = vector.load %arg2[%306, %c0_105, %c0_106] : memref<16x16x1xf32, #tpu.memory_space<vmem>>, vector<1x16x1xf32>
    %308 = vector.shape_cast %307 : vector<1x16x1xf32> to vector<16x1xf32>
    %309 = vector.shape_cast %13 : vector<1x128xi1> to vector<1x128xi1>
    %310 = vector.broadcast %309 : vector<1x128xi1> to vector<16x128xi1>
    %311 = vector.shape_cast %305 : vector<16x1xf32> to vector<16x1xf32>
    %312 = vector.broadcast %311 : vector<16x1xf32> to vector<16x128xf32>
    %313 = vector.shape_cast %308 : vector<16x1xf32> to vector<16x1xf32>
    %314 = vector.broadcast %313 : vector<16x1xf32> to vector<16x128xf32>
    %315 = arith.select %310, %312, %314 : vector<16x128xi1>, vector<16x128xf32>
    %316 = arith.mulf %315, %302 : vector<16x128xf32>
    %317 = arith.addf %257, %316 : vector<16x128xf32>
    %c5_i32 = arith.constant 5 : i32
    %c15_i32_107 = arith.constant 15 : i32
    %318 = arith.subi %c15_i32_107, %c5_i32 : i32
    %319 = arith.truncf %302 : vector<16x128xf32> to vector<16x128xbf16>
    %cst_108 = arith.constant dense<0.000000e+00> : vector<16x512xf32>
    %320 = tpu.matmul %319, %10, %cst_108 {dimension_numbers = #tpu.dot_dimension_numbers<[1], [0], [0], [1], [0, 0, 1, 1], [], []>} : vector<16x128xbf16>, vector<128x512xbf16>, vector<16x512xf32> -> vector<16x512xf32>
    %321 = arith.index_cast %c5_i32 : i32 to index
    %c0_109 = arith.constant 0 : index
    %c0_110 = arith.constant 0 : index
    %322 = vector.load %arg7[%321, %c0_109, %c0_110] : memref<16x16x512xbf16, #tpu.memory_space<vmem>>, vector<1x16x512xbf16>
    %323 = vector.shape_cast %322 : vector<1x16x512xbf16> to vector<16x512xbf16>
    %324 = arith.index_cast %318 : i32 to index
    %c0_111 = arith.constant 0 : index
    %c0_112 = arith.constant 0 : index
    %325 = vector.load %arg7[%324, %c0_111, %c0_112] : memref<16x16x512xbf16, #tpu.memory_space<vmem>>, vector<1x16x512xbf16>
    %326 = vector.shape_cast %325 : vector<1x16x512xbf16> to vector<16x512xbf16>
    %327 = vector.shape_cast %16 : vector<1x512xi1> to vector<1x512xi1>
    %328 = vector.broadcast %327 : vector<1x512xi1> to vector<16x512xi1>
    %329 = arith.select %328, %323, %326 : vector<16x512xi1>, vector<16x512xbf16>
    %330 = arith.extf %329 : vector<16x512xbf16> to vector<16x512xf32>
    %331 = arith.addf %330, %320 : vector<16x512xf32>
    %332 = vector.extract_strided_slice %331 {offsets = [0, 0], sizes = [16, 128], strides = [1, 1]} : vector<16x512xf32> to vector<16x128xf32>
    %cst_113 = arith.constant 5.000000e-01 : f32
    %333 = vector.broadcast %cst_113 : f32 to vector<16x128xf32>
    %334 = arith.mulf %333, %332 : vector<16x128xf32>
    %335 = math.tanh %334 : vector<16x128xf32>
    %cst_114 = arith.constant 5.000000e-01 : f32
    %336 = vector.broadcast %cst_114 : f32 to vector<16x128xf32>
    %337 = arith.mulf %336, %335 : vector<16x128xf32>
    %cst_115 = arith.constant 5.000000e-01 : f32
    %338 = vector.broadcast %cst_115 : f32 to vector<16x128xf32>
    %339 = arith.addf %337, %338 : vector<16x128xf32>
    %340 = vector.extract_strided_slice %331 {offsets = [0, 128], sizes = [16, 128], strides = [1, 1]} : vector<16x512xf32> to vector<16x128xf32>
    %cst_116 = arith.constant 5.000000e-01 : f32
    %341 = vector.broadcast %cst_116 : f32 to vector<16x128xf32>
    %342 = arith.mulf %341, %340 : vector<16x128xf32>
    %343 = math.tanh %342 : vector<16x128xf32>
    %cst_117 = arith.constant 5.000000e-01 : f32
    %344 = vector.broadcast %cst_117 : f32 to vector<16x128xf32>
    %345 = arith.mulf %344, %343 : vector<16x128xf32>
    %cst_118 = arith.constant 5.000000e-01 : f32
    %346 = vector.broadcast %cst_118 : f32 to vector<16x128xf32>
    %347 = arith.addf %345, %346 : vector<16x128xf32>
    %348 = vector.extract_strided_slice %331 {offsets = [0, 256], sizes = [16, 128], strides = [1, 1]} : vector<16x512xf32> to vector<16x128xf32>
    %349 = math.tanh %348 : vector<16x128xf32>
    %350 = vector.extract_strided_slice %331 {offsets = [0, 384], sizes = [16, 128], strides = [1, 1]} : vector<16x512xf32> to vector<16x128xf32>
    %cst_119 = arith.constant 5.000000e-01 : f32
    %351 = vector.broadcast %cst_119 : f32 to vector<16x128xf32>
    %352 = arith.mulf %351, %350 : vector<16x128xf32>
    %353 = math.tanh %352 : vector<16x128xf32>
    %cst_120 = arith.constant 5.000000e-01 : f32
    %354 = vector.broadcast %cst_120 : f32 to vector<16x128xf32>
    %355 = arith.mulf %354, %353 : vector<16x128xf32>
    %cst_121 = arith.constant 5.000000e-01 : f32
    %356 = vector.broadcast %cst_121 : f32 to vector<16x128xf32>
    %357 = arith.addf %355, %356 : vector<16x128xf32>
    %358 = arith.mulf %347, %300 : vector<16x128xf32>
    %359 = arith.mulf %339, %349 : vector<16x128xf32>
    %360 = arith.addf %358, %359 : vector<16x128xf32>
    %361 = math.tanh %360 : vector<16x128xf32>
    %362 = arith.mulf %357, %361 : vector<16x128xf32>
    %363 = arith.index_cast %c5_i32 : i32 to index
    %c0_122 = arith.constant 0 : index
    %c0_123 = arith.constant 0 : index
    %364 = vector.load %arg2[%363, %c0_122, %c0_123] : memref<16x16x1xf32, #tpu.memory_space<vmem>>, vector<1x16x1xf32>
    %365 = vector.shape_cast %364 : vector<1x16x1xf32> to vector<16x1xf32>
    %366 = arith.index_cast %318 : i32 to index
    %c0_124 = arith.constant 0 : index
    %c0_125 = arith.constant 0 : index
    %367 = vector.load %arg2[%366, %c0_124, %c0_125] : memref<16x16x1xf32, #tpu.memory_space<vmem>>, vector<1x16x1xf32>
    %368 = vector.shape_cast %367 : vector<1x16x1xf32> to vector<16x1xf32>
    %369 = vector.shape_cast %13 : vector<1x128xi1> to vector<1x128xi1>
    %370 = vector.broadcast %369 : vector<1x128xi1> to vector<16x128xi1>
    %371 = vector.shape_cast %365 : vector<16x1xf32> to vector<16x1xf32>
    %372 = vector.broadcast %371 : vector<16x1xf32> to vector<16x128xf32>
    %373 = vector.shape_cast %368 : vector<16x1xf32> to vector<16x1xf32>
    %374 = vector.broadcast %373 : vector<16x1xf32> to vector<16x128xf32>
    %375 = arith.select %370, %372, %374 : vector<16x128xi1>, vector<16x128xf32>
    %376 = arith.mulf %375, %362 : vector<16x128xf32>
    %377 = arith.addf %317, %376 : vector<16x128xf32>
    %c6_i32 = arith.constant 6 : i32
    %c15_i32_126 = arith.constant 15 : i32
    %378 = arith.subi %c15_i32_126, %c6_i32 : i32
    %379 = arith.truncf %362 : vector<16x128xf32> to vector<16x128xbf16>
    %cst_127 = arith.constant dense<0.000000e+00> : vector<16x512xf32>
    %380 = tpu.matmul %379, %10, %cst_127 {dimension_numbers = #tpu.dot_dimension_numbers<[1], [0], [0], [1], [0, 0, 1, 1], [], []>} : vector<16x128xbf16>, vector<128x512xbf16>, vector<16x512xf32> -> vector<16x512xf32>
    %381 = arith.index_cast %c6_i32 : i32 to index
    %c0_128 = arith.constant 0 : index
    %c0_129 = arith.constant 0 : index
    %382 = vector.load %arg7[%381, %c0_128, %c0_129] : memref<16x16x512xbf16, #tpu.memory_space<vmem>>, vector<1x16x512xbf16>
    %383 = vector.shape_cast %382 : vector<1x16x512xbf16> to vector<16x512xbf16>
    %384 = arith.index_cast %378 : i32 to index
    %c0_130 = arith.constant 0 : index
    %c0_131 = arith.constant 0 : index
    %385 = vector.load %arg7[%384, %c0_130, %c0_131] : memref<16x16x512xbf16, #tpu.memory_space<vmem>>, vector<1x16x512xbf16>
    %386 = vector.shape_cast %385 : vector<1x16x512xbf16> to vector<16x512xbf16>
    %387 = vector.shape_cast %16 : vector<1x512xi1> to vector<1x512xi1>
    %388 = vector.broadcast %387 : vector<1x512xi1> to vector<16x512xi1>
    %389 = arith.select %388, %383, %386 : vector<16x512xi1>, vector<16x512xbf16>
    %390 = arith.extf %389 : vector<16x512xbf16> to vector<16x512xf32>
    %391 = arith.addf %390, %380 : vector<16x512xf32>
    %392 = vector.extract_strided_slice %391 {offsets = [0, 0], sizes = [16, 128], strides = [1, 1]} : vector<16x512xf32> to vector<16x128xf32>
    %cst_132 = arith.constant 5.000000e-01 : f32
    %393 = vector.broadcast %cst_132 : f32 to vector<16x128xf32>
    %394 = arith.mulf %393, %392 : vector<16x128xf32>
    %395 = math.tanh %394 : vector<16x128xf32>
    %cst_133 = arith.constant 5.000000e-01 : f32
    %396 = vector.broadcast %cst_133 : f32 to vector<16x128xf32>
    %397 = arith.mulf %396, %395 : vector<16x128xf32>
    %cst_134 = arith.constant 5.000000e-01 : f32
    %398 = vector.broadcast %cst_134 : f32 to vector<16x128xf32>
    %399 = arith.addf %397, %398 : vector<16x128xf32>
    %400 = vector.extract_strided_slice %391 {offsets = [0, 128], sizes = [16, 128], strides = [1, 1]} : vector<16x512xf32> to vector<16x128xf32>
    %cst_135 = arith.constant 5.000000e-01 : f32
    %401 = vector.broadcast %cst_135 : f32 to vector<16x128xf32>
    %402 = arith.mulf %401, %400 : vector<16x128xf32>
    %403 = math.tanh %402 : vector<16x128xf32>
    %cst_136 = arith.constant 5.000000e-01 : f32
    %404 = vector.broadcast %cst_136 : f32 to vector<16x128xf32>
    %405 = arith.mulf %404, %403 : vector<16x128xf32>
    %cst_137 = arith.constant 5.000000e-01 : f32
    %406 = vector.broadcast %cst_137 : f32 to vector<16x128xf32>
    %407 = arith.addf %405, %406 : vector<16x128xf32>
    %408 = vector.extract_strided_slice %391 {offsets = [0, 256], sizes = [16, 128], strides = [1, 1]} : vector<16x512xf32> to vector<16x128xf32>
    %409 = math.tanh %408 : vector<16x128xf32>
    %410 = vector.extract_strided_slice %391 {offsets = [0, 384], sizes = [16, 128], strides = [1, 1]} : vector<16x512xf32> to vector<16x128xf32>
    %cst_138 = arith.constant 5.000000e-01 : f32
    %411 = vector.broadcast %cst_138 : f32 to vector<16x128xf32>
    %412 = arith.mulf %411, %410 : vector<16x128xf32>
    %413 = math.tanh %412 : vector<16x128xf32>
    %cst_139 = arith.constant 5.000000e-01 : f32
    %414 = vector.broadcast %cst_139 : f32 to vector<16x128xf32>
    %415 = arith.mulf %414, %413 : vector<16x128xf32>
    %cst_140 = arith.constant 5.000000e-01 : f32
    %416 = vector.broadcast %cst_140 : f32 to vector<16x128xf32>
    %417 = arith.addf %415, %416 : vector<16x128xf32>
    %418 = arith.mulf %407, %360 : vector<16x128xf32>
    %419 = arith.mulf %399, %409 : vector<16x128xf32>
    %420 = arith.addf %418, %419 : vector<16x128xf32>
    %421 = math.tanh %420 : vector<16x128xf32>
    %422 = arith.mulf %417, %421 : vector<16x128xf32>
    %423 = arith.index_cast %c6_i32 : i32 to index
    %c0_141 = arith.constant 0 : index
    %c0_142 = arith.constant 0 : index
    %424 = vector.load %arg2[%423, %c0_141, %c0_142] : memref<16x16x1xf32, #tpu.memory_space<vmem>>, vector<1x16x1xf32>
    %425 = vector.shape_cast %424 : vector<1x16x1xf32> to vector<16x1xf32>
    %426 = arith.index_cast %378 : i32 to index
    %c0_143 = arith.constant 0 : index
    %c0_144 = arith.constant 0 : index
    %427 = vector.load %arg2[%426, %c0_143, %c0_144] : memref<16x16x1xf32, #tpu.memory_space<vmem>>, vector<1x16x1xf32>
    %428 = vector.shape_cast %427 : vector<1x16x1xf32> to vector<16x1xf32>
    %429 = vector.shape_cast %13 : vector<1x128xi1> to vector<1x128xi1>
    %430 = vector.broadcast %429 : vector<1x128xi1> to vector<16x128xi1>
    %431 = vector.shape_cast %425 : vector<16x1xf32> to vector<16x1xf32>
    %432 = vector.broadcast %431 : vector<16x1xf32> to vector<16x128xf32>
    %433 = vector.shape_cast %428 : vector<16x1xf32> to vector<16x1xf32>
    %434 = vector.broadcast %433 : vector<16x1xf32> to vector<16x128xf32>
    %435 = arith.select %430, %432, %434 : vector<16x128xi1>, vector<16x128xf32>
    %436 = arith.mulf %435, %422 : vector<16x128xf32>
    %437 = arith.addf %377, %436 : vector<16x128xf32>
    %c7_i32 = arith.constant 7 : i32
    %c15_i32_145 = arith.constant 15 : i32
    %438 = arith.subi %c15_i32_145, %c7_i32 : i32
    %439 = arith.truncf %422 : vector<16x128xf32> to vector<16x128xbf16>
    %cst_146 = arith.constant dense<0.000000e+00> : vector<16x512xf32>
    %440 = tpu.matmul %439, %10, %cst_146 {dimension_numbers = #tpu.dot_dimension_numbers<[1], [0], [0], [1], [0, 0, 1, 1], [], []>} : vector<16x128xbf16>, vector<128x512xbf16>, vector<16x512xf32> -> vector<16x512xf32>
    %441 = arith.index_cast %c7_i32 : i32 to index
    %c0_147 = arith.constant 0 : index
    %c0_148 = arith.constant 0 : index
    %442 = vector.load %arg7[%441, %c0_147, %c0_148] : memref<16x16x512xbf16, #tpu.memory_space<vmem>>, vector<1x16x512xbf16>
    %443 = vector.shape_cast %442 : vector<1x16x512xbf16> to vector<16x512xbf16>
    %444 = arith.index_cast %438 : i32 to index
    %c0_149 = arith.constant 0 : index
    %c0_150 = arith.constant 0 : index
    %445 = vector.load %arg7[%444, %c0_149, %c0_150] : memref<16x16x512xbf16, #tpu.memory_space<vmem>>, vector<1x16x512xbf16>
    %446 = vector.shape_cast %445 : vector<1x16x512xbf16> to vector<16x512xbf16>
    %447 = vector.shape_cast %16 : vector<1x512xi1> to vector<1x512xi1>
    %448 = vector.broadcast %447 : vector<1x512xi1> to vector<16x512xi1>
    %449 = arith.select %448, %443, %446 : vector<16x512xi1>, vector<16x512xbf16>
    %450 = arith.extf %449 : vector<16x512xbf16> to vector<16x512xf32>
    %451 = arith.addf %450, %440 : vector<16x512xf32>
    %452 = vector.extract_strided_slice %451 {offsets = [0, 0], sizes = [16, 128], strides = [1, 1]} : vector<16x512xf32> to vector<16x128xf32>
    %cst_151 = arith.constant 5.000000e-01 : f32
    %453 = vector.broadcast %cst_151 : f32 to vector<16x128xf32>
    %454 = arith.mulf %453, %452 : vector<16x128xf32>
    %455 = math.tanh %454 : vector<16x128xf32>
    %cst_152 = arith.constant 5.000000e-01 : f32
    %456 = vector.broadcast %cst_152 : f32 to vector<16x128xf32>
    %457 = arith.mulf %456, %455 : vector<16x128xf32>
    %cst_153 = arith.constant 5.000000e-01 : f32
    %458 = vector.broadcast %cst_153 : f32 to vector<16x128xf32>
    %459 = arith.addf %457, %458 : vector<16x128xf32>
    %460 = vector.extract_strided_slice %451 {offsets = [0, 128], sizes = [16, 128], strides = [1, 1]} : vector<16x512xf32> to vector<16x128xf32>
    %cst_154 = arith.constant 5.000000e-01 : f32
    %461 = vector.broadcast %cst_154 : f32 to vector<16x128xf32>
    %462 = arith.mulf %461, %460 : vector<16x128xf32>
    %463 = math.tanh %462 : vector<16x128xf32>
    %cst_155 = arith.constant 5.000000e-01 : f32
    %464 = vector.broadcast %cst_155 : f32 to vector<16x128xf32>
    %465 = arith.mulf %464, %463 : vector<16x128xf32>
    %cst_156 = arith.constant 5.000000e-01 : f32
    %466 = vector.broadcast %cst_156 : f32 to vector<16x128xf32>
    %467 = arith.addf %465, %466 : vector<16x128xf32>
    %468 = vector.extract_strided_slice %451 {offsets = [0, 256], sizes = [16, 128], strides = [1, 1]} : vector<16x512xf32> to vector<16x128xf32>
    %469 = math.tanh %468 : vector<16x128xf32>
    %470 = vector.extract_strided_slice %451 {offsets = [0, 384], sizes = [16, 128], strides = [1, 1]} : vector<16x512xf32> to vector<16x128xf32>
    %cst_157 = arith.constant 5.000000e-01 : f32
    %471 = vector.broadcast %cst_157 : f32 to vector<16x128xf32>
    %472 = arith.mulf %471, %470 : vector<16x128xf32>
    %473 = math.tanh %472 : vector<16x128xf32>
    %cst_158 = arith.constant 5.000000e-01 : f32
    %474 = vector.broadcast %cst_158 : f32 to vector<16x128xf32>
    %475 = arith.mulf %474, %473 : vector<16x128xf32>
    %cst_159 = arith.constant 5.000000e-01 : f32
    %476 = vector.broadcast %cst_159 : f32 to vector<16x128xf32>
    %477 = arith.addf %475, %476 : vector<16x128xf32>
    %478 = arith.mulf %467, %420 : vector<16x128xf32>
    %479 = arith.mulf %459, %469 : vector<16x128xf32>
    %480 = arith.addf %478, %479 : vector<16x128xf32>
    %481 = math.tanh %480 : vector<16x128xf32>
    %482 = arith.mulf %477, %481 : vector<16x128xf32>
    %483 = arith.index_cast %c7_i32 : i32 to index
    %c0_160 = arith.constant 0 : index
    %c0_161 = arith.constant 0 : index
    %484 = vector.load %arg2[%483, %c0_160, %c0_161] : memref<16x16x1xf32, #tpu.memory_space<vmem>>, vector<1x16x1xf32>
    %485 = vector.shape_cast %484 : vector<1x16x1xf32> to vector<16x1xf32>
    %486 = arith.index_cast %438 : i32 to index
    %c0_162 = arith.constant 0 : index
    %c0_163 = arith.constant 0 : index
    %487 = vector.load %arg2[%486, %c0_162, %c0_163] : memref<16x16x1xf32, #tpu.memory_space<vmem>>, vector<1x16x1xf32>
    %488 = vector.shape_cast %487 : vector<1x16x1xf32> to vector<16x1xf32>
    %489 = vector.shape_cast %13 : vector<1x128xi1> to vector<1x128xi1>
    %490 = vector.broadcast %489 : vector<1x128xi1> to vector<16x128xi1>
    %491 = vector.shape_cast %485 : vector<16x1xf32> to vector<16x1xf32>
    %492 = vector.broadcast %491 : vector<16x1xf32> to vector<16x128xf32>
    %493 = vector.shape_cast %488 : vector<16x1xf32> to vector<16x1xf32>
    %494 = vector.broadcast %493 : vector<16x1xf32> to vector<16x128xf32>
    %495 = arith.select %490, %492, %494 : vector<16x128xi1>, vector<16x128xf32>
    %496 = arith.mulf %495, %482 : vector<16x128xf32>
    %497 = arith.addf %437, %496 : vector<16x128xf32>
    %c8_i32 = arith.constant 8 : i32
    %c15_i32_164 = arith.constant 15 : i32
    %498 = arith.subi %c15_i32_164, %c8_i32 : i32
    %499 = arith.truncf %482 : vector<16x128xf32> to vector<16x128xbf16>
    %cst_165 = arith.constant dense<0.000000e+00> : vector<16x512xf32>
    %500 = tpu.matmul %499, %10, %cst_165 {dimension_numbers = #tpu.dot_dimension_numbers<[1], [0], [0], [1], [0, 0, 1, 1], [], []>} : vector<16x128xbf16>, vector<128x512xbf16>, vector<16x512xf32> -> vector<16x512xf32>
    %501 = arith.index_cast %c8_i32 : i32 to index
    %c0_166 = arith.constant 0 : index
    %c0_167 = arith.constant 0 : index
    %502 = vector.load %arg7[%501, %c0_166, %c0_167] : memref<16x16x512xbf16, #tpu.memory_space<vmem>>, vector<1x16x512xbf16>
    %503 = vector.shape_cast %502 : vector<1x16x512xbf16> to vector<16x512xbf16>
    %504 = arith.index_cast %498 : i32 to index
    %c0_168 = arith.constant 0 : index
    %c0_169 = arith.constant 0 : index
    %505 = vector.load %arg7[%504, %c0_168, %c0_169] : memref<16x16x512xbf16, #tpu.memory_space<vmem>>, vector<1x16x512xbf16>
    %506 = vector.shape_cast %505 : vector<1x16x512xbf16> to vector<16x512xbf16>
    %507 = vector.shape_cast %16 : vector<1x512xi1> to vector<1x512xi1>
    %508 = vector.broadcast %507 : vector<1x512xi1> to vector<16x512xi1>
    %509 = arith.select %508, %503, %506 : vector<16x512xi1>, vector<16x512xbf16>
    %510 = arith.extf %509 : vector<16x512xbf16> to vector<16x512xf32>
    %511 = arith.addf %510, %500 : vector<16x512xf32>
    %512 = vector.extract_strided_slice %511 {offsets = [0, 0], sizes = [16, 128], strides = [1, 1]} : vector<16x512xf32> to vector<16x128xf32>
    %cst_170 = arith.constant 5.000000e-01 : f32
    %513 = vector.broadcast %cst_170 : f32 to vector<16x128xf32>
    %514 = arith.mulf %513, %512 : vector<16x128xf32>
    %515 = math.tanh %514 : vector<16x128xf32>
    %cst_171 = arith.constant 5.000000e-01 : f32
    %516 = vector.broadcast %cst_171 : f32 to vector<16x128xf32>
    %517 = arith.mulf %516, %515 : vector<16x128xf32>
    %cst_172 = arith.constant 5.000000e-01 : f32
    %518 = vector.broadcast %cst_172 : f32 to vector<16x128xf32>
    %519 = arith.addf %517, %518 : vector<16x128xf32>
    %520 = vector.extract_strided_slice %511 {offsets = [0, 128], sizes = [16, 128], strides = [1, 1]} : vector<16x512xf32> to vector<16x128xf32>
    %cst_173 = arith.constant 5.000000e-01 : f32
    %521 = vector.broadcast %cst_173 : f32 to vector<16x128xf32>
    %522 = arith.mulf %521, %520 : vector<16x128xf32>
    %523 = math.tanh %522 : vector<16x128xf32>
    %cst_174 = arith.constant 5.000000e-01 : f32
    %524 = vector.broadcast %cst_174 : f32 to vector<16x128xf32>
    %525 = arith.mulf %524, %523 : vector<16x128xf32>
    %cst_175 = arith.constant 5.000000e-01 : f32
    %526 = vector.broadcast %cst_175 : f32 to vector<16x128xf32>
    %527 = arith.addf %525, %526 : vector<16x128xf32>
    %528 = vector.extract_strided_slice %511 {offsets = [0, 256], sizes = [16, 128], strides = [1, 1]} : vector<16x512xf32> to vector<16x128xf32>
    %529 = math.tanh %528 : vector<16x128xf32>
    %530 = vector.extract_strided_slice %511 {offsets = [0, 384], sizes = [16, 128], strides = [1, 1]} : vector<16x512xf32> to vector<16x128xf32>
    %cst_176 = arith.constant 5.000000e-01 : f32
    %531 = vector.broadcast %cst_176 : f32 to vector<16x128xf32>
    %532 = arith.mulf %531, %530 : vector<16x128xf32>
    %533 = math.tanh %532 : vector<16x128xf32>
    %cst_177 = arith.constant 5.000000e-01 : f32
    %534 = vector.broadcast %cst_177 : f32 to vector<16x128xf32>
    %535 = arith.mulf %534, %533 : vector<16x128xf32>
    %cst_178 = arith.constant 5.000000e-01 : f32
    %536 = vector.broadcast %cst_178 : f32 to vector<16x128xf32>
    %537 = arith.addf %535, %536 : vector<16x128xf32>
    %538 = arith.mulf %527, %480 : vector<16x128xf32>
    %539 = arith.mulf %519, %529 : vector<16x128xf32>
    %540 = arith.addf %538, %539 : vector<16x128xf32>
    %541 = math.tanh %540 : vector<16x128xf32>
    %542 = arith.mulf %537, %541 : vector<16x128xf32>
    %543 = arith.index_cast %c8_i32 : i32 to index
    %c0_179 = arith.constant 0 : index
    %c0_180 = arith.constant 0 : index
    %544 = vector.load %arg2[%543, %c0_179, %c0_180] : memref<16x16x1xf32, #tpu.memory_space<vmem>>, vector<1x16x1xf32>
    %545 = vector.shape_cast %544 : vector<1x16x1xf32> to vector<16x1xf32>
    %546 = arith.index_cast %498 : i32 to index
    %c0_181 = arith.constant 0 : index
    %c0_182 = arith.constant 0 : index
    %547 = vector.load %arg2[%546, %c0_181, %c0_182] : memref<16x16x1xf32, #tpu.memory_space<vmem>>, vector<1x16x1xf32>
    %548 = vector.shape_cast %547 : vector<1x16x1xf32> to vector<16x1xf32>
    %549 = vector.shape_cast %13 : vector<1x128xi1> to vector<1x128xi1>
    %550 = vector.broadcast %549 : vector<1x128xi1> to vector<16x128xi1>
    %551 = vector.shape_cast %545 : vector<16x1xf32> to vector<16x1xf32>
    %552 = vector.broadcast %551 : vector<16x1xf32> to vector<16x128xf32>
    %553 = vector.shape_cast %548 : vector<16x1xf32> to vector<16x1xf32>
    %554 = vector.broadcast %553 : vector<16x1xf32> to vector<16x128xf32>
    %555 = arith.select %550, %552, %554 : vector<16x128xi1>, vector<16x128xf32>
    %556 = arith.mulf %555, %542 : vector<16x128xf32>
    %557 = arith.addf %497, %556 : vector<16x128xf32>
    %c9_i32 = arith.constant 9 : i32
    %c15_i32_183 = arith.constant 15 : i32
    %558 = arith.subi %c15_i32_183, %c9_i32 : i32
    %559 = arith.truncf %542 : vector<16x128xf32> to vector<16x128xbf16>
    %cst_184 = arith.constant dense<0.000000e+00> : vector<16x512xf32>
    %560 = tpu.matmul %559, %10, %cst_184 {dimension_numbers = #tpu.dot_dimension_numbers<[1], [0], [0], [1], [0, 0, 1, 1], [], []>} : vector<16x128xbf16>, vector<128x512xbf16>, vector<16x512xf32> -> vector<16x512xf32>
    %561 = arith.index_cast %c9_i32 : i32 to index
    %c0_185 = arith.constant 0 : index
    %c0_186 = arith.constant 0 : index
    %562 = vector.load %arg7[%561, %c0_185, %c0_186] : memref<16x16x512xbf16, #tpu.memory_space<vmem>>, vector<1x16x512xbf16>
    %563 = vector.shape_cast %562 : vector<1x16x512xbf16> to vector<16x512xbf16>
    %564 = arith.index_cast %558 : i32 to index
    %c0_187 = arith.constant 0 : index
    %c0_188 = arith.constant 0 : index
    %565 = vector.load %arg7[%564, %c0_187, %c0_188] : memref<16x16x512xbf16, #tpu.memory_space<vmem>>, vector<1x16x512xbf16>
    %566 = vector.shape_cast %565 : vector<1x16x512xbf16> to vector<16x512xbf16>
    %567 = vector.shape_cast %16 : vector<1x512xi1> to vector<1x512xi1>
    %568 = vector.broadcast %567 : vector<1x512xi1> to vector<16x512xi1>
    %569 = arith.select %568, %563, %566 : vector<16x512xi1>, vector<16x512xbf16>
    %570 = arith.extf %569 : vector<16x512xbf16> to vector<16x512xf32>
    %571 = arith.addf %570, %560 : vector<16x512xf32>
    %572 = vector.extract_strided_slice %571 {offsets = [0, 0], sizes = [16, 128], strides = [1, 1]} : vector<16x512xf32> to vector<16x128xf32>
    %cst_189 = arith.constant 5.000000e-01 : f32
    %573 = vector.broadcast %cst_189 : f32 to vector<16x128xf32>
    %574 = arith.mulf %573, %572 : vector<16x128xf32>
    %575 = math.tanh %574 : vector<16x128xf32>
    %cst_190 = arith.constant 5.000000e-01 : f32
    %576 = vector.broadcast %cst_190 : f32 to vector<16x128xf32>
    %577 = arith.mulf %576, %575 : vector<16x128xf32>
    %cst_191 = arith.constant 5.000000e-01 : f32
    %578 = vector.broadcast %cst_191 : f32 to vector<16x128xf32>
    %579 = arith.addf %577, %578 : vector<16x128xf32>
    %580 = vector.extract_strided_slice %571 {offsets = [0, 128], sizes = [16, 128], strides = [1, 1]} : vector<16x512xf32> to vector<16x128xf32>
    %cst_192 = arith.constant 5.000000e-01 : f32
    %581 = vector.broadcast %cst_192 : f32 to vector<16x128xf32>
    %582 = arith.mulf %581, %580 : vector<16x128xf32>
    %583 = math.tanh %582 : vector<16x128xf32>
    %cst_193 = arith.constant 5.000000e-01 : f32
    %584 = vector.broadcast %cst_193 : f32 to vector<16x128xf32>
    %585 = arith.mulf %584, %583 : vector<16x128xf32>
    %cst_194 = arith.constant 5.000000e-01 : f32
    %586 = vector.broadcast %cst_194 : f32 to vector<16x128xf32>
    %587 = arith.addf %585, %586 : vector<16x128xf32>
    %588 = vector.extract_strided_slice %571 {offsets = [0, 256], sizes = [16, 128], strides = [1, 1]} : vector<16x512xf32> to vector<16x128xf32>
    %589 = math.tanh %588 : vector<16x128xf32>
    %590 = vector.extract_strided_slice %571 {offsets = [0, 384], sizes = [16, 128], strides = [1, 1]} : vector<16x512xf32> to vector<16x128xf32>
    %cst_195 = arith.constant 5.000000e-01 : f32
    %591 = vector.broadcast %cst_195 : f32 to vector<16x128xf32>
    %592 = arith.mulf %591, %590 : vector<16x128xf32>
    %593 = math.tanh %592 : vector<16x128xf32>
    %cst_196 = arith.constant 5.000000e-01 : f32
    %594 = vector.broadcast %cst_196 : f32 to vector<16x128xf32>
    %595 = arith.mulf %594, %593 : vector<16x128xf32>
    %cst_197 = arith.constant 5.000000e-01 : f32
    %596 = vector.broadcast %cst_197 : f32 to vector<16x128xf32>
    %597 = arith.addf %595, %596 : vector<16x128xf32>
    %598 = arith.mulf %587, %540 : vector<16x128xf32>
    %599 = arith.mulf %579, %589 : vector<16x128xf32>
    %600 = arith.addf %598, %599 : vector<16x128xf32>
    %601 = math.tanh %600 : vector<16x128xf32>
    %602 = arith.mulf %597, %601 : vector<16x128xf32>
    %603 = arith.index_cast %c9_i32 : i32 to index
    %c0_198 = arith.constant 0 : index
    %c0_199 = arith.constant 0 : index
    %604 = vector.load %arg2[%603, %c0_198, %c0_199] : memref<16x16x1xf32, #tpu.memory_space<vmem>>, vector<1x16x1xf32>
    %605 = vector.shape_cast %604 : vector<1x16x1xf32> to vector<16x1xf32>
    %606 = arith.index_cast %558 : i32 to index
    %c0_200 = arith.constant 0 : index
    %c0_201 = arith.constant 0 : index
    %607 = vector.load %arg2[%606, %c0_200, %c0_201] : memref<16x16x1xf32, #tpu.memory_space<vmem>>, vector<1x16x1xf32>
    %608 = vector.shape_cast %607 : vector<1x16x1xf32> to vector<16x1xf32>
    %609 = vector.shape_cast %13 : vector<1x128xi1> to vector<1x128xi1>
    %610 = vector.broadcast %609 : vector<1x128xi1> to vector<16x128xi1>
    %611 = vector.shape_cast %605 : vector<16x1xf32> to vector<16x1xf32>
    %612 = vector.broadcast %611 : vector<16x1xf32> to vector<16x128xf32>
    %613 = vector.shape_cast %608 : vector<16x1xf32> to vector<16x1xf32>
    %614 = vector.broadcast %613 : vector<16x1xf32> to vector<16x128xf32>
    %615 = arith.select %610, %612, %614 : vector<16x128xi1>, vector<16x128xf32>
    %616 = arith.mulf %615, %602 : vector<16x128xf32>
    %617 = arith.addf %557, %616 : vector<16x128xf32>
    %c10_i32 = arith.constant 10 : i32
    %c15_i32_202 = arith.constant 15 : i32
    %618 = arith.subi %c15_i32_202, %c10_i32 : i32
    %619 = arith.truncf %602 : vector<16x128xf32> to vector<16x128xbf16>
    %cst_203 = arith.constant dense<0.000000e+00> : vector<16x512xf32>
    %620 = tpu.matmul %619, %10, %cst_203 {dimension_numbers = #tpu.dot_dimension_numbers<[1], [0], [0], [1], [0, 0, 1, 1], [], []>} : vector<16x128xbf16>, vector<128x512xbf16>, vector<16x512xf32> -> vector<16x512xf32>
    %621 = arith.index_cast %c10_i32 : i32 to index
    %c0_204 = arith.constant 0 : index
    %c0_205 = arith.constant 0 : index
    %622 = vector.load %arg7[%621, %c0_204, %c0_205] : memref<16x16x512xbf16, #tpu.memory_space<vmem>>, vector<1x16x512xbf16>
    %623 = vector.shape_cast %622 : vector<1x16x512xbf16> to vector<16x512xbf16>
    %624 = arith.index_cast %618 : i32 to index
    %c0_206 = arith.constant 0 : index
    %c0_207 = arith.constant 0 : index
    %625 = vector.load %arg7[%624, %c0_206, %c0_207] : memref<16x16x512xbf16, #tpu.memory_space<vmem>>, vector<1x16x512xbf16>
    %626 = vector.shape_cast %625 : vector<1x16x512xbf16> to vector<16x512xbf16>
    %627 = vector.shape_cast %16 : vector<1x512xi1> to vector<1x512xi1>
    %628 = vector.broadcast %627 : vector<1x512xi1> to vector<16x512xi1>
    %629 = arith.select %628, %623, %626 : vector<16x512xi1>, vector<16x512xbf16>
    %630 = arith.extf %629 : vector<16x512xbf16> to vector<16x512xf32>
    %631 = arith.addf %630, %620 : vector<16x512xf32>
    %632 = vector.extract_strided_slice %631 {offsets = [0, 0], sizes = [16, 128], strides = [1, 1]} : vector<16x512xf32> to vector<16x128xf32>
    %cst_208 = arith.constant 5.000000e-01 : f32
    %633 = vector.broadcast %cst_208 : f32 to vector<16x128xf32>
    %634 = arith.mulf %633, %632 : vector<16x128xf32>
    %635 = math.tanh %634 : vector<16x128xf32>
    %cst_209 = arith.constant 5.000000e-01 : f32
    %636 = vector.broadcast %cst_209 : f32 to vector<16x128xf32>
    %637 = arith.mulf %636, %635 : vector<16x128xf32>
    %cst_210 = arith.constant 5.000000e-01 : f32
    %638 = vector.broadcast %cst_210 : f32 to vector<16x128xf32>
    %639 = arith.addf %637, %638 : vector<16x128xf32>
    %640 = vector.extract_strided_slice %631 {offsets = [0, 128], sizes = [16, 128], strides = [1, 1]} : vector<16x512xf32> to vector<16x128xf32>
    %cst_211 = arith.constant 5.000000e-01 : f32
    %641 = vector.broadcast %cst_211 : f32 to vector<16x128xf32>
    %642 = arith.mulf %641, %640 : vector<16x128xf32>
    %643 = math.tanh %642 : vector<16x128xf32>
    %cst_212 = arith.constant 5.000000e-01 : f32
    %644 = vector.broadcast %cst_212 : f32 to vector<16x128xf32>
    %645 = arith.mulf %644, %643 : vector<16x128xf32>
    %cst_213 = arith.constant 5.000000e-01 : f32
    %646 = vector.broadcast %cst_213 : f32 to vector<16x128xf32>
    %647 = arith.addf %645, %646 : vector<16x128xf32>
    %648 = vector.extract_strided_slice %631 {offsets = [0, 256], sizes = [16, 128], strides = [1, 1]} : vector<16x512xf32> to vector<16x128xf32>
    %649 = math.tanh %648 : vector<16x128xf32>
    %650 = vector.extract_strided_slice %631 {offsets = [0, 384], sizes = [16, 128], strides = [1, 1]} : vector<16x512xf32> to vector<16x128xf32>
    %cst_214 = arith.constant 5.000000e-01 : f32
    %651 = vector.broadcast %cst_214 : f32 to vector<16x128xf32>
    %652 = arith.mulf %651, %650 : vector<16x128xf32>
    %653 = math.tanh %652 : vector<16x128xf32>
    %cst_215 = arith.constant 5.000000e-01 : f32
    %654 = vector.broadcast %cst_215 : f32 to vector<16x128xf32>
    %655 = arith.mulf %654, %653 : vector<16x128xf32>
    %cst_216 = arith.constant 5.000000e-01 : f32
    %656 = vector.broadcast %cst_216 : f32 to vector<16x128xf32>
    %657 = arith.addf %655, %656 : vector<16x128xf32>
    %658 = arith.mulf %647, %600 : vector<16x128xf32>
    %659 = arith.mulf %639, %649 : vector<16x128xf32>
    %660 = arith.addf %658, %659 : vector<16x128xf32>
    %661 = math.tanh %660 : vector<16x128xf32>
    %662 = arith.mulf %657, %661 : vector<16x128xf32>
    %663 = arith.index_cast %c10_i32 : i32 to index
    %c0_217 = arith.constant 0 : index
    %c0_218 = arith.constant 0 : index
    %664 = vector.load %arg2[%663, %c0_217, %c0_218] : memref<16x16x1xf32, #tpu.memory_space<vmem>>, vector<1x16x1xf32>
    %665 = vector.shape_cast %664 : vector<1x16x1xf32> to vector<16x1xf32>
    %666 = arith.index_cast %618 : i32 to index
    %c0_219 = arith.constant 0 : index
    %c0_220 = arith.constant 0 : index
    %667 = vector.load %arg2[%666, %c0_219, %c0_220] : memref<16x16x1xf32, #tpu.memory_space<vmem>>, vector<1x16x1xf32>
    %668 = vector.shape_cast %667 : vector<1x16x1xf32> to vector<16x1xf32>
    %669 = vector.shape_cast %13 : vector<1x128xi1> to vector<1x128xi1>
    %670 = vector.broadcast %669 : vector<1x128xi1> to vector<16x128xi1>
    %671 = vector.shape_cast %665 : vector<16x1xf32> to vector<16x1xf32>
    %672 = vector.broadcast %671 : vector<16x1xf32> to vector<16x128xf32>
    %673 = vector.shape_cast %668 : vector<16x1xf32> to vector<16x1xf32>
    %674 = vector.broadcast %673 : vector<16x1xf32> to vector<16x128xf32>
    %675 = arith.select %670, %672, %674 : vector<16x128xi1>, vector<16x128xf32>
    %676 = arith.mulf %675, %662 : vector<16x128xf32>
    %677 = arith.addf %617, %676 : vector<16x128xf32>
    %c11_i32 = arith.constant 11 : i32
    %c15_i32_221 = arith.constant 15 : i32
    %678 = arith.subi %c15_i32_221, %c11_i32 : i32
    %679 = arith.truncf %662 : vector<16x128xf32> to vector<16x128xbf16>
    %cst_222 = arith.constant dense<0.000000e+00> : vector<16x512xf32>
    %680 = tpu.matmul %679, %10, %cst_222 {dimension_numbers = #tpu.dot_dimension_numbers<[1], [0], [0], [1], [0, 0, 1, 1], [], []>} : vector<16x128xbf16>, vector<128x512xbf16>, vector<16x512xf32> -> vector<16x512xf32>
    %681 = arith.index_cast %c11_i32 : i32 to index
    %c0_223 = arith.constant 0 : index
    %c0_224 = arith.constant 0 : index
    %682 = vector.load %arg7[%681, %c0_223, %c0_224] : memref<16x16x512xbf16, #tpu.memory_space<vmem>>, vector<1x16x512xbf16>
    %683 = vector.shape_cast %682 : vector<1x16x512xbf16> to vector<16x512xbf16>
    %684 = arith.index_cast %678 : i32 to index
    %c0_225 = arith.constant 0 : index
    %c0_226 = arith.constant 0 : index
    %685 = vector.load %arg7[%684, %c0_225, %c0_226] : memref<16x16x512xbf16, #tpu.memory_space<vmem>>, vector<1x16x512xbf16>
    %686 = vector.shape_cast %685 : vector<1x16x512xbf16> to vector<16x512xbf16>
    %687 = vector.shape_cast %16 : vector<1x512xi1> to vector<1x512xi1>
    %688 = vector.broadcast %687 : vector<1x512xi1> to vector<16x512xi1>
    %689 = arith.select %688, %683, %686 : vector<16x512xi1>, vector<16x512xbf16>
    %690 = arith.extf %689 : vector<16x512xbf16> to vector<16x512xf32>
    %691 = arith.addf %690, %680 : vector<16x512xf32>
    %692 = vector.extract_strided_slice %691 {offsets = [0, 0], sizes = [16, 128], strides = [1, 1]} : vector<16x512xf32> to vector<16x128xf32>
    %cst_227 = arith.constant 5.000000e-01 : f32
    %693 = vector.broadcast %cst_227 : f32 to vector<16x128xf32>
    %694 = arith.mulf %693, %692 : vector<16x128xf32>
    %695 = math.tanh %694 : vector<16x128xf32>
    %cst_228 = arith.constant 5.000000e-01 : f32
    %696 = vector.broadcast %cst_228 : f32 to vector<16x128xf32>
    %697 = arith.mulf %696, %695 : vector<16x128xf32>
    %cst_229 = arith.constant 5.000000e-01 : f32
    %698 = vector.broadcast %cst_229 : f32 to vector<16x128xf32>
    %699 = arith.addf %697, %698 : vector<16x128xf32>
    %700 = vector.extract_strided_slice %691 {offsets = [0, 128], sizes = [16, 128], strides = [1, 1]} : vector<16x512xf32> to vector<16x128xf32>
    %cst_230 = arith.constant 5.000000e-01 : f32
    %701 = vector.broadcast %cst_230 : f32 to vector<16x128xf32>
    %702 = arith.mulf %701, %700 : vector<16x128xf32>
    %703 = math.tanh %702 : vector<16x128xf32>
    %cst_231 = arith.constant 5.000000e-01 : f32
    %704 = vector.broadcast %cst_231 : f32 to vector<16x128xf32>
    %705 = arith.mulf %704, %703 : vector<16x128xf32>
    %cst_232 = arith.constant 5.000000e-01 : f32
    %706 = vector.broadcast %cst_232 : f32 to vector<16x128xf32>
    %707 = arith.addf %705, %706 : vector<16x128xf32>
    %708 = vector.extract_strided_slice %691 {offsets = [0, 256], sizes = [16, 128], strides = [1, 1]} : vector<16x512xf32> to vector<16x128xf32>
    %709 = math.tanh %708 : vector<16x128xf32>
    %710 = vector.extract_strided_slice %691 {offsets = [0, 384], sizes = [16, 128], strides = [1, 1]} : vector<16x512xf32> to vector<16x128xf32>
    %cst_233 = arith.constant 5.000000e-01 : f32
    %711 = vector.broadcast %cst_233 : f32 to vector<16x128xf32>
    %712 = arith.mulf %711, %710 : vector<16x128xf32>
    %713 = math.tanh %712 : vector<16x128xf32>
    %cst_234 = arith.constant 5.000000e-01 : f32
    %714 = vector.broadcast %cst_234 : f32 to vector<16x128xf32>
    %715 = arith.mulf %714, %713 : vector<16x128xf32>
    %cst_235 = arith.constant 5.000000e-01 : f32
    %716 = vector.broadcast %cst_235 : f32 to vector<16x128xf32>
    %717 = arith.addf %715, %716 : vector<16x128xf32>
    %718 = arith.mulf %707, %660 : vector<16x128xf32>
    %719 = arith.mulf %699, %709 : vector<16x128xf32>
    %720 = arith.addf %718, %719 : vector<16x128xf32>
    %721 = math.tanh %720 : vector<16x128xf32>
    %722 = arith.mulf %717, %721 : vector<16x128xf32>
    %723 = arith.index_cast %c11_i32 : i32 to index
    %c0_236 = arith.constant 0 : index
    %c0_237 = arith.constant 0 : index
    %724 = vector.load %arg2[%723, %c0_236, %c0_237] : memref<16x16x1xf32, #tpu.memory_space<vmem>>, vector<1x16x1xf32>
    %725 = vector.shape_cast %724 : vector<1x16x1xf32> to vector<16x1xf32>
    %726 = arith.index_cast %678 : i32 to index
    %c0_238 = arith.constant 0 : index
    %c0_239 = arith.constant 0 : index
    %727 = vector.load %arg2[%726, %c0_238, %c0_239] : memref<16x16x1xf32, #tpu.memory_space<vmem>>, vector<1x16x1xf32>
    %728 = vector.shape_cast %727 : vector<1x16x1xf32> to vector<16x1xf32>
    %729 = vector.shape_cast %13 : vector<1x128xi1> to vector<1x128xi1>
    %730 = vector.broadcast %729 : vector<1x128xi1> to vector<16x128xi1>
    %731 = vector.shape_cast %725 : vector<16x1xf32> to vector<16x1xf32>
    %732 = vector.broadcast %731 : vector<16x1xf32> to vector<16x128xf32>
    %733 = vector.shape_cast %728 : vector<16x1xf32> to vector<16x1xf32>
    %734 = vector.broadcast %733 : vector<16x1xf32> to vector<16x128xf32>
    %735 = arith.select %730, %732, %734 : vector<16x128xi1>, vector<16x128xf32>
    %736 = arith.mulf %735, %722 : vector<16x128xf32>
    %737 = arith.addf %677, %736 : vector<16x128xf32>
    %c12_i32 = arith.constant 12 : i32
    %c15_i32_240 = arith.constant 15 : i32
    %738 = arith.subi %c15_i32_240, %c12_i32 : i32
    %739 = arith.truncf %722 : vector<16x128xf32> to vector<16x128xbf16>
    %cst_241 = arith.constant dense<0.000000e+00> : vector<16x512xf32>
    %740 = tpu.matmul %739, %10, %cst_241 {dimension_numbers = #tpu.dot_dimension_numbers<[1], [0], [0], [1], [0, 0, 1, 1], [], []>} : vector<16x128xbf16>, vector<128x512xbf16>, vector<16x512xf32> -> vector<16x512xf32>
    %741 = arith.index_cast %c12_i32 : i32 to index
    %c0_242 = arith.constant 0 : index
    %c0_243 = arith.constant 0 : index
    %742 = vector.load %arg7[%741, %c0_242, %c0_243] : memref<16x16x512xbf16, #tpu.memory_space<vmem>>, vector<1x16x512xbf16>
    %743 = vector.shape_cast %742 : vector<1x16x512xbf16> to vector<16x512xbf16>
    %744 = arith.index_cast %738 : i32 to index
    %c0_244 = arith.constant 0 : index
    %c0_245 = arith.constant 0 : index
    %745 = vector.load %arg7[%744, %c0_244, %c0_245] : memref<16x16x512xbf16, #tpu.memory_space<vmem>>, vector<1x16x512xbf16>
    %746 = vector.shape_cast %745 : vector<1x16x512xbf16> to vector<16x512xbf16>
    %747 = vector.shape_cast %16 : vector<1x512xi1> to vector<1x512xi1>
    %748 = vector.broadcast %747 : vector<1x512xi1> to vector<16x512xi1>
    %749 = arith.select %748, %743, %746 : vector<16x512xi1>, vector<16x512xbf16>
    %750 = arith.extf %749 : vector<16x512xbf16> to vector<16x512xf32>
    %751 = arith.addf %750, %740 : vector<16x512xf32>
    %752 = vector.extract_strided_slice %751 {offsets = [0, 0], sizes = [16, 128], strides = [1, 1]} : vector<16x512xf32> to vector<16x128xf32>
    %cst_246 = arith.constant 5.000000e-01 : f32
    %753 = vector.broadcast %cst_246 : f32 to vector<16x128xf32>
    %754 = arith.mulf %753, %752 : vector<16x128xf32>
    %755 = math.tanh %754 : vector<16x128xf32>
    %cst_247 = arith.constant 5.000000e-01 : f32
    %756 = vector.broadcast %cst_247 : f32 to vector<16x128xf32>
    %757 = arith.mulf %756, %755 : vector<16x128xf32>
    %cst_248 = arith.constant 5.000000e-01 : f32
    %758 = vector.broadcast %cst_248 : f32 to vector<16x128xf32>
    %759 = arith.addf %757, %758 : vector<16x128xf32>
    %760 = vector.extract_strided_slice %751 {offsets = [0, 128], sizes = [16, 128], strides = [1, 1]} : vector<16x512xf32> to vector<16x128xf32>
    %cst_249 = arith.constant 5.000000e-01 : f32
    %761 = vector.broadcast %cst_249 : f32 to vector<16x128xf32>
    %762 = arith.mulf %761, %760 : vector<16x128xf32>
    %763 = math.tanh %762 : vector<16x128xf32>
    %cst_250 = arith.constant 5.000000e-01 : f32
    %764 = vector.broadcast %cst_250 : f32 to vector<16x128xf32>
    %765 = arith.mulf %764, %763 : vector<16x128xf32>
    %cst_251 = arith.constant 5.000000e-01 : f32
    %766 = vector.broadcast %cst_251 : f32 to vector<16x128xf32>
    %767 = arith.addf %765, %766 : vector<16x128xf32>
    %768 = vector.extract_strided_slice %751 {offsets = [0, 256], sizes = [16, 128], strides = [1, 1]} : vector<16x512xf32> to vector<16x128xf32>
    %769 = math.tanh %768 : vector<16x128xf32>
    %770 = vector.extract_strided_slice %751 {offsets = [0, 384], sizes = [16, 128], strides = [1, 1]} : vector<16x512xf32> to vector<16x128xf32>
    %cst_252 = arith.constant 5.000000e-01 : f32
    %771 = vector.broadcast %cst_252 : f32 to vector<16x128xf32>
    %772 = arith.mulf %771, %770 : vector<16x128xf32>
    %773 = math.tanh %772 : vector<16x128xf32>
    %cst_253 = arith.constant 5.000000e-01 : f32
    %774 = vector.broadcast %cst_253 : f32 to vector<16x128xf32>
    %775 = arith.mulf %774, %773 : vector<16x128xf32>
    %cst_254 = arith.constant 5.000000e-01 : f32
    %776 = vector.broadcast %cst_254 : f32 to vector<16x128xf32>
    %777 = arith.addf %775, %776 : vector<16x128xf32>
    %778 = arith.mulf %767, %720 : vector<16x128xf32>
    %779 = arith.mulf %759, %769 : vector<16x128xf32>
    %780 = arith.addf %778, %779 : vector<16x128xf32>
    %781 = math.tanh %780 : vector<16x128xf32>
    %782 = arith.mulf %777, %781 : vector<16x128xf32>
    %783 = arith.index_cast %c12_i32 : i32 to index
    %c0_255 = arith.constant 0 : index
    %c0_256 = arith.constant 0 : index
    %784 = vector.load %arg2[%783, %c0_255, %c0_256] : memref<16x16x1xf32, #tpu.memory_space<vmem>>, vector<1x16x1xf32>
    %785 = vector.shape_cast %784 : vector<1x16x1xf32> to vector<16x1xf32>
    %786 = arith.index_cast %738 : i32 to index
    %c0_257 = arith.constant 0 : index
    %c0_258 = arith.constant 0 : index
    %787 = vector.load %arg2[%786, %c0_257, %c0_258] : memref<16x16x1xf32, #tpu.memory_space<vmem>>, vector<1x16x1xf32>
    %788 = vector.shape_cast %787 : vector<1x16x1xf32> to vector<16x1xf32>
    %789 = vector.shape_cast %13 : vector<1x128xi1> to vector<1x128xi1>
    %790 = vector.broadcast %789 : vector<1x128xi1> to vector<16x128xi1>
    %791 = vector.shape_cast %785 : vector<16x1xf32> to vector<16x1xf32>
    %792 = vector.broadcast %791 : vector<16x1xf32> to vector<16x128xf32>
    %793 = vector.shape_cast %788 : vector<16x1xf32> to vector<16x1xf32>
    %794 = vector.broadcast %793 : vector<16x1xf32> to vector<16x128xf32>
    %795 = arith.select %790, %792, %794 : vector<16x128xi1>, vector<16x128xf32>
    %796 = arith.mulf %795, %782 : vector<16x128xf32>
    %797 = arith.addf %737, %796 : vector<16x128xf32>
    %c13_i32 = arith.constant 13 : i32
    %c15_i32_259 = arith.constant 15 : i32
    %798 = arith.subi %c15_i32_259, %c13_i32 : i32
    %799 = arith.truncf %782 : vector<16x128xf32> to vector<16x128xbf16>
    %cst_260 = arith.constant dense<0.000000e+00> : vector<16x512xf32>
    %800 = tpu.matmul %799, %10, %cst_260 {dimension_numbers = #tpu.dot_dimension_numbers<[1], [0], [0], [1], [0, 0, 1, 1], [], []>} : vector<16x128xbf16>, vector<128x512xbf16>, vector<16x512xf32> -> vector<16x512xf32>
    %801 = arith.index_cast %c13_i32 : i32 to index
    %c0_261 = arith.constant 0 : index
    %c0_262 = arith.constant 0 : index
    %802 = vector.load %arg7[%801, %c0_261, %c0_262] : memref<16x16x512xbf16, #tpu.memory_space<vmem>>, vector<1x16x512xbf16>
    %803 = vector.shape_cast %802 : vector<1x16x512xbf16> to vector<16x512xbf16>
    %804 = arith.index_cast %798 : i32 to index
    %c0_263 = arith.constant 0 : index
    %c0_264 = arith.constant 0 : index
    %805 = vector.load %arg7[%804, %c0_263, %c0_264] : memref<16x16x512xbf16, #tpu.memory_space<vmem>>, vector<1x16x512xbf16>
    %806 = vector.shape_cast %805 : vector<1x16x512xbf16> to vector<16x512xbf16>
    %807 = vector.shape_cast %16 : vector<1x512xi1> to vector<1x512xi1>
    %808 = vector.broadcast %807 : vector<1x512xi1> to vector<16x512xi1>
    %809 = arith.select %808, %803, %806 : vector<16x512xi1>, vector<16x512xbf16>
    %810 = arith.extf %809 : vector<16x512xbf16> to vector<16x512xf32>
    %811 = arith.addf %810, %800 : vector<16x512xf32>
    %812 = vector.extract_strided_slice %811 {offsets = [0, 0], sizes = [16, 128], strides = [1, 1]} : vector<16x512xf32> to vector<16x128xf32>
    %cst_265 = arith.constant 5.000000e-01 : f32
    %813 = vector.broadcast %cst_265 : f32 to vector<16x128xf32>
    %814 = arith.mulf %813, %812 : vector<16x128xf32>
    %815 = math.tanh %814 : vector<16x128xf32>
    %cst_266 = arith.constant 5.000000e-01 : f32
    %816 = vector.broadcast %cst_266 : f32 to vector<16x128xf32>
    %817 = arith.mulf %816, %815 : vector<16x128xf32>
    %cst_267 = arith.constant 5.000000e-01 : f32
    %818 = vector.broadcast %cst_267 : f32 to vector<16x128xf32>
    %819 = arith.addf %817, %818 : vector<16x128xf32>
    %820 = vector.extract_strided_slice %811 {offsets = [0, 128], sizes = [16, 128], strides = [1, 1]} : vector<16x512xf32> to vector<16x128xf32>
    %cst_268 = arith.constant 5.000000e-01 : f32
    %821 = vector.broadcast %cst_268 : f32 to vector<16x128xf32>
    %822 = arith.mulf %821, %820 : vector<16x128xf32>
    %823 = math.tanh %822 : vector<16x128xf32>
    %cst_269 = arith.constant 5.000000e-01 : f32
    %824 = vector.broadcast %cst_269 : f32 to vector<16x128xf32>
    %825 = arith.mulf %824, %823 : vector<16x128xf32>
    %cst_270 = arith.constant 5.000000e-01 : f32
    %826 = vector.broadcast %cst_270 : f32 to vector<16x128xf32>
    %827 = arith.addf %825, %826 : vector<16x128xf32>
    %828 = vector.extract_strided_slice %811 {offsets = [0, 256], sizes = [16, 128], strides = [1, 1]} : vector<16x512xf32> to vector<16x128xf32>
    %829 = math.tanh %828 : vector<16x128xf32>
    %830 = vector.extract_strided_slice %811 {offsets = [0, 384], sizes = [16, 128], strides = [1, 1]} : vector<16x512xf32> to vector<16x128xf32>
    %cst_271 = arith.constant 5.000000e-01 : f32
    %831 = vector.broadcast %cst_271 : f32 to vector<16x128xf32>
    %832 = arith.mulf %831, %830 : vector<16x128xf32>
    %833 = math.tanh %832 : vector<16x128xf32>
    %cst_272 = arith.constant 5.000000e-01 : f32
    %834 = vector.broadcast %cst_272 : f32 to vector<16x128xf32>
    %835 = arith.mulf %834, %833 : vector<16x128xf32>
    %cst_273 = arith.constant 5.000000e-01 : f32
    %836 = vector.broadcast %cst_273 : f32 to vector<16x128xf32>
    %837 = arith.addf %835, %836 : vector<16x128xf32>
    %838 = arith.mulf %827, %780 : vector<16x128xf32>
    %839 = arith.mulf %819, %829 : vector<16x128xf32>
    %840 = arith.addf %838, %839 : vector<16x128xf32>
    %841 = math.tanh %840 : vector<16x128xf32>
    %842 = arith.mulf %837, %841 : vector<16x128xf32>
    %843 = arith.index_cast %c13_i32 : i32 to index
    %c0_274 = arith.constant 0 : index
    %c0_275 = arith.constant 0 : index
    %844 = vector.load %arg2[%843, %c0_274, %c0_275] : memref<16x16x1xf32, #tpu.memory_space<vmem>>, vector<1x16x1xf32>
    %845 = vector.shape_cast %844 : vector<1x16x1xf32> to vector<16x1xf32>
    %846 = arith.index_cast %798 : i32 to index
    %c0_276 = arith.constant 0 : index
    %c0_277 = arith.constant 0 : index
    %847 = vector.load %arg2[%846, %c0_276, %c0_277] : memref<16x16x1xf32, #tpu.memory_space<vmem>>, vector<1x16x1xf32>
    %848 = vector.shape_cast %847 : vector<1x16x1xf32> to vector<16x1xf32>
    %849 = vector.shape_cast %13 : vector<1x128xi1> to vector<1x128xi1>
    %850 = vector.broadcast %849 : vector<1x128xi1> to vector<16x128xi1>
    %851 = vector.shape_cast %845 : vector<16x1xf32> to vector<16x1xf32>
    %852 = vector.broadcast %851 : vector<16x1xf32> to vector<16x128xf32>
    %853 = vector.shape_cast %848 : vector<16x1xf32> to vector<16x1xf32>
    %854 = vector.broadcast %853 : vector<16x1xf32> to vector<16x128xf32>
    %855 = arith.select %850, %852, %854 : vector<16x128xi1>, vector<16x128xf32>
    %856 = arith.mulf %855, %842 : vector<16x128xf32>
    %857 = arith.addf %797, %856 : vector<16x128xf32>
    %c14_i32 = arith.constant 14 : i32
    %c15_i32_278 = arith.constant 15 : i32
    %858 = arith.subi %c15_i32_278, %c14_i32 : i32
    %859 = arith.truncf %842 : vector<16x128xf32> to vector<16x128xbf16>
    %cst_279 = arith.constant dense<0.000000e+00> : vector<16x512xf32>
    %860 = tpu.matmul %859, %10, %cst_279 {dimension_numbers = #tpu.dot_dimension_numbers<[1], [0], [0], [1], [0, 0, 1, 1], [], []>} : vector<16x128xbf16>, vector<128x512xbf16>, vector<16x512xf32> -> vector<16x512xf32>
    %861 = arith.index_cast %c14_i32 : i32 to index
    %c0_280 = arith.constant 0 : index
    %c0_281 = arith.constant 0 : index
    %862 = vector.load %arg7[%861, %c0_280, %c0_281] : memref<16x16x512xbf16, #tpu.memory_space<vmem>>, vector<1x16x512xbf16>
    %863 = vector.shape_cast %862 : vector<1x16x512xbf16> to vector<16x512xbf16>
    %864 = arith.index_cast %858 : i32 to index
    %c0_282 = arith.constant 0 : index
    %c0_283 = arith.constant 0 : index
    %865 = vector.load %arg7[%864, %c0_282, %c0_283] : memref<16x16x512xbf16, #tpu.memory_space<vmem>>, vector<1x16x512xbf16>
    %866 = vector.shape_cast %865 : vector<1x16x512xbf16> to vector<16x512xbf16>
    %867 = vector.shape_cast %16 : vector<1x512xi1> to vector<1x512xi1>
    %868 = vector.broadcast %867 : vector<1x512xi1> to vector<16x512xi1>
    %869 = arith.select %868, %863, %866 : vector<16x512xi1>, vector<16x512xbf16>
    %870 = arith.extf %869 : vector<16x512xbf16> to vector<16x512xf32>
    %871 = arith.addf %870, %860 : vector<16x512xf32>
    %872 = vector.extract_strided_slice %871 {offsets = [0, 0], sizes = [16, 128], strides = [1, 1]} : vector<16x512xf32> to vector<16x128xf32>
    %cst_284 = arith.constant 5.000000e-01 : f32
    %873 = vector.broadcast %cst_284 : f32 to vector<16x128xf32>
    %874 = arith.mulf %873, %872 : vector<16x128xf32>
    %875 = math.tanh %874 : vector<16x128xf32>
    %cst_285 = arith.constant 5.000000e-01 : f32
    %876 = vector.broadcast %cst_285 : f32 to vector<16x128xf32>
    %877 = arith.mulf %876, %875 : vector<16x128xf32>
    %cst_286 = arith.constant 5.000000e-01 : f32
    %878 = vector.broadcast %cst_286 : f32 to vector<16x128xf32>
    %879 = arith.addf %877, %878 : vector<16x128xf32>
    %880 = vector.extract_strided_slice %871 {offsets = [0, 128], sizes = [16, 128], strides = [1, 1]} : vector<16x512xf32> to vector<16x128xf32>
    %cst_287 = arith.constant 5.000000e-01 : f32
    %881 = vector.broadcast %cst_287 : f32 to vector<16x128xf32>
    %882 = arith.mulf %881, %880 : vector<16x128xf32>
    %883 = math.tanh %882 : vector<16x128xf32>
    %cst_288 = arith.constant 5.000000e-01 : f32
    %884 = vector.broadcast %cst_288 : f32 to vector<16x128xf32>
    %885 = arith.mulf %884, %883 : vector<16x128xf32>
    %cst_289 = arith.constant 5.000000e-01 : f32
    %886 = vector.broadcast %cst_289 : f32 to vector<16x128xf32>
    %887 = arith.addf %885, %886 : vector<16x128xf32>
    %888 = vector.extract_strided_slice %871 {offsets = [0, 256], sizes = [16, 128], strides = [1, 1]} : vector<16x512xf32> to vector<16x128xf32>
    %889 = math.tanh %888 : vector<16x128xf32>
    %890 = vector.extract_strided_slice %871 {offsets = [0, 384], sizes = [16, 128], strides = [1, 1]} : vector<16x512xf32> to vector<16x128xf32>
    %cst_290 = arith.constant 5.000000e-01 : f32
    %891 = vector.broadcast %cst_290 : f32 to vector<16x128xf32>
    %892 = arith.mulf %891, %890 : vector<16x128xf32>
    %893 = math.tanh %892 : vector<16x128xf32>
    %cst_291 = arith.constant 5.000000e-01 : f32
    %894 = vector.broadcast %cst_291 : f32 to vector<16x128xf32>
    %895 = arith.mulf %894, %893 : vector<16x128xf32>
    %cst_292 = arith.constant 5.000000e-01 : f32
    %896 = vector.broadcast %cst_292 : f32 to vector<16x128xf32>
    %897 = arith.addf %895, %896 : vector<16x128xf32>
    %898 = arith.mulf %887, %840 : vector<16x128xf32>
    %899 = arith.mulf %879, %889 : vector<16x128xf32>
    %900 = arith.addf %898, %899 : vector<16x128xf32>
    %901 = math.tanh %900 : vector<16x128xf32>
    %902 = arith.mulf %897, %901 : vector<16x128xf32>
    %903 = arith.index_cast %c14_i32 : i32 to index
    %c0_293 = arith.constant 0 : index
    %c0_294 = arith.constant 0 : index
    %904 = vector.load %arg2[%903, %c0_293, %c0_294] : memref<16x16x1xf32, #tpu.memory_space<vmem>>, vector<1x16x1xf32>
    %905 = vector.shape_cast %904 : vector<1x16x1xf32> to vector<16x1xf32>
    %906 = arith.index_cast %858 : i32 to index
    %c0_295 = arith.constant 0 : index
    %c0_296 = arith.constant 0 : index
    %907 = vector.load %arg2[%906, %c0_295, %c0_296] : memref<16x16x1xf32, #tpu.memory_space<vmem>>, vector<1x16x1xf32>
    %908 = vector.shape_cast %907 : vector<1x16x1xf32> to vector<16x1xf32>
    %909 = vector.shape_cast %13 : vector<1x128xi1> to vector<1x128xi1>
    %910 = vector.broadcast %909 : vector<1x128xi1> to vector<16x128xi1>
    %911 = vector.shape_cast %905 : vector<16x1xf32> to vector<16x1xf32>
    %912 = vector.broadcast %911 : vector<16x1xf32> to vector<16x128xf32>
    %913 = vector.shape_cast %908 : vector<16x1xf32> to vector<16x1xf32>
    %914 = vector.broadcast %913 : vector<16x1xf32> to vector<16x128xf32>
    %915 = arith.select %910, %912, %914 : vector<16x128xi1>, vector<16x128xf32>
    %916 = arith.mulf %915, %902 : vector<16x128xf32>
    %917 = arith.addf %857, %916 : vector<16x128xf32>
    %c15_i32_297 = arith.constant 15 : i32
    %c15_i32_298 = arith.constant 15 : i32
    %918 = arith.subi %c15_i32_298, %c15_i32_297 : i32
    %919 = arith.truncf %902 : vector<16x128xf32> to vector<16x128xbf16>
    %cst_299 = arith.constant dense<0.000000e+00> : vector<16x512xf32>
    %920 = tpu.matmul %919, %10, %cst_299 {dimension_numbers = #tpu.dot_dimension_numbers<[1], [0], [0], [1], [0, 0, 1, 1], [], []>} : vector<16x128xbf16>, vector<128x512xbf16>, vector<16x512xf32> -> vector<16x512xf32>
    %921 = arith.index_cast %c15_i32_297 : i32 to index
    %c0_300 = arith.constant 0 : index
    %c0_301 = arith.constant 0 : index
    %922 = vector.load %arg7[%921, %c0_300, %c0_301] : memref<16x16x512xbf16, #tpu.memory_space<vmem>>, vector<1x16x512xbf16>
    %923 = vector.shape_cast %922 : vector<1x16x512xbf16> to vector<16x512xbf16>
    %924 = arith.index_cast %918 : i32 to index
    %c0_302 = arith.constant 0 : index
    %c0_303 = arith.constant 0 : index
    %925 = vector.load %arg7[%924, %c0_302, %c0_303] : memref<16x16x512xbf16, #tpu.memory_space<vmem>>, vector<1x16x512xbf16>
    %926 = vector.shape_cast %925 : vector<1x16x512xbf16> to vector<16x512xbf16>
    %927 = vector.shape_cast %16 : vector<1x512xi1> to vector<1x512xi1>
    %928 = vector.broadcast %927 : vector<1x512xi1> to vector<16x512xi1>
    %929 = arith.select %928, %923, %926 : vector<16x512xi1>, vector<16x512xbf16>
    %930 = arith.extf %929 : vector<16x512xbf16> to vector<16x512xf32>
    %931 = arith.addf %930, %920 : vector<16x512xf32>
    %932 = vector.extract_strided_slice %931 {offsets = [0, 0], sizes = [16, 128], strides = [1, 1]} : vector<16x512xf32> to vector<16x128xf32>
    %cst_304 = arith.constant 5.000000e-01 : f32
    %933 = vector.broadcast %cst_304 : f32 to vector<16x128xf32>
    %934 = arith.mulf %933, %932 : vector<16x128xf32>
    %935 = math.tanh %934 : vector<16x128xf32>
    %cst_305 = arith.constant 5.000000e-01 : f32
    %936 = vector.broadcast %cst_305 : f32 to vector<16x128xf32>
    %937 = arith.mulf %936, %935 : vector<16x128xf32>
    %cst_306 = arith.constant 5.000000e-01 : f32
    %938 = vector.broadcast %cst_306 : f32 to vector<16x128xf32>
    %939 = arith.addf %937, %938 : vector<16x128xf32>
    %940 = vector.extract_strided_slice %931 {offsets = [0, 128], sizes = [16, 128], strides = [1, 1]} : vector<16x512xf32> to vector<16x128xf32>
    %cst_307 = arith.constant 5.000000e-01 : f32
    %941 = vector.broadcast %cst_307 : f32 to vector<16x128xf32>
    %942 = arith.mulf %941, %940 : vector<16x128xf32>
    %943 = math.tanh %942 : vector<16x128xf32>
    %cst_308 = arith.constant 5.000000e-01 : f32
    %944 = vector.broadcast %cst_308 : f32 to vector<16x128xf32>
    %945 = arith.mulf %944, %943 : vector<16x128xf32>
    %cst_309 = arith.constant 5.000000e-01 : f32
    %946 = vector.broadcast %cst_309 : f32 to vector<16x128xf32>
    %947 = arith.addf %945, %946 : vector<16x128xf32>
    %948 = vector.extract_strided_slice %931 {offsets = [0, 256], sizes = [16, 128], strides = [1, 1]} : vector<16x512xf32> to vector<16x128xf32>
    %949 = math.tanh %948 : vector<16x128xf32>
    %950 = vector.extract_strided_slice %931 {offsets = [0, 384], sizes = [16, 128], strides = [1, 1]} : vector<16x512xf32> to vector<16x128xf32>
    %cst_310 = arith.constant 5.000000e-01 : f32
    %951 = vector.broadcast %cst_310 : f32 to vector<16x128xf32>
    %952 = arith.mulf %951, %950 : vector<16x128xf32>
    %953 = math.tanh %952 : vector<16x128xf32>
    %cst_311 = arith.constant 5.000000e-01 : f32
    %954 = vector.broadcast %cst_311 : f32 to vector<16x128xf32>
    %955 = arith.mulf %954, %953 : vector<16x128xf32>
    %cst_312 = arith.constant 5.000000e-01 : f32
    %956 = vector.broadcast %cst_312 : f32 to vector<16x128xf32>
    %957 = arith.addf %955, %956 : vector<16x128xf32>
    %958 = arith.mulf %947, %900 : vector<16x128xf32>
    %959 = arith.mulf %939, %949 : vector<16x128xf32>
    %960 = arith.addf %958, %959 : vector<16x128xf32>
    %961 = math.tanh %960 : vector<16x128xf32>
    %962 = arith.mulf %957, %961 : vector<16x128xf32>
    %963 = arith.index_cast %c15_i32_297 : i32 to index
    %c0_313 = arith.constant 0 : index
    %c0_314 = arith.constant 0 : index
    %964 = vector.load %arg2[%963, %c0_313, %c0_314] : memref<16x16x1xf32, #tpu.memory_space<vmem>>, vector<1x16x1xf32>
    %965 = vector.shape_cast %964 : vector<1x16x1xf32> to vector<16x1xf32>
    %966 = arith.index_cast %918 : i32 to index
    %c0_315 = arith.constant 0 : index
    %c0_316 = arith.constant 0 : index
    %967 = vector.load %arg2[%966, %c0_315, %c0_316] : memref<16x16x1xf32, #tpu.memory_space<vmem>>, vector<1x16x1xf32>
    %968 = vector.shape_cast %967 : vector<1x16x1xf32> to vector<16x1xf32>
    %969 = vector.shape_cast %13 : vector<1x128xi1> to vector<1x128xi1>
    %970 = vector.broadcast %969 : vector<1x128xi1> to vector<16x128xi1>
    %971 = vector.shape_cast %965 : vector<16x1xf32> to vector<16x1xf32>
    %972 = vector.broadcast %971 : vector<16x1xf32> to vector<16x128xf32>
    %973 = vector.shape_cast %968 : vector<16x1xf32> to vector<16x1xf32>
    %974 = vector.broadcast %973 : vector<16x1xf32> to vector<16x128xf32>
    %975 = arith.select %970, %972, %974 : vector<16x128xi1>, vector<16x128xf32>
    %976 = arith.mulf %975, %962 : vector<16x128xf32>
    %977 = arith.addf %917, %976 : vector<16x128xf32>
    %c16_i32 = arith.constant 16 : i32
    %c0_317 = arith.constant 0 : index
    %c0_318 = arith.constant 0 : index
    %c0_319 = arith.constant 0 : index
    %978 = vector.load %arg2[%c0_317, %c0_318, %c0_319] : memref<16x16x1xf32, #tpu.memory_space<vmem>>, vector<16x16x1xf32>
    %cst_320 = arith.constant dense<0.000000e+00> : vector<16x1xf32>
    %979 = vector.multi_reduction <add>, %978, %cst_320 [0] : vector<16x16x1xf32> to vector<16x1xf32>
    %cst_321 = arith.constant 1.000000e+00 : f32
    %980 = vector.broadcast %cst_321 : f32 to vector<16x1xf32>
    %981 = arith.maximumf %979, %980 : vector<16x1xf32>
    %982 = vector.broadcast %981 : vector<16x1xf32> to vector<16x128xf32>
    %983 = arith.divf %977, %982 : vector<16x128xf32>
    %c0_322 = arith.constant 0 : index
    %c0_323 = arith.constant 0 : index
    %984 = vector.load %arg6[%c0_322, %c0_323] : memref<16x128xf32, #tpu.memory_space<vmem>>, vector<16x128xf32>
    tpu.vector_store %arg6[%c0_322, %c0_323], %983 {strides = array<i32>} : memref<16x128xf32, #tpu.memory_space<vmem>>, vector<16x128xf32>,
    return
  }
  func.func @transform_0(%arg0: i32) -> (i32, i32, i32) {
    %c0_i32 = arith.constant 0 : i32
    %c0_i32_0 = arith.constant 0 : i32
    %c0_i32_1 = arith.constant 0 : i32
    return %c0_i32, %arg0, %c0_i32_0 : i32, i32, i32
  }
  func.func @transform_1(%arg0: i32) -> (i32, i32, i32) {
    %c0_i32 = arith.constant 0 : i32
    %c0_i32_0 = arith.constant 0 : i32
    %c0_i32_1 = arith.constant 0 : i32
    return %c0_i32, %arg0, %c0_i32_0 : i32, i32, i32
  }
  func.func @transform_2(%arg0: i32) -> (i32, i32) {
    %c0_i32 = arith.constant 0 : i32
    %c0_i32_0 = arith.constant 0 : i32
    %c0_i32_1 = arith.constant 0 : i32
    return %c0_i32, %c0_i32_0 : i32, i32
  }
  func.func @transform_3(%arg0: i32) -> (i32, i32) {
    %c0_i32 = arith.constant 0 : i32
    %c0_i32_0 = arith.constant 0 : i32
    %c0_i32_1 = arith.constant 0 : i32
    return %c0_i32, %c0_i32_0 : i32, i32
  }
  func.func @transform_4(%arg0: i32) -> (i32, i32) {
    %c0_i32 = arith.constant 0 : i32
    %c0_i32_0 = arith.constant 0 : i32
    %c0_i32_1 = arith.constant 0 : i32
    return %c0_i32, %c0_i32_0 : i32, i32
  }
  func.func @transform_5(%arg0: i32) -> (i32, i32) {
    %c0_i32 = arith.constant 0 : i32
    %c0_i32_0 = arith.constant 0 : i32
    return %arg0, %c0_i32 : i32, i32
  }
}

</mosaic_0001>

<bundles_post_ra>
// kernel: tpu_custom_call.1
= control target key start
LH: loop header
LB: loop body
LE: loop exit
PB: predicated region body
PF: predicated region fallthrough
CT: control target
= control target key end

     0   :  { %10 = vsyncpa [#allocation6], 0  ;;  %s8271_s0 = inlined_call_operand.vmem [shape: bf16[16,32,128], index: 0, kind: input, shape index: {}]   ;;  %s8272_s1 = inlined_call_operand.vmem [shape: f32[16,32,1], index: 1, kind: input, shape index: {}]   ;;  %s8273_s2 = inlined_call_operand.vmem [shape: bf16[128,512], index: 2, kind: input, shape index: {}]   ;;  %s8274_s3 = inlined_call_operand.vmem [shape: f32[1,512], index: 3, kind: input, shape index: {}]   ;;  %s8275_s4 = inlined_call_operand.hbm [shape: bf16[128,512], index: 4, kind: input, shape index: {}]   ;;  %s8276_s5 = inlined_call_operand.hbm [shape: f32[32,128], index: 5, kind: output, shape index: {}]  }
   0x1   :  { %11 = vsyncpa [#allocation7], 0 }
   0x2   :  { %13 = vsyncpa [#allocation7 + $0x1], 0  ;;  %s5842_s18 = smov 0   ;;  %s5844_s19 = smov 0  }
   0x3   :  { %s5846_s20 = smov 0   ;;  %s5848_s21 = smov 0  }
   0x4 LB: > { %s5863_s22 = sadd.s32 4294967295, %s5803_s21   ;;  %s4863_s23 = sadd.s32 4294967294, %s5803_s21   ;;  %s5803_s21 = sphi %s5848_s21, %s8542_s21   ;;  %s5799_s20 = sphi %s5846_s20, %s8541_s20   ;;  %s5795_s19 = sphi %s5844_s19, %s8540_s19   ;;  %s5791_s18 = sphi %s5842_s18, %s8539_s18  }
   0x5   : > { %s5867_s24 = sadd.s32 1, %s5803_s21   ;;  %s26_s25 = sadd.s32 1, %s5799_s20 }
   0x6   : > { %s23_s26 = ssub.s32 %s5803_s21, %s5867_s24  ;;  %p33_p0 = scmp.ne.s32.totalorder %s5799_s20, %s5795_s19 }
   0x7   : > { %p24_p1 = scmp.eq.s32.totalorder %s23_s26, 0  ;;  %p34_p2 = scmp.eq.s32.totalorder %s5803_s21, 0 }
   0x8   : > { %p152_p3 = scmp.eq.s32.totalorder %s5863_s22, 1  ;;  %p157_p4 = scmp.ne.s32.totalorder %s5795_s19, %s5791_s18 }
   0x9   : > { %s5879_s27 = scalar_select %p24_p1, %s5799_s20, %s26_s25  }
   0xa   : > { %p5881_p5 = por %p34_p2, %p33_p0  ;;  %p5885_p6 = por %p152_p3, %p33_p0 }
   0xb   : > { %p158_p7 = scmp.eq.s32.totalorder %s4863_s23, 1  ;;  %p4864_p8 = scmp.ge.s32.totalorder %s5803_s21, 1 }
   0xc   : > { %s8365_s29 = scalar_select %p5885_p6, 1, 0 }
   0xd   : > { %p165_p9 = scmp.lt.s32.totalorder %s5803_s21, 3  ;;  %p5891_p10 = por %p158_p7, %p157_p4 }
   0xe   : > { %p5138_p11 = scmp.eq.s32.totalorder %s5863_s22, 0  ;;  %s5805_s7 = smov [#allocation5]  }
   0xf   : > { %s8366_s30 = scalar_select %p5891_p10, 1, 0 }
  0x10   : > { %p5896_p12 = pnand %p4864_p8, %p165_p9  ;;  %s183_s8 = sshll.u32 %s5805_s7, 4  ;;  %s184_s8 = int_to_ptr.vmem [resolvable:$true] %s183_s8 }
  0x11   : > { %s5724_s9 = scalar_lea.vmem %s184_s8, 4096  ;;  %p5732_p7 = scmp.lt.s32.totalorder %s184_s8, %s184_s8 }
  0x12   : > { %p5130_p13 = pneg %p5896_p12  ;;  %p5725_p2 = scmp.ne.s32.totalorder %s184_s8, %s5724_s9 }
  0x13   : > { %p5733_p10 = scmp.lt.s32.totalorder %s5724_s9, %s5724_s9 }
  0x14   : > { %p5131_p0 = pnand %p5138_p11, %p5130_p13 }
  0x15   : > { %p5734_p6 = por %p5733_p10, %p5732_p7 }
  0x16   : > { %p5715_p1 = pneg %p5131_p0 }
  0x18   : > { %p5727_p3 = pnand %p5725_p2, %p5715_p1 }
  0x1a   : > { %p5728_p4 = pneg %p5727_p3 }
  0x1c   : > { %p5735_p8 = pnand %p5734_p6, %p5728_p4 }
  0x1e   : > { %5738 = shalt.err (!%p5735_p8)
}
  0x1f   : > { %s5806_s10 = smov 256   ;;  %s5807_s11 = smov 16  }
  0x20   : > { %5133 = dma.hbm_to_vmem [thread:$0]  (!%p5131_p0), %s8275_s4, 4096, %s184_s8, [#allocation6], %s5806_s10, %s5806_s10, %s5807_s11  }
  0x21   : > { %p4866_p9 = scmp.ge.s32.totalorder %s5803_s21, 2 }
  0x23   : > { %193 = sbr.rel (%p4866_p9) target bundleno = 72 (0x48), region = 28 }
  0x28   : > { %196 = sbr.rel (!%p5881_p5) target bundleno = 52 (0x34), region = 32  ;;  %s198_s14 = sand.u32 (%p5881_p5), 1, %s5799_s20  }
  0x29   : > { %s5057_s15 = sshll.u32 (%p5881_p5), %s5803_s21, 3  ;;  %s4867_s16 = sshll.u32 (%p5881_p5), %s198_s14, 7 }
  0x2a   : > { %s5917_s25 = scalar_lea.vmem (%p5881_p5), %s8271_s0, %s5057_s15  ;;  %s200_s26 = scalar_lea.vmem (%p5881_p5), [#allocation3], %s4867_s16 }
  0x2b   : > { %v220_v0 = vld [vmem:[%s5917_s25] sm:$0xff] (%p5881_p5)   ;;  %v224_v1 = vld [vmem:[%s5917_s25 + $0x10] sm:$0xff] (%p5881_p5)  }
  0x2c   : > { %v228_v2 = vld [vmem:[%s5917_s25 + $0x20] sm:$0xff] (%p5881_p5)   ;;  %221 = vst [vmem:[%s200_s26] sm:$0xff] (%p5881_p5), %v220_v0   ;;  %225 = vst [vmem:[%s200_s26 + $0x8] sm:$0xff] (%p5881_p5), %v224_v1   ;;  %v232_v3 = vld [vmem:[%s5917_s25 + $0x30] sm:$0xff] (%p5881_p5)  }
  0x2d   : > { %229 = vst [vmem:[%s200_s26 + $0x10] sm:$0xff] %v228_v2   ;;  %v236_v4 = vld [vmem:[%s5917_s25 + $0x40] sm:$0xff]   ;;  %v240_v5 = vld [vmem:[%s5917_s25 + $0x50] sm:$0xff]   ;;  %233 = vst [vmem:[%s200_s26 + $0x18] sm:$0xff] %v232_v3  }
  0x2e   : > { %237 = vst [vmem:[%s200_s26 + $0x20] sm:$0xff] %v236_v4   ;;  %241 = vst [vmem:[%s200_s26 + $0x28] sm:$0xff] %v240_v5   ;;  %v244_v6 = vld [vmem:[%s5917_s25 + $0x60] sm:$0xff]   ;;  %v248_v7 = vld [vmem:[%s5917_s25 + $0x70] sm:$0xff]  }
  0x2f   : > { %v252_v8 = vld [vmem:[%s5917_s25 + $0x80] sm:$0xff]   ;;  %245 = vst [vmem:[%s200_s26 + $0x30] sm:$0xff] %v244_v6   ;;  %249 = vst [vmem:[%s200_s26 + $0x38] sm:$0xff] %v248_v7   ;;  %v256_v9 = vld [vmem:[%s5917_s25 + $0x90] sm:$0xff]  }
  0x30   : > { %253 = vst [vmem:[%s200_s26 + $0x40] sm:$0xff] %v252_v8   ;;  %v260_v10 = vld [vmem:[%s5917_s25 + $0xa0] sm:$0xff]   ;;  %v264_v11 = vld [vmem:[%s5917_s25 + $0xb0] sm:$0xff]   ;;  %257 = vst [vmem:[%s200_s26 + $0x48] sm:$0xff] %v256_v9  }
  0x31   : > { %261 = vst [vmem:[%s200_s26 + $0x50] sm:$0xff] %v260_v10   ;;  %265 = vst [vmem:[%s200_s26 + $0x58] sm:$0xff] %v264_v11   ;;  %v268_v12 = vld [vmem:[%s5917_s25 + $0xc0] sm:$0xff]   ;;  %v272_v13 = vld [vmem:[%s5917_s25 + $0xd0] sm:$0xff]  }
  0x32   : > { %v276_v14 = vld [vmem:[%s5917_s25 + $0xe0] sm:$0xff]   ;;  %269 = vst [vmem:[%s200_s26 + $0x60] sm:$0xff] %v268_v12   ;;  %273 = vst [vmem:[%s200_s26 + $0x68] sm:$0xff] %v272_v13   ;;  %v280_v15 = vld [vmem:[%s5917_s25 + $0xf0] sm:$0xff]  }
  0x33   : > { %277 = vst [vmem:[%s200_s26 + $0x70] sm:$0xff] %v276_v14   ;;  %281 = vst [vmem:[%s200_s26 + $0x78] sm:$0xff] %v280_v15  }
  0x34 PF: > { %371 = sbr.rel (!%p5881_p5) target bundleno = 72 (0x48), region = 73  ;;  %s373_s7 = sand.u32 (%p5881_p5), 1, %s5799_s20  }
  0x35   : > { %s5058_s8 = sshll.u32 (%p5881_p5), %s5803_s21, 4  ;;  %s4870_s9 = sshll.u32 (%p5881_p5), %s373_s7, 8 }
  0x36   : > { %s5942_s12 = scalar_lea.vmem (%p5881_p5), %s8272_s1, %s5058_s8  ;;  %s5947_s28 = scalar_lea.vmem (%p5881_p5), [#allocation4], %s4870_s9 }
  0x37   : > { %v469_v16 = vld [vmem:[%s5942_s12] sm:$0xff] (%p5881_p5)  ;;  %v471_v17 = vld [vmem:[%s5942_s12 + $0x8] sm:$0xff] (%p5881_p5) }
  0x38   : > { %v473_v18 = vld [vmem:[%s5942_s12 + $0x20] sm:$0xff] (%p5881_p5)  ;;  %470 = vst [vmem:[%s5947_s28] sm:$0xff] (%p5881_p5), %v469_v16  ;;  %472 = vst [vmem:[%s5947_s28 + $0x8] sm:$0xff] (%p5881_p5), %v471_v17  ;;  %v475_v19 = vld [vmem:[%s5942_s12 + $0x28] sm:$0xff] (%p5881_p5) }
  0x39   : > { %474 = vst [vmem:[%s5947_s28 + $0x10] sm:$0xff] %v473_v18  ;;  %v477_v20 = vld [vmem:[%s5942_s12 + $0x40] sm:$0xff]  ;;  %v479_v21 = vld [vmem:[%s5942_s12 + $0x48] sm:$0xff]  ;;  %476 = vst [vmem:[%s5947_s28 + $0x18] sm:$0xff] %v475_v19 }
  0x3a   : > { %478 = vst [vmem:[%s5947_s28 + $0x20] sm:$0xff] %v477_v20  ;;  %480 = vst [vmem:[%s5947_s28 + $0x28] sm:$0xff] %v479_v21  ;;  %v481_v22 = vld [vmem:[%s5942_s12 + $0x60] sm:$0xff]  ;;  %v483_v23 = vld [vmem:[%s5942_s12 + $0x68] sm:$0xff] }
  0x3b   : > { %v485_v24 = vld [vmem:[%s5942_s12 + $0x80] sm:$0xff]  ;;  %482 = vst [vmem:[%s5947_s28 + $0x30] sm:$0xff] %v481_v22  ;;  %484 = vst [vmem:[%s5947_s28 + $0x38] sm:$0xff] %v483_v23  ;;  %v487_v25 = vld [vmem:[%s5942_s12 + $0x88] sm:$0xff] }
  0x3c   : > { %486 = vst [vmem:[%s5947_s28 + $0x40] sm:$0xff] %v485_v24  ;;  %v489_v26 = vld [vmem:[%s5942_s12 + $0xa0] sm:$0xff]  ;;  %v491_v27 = vld [vmem:[%s5942_s12 + $0xa8] sm:$0xff]  ;;  %488 = vst [vmem:[%s5947_s28 + $0x48] sm:$0xff] %v487_v25 }
  0x3d   : > { %490 = vst [vmem:[%s5947_s28 + $0x50] sm:$0xff] %v489_v26  ;;  %492 = vst [vmem:[%s5947_s28 + $0x58] sm:$0xff] %v491_v27  ;;  %v493_v28 = vld [vmem:[%s5942_s12 + $0xc0] sm:$0xff]  ;;  %v495_v29 = vld [vmem:[%s5942_s12 + $0xc8] sm:$0xff] }
  0x3e   : > { %v497_v30 = vld [vmem:[%s5942_s12 + $0xe0] sm:$0xff]  ;;  %494 = vst [vmem:[%s5947_s28 + $0x60] sm:$0xff] %v493_v28  ;;  %496 = vst [vmem:[%s5947_s28 + $0x68] sm:$0xff] %v495_v29  ;;  %v499_v31 = vld [vmem:[%s5942_s12 + $0xe8] sm:$0xff] }
  0x3f   : > { %498 = vst [vmem:[%s5947_s28 + $0x70] sm:$0xff] %v497_v30  ;;  %v501_v32 = vld [vmem:[%s5942_s12 + $0x100] sm:$0xff]  ;;  %v503_v33 = vld [vmem:[%s5942_s12 + $0x108] sm:$0xff]  ;;  %500 = vst [vmem:[%s5947_s28 + $0x78] sm:$0xff] %v499_v31 }
  0x40   : > { %502 = vst [vmem:[%s5947_s28 + $0x80] sm:$0xff] %v501_v32  ;;  %504 = vst [vmem:[%s5947_s28 + $0x88] sm:$0xff] %v503_v33  ;;  %v505_v34 = vld [vmem:[%s5942_s12 + $0x120] sm:$0xff]  ;;  %v507_v35 = vld [vmem:[%s5942_s12 + $0x128] sm:$0xff] }
  0x41   : > { %v509_v36 = vld [vmem:[%s5942_s12 + $0x140] sm:$0xff]  ;;  %506 = vst [vmem:[%s5947_s28 + $0x90] sm:$0xff] %v505_v34  ;;  %508 = vst [vmem:[%s5947_s28 + $0x98] sm:$0xff] %v507_v35  ;;  %v511_v37 = vld [vmem:[%s5942_s12 + $0x148] sm:$0xff] }
  0x42   : > { %510 = vst [vmem:[%s5947_s28 + $0xa0] sm:$0xff] %v509_v36  ;;  %v513_v38 = vld [vmem:[%s5942_s12 + $0x160] sm:$0xff]  ;;  %v515_v39 = vld [vmem:[%s5942_s12 + $0x168] sm:$0xff]  ;;  %512 = vst [vmem:[%s5947_s28 + $0xa8] sm:$0xff] %v511_v37 }
  0x43   : > { %514 = vst [vmem:[%s5947_s28 + $0xb0] sm:$0xff] %v513_v38  ;;  %516 = vst [vmem:[%s5947_s28 + $0xb8] sm:$0xff] %v515_v39  ;;  %v517_v40 = vld [vmem:[%s5942_s12 + $0x180] sm:$0xff]  ;;  %v519_v41 = vld [vmem:[%s5942_s12 + $0x188] sm:$0xff] }
  0x44   : > { %v521_v42 = vld [vmem:[%s5942_s12 + $0x1a0] sm:$0xff]  ;;  %518 = vst [vmem:[%s5947_s28 + $0xc0] sm:$0xff] %v517_v40  ;;  %520 = vst [vmem:[%s5947_s28 + $0xc8] sm:$0xff] %v519_v41  ;;  %v523_v43 = vld [vmem:[%s5942_s12 + $0x1a8] sm:$0xff] }
  0x45   : > { %522 = vst [vmem:[%s5947_s28 + $0xd0] sm:$0xff] %v521_v42  ;;  %v525_v44 = vld [vmem:[%s5942_s12 + $0x1c0] sm:$0xff]  ;;  %v527_v45 = vld [vmem:[%s5942_s12 + $0x1c8] sm:$0xff]  ;;  %524 = vst [vmem:[%s5947_s28 + $0xd8] sm:$0xff] %v523_v43 }
  0x46   : > { %526 = vst [vmem:[%s5947_s28 + $0xe0] sm:$0xff] %v525_v44  ;;  %528 = vst [vmem:[%s5947_s28 + $0xe8] sm:$0xff] %v527_v45  ;;  %v529_v46 = vld [vmem:[%s5942_s12 + $0x1e0] sm:$0xff]  ;;  %v531_v47 = vld [vmem:[%s5942_s12 + $0x1e8] sm:$0xff] }
  0x47   : > { %530 = vst [vmem:[%s5947_s28 + $0xf0] sm:$0xff] %v529_v46  ;;  %532 = vst [vmem:[%s5947_s28 + $0xf8] sm:$0xff] %v531_v47 }
  0x48 PF: > { %541 = sbr.rel (%p5896_p12) target bundleno = 4150 (0x1036), region = 111 }
  0x4d   : > { %s6013_s13 = sand.u32 1, %s5795_s19  }
  0x4e   : > { %s4874_s14 = sshll.u32 %s6013_s13, 7  ;;  %s4875_s15 = sshll.u32 %s6013_s13, 8 }
  0x4f   : > { %s6017_s16 = scalar_lea.vmem [#allocation3], %s4874_s14  ;;  %s6019_s17 = scalar_lea.vmem [#allocation4], %s4875_s15 }
  0x50   : > { %5782 = dma.done.wait (%p5138_p11), [#allocation6], 4096  }
  0x51   : > { %5784 = vsyncadd (%p5138_p11), [#allocation6], 4294963200  ;;  %v8278_v48 = vmov 0   ;;  %v5181_v49 = vld [vmem:[%s8273_s2 + $0xe4] ss:$16 sps:$4 sm:$0xff]   ;;  %v5233_v28 = vld [vmem:[%s6017_s16 + $0x8] sm:$0xff]  }
  0x52   : > { %964 = vmatprep.mubr.bf16.mxu0 %v8278_v48  ;;  %1157 = vmatprep.mubr.bf16.mxu1 %v8278_v48  ;;  %v5183_v50 = vld [vmem:[%s8273_s2 + $0xec] ss:$16 sps:$4 sm:$0xff]   ;;  %v5185_v51 = vld [vmem:[%s8273_s2 + $0xe0] ss:$16 sps:$4 sm:$0xff]   ;;  %v5186_v52 = vld [vmem:[%s8273_s2 + $0xe8] ss:$16 sps:$4 sm:$0xff]  }
  0x53   : > { %5180 = vset.pattern.permute.xlu1 %v8278_v48  ;;  %5179 = vset.pattern.permute.xlu0 %v8278_v48  ;;  %v5187_v53 = vld [vmem:[%s8273_s2 + $0xc4] ss:$16 sps:$4 sm:$0xff]   ;;  %v5189_v54 = vld [vmem:[%s8273_s2 + $0xcc] ss:$16 sps:$4 sm:$0xff]   ;;  %v5191_v55 = vld [vmem:[%s8273_s2 + $0xc0] ss:$16 sps:$4 sm:$0xff]  }
  0x54   : > { %932 = vmatprep.subr.bf16.mxu0 %v5181_v49  ;;  %1125 = vmatprep.subr.bf16.mxu1 %v5183_v50  ;;  %v5192_v56 = vld [vmem:[%s8273_s2 + $0xc8] ss:$16 sps:$4 sm:$0xff]   ;;  %v5193_v57 = vld [vmem:[%s8273_s2 + $0xa4] ss:$16 sps:$4 sm:$0xff]   ;;  %v5195_v58 = vld [vmem:[%s8273_s2 + $0xac] ss:$16 sps:$4 sm:$0xff]  }
  0x55   : > { %933 = vmatpush1.bf16.msra.mxu0 %v5185_v51  ;;  %1126 = vmatpush1.bf16.msra.mxu1 %v5186_v52  ;;  %v5197_v59 = vld [vmem:[%s8273_s2 + $0xa0] ss:$16 sps:$4 sm:$0xff]   ;;  %v5198_v60 = vld [vmem:[%s8273_s2 + $0xa8] ss:$16 sps:$4 sm:$0xff]   ;;  %v5199_v61 = vld [vmem:[%s8273_s2 + $0x84] ss:$16 sps:$4 sm:$0xff]  }
  0x56   : > { %934 = vmatprep.subr.bf16.mxu0 %v5187_v53  ;;  %1127 = vmatprep.subr.bf16.mxu1 %v5189_v54  ;;  %v5201_v62 = vld [vmem:[%s8273_s2 + $0x8c] ss:$16 sps:$4 sm:$0xff]   ;;  %v5203_v63 = vld [vmem:[%s8273_s2 + $0x80] ss:$16 sps:$4 sm:$0xff]   ;;  %v5204_v0 = vld [vmem:[%s8273_s2 + $0x88] ss:$16 sps:$4 sm:$0xff]  }
  0x57   : > { %v5205_v1 = vld [vmem:[%s8273_s2 + $0x64] ss:$16 sps:$4 sm:$0xff]   ;;  %v5207_v2 = vld [vmem:[%s8273_s2 + $0x6c] ss:$16 sps:$4 sm:$0xff]   ;;  %v5209_v3 = vld [vmem:[%s8273_s2 + $0x60] ss:$16 sps:$4 sm:$0xff]  }
  0x58   : > { %v5210_v4 = vld [vmem:[%s8273_s2 + $0x68] ss:$16 sps:$4 sm:$0xff]   ;;  %v5211_v5 = vld [vmem:[%s8273_s2 + $0x44] ss:$16 sps:$4 sm:$0xff]   ;;  %v5213_v6 = vld [vmem:[%s8273_s2 + $0x4c] ss:$16 sps:$4 sm:$0xff]  }
  0x59   : > { %935 = vmatpush1.bf16.msra.mxu0 %v5191_v55  ;;  %1128 = vmatpush1.bf16.msra.mxu1 %v5192_v56  ;;  %v5215_v7 = vld [vmem:[%s8273_s2 + $0x40] ss:$16 sps:$4 sm:$0xff]   ;;  %v5216_v8 = vld [vmem:[%s8273_s2 + $0x48] ss:$16 sps:$4 sm:$0xff]   ;;  %v5217_v9 = vld [vmem:[%s8273_s2 + $0x24] ss:$16 sps:$4 sm:$0xff]  }
  0x5a   : > { %936 = vmatprep.subr.bf16.mxu0 %v5193_v57  ;;  %1129 = vmatprep.subr.bf16.mxu1 %v5195_v58  ;;  %v5219_v10 = vld [vmem:[%s8273_s2 + $0x2c] ss:$16 sps:$4 sm:$0xff]   ;;  %v5221_v11 = vld [vmem:[%s8273_s2 + $0x20] ss:$16 sps:$4 sm:$0xff]   ;;  %v5222_v12 = vld [vmem:[%s8273_s2 + $0x28] ss:$16 sps:$4 sm:$0xff]  }
  0x5b   : > { %v5223_v13 = vld [vmem:[%s8273_s2 + $0x4] ss:$16 sps:$4 sm:$0xff]   ;;  %v5225_v14 = vld [vmem:[%s8273_s2 + $0xc] ss:$16 sps:$4 sm:$0xff]   ;;  %v5227_v15 = vld [vmem:[%s8273_s2] ss:$16 sps:$4 sm:$0xff]  }
  0x5c   : > { %v5228_v16 = vld [vmem:[%s8273_s2 + $0x8] ss:$16 sps:$4 sm:$0xff]   ;;  %v6125_v17 = vld [vmem:[#allocation5 + $0xe4] ss:$16 sps:$4 sm:$0xff]   ;;  %v6127_v18 = vld [vmem:[#allocation5 + $0xec] ss:$16 sps:$4 sm:$0xff]  }
  0x5d   : > { %937 = vmatpush1.bf16.msra.mxu0 %v5197_v59  ;;  %1130 = vmatpush1.bf16.msra.mxu1 %v5198_v60  ;;  %v5229_v19 = vld [vmem:[%s6017_s16] sm:$0xff]   ;;  %v6132_v21 = vld [vmem:[#allocation5 + $0xe8] ss:$16 sps:$4 sm:$0xff]   ;;  %v6138_v23 = vld [vmem:[#allocation5 + $0xcc] ss:$16 sps:$4 sm:$0xff]   ;;  %vm4670_vm3 = vcmask 7168  }
  0x5e   : > { %938 = vmatprep.subr.bf16.mxu0 %v5199_v61  ;;  %1131 = vmatprep.subr.bf16.mxu1 %v5201_v62  ;;  %v6130_v20 = vld [vmem:[#allocation5 + $0xe0] ss:$16 sps:$4 sm:$0xff]   ;;  %v6136_v22 = vld [vmem:[#allocation5 + $0xc4] ss:$16 sps:$4 sm:$0xff]   ;;  %v6146_v25 = vld [vmem:[#allocation5 + $0xc8] ss:$16 sps:$4 sm:$0xff]  }
  0x5f   : > { %v6142_v24 = vld [vmem:[#allocation5 + $0xc0] ss:$16 sps:$4 sm:$0xff]   ;;  %v6148_v26 = vld [vmem:[#allocation5 + $0xa4] ss:$16 sps:$4 sm:$0xff]   ;;  %v6152_v27 = vld [vmem:[#allocation5 + $0xac] ss:$16 sps:$4 sm:$0xff]  }
  0x60   : > { %v6155_v29 = vld [vmem:[#allocation5 + $0xa0] ss:$16 sps:$4 sm:$0xff]   ;;  %v6158_v30 = vld [vmem:[#allocation5 + $0xa8] ss:$16 sps:$4 sm:$0xff]   ;;  %v6162_v31 = vld [vmem:[#allocation5 + $0x84] ss:$16 sps:$4 sm:$0xff]  }
  0x61   : > { %939 = vmatpush1.bf16.msra.mxu0 %v5203_v63  ;;  %1132 = vmatpush1.bf16.msra.mxu1 %v5204_v0  ;;  %v6165_v32 = vld [vmem:[#allocation5 + $0x8c] ss:$16 sps:$4 sm:$0xff]   ;;  %v6169_v33 = vld [vmem:[#allocation5 + $0x80] ss:$16 sps:$4 sm:$0xff]   ;;  %v6174_v35 = vld [vmem:[#allocation5 + $0x88] ss:$16 sps:$4 sm:$0xff]  }
  0x62   : > { %940 = vmatprep.subr.bf16.mxu0 %v5205_v1  ;;  %1133 = vmatprep.subr.bf16.mxu1 %v5207_v2  ;;  %v5237_v34 = vld [vmem:[%s6017_s16 + $0x10] sm:$0xff]   ;;  %v6180_v37 = vld [vmem:[#allocation5 + $0x6c] ss:$16 sps:$4 sm:$0xff]   ;;  %v6184_v39 = vld [vmem:[#allocation5 + $0x68] ss:$16 sps:$4 sm:$0xff]   ;;  %s5123_s6 = sshll.u32 %s5863_s22, 8 }
  0x63   : > { %v6178_v36 = vld [vmem:[#allocation5 + $0x64] ss:$16 sps:$4 sm:$0xff]   ;;  %v6182_v38 = vld [vmem:[#allocation5 + $0x60] ss:$16 sps:$4 sm:$0xff]   ;;  %v6192_v41 = vld [vmem:[#allocation5 + $0x4c] ss:$16 sps:$4 sm:$0xff]   ;;  %s8226_s8 = scalar_lea.hbm %s8276_s5, %s5123_s6 }
  0x64   : > { %v6188_v40 = vld [vmem:[#allocation5 + $0x44] ss:$16 sps:$4 sm:$0xff]   ;;  %v6196_v42 = vld [vmem:[#allocation5 + $0x40] ss:$16 sps:$4 sm:$0xff]   ;;  %v6200_v43 = vld [vmem:[#allocation5 + $0x48] ss:$16 sps:$4 sm:$0xff]  }
  0x65   : > { %941 = vmatpush1.bf16.msra.mxu0 %v5209_v3  ;;  %1134 = vmatpush1.bf16.msra.mxu1 %v5210_v4  ;;  %v6202_v44 = vld [vmem:[#allocation5 + $0x24] ss:$16 sps:$4 sm:$0xff]   ;;  %v6206_v45 = vld [vmem:[#allocation5 + $0x2c] ss:$16 sps:$4 sm:$0xff]   ;;  %v6209_v47 = vld [vmem:[#allocation5 + $0x20] ss:$16 sps:$4 sm:$0xff]  }
  0x66   : > { %942 = vmatprep.subr.bf16.mxu0 %v5211_v5  ;;  %1135 = vmatprep.subr.bf16.mxu1 %v5213_v6  ;;  %v5241_v46 = vld [vmem:[%s6017_s16 + $0x18] sm:$0xff]   ;;  %v6217_v50 = vld [vmem:[#allocation5 + $0x4] ss:$16 sps:$4 sm:$0xff]   ;;  %v6225_v52 = vld [vmem:[#allocation5] ss:$16 sps:$4 sm:$0xff]   ;;  %v656_v6 = vlaneseq  ;;  %s4752_s9 = scalar_lea.sflag [#allocation7], %s6013_s13 }
  0x67   : > { %v6213_v49 = vld [vmem:[#allocation5 + $0x28] ss:$16 sps:$4 sm:$0xff]   ;;  %v6219_v51 = vld [vmem:[#allocation5 + $0xc] ss:$16 sps:$4 sm:$0xff]   ;;  %v5245_v54 = vld [vmem:[%s6017_s16 + $0x20] sm:$0xff]   ;;  %p8537_p6 = scmp.ne.s32.totalorder %s8365_s29, 0 }
  0x68   : > { %v6227_v53 = vld [vmem:[#allocation5 + $0x8] ss:$16 sps:$4 sm:$0xff]   ;;  %v5253_v56 = vld [vmem:[%s6017_s16 + $0x30] sm:$0xff]   ;;  %v5261_v58 = vld [vmem:[%s6017_s16 + $0x40] sm:$0xff]   ;;  %s5809_s10 = smov [#allocation8]  }
  0x69   : > { %943 = vmatpush1.bf16.msra.mxu0 %v5215_v7  ;;  %1136 = vmatpush1.bf16.msra.mxu1 %v5216_v8  ;;  %v5249_v55 = vld [vmem:[%s6017_s16 + $0x28] sm:$0xff]   ;;  %v5257_v57 = vld [vmem:[%s6017_s16 + $0x38] sm:$0xff]   ;;  %v5269_v60 = vld [vmem:[%s6017_s16 + $0x50] sm:$0xff]   ;;  %v6312_v7 = vshrl.u32 %v656_v6, 7  ;;  %s5743_s11 = sshll.u32 %s5809_s10, 4  ;;  %s5744_s11 = int_to_ptr.vmem [resolvable:$false] %s5743_s11 }
  0x6a   : > { %944 = vmatprep.subr.bf16.mxu0 %v5217_v9  ;;  %1137 = vmatprep.subr.bf16.mxu1 %v5219_v10  ;;  %v5265_v59 = vld [vmem:[%s6017_s16 + $0x48] sm:$0xff]   ;;  %v5273_v61 = vld [vmem:[%s6017_s16 + $0x58] sm:$0xff]   ;;  %v5277_v62 = vld [vmem:[%s6017_s16 + $0x60] sm:$0xff]   ;;  %s5745_s12 = scalar_lea.vmem %s5744_s11, 512 }
  0x6b   : > { %v5281_v63 = vld [vmem:[%s6017_s16 + $0x68] sm:$0xff]   ;;  %v5285_v0 = vld [vmem:[%s6017_s16 + $0x70] sm:$0xff]   ;;  %v2119_v2 = vld [vmem:[%s6019_s17] sm:$0xff]  ;;  %v666_v8 = vsub.s32 2, %v6312_v7  ;;  %v658_v9 = vsub.s32 0, %v6312_v7  ;;  %v662_v10 = vsub.s32 1, %v6312_v7 }
  0x6c   : > { %v5022_v1 = vld [vmem:[%s6019_s17 + $0xf0] sm:$0xff]  ;;  %2127 = vperm.xlu0 %5179, %v2119_v2   ;;  %v5023_v3 = vld [vmem:[%s6019_s17 + $0xf8] sm:$0xff]  ;;  %v2120_v4 = vld [vmem:[%s6019_s17 + $0x8] sm:$0xff] }
  0x6d   : > { %945 = vmatpush1.bf16.msra.mxu0 %v5221_v11  ;;  %1138 = vmatpush1.bf16.msra.mxu1 %v5222_v12  ;;  %v5289_v5 = vld [vmem:[%s6017_s16 + $0x78] sm:$0xff]   ;;  %v670_v11 = vsub.s32 3, %v6312_v7  ;;  %v654_v12 = vld [vmem:[%s8274_s3] sm:$0xf] }
  0x6e   : > { %946 = vmatprep.subr.bf16.mxu0 %v5223_v13  ;;  %1139 = vmatprep.subr.bf16.mxu1 %v5225_v14  ;;  %v6321_v13 = vrot.slane %v654_v12, %v666_v8  ;;  %v6325_v14 = vrot.slane %v654_v12, %v658_v9 }
  0x6f   : > { %2137 = vperm.xlu1 %5180, %v5022_v1  }
  0x70   : > { %2132 = vperm.xlu0 %5179, %v2120_v4  }
  0x71   : > { %947 = vmatpush1.bf16.msra.mxu0 %v5227_v15  ;;  %1140 = vmatpush1.bf16.msra.mxu1 %v5228_v16  ;;  %v6327_v15 = vrot.slane %v654_v12, %v662_v10  ;;  %v6329_v16 = vrot.slane %v654_v12, %v670_v11 }
  0x72   : > { %1961 = vmatprep.subr.bf16.mxu0 %v6125_v17  ;;  %2004 = vmatprep.subr.bf16.mxu1 %v6127_v18 }
  0x73   : > { %2142 = vperm.xlu1 %5180, %v5023_v3  }
  0x74   : > { %965 = vmatmul.mubr.bf16.vlgmr.msra.gmra.mxu0 %v5229_v19  ;;  %1158 = vmatmul.mubr.bf16.vlgmr.msra.gmra.mxu1 %v5229_v19 }
  0x75   : > { %1962 = vmatpush1.bf16.msra.mxu0 %v6130_v20  ;;  %974 = vmatprep.mubr.bf16.mxu0 %v8278_v48 }
  0x76   : > { %1167 = vmatprep.mubr.bf16.mxu1 %v8278_v48  ;;  %2005 = vmatpush1.bf16.msra.mxu1 %v6132_v21 }
  0x77   : > { %1963 = vmatprep.subr.bf16.mxu0 %v6136_v22  ;;  %2006 = vmatprep.subr.bf16.mxu1 %v6138_v23 }
  0x79   : > { %1964 = vmatpush1.bf16.msra.mxu0 %v6142_v24 }
  0x7a   : > { %2007 = vmatpush1.bf16.msra.mxu1 %v6146_v25  ;;  %1965 = vmatprep.subr.bf16.mxu0 %v6148_v26 }
  0x7b   : > { %2008 = vmatprep.subr.bf16.mxu1 %v6152_v27 }
  0x7c   : > { %975 = vmatmul.mubr.bf16.gmra.mxu0 %v5233_v28  ;;  %1168 = vmatmul.mubr.bf16.gmra.mxu1 %v5233_v28 }
  0x7d   : > { %984 = vmatprep.mubr.bf16.mxu0 %v8278_v48  ;;  %1177 = vmatprep.mubr.bf16.mxu1 %v8278_v48 }
  0x7e   : > { %1966 = vmatpush1.bf16.msra.mxu0 %v6155_v29  ;;  %2009 = vmatpush1.bf16.msra.mxu1 %v6158_v30 }
  0x7f   : > { %1967 = vmatprep.subr.bf16.mxu0 %v6162_v31  ;;  %2010 = vmatprep.subr.bf16.mxu1 %v6165_v32 }
  0x82   : > { %1968 = vmatpush1.bf16.msra.mxu0 %v6169_v33  ;;  %2011 = vmatpush1.bf16.msra.mxu1 %v6174_v35 }
  0x83   : > { %1969 = vmatprep.subr.bf16.mxu0 %v6178_v36  ;;  %2012 = vmatprep.subr.bf16.mxu1 %v6180_v37 }
  0x84   : > { %985 = vmatmul.mubr.bf16.gmra.mxu0 %v5237_v34  ;;  %1178 = vmatmul.mubr.bf16.gmra.mxu1 %v5237_v34 }
  0x85   : > { %994 = vmatprep.mubr.bf16.mxu0 %v8278_v48  ;;  %1187 = vmatprep.mubr.bf16.mxu1 %v8278_v48 }
  0x86   : > { %1970 = vmatpush1.bf16.msra.mxu0 %v6182_v38  ;;  %2013 = vmatpush1.bf16.msra.mxu1 %v6184_v39 }
  0x87   : > { %1971 = vmatprep.subr.bf16.mxu0 %v6188_v40  ;;  %2014 = vmatprep.subr.bf16.mxu1 %v6192_v41 }
  0x8a   : > { %1972 = vmatpush1.bf16.msra.mxu0 %v6196_v42  ;;  %2015 = vmatpush1.bf16.msra.mxu1 %v6200_v43 }
  0x8b   : > { %1973 = vmatprep.subr.bf16.mxu0 %v6202_v44  ;;  %2016 = vmatprep.subr.bf16.mxu1 %v6206_v45 }
  0x8c   : > { %995 = vmatmul.mubr.bf16.gmra.mxu0 %v5241_v46  ;;  %1188 = vmatmul.mubr.bf16.gmra.mxu1 %v5241_v46 }
  0x8d   : > { %1004 = vmatprep.mubr.bf16.mxu0 %v8278_v48  ;;  %1197 = vmatprep.mubr.bf16.mxu1 %v8278_v48 }
  0x8e   : > { %1974 = vmatpush1.bf16.msra.mxu0 %v6209_v47  ;;  %2017 = vmatpush1.bf16.msra.mxu1 %v6213_v49 }
  0x8f   : > { %1975 = vmatprep.subr.bf16.mxu0 %v6217_v50  ;;  %2018 = vmatprep.subr.bf16.mxu1 %v6219_v51 }
  0x92   : > { %1976 = vmatpush1.bf16.msra.mxu0 %v6225_v52  ;;  %2019 = vmatpush1.bf16.msra.mxu1 %v6227_v53 }
  0x93   : > { %2152 = vmatprep.subr.bf16.mxu0 %v6125_v17  ;;  %2195 = vmatprep.subr.bf16.mxu1 %v6127_v18 }
  0x94   : > { %1005 = vmatmul.mubr.bf16.gmra.mxu0 %v5245_v54  ;;  %1198 = vmatmul.mubr.bf16.gmra.mxu1 %v5245_v54 }
  0x95   : > { %1014 = vmatprep.mubr.bf16.mxu0 %v8278_v48  ;;  %1207 = vmatprep.mubr.bf16.mxu1 %v8278_v48 }
  0x9c   : > { %1015 = vmatmul.mubr.bf16.gmra.mxu0 %v5249_v55  ;;  %1208 = vmatmul.mubr.bf16.gmra.mxu1 %v5249_v55 }
  0x9d   : > { %1024 = vmatprep.mubr.bf16.mxu0 %v8278_v48  ;;  %1217 = vmatprep.mubr.bf16.mxu1 %v8278_v48 }
  0xa4   : > { %1025 = vmatmul.mubr.bf16.gmra.mxu0 %v5253_v56  ;;  %1218 = vmatmul.mubr.bf16.gmra.mxu1 %v5253_v56 }
  0xa5   : > { %1034 = vmatprep.mubr.bf16.mxu0 %v8278_v48  ;;  %1227 = vmatprep.mubr.bf16.mxu1 %v8278_v48 }
  0xac   : > { %1035 = vmatmul.mubr.bf16.gmra.mxu0 %v5257_v57  ;;  %1228 = vmatmul.mubr.bf16.gmra.mxu1 %v5257_v57 }
  0xad   : > { %1044 = vmatprep.mubr.bf16.mxu0 %v8278_v48  ;;  %1237 = vmatprep.mubr.bf16.mxu1 %v8278_v48 }
  0xb4   : > { %1045 = vmatmul.mubr.bf16.gmra.mxu0 %v5261_v58  ;;  %1238 = vmatmul.mubr.bf16.gmra.mxu1 %v5261_v58 }
  0xb5   : > { %1054 = vmatprep.mubr.bf16.mxu0 %v8278_v48  ;;  %1247 = vmatprep.mubr.bf16.mxu1 %v8278_v48 }
  0xbc   : > { %1055 = vmatmul.mubr.bf16.gmra.mxu0 %v5265_v59  ;;  %1248 = vmatmul.mubr.bf16.gmra.mxu1 %v5265_v59 }
  0xbd   : > { %1064 = vmatprep.mubr.bf16.mxu0 %v8278_v48  ;;  %1257 = vmatprep.mubr.bf16.mxu1 %v8278_v48 }
  0xc4   : > { %1065 = vmatmul.mubr.bf16.gmra.mxu0 %v5269_v60  ;;  %1258 = vmatmul.mubr.bf16.gmra.mxu1 %v5269_v60 }
  0xc5   : > { %1074 = vmatprep.mubr.bf16.mxu0 %v8278_v48  ;;  %1267 = vmatprep.mubr.bf16.mxu1 %v8278_v48 }
  0xcc   : > { %1075 = vmatmul.mubr.bf16.gmra.mxu0 %v5273_v61  ;;  %1268 = vmatmul.mubr.bf16.gmra.mxu1 %v5273_v61 }
  0xcd   : > { %1084 = vmatprep.mubr.bf16.mxu0 %v8278_v48  ;;  %1277 = vmatprep.mubr.bf16.mxu1 %v8278_v48 }
  0xd4   : > { %1085 = vmatmul.mubr.bf16.gmra.mxu0 %v5277_v62  ;;  %1278 = vmatmul.mubr.bf16.gmra.mxu1 %v5277_v62 }
  0xd5   : > { %1094 = vmatprep.mubr.bf16.mxu0 %v8278_v48  ;;  %1287 = vmatprep.mubr.bf16.mxu1 %v8278_v48 }
  0xdc   : > { %1095 = vmatmul.mubr.bf16.gmra.mxu0 %v5281_v63  ;;  %1288 = vmatmul.mubr.bf16.gmra.mxu1 %v5281_v63 }
  0xdd   : > { %1104 = vmatprep.mubr.bf16.mxu0 %v8278_v48  ;;  %1297 = vmatprep.mubr.bf16.mxu1 %v8278_v48 }
  0xe4   : > { %1105 = vmatmul.mubr.bf16.gmra.mxu0 %v5285_v0  ;;  %1298 = vmatmul.mubr.bf16.gmra.mxu1 %v5285_v0 }
  0xe5   : > { %1114 = vmatprep.mubr.bf16.mxu0 %v8278_v48  ;;  %1307 = vmatprep.mubr.bf16.mxu1 %v8278_v48 }
  0xec   : > { %1115 = vmatmul.mubr.bf16.gmra.mxu0 %v5289_v5  ;;  %1308 = vmatmul.mubr.bf16.gmra.mxu1 %v5289_v5 }
  0xed   : > { %1993 = vmatprep.mubr.bf16.mxu0 %v8278_v48  ;;  %2036 = vmatprep.mubr.bf16.mxu1 %v8278_v48 }
  0xf4   : > { %1994 = vmatmul.mubr.bf16.vlgmr.msra.gmra.mxu0 %v8278_v48  ;;  %2037 = vmatmul.mubr.bf16.vlgmr.msra.gmra.mxu1 %v8278_v48 }
  0xf5   : > { %2153 = vmatpush1.bf16.msra.mxu0 %v6130_v20  ;;  %2196 = vmatpush1.bf16.msra.mxu1 %v6132_v21 }
  0xf6   : > { %2154 = vmatprep.subr.bf16.mxu0 %v6136_v22  ;;  %2197 = vmatprep.subr.bf16.mxu1 %v6138_v23 }
  0xf7   : > { %2184 = vmatprep.mubr.bf16.mxu0 %v8278_v48  ;;  %2227 = vmatprep.mubr.bf16.mxu1 %v8278_v48 }
  0xf9   : > { %2155 = vmatpush1.bf16.msra.mxu0 %v6142_v24  ;;  %2198 = vmatpush1.bf16.msra.mxu1 %v6146_v25 }
  0xfa   : > { %2156 = vmatprep.subr.bf16.mxu0 %v6148_v26  ;;  %2199 = vmatprep.subr.bf16.mxu1 %v6152_v27 }
  0xfd   : > { %2157 = vmatpush1.bf16.msra.mxu0 %v6155_v29  ;;  %2200 = vmatpush1.bf16.msra.mxu1 %v6158_v30 }
  0xfe   : > { %2158 = vmatprep.subr.bf16.mxu0 %v6162_v31  ;;  %2201 = vmatprep.subr.bf16.mxu1 %v6165_v32 }
 0x101   : > { %2159 = vmatpush1.bf16.msra.mxu0 %v6169_v33  ;;  %2202 = vmatpush1.bf16.msra.mxu1 %v6174_v35 }
 0x102   : > { %2160 = vmatprep.subr.bf16.mxu0 %v6178_v36  ;;  %2203 = vmatprep.subr.bf16.mxu1 %v6180_v37 }
 0x105   : > { %2161 = vmatpush1.bf16.msra.mxu0 %v6182_v38  ;;  %2204 = vmatpush1.bf16.msra.mxu1 %v6184_v39 }
 0x106   : > { %2162 = vmatprep.subr.bf16.mxu0 %v6188_v40  ;;  %2205 = vmatprep.subr.bf16.mxu1 %v6192_v41 }
 0x109   : > { %2163 = vmatpush1.bf16.msra.mxu0 %v6196_v42  ;;  %2206 = vmatpush1.bf16.msra.mxu1 %v6200_v43 }
 0x10a   : > { %2164 = vmatprep.subr.bf16.mxu0 %v6202_v44  ;;  %2207 = vmatprep.subr.bf16.mxu1 %v6206_v45 }
 0x10d   : > { %2165 = vmatpush1.bf16.msra.mxu0 %v6209_v47  ;;  %2208 = vmatpush1.bf16.msra.mxu1 %v6213_v49 }
 0x10e   : > { %2166 = vmatprep.subr.bf16.mxu0 %v6217_v50  ;;  %2209 = vmatprep.subr.bf16.mxu1 %v6219_v51 }
 0x111   : > { %2167 = vmatpush1.bf16.msra.mxu0 %v6225_v52  ;;  %2210 = vmatpush1.bf16.msra.mxu1 %v6227_v53 }
 0x112   : > { %2337 = vmatprep.subr.bf16.mxu0 %v6125_v17  ;;  %2380 = vmatprep.subr.bf16.mxu1 %v6127_v18 }
 0x134   : > { %v966_v17 = vpop.f32.mrf.mxu0  ;;  %v1159_v18 = vpop.f32.mrf.mxu1 }
 0x135   : > { %v1160_v19 = vadd.f32 %v1159_v18, %v6321_v13  ;;  %v967_v22 = vadd.f32 %v966_v17, %v6325_v14 }
 0x136   : > { %v968_v20 = vpop.f32.mrf.mxu0  ;;  %v1161_v21 = vpop.f32.mrf.mxu1 }
 0x137   : > { %v969_v23 = vadd.f32 %v968_v20, %v6327_v15  ;;  %v1162_v24 = vadd.f32 %v1161_v21, %v6329_v16 }
 0x138   : > { %v6335_v25 = vpop.f32.mrf.mxu0  ;;  %v6337_v26 = vpop.f32.mrf.mxu1 }
 0x139   : > { %v6339_v27 = vpack.c.bf16 %v969_v23, %v967_v22  ;;  %v6341_v28 = vpack.c.bf16 %v1162_v24, %v1160_v19 }
 0x13a   : > { %v6343_v29 = vpop.f32.mrf.mxu0  ;;  %v6345_v30 = vpop.f32.mrf.mxu1 }
 0x13c   : > { %v976_v31 = vpop.f32.mrf.mxu0  ;;  %v1169_v32 = vpop.f32.mrf.mxu1 }
 0x13d   : > { %v1170_v33 = vadd.f32 %v1169_v32, %v6321_v13  ;;  %v977_v36 = vadd.f32 %v976_v31, %v6325_v14 }
 0x13e   : > { %v978_v34 = vpop.f32.mrf.mxu0  ;;  %v1171_v35 = vpop.f32.mrf.mxu1 }
 0x13f   : > { %v979_v37 = vadd.f32 %v978_v34, %v6327_v15  ;;  %v1172_v38 = vadd.f32 %v1171_v35, %v6329_v16 }
 0x140   : > { %v6351_v39 = vpop.f32.mrf.mxu0  ;;  %v6353_v40 = vpop.f32.mrf.mxu1 }
 0x141   : > { %v6355_v41 = vpack.c.bf16 %v979_v37, %v977_v36  ;;  %v6357_v42 = vpack.c.bf16 %v1172_v38, %v1170_v33 }
 0x142   : > { %v6359_v43 = vpop.f32.mrf.mxu0  ;;  %v6361_v44 = vpop.f32.mrf.mxu1 }
 0x144   : > { %v986_v45 = vpop.f32.mrf.mxu0  ;;  %v1179_v46 = vpop.f32.mrf.mxu1 }
 0x145   : > { %v1180_v47 = vadd.f32 %v1179_v46, %v6321_v13  ;;  %v987_v51 = vadd.f32 %v986_v45, %v6325_v14 }
 0x146   : > { %v988_v49 = vpop.f32.mrf.mxu0  ;;  %v1181_v50 = vpop.f32.mrf.mxu1 }
 0x147   : > { %v989_v52 = vadd.f32 %v988_v49, %v6327_v15  ;;  %v1182_v53 = vadd.f32 %v1181_v50, %v6329_v16 }
 0x148   : > { %v6367_v54 = vpop.f32.mrf.mxu0  ;;  %v6369_v55 = vpop.f32.mrf.mxu1 }
 0x149   : > { %v6371_v56 = vpack.c.bf16 %v989_v52, %v987_v51  ;;  %v6373_v57 = vpack.c.bf16 %v1182_v53, %v1180_v47  ;;  %v6413_v53 = vand.u32 127, %v656_v6  ;;  %v6424_v6 = vpop.permute.xlu1 %2137 }
 0x14a   : > { %v6375_v58 = vpop.f32.mrf.mxu0  ;;  %v6377_v59 = vpop.f32.mrf.mxu1 }
 0x14b   : > { %8368 = vst [vmem:[#allocation11_spill] sm:$0xff] %v6413_v53  ;;  %vm1800_vm0 = vcmp.lt.s32.totalorder %v6413_v53, 64 }
 0x14c   : > { %v996_v60 = vpop.f32.mrf.mxu0  ;;  %v1189_v61 = vpop.f32.mrf.mxu1 }
 0x14d   : > { %v1190_v62 = vadd.f32 %v1189_v61, %v6321_v13  ;;  %v997_v1 = vadd.f32 %v996_v60, %v6325_v14 }
 0x14e   : > { %v998_v63 = vpop.f32.mrf.mxu0  ;;  %v1191_v0 = vpop.f32.mrf.mxu1 }
 0x14f   : > { %v999_v2 = vadd.f32 %v998_v63, %v6327_v15  ;;  %v1192_v3 = vadd.f32 %v1191_v0, %v6329_v16 }
 0x150   : > { %v6383_v4 = vpop.f32.mrf.mxu0  ;;  %v6385_v5 = vpop.f32.mrf.mxu1 }
 0x151   : > { %v6387_v8 = vpack.c.bf16 %v999_v2, %v997_v1  ;;  %v6389_v10 = vpack.c.bf16 %v1192_v3, %v1190_v62 }
 0x152   : > { %v6391_v11 = vpop.f32.mrf.mxu0  ;;  %v6393_v12 = vpop.f32.mrf.mxu1 }
 0x154   : > { %v1006_v17 = vpop.f32.mrf.mxu0  ;;  %v1199_v18 = vpop.f32.mrf.mxu1 }
 0x155   : > { %v1200_v19 = vadd.f32 %v1199_v18, %v6321_v13  ;;  %v1007_v22 = vadd.f32 %v1006_v17, %v6325_v14 }
 0x156   : > { %v1008_v20 = vpop.f32.mrf.mxu0  ;;  %v1201_v21 = vpop.f32.mrf.mxu1 }
 0x157   : > { %v1009_v23 = vadd.f32 %v1008_v20, %v6327_v15  ;;  %v1202_v24 = vadd.f32 %v1201_v21, %v6329_v16 }
 0x158   : > { %v1010_v31 = vpop.f32.mrf.mxu0  ;;  %v1203_v32 = vpop.f32.mrf.mxu1 }
 0x159   : > { %v6399_v33 = vpack.c.bf16 %v1009_v23, %v1007_v22  ;;  %v6401_v34 = vpack.c.bf16 %v1202_v24, %v1200_v19  ;;  %v1204_v35 = vadd.f32 %v1203_v32, %v6321_v13  ;;  %v1011_v38 = vadd.f32 %v1010_v31, %v6325_v14  ;;  %v6426_v19 = vpop.permute.xlu0 %2127 }
 0x15a   : > { %v1012_v36 = vpop.f32.mrf.mxu0  ;;  %v1205_v37 = vpop.f32.mrf.mxu1  ;;  %8369 = vst [vmem:[#allocation12_spill] sm:$0xff] %v6426_v19  ;;  %v6432_v22 = vsel %vm1800_vm0, %v6424_v6, %v6426_v19 }
 0x15b   : > { %v1013_v45 = vadd.f32 %v1012_v36, %v6327_v15  ;;  %v1206_v46 = vadd.f32 %v1205_v37, %v6329_v16  ;;  %8370 = vst [vmem:[#allocation13_spill] sm:$0xff] %v6432_v22 }
 0x15c   : > { %v1016_v47 = vpop.f32.mrf.mxu0  ;;  %v1209_v49 = vpop.f32.mrf.mxu1 }
 0x15d   : > { %v6407_v50 = vpack.c.bf16 %v1013_v45, %v1011_v38  ;;  %v6409_v51 = vpack.c.bf16 %v1206_v46, %v1204_v35  ;;  %v1210_v52 = vadd.f32 %v1209_v49, %v6321_v13  ;;  %v1017_v62 = vadd.f32 %v1016_v47, %v6325_v14 }
 0x15e   : > { %v1018_v60 = vpop.f32.mrf.mxu0  ;;  %v1211_v61 = vpop.f32.mrf.mxu1 }
 0x15f   : > { %v1019_v63 = vadd.f32 %v1018_v60, %v6327_v15  ;;  %v1212_v0 = vadd.f32 %v1211_v61, %v6329_v16  ;;  %v5024_v60 = vld [vmem:[%s6019_s17 + $0x10] sm:$0xff]  ;;  %v5025_v61 = vld [vmem:[%s6019_s17 + $0x18] sm:$0xff] }
 0x160   : > { %v1020_v1 = vpop.f32.mrf.mxu0  ;;  %v1213_v2 = vpop.f32.mrf.mxu1  ;;  %2312 = vperm.xlu0 %5179, %v5024_v60   ;;  %2317 = vperm.xlu1 %5180, %v5025_v61   ;;  %v2056_v60 = vsel %vm1800_vm0, 1, %v8278_v48 }
 0x161   : > { %v6418_v3 = vpack.c.bf16 %v1019_v63, %v1017_v62  ;;  %v6420_v17 = vpack.c.bf16 %v1212_v0, %v1210_v52  ;;  %v1214_v18 = vadd.f32 %v1213_v2, %v6321_v13  ;;  %v1021_v23 = vadd.f32 %v1020_v1, %v6325_v14 }
 0x162   : > { %v1022_v20 = vpop.f32.mrf.mxu0  ;;  %v1215_v21 = vpop.f32.mrf.mxu1 }
 0x163   : > { %v1023_v24 = vadd.f32 %v1022_v20, %v6327_v15  ;;  %v1216_v31 = vadd.f32 %v1215_v21, %v6329_v16  ;;  %v5027_v20 = vld [vmem:[%s6019_s17 + $0xe8] sm:$0xff] }
 0x164   : > { %v1026_v32 = vpop.f32.mrf.mxu0  ;;  %v1219_v35 = vpop.f32.mrf.mxu1  ;;  %2327 = vperm.xlu1 %5180, %v5027_v20  }
 0x165   : > { %v6437_v36 = vpack.c.bf16 %v1023_v24, %v1021_v23  ;;  %v6439_v37 = vpack.c.bf16 %v1216_v31, %v1214_v18  ;;  %v1220_v38 = vadd.f32 %v1219_v35, %v6321_v13  ;;  %v1027_v47 = vadd.f32 %v1026_v32, %v6325_v14  ;;  %v5026_v18 = vld [vmem:[%s6019_s17 + $0xe0] sm:$0xff] }
 0x166   : > { %v1028_v45 = vpop.f32.mrf.mxu0  ;;  %v1221_v46 = vpop.f32.mrf.mxu1  ;;  %2322 = vperm.xlu0 %5179, %v5026_v18  }
 0x167   : > { %v1029_v49 = vadd.f32 %v1028_v45, %v6327_v15  ;;  %v1222_v52 = vadd.f32 %v1221_v46, %v6329_v16 }
 0x168   : > { %v1030_v62 = vpop.f32.mrf.mxu0  ;;  %v1223_v63 = vpop.f32.mrf.mxu1 }
 0x169   : > { %v6447_v0 = vpack.c.bf16 %v1029_v49, %v1027_v47  ;;  %v6449_v1 = vpack.c.bf16 %v1222_v52, %v1220_v38  ;;  %v1224_v2 = vadd.f32 %v1223_v63, %v6321_v13  ;;  %v1031_v24 = vadd.f32 %v1030_v62, %v6325_v14 }
 0x16a   : > { %v1032_v21 = vpop.f32.mrf.mxu0  ;;  %v1225_v23 = vpop.f32.mrf.mxu1 }
 0x16b   : > { %v1033_v31 = vadd.f32 %v1032_v21, %v6327_v15  ;;  %v1226_v32 = vadd.f32 %v1225_v23, %v6329_v16 }
 0x16c   : > { %v1036_v35 = vpop.f32.mrf.mxu0  ;;  %v1229_v45 = vpop.f32.mrf.mxu1 }
 0x16d   : > { %v6457_v46 = vpack.c.bf16 %v1033_v31, %v1031_v24  ;;  %v6459_v38 = vpack.c.bf16 %v1226_v32, %v1224_v2  ;;  %v1230_v47 = vadd.f32 %v1229_v45, %v6321_v13  ;;  %v1037_v61 = vadd.f32 %v1036_v35, %v6325_v14 }
 0x16e   : > { %v1038_v49 = vpop.f32.mrf.mxu0  ;;  %v1231_v52 = vpop.f32.mrf.mxu1  ;;  %v2060_v24 = vrot.slane %v2056_v60, %v658_v9 }
 0x16f   : > { %v1039_v62 = vadd.f32 %v1038_v49, %v6327_v15  ;;  %v1232_v63 = vadd.f32 %v1231_v52, %v6329_v16 }
 0x170   : > { %v1040_v18 = vpop.f32.mrf.mxu0  ;;  %v1233_v20 = vpop.f32.mrf.mxu1  ;;  %vm2061_vm1 = vcmp.eq.s32.totalorder %v2060_v24, 1 }
 0x171   : > { %v5087_v21 = vpack.c.bf16 %v1039_v62, %v1037_v61  ;;  %v5088_v23 = vpack.c.bf16 %v1232_v63, %v1230_v47  ;;  %v1234_v2 = vadd.f32 %v1233_v20, %v6321_v13  ;;  %v1041_v45 = vadd.f32 %v1040_v18, %v6325_v14  ;;  %vm6478_vm2 = vmpackc.low %vm2061_vm1, %vm2061_vm1 }
 0x172   : > { %v1042_v31 = vpop.f32.mrf.mxu0  ;;  %v1235_v32 = vpop.f32.mrf.mxu1 }
 0x173   : > { %v1043_v48 = vadd.f32 %v1042_v31, %v6327_v15  ;;  %v1236_v35 = vadd.f32 %v1235_v32, %v6329_v16 }
 0x174   : > { %v1046_v49 = vpop.f32.mrf.mxu0  ;;  %v1239_v22 = vpop.f32.mrf.mxu1 }
 0x175   : > { %v5089_v52 = vpack.c.bf16 %v1043_v48, %v1041_v45  ;;  %v5090_v53 = vpack.c.bf16 %v1236_v35, %v1234_v2  ;;  %v1240_v61 = vadd.f32 %v1239_v22, %v6321_v13  ;;  %v1047_v7 = vadd.f32 %v1046_v49, %v6325_v14 }
 0x176   : > { %v1048_v47 = vpop.f32.mrf.mxu0  ;;  %v1241_v62 = vpop.f32.mrf.mxu1 }
 0x177   : > { %v1049_v9 = vadd.f32 %v1048_v47, %v6327_v15  ;;  %v1242_v60 = vadd.f32 %v1241_v62, %v6329_v16 }
 0x178   : > { %v1050_v63 = vpop.f32.mrf.mxu0  ;;  %v1243_v18 = vpop.f32.mrf.mxu1 }
 0x179   : > { %v5091_v31 = vpack.c.bf16 %v1049_v9, %v1047_v7  ;;  %v5092_v48 = vpack.c.bf16 %v1242_v60, %v1240_v61  ;;  %v1244_v2 = vadd.f32 %v1243_v18, %v6321_v13  ;;  %v1051_v22 = vadd.f32 %v1050_v63, %v6325_v14 }
 0x17a   : > { %v1052_v24 = vpop.f32.mrf.mxu0  ;;  %v1245_v32 = vpop.f32.mrf.mxu1 }
 0x17b   : > { %v1053_v45 = vadd.f32 %v1052_v24, %v6327_v15  ;;  %v1246_v35 = vadd.f32 %v1245_v32, %v6329_v16  ;;  %v6488_v49 = vsel %vm6478_vm2, %v5087_v21, %v5091_v31  ;;  %v6492_v47 = vsel %vm6478_vm2, %v5088_v23, %v5092_v48 }
 0x17c   : > { %8373 = vst [vmem:[#allocation14_spill] sm:$0xff] %v6488_v49  ;;  %8374 = vst [vmem:[#allocation15_spill] sm:$0xff] %v6492_v47  ;;  %v1056_v62 = vpop.f32.mrf.mxu0  ;;  %v1249_v61 = vpop.f32.mrf.mxu1  ;;  %v6498_v32 = vsel %vm6478_vm2, %v5091_v31, %v5087_v21  ;;  %v6502_v49 = vsel %vm6478_vm2, %v5092_v48, %v5088_v23 }
 0x17d   : > { %v5093_v7 = vpack.c.bf16 %v1053_v45, %v1051_v22  ;;  %v5094_v9 = vpack.c.bf16 %v1246_v35, %v1244_v2  ;;  %v1250_v60 = vadd.f32 %v1249_v61, %v6321_v13  ;;  %v1057_v63 = vadd.f32 %v1056_v62, %v6325_v14  ;;  %8375 = vst [vmem:[#allocation16_spill] sm:$0xff] %v6498_v32 }
 0x17e   : > { %v1058_v18 = vpop.f32.mrf.mxu0  ;;  %v1251_v24 = vpop.f32.mrf.mxu1  ;;  %8376 = vst [vmem:[#allocation17_spill] sm:$0xff] %v6502_v49 }
 0x17f   : > { %v1059_v47 = vadd.f32 %v1058_v18, %v6327_v15  ;;  %v1252_v19 = vadd.f32 %v1251_v24, %v6329_v16  ;;  %v6508_v2 = vsel %vm6478_vm2, %v5089_v52, %v5093_v7  ;;  %v6512_v22 = vsel %vm6478_vm2, %v5090_v53, %v5094_v9 }
 0x180   : > { %8377 = vst [vmem:[#allocation18_spill] sm:$0xff] %v6508_v2  ;;  %8378 = vst [vmem:[#allocation19_spill] sm:$0xff] %v6512_v22  ;;  %v1060_v45 = vpop.f32.mrf.mxu0  ;;  %v1253_v35 = vpop.f32.mrf.mxu1  ;;  %v6532_v22 = vsel %vm6478_vm2, %v5093_v7, %v5089_v52  ;;  %v6536_v2 = vsel %vm6478_vm2, %v5094_v9, %v5090_v53 }
 0x181   : > { %v5095_v21 = vpack.c.bf16 %v1059_v47, %v1057_v63  ;;  %v5096_v31 = vpack.c.bf16 %v1252_v19, %v1250_v60  ;;  %v1254_v62 = vadd.f32 %v1253_v35, %v6321_v13  ;;  %v1061_v23 = vadd.f32 %v1060_v45, %v6325_v14  ;;  %8381 = vst [vmem:[#allocation22_spill] sm:$0xff] %v6532_v22 }
 0x182   : > { %v1062_v48 = vpop.f32.mrf.mxu0  ;;  %v1255_v61 = vpop.f32.mrf.mxu1  ;;  %8382 = vst [vmem:[#allocation23_spill] sm:$0xff] %v6536_v2 }
 0x183   : > { %v1063_v18 = vadd.f32 %v1062_v48, %v6327_v15  ;;  %v1256_v24 = vadd.f32 %v1255_v61, %v6329_v16  ;;  %v6521_v49 = vsel %vm6478_vm2, %v6447_v0, %v5095_v21  ;;  %v6526_v47 = vsel %vm6478_vm2, %v6449_v1, %v5096_v31 }
 0x184   : > { %8379 = vst [vmem:[#allocation20_spill] sm:$0xff] %v6521_v49  ;;  %8380 = vst [vmem:[#allocation21_spill] sm:$0xff] %v6526_v47  ;;  %v1066_v19 = vpop.f32.mrf.mxu0  ;;  %v1259_v60 = vpop.f32.mrf.mxu1  ;;  %v6541_v47 = vsel %vm6478_vm2, %v5095_v21, %v6447_v0 }
 0x185   : > { %v5097_v63 = vpack.c.bf16 %v1063_v18, %v1061_v23  ;;  %v5098_v45 = vpack.c.bf16 %v1256_v24, %v1254_v62  ;;  %v1067_v35 = vadd.f32 %v1066_v19, %v6325_v14  ;;  %v1260_v48 = vadd.f32 %v1259_v60, %v6321_v13  ;;  %8383 = vst [vmem:[#allocation24_spill] sm:$0xff] %v6541_v47 }
 0x186   : > { %v1068_v32 = vpop.f32.mrf.mxu0  ;;  %v1261_v61 = vpop.f32.mrf.mxu1  ;;  %v6546_v62 = vsel %vm6478_vm2, %v5096_v31, %v6449_v1 }
 0x187   : > { %8384 = vst [vmem:[#allocation25_spill] sm:$0xff] %v6546_v62  ;;  %v1069_v23 = vadd.f32 %v1068_v32, %v6327_v15  ;;  %v1262_v18 = vadd.f32 %v1261_v61, %v6329_v16  ;;  %v6553_v52 = vsel %vm6478_vm2, %v6457_v46, %v5097_v63  ;;  %v6558_v53 = vsel %vm6478_vm2, %v6459_v38, %v5098_v45 }
 0x188   : > { %8385 = vst [vmem:[#allocation26_spill] sm:$0xff] %v6553_v52  ;;  %8386 = vst [vmem:[#allocation27_spill] sm:$0xff] %v6558_v53  ;;  %v1070_v0 = vpop.f32.mrf.mxu0  ;;  %v1263_v7 = vpop.f32.mrf.mxu1  ;;  %v6599_v52 = vsel %vm6478_vm2, %v5097_v63, %v6457_v46  ;;  %v6604_v49 = vsel %vm6478_vm2, %v5098_v45, %v6459_v38 }
 0x189   : > { %v5099_v9 = vpack.c.bf16 %v1069_v23, %v1067_v35  ;;  %v5100_v21 = vpack.c.bf16 %v1262_v18, %v1260_v48  ;;  %v1264_v1 = vadd.f32 %v1263_v7, %v6321_v13  ;;  %v1071_v32 = vadd.f32 %v1070_v0, %v6325_v14  ;;  %8391 = vst [vmem:[#allocation32_spill] sm:$0xff] %v6599_v52 }
 0x18a   : > { %v1072_v31 = vpop.f32.mrf.mxu0  ;;  %v1265_v24 = vpop.f32.mrf.mxu1  ;;  %8392 = vst [vmem:[#allocation33_spill] sm:$0xff] %v6604_v49  ;;  %v1001_v49 = vadd.f32 %v6383_v4, %v6325_v14 }
 0x18b   : > { %v1073_v19 = vadd.f32 %v1072_v31, %v6327_v15  ;;  %v1266_v60 = vadd.f32 %v1265_v24, %v6329_v16  ;;  %v6567_v61 = vsel %vm6478_vm2, %v6418_v3, %v5099_v9  ;;  %v6572_v35 = vsel %vm6478_vm2, %v6420_v17, %v5100_v21 }
 0x18c   : > { %8387 = vst [vmem:[#allocation28_spill] sm:$0xff] %v6567_v61  ;;  %8388 = vst [vmem:[#allocation29_spill] sm:$0xff] %v6572_v35  ;;  %v1076_v48 = vpop.f32.mrf.mxu0  ;;  %v1269_v23 = vpop.f32.mrf.mxu1 }
 0x18d   : > { %v6574_v18 = vpack.c.bf16 %v1073_v19, %v1071_v32  ;;  %v6576_v0 = vpack.c.bf16 %v1266_v60, %v1264_v1  ;;  %v1270_v7 = vadd.f32 %v1269_v23, %v6321_v13  ;;  %v1077_v31 = vadd.f32 %v1076_v48, %v6325_v14 }
 0x18e   : > { %v1078_v24 = vpop.f32.mrf.mxu0  ;;  %v1271_v62 = vpop.f32.mrf.mxu1 }
 0x18f   : > { %v1079_v47 = vadd.f32 %v1078_v24, %v6327_v15  ;;  %v1272_v2 = vadd.f32 %v1271_v62, %v6329_v16  ;;  %v6586_v22 = vsel %vm6478_vm2, %v6437_v36, %v6574_v18  ;;  %v6592_v1 = vsel %vm6478_vm2, %v6439_v37, %v6576_v0 }
 0x190   : > { %8389 = vst [vmem:[#allocation30_spill] sm:$0xff] %v6586_v22  ;;  %8390 = vst [vmem:[#allocation31_spill] sm:$0xff] %v6592_v1  ;;  %v1080_v32 = vpop.f32.mrf.mxu0  ;;  %v1273_v19 = vpop.f32.mrf.mxu1 }
 0x191   : > { %v5103_v60 = vpack.c.bf16 %v1079_v47, %v1077_v31  ;;  %v5104_v48 = vpack.c.bf16 %v1272_v2, %v1270_v7  ;;  %v1081_v23 = vadd.f32 %v1080_v32, %v6325_v14  ;;  %v1274_v62 = vadd.f32 %v1273_v19, %v6321_v13 }
 0x192   : > { %v1082_v24 = vpop.f32.mrf.mxu0  ;;  %v1275_v53 = vpop.f32.mrf.mxu1  ;;  %v6609_v2 = vsel %vm6478_vm2, %v5099_v9, %v6418_v3  ;;  %v6614_v47 = vsel %vm6478_vm2, %v5100_v21, %v6420_v17 }
 0x193   : > { %8393 = vst [vmem:[#allocation34_spill] sm:$0xff] %v6609_v2  ;;  %8394 = vst [vmem:[#allocation35_spill] sm:$0xff] %v6614_v47  ;;  %v1083_v7 = vadd.f32 %v1082_v24, %v6327_v15  ;;  %v1276_v46 = vadd.f32 %v1275_v53, %v6329_v16  ;;  %v6621_v63 = vsel %vm6478_vm2, %v6399_v33, %v5103_v60 }
 0x194   : > { %8395 = vst [vmem:[#allocation36_spill] sm:$0xff] %v6621_v63  ;;  %v6626_v38 = vsel %vm6478_vm2, %v6401_v34, %v5104_v48  ;;  %v1086_v3 = vpop.f32.mrf.mxu0  ;;  %v1279_v45 = vpop.f32.mrf.mxu1 }
 0x195   : > { %8396 = vst [vmem:[#allocation37_spill] sm:$0xff] %v6626_v38  ;;  %v6628_v9 = vpack.c.bf16 %v1083_v7, %v1081_v23  ;;  %v6630_v17 = vpack.c.bf16 %v1276_v46, %v1274_v62  ;;  %v1280_v21 = vadd.f32 %v1279_v45, %v6321_v13  ;;  %v1087_v53 = vadd.f32 %v1086_v3, %v6325_v14 }
 0x196   : > { %v1088_v31 = vpop.f32.mrf.mxu0  ;;  %v1281_v32 = vpop.f32.mrf.mxu1  ;;  %v1194_v62 = vadd.f32 %v6385_v5, %v6321_v13  ;;  %v1003_v7 = vadd.f32 %v6391_v11, %v6327_v15  ;;  %v1196_v46 = vadd.f32 %v6393_v12, %v6329_v16 }
 0x197   : > { %v1089_v19 = vadd.f32 %v1088_v31, %v6327_v15  ;;  %v1282_v24 = vadd.f32 %v1281_v32, %v6329_v16  ;;  %v6640_v47 = vsel %vm6478_vm2, %v6407_v50, %v6628_v9  ;;  %v6646_v23 = vsel %vm6478_vm2, %v6409_v51, %v6630_v17 }
 0x198   : > { %8397 = vst [vmem:[#allocation38_spill] sm:$0xff] %v6640_v47  ;;  %8398 = vst [vmem:[#allocation39_spill] sm:$0xff] %v6646_v23  ;;  %v1090_v3 = vpop.f32.mrf.mxu0  ;;  %v1283_v45 = vpop.f32.mrf.mxu1  ;;  %v6676_v4 = vpack.c.bf16 %v1003_v7, %v1001_v49  ;;  %v6690_v49 = vsel %vm6478_vm2, %v6574_v18, %v6437_v36 }
 0x199   : > { %v6654_v31 = vpack.c.bf16 %v1089_v19, %v1087_v53  ;;  %v6656_v32 = vpack.c.bf16 %v1282_v24, %v1280_v21  ;;  %v1284_v2 = vadd.f32 %v1283_v45, %v6321_v13  ;;  %v1091_v52 = vadd.f32 %v1090_v3, %v6325_v14  ;;  %8401 = vst [vmem:[#allocation42_spill] sm:$0xff] %v6690_v49 }
 0x19a   : > { %v1092_v5 = vpop.f32.mrf.mxu0  ;;  %v1285_v1 = vpop.f32.mrf.mxu1  ;;  %v6678_v53 = vpack.c.bf16 %v1196_v46, %v1194_v62  ;;  %v991_v46 = vadd.f32 %v6367_v54, %v6325_v14 }
 0x19b   : > { %v1093_v11 = vadd.f32 %v1092_v5, %v6327_v15  ;;  %v1286_v22 = vadd.f32 %v1285_v1, %v6329_v16  ;;  %v6668_v12 = vsel %vm6478_vm2, %v6387_v8, %v6654_v31  ;;  %v6674_v21 = vsel %vm6478_vm2, %v6389_v10, %v6656_v32 }
 0x19c   : > { %8399 = vst [vmem:[#allocation40_spill] sm:$0xff] %v6668_v12  ;;  %8400 = vst [vmem:[#allocation41_spill] sm:$0xff] %v6674_v21  ;;  %v1096_v19 = vpop.f32.mrf.mxu0  ;;  %v1289_v24 = vpop.f32.mrf.mxu1 }
 0x19d   : > { %v6680_v3 = vpack.c.bf16 %v1093_v11, %v1091_v52  ;;  %v6682_v1 = vpack.c.bf16 %v1286_v22, %v1284_v2  ;;  %v1097_v45 = vadd.f32 %v1096_v19, %v6325_v14  ;;  %v1290_v5 = vadd.f32 %v1289_v24, %v6321_v13 }
 0x19e   : > { %v1098_v35 = vpop.f32.mrf.mxu0  ;;  %v1291_v61 = vpop.f32.mrf.mxu1  ;;  %v6696_v52 = vsel %vm6478_vm2, %v6576_v0, %v6439_v37  ;;  %v6701_v22 = vsel %vm6478_vm2, %v5103_v60, %v6399_v33  ;;  %v6706_v2 = vsel %vm6478_vm2, %v5104_v48, %v6401_v34  ;;  %v1184_v34 = vadd.f32 %v6369_v55, %v6321_v13 }
 0x19f   : > { %8402 = vst [vmem:[#allocation43_spill] sm:$0xff] %v6696_v52  ;;  %8403 = vst [vmem:[#allocation44_spill] sm:$0xff] %v6701_v22  ;;  %v1099_v62 = vadd.f32 %v1098_v35, %v6327_v15  ;;  %v1292_v36 = vadd.f32 %v1291_v61, %v6329_v16  ;;  %v6714_v37 = vsel %vm6478_vm2, %v6676_v4, %v6680_v3 }
 0x1a0   : > { %8404 = vst [vmem:[#allocation45_spill] sm:$0xff] %v6706_v2  ;;  %8405 = vst [vmem:[#allocation46_spill] sm:$0xff] %v6714_v37  ;;  %v6720_v33 = vsel %vm6478_vm2, %v6678_v53, %v6682_v1  ;;  %v993_v35 = vadd.f32 %v6375_v58, %v6327_v15  ;;  %v1100_v18 = vpop.f32.mrf.mxu0  ;;  %v1293_v61 = vpop.f32.mrf.mxu1  ;;  %v1186_v0 = vadd.f32 %v6377_v59, %v6329_v16 }
 0x1a1   : > { %8406 = vst [vmem:[#allocation47_spill] sm:$0xff] %v6720_v33  ;;  %v6728_v60 = vpack.c.bf16 %v1099_v62, %v1097_v45  ;;  %v6730_v48 = vpack.c.bf16 %v1292_v36, %v1290_v5  ;;  %v1294_v7 = vadd.f32 %v1293_v61, %v6321_v13  ;;  %v1101_v11 = vadd.f32 %v1100_v18, %v6325_v14 }
 0x1a2   : > { %v1102_v55 = vpop.f32.mrf.mxu0  ;;  %v1295_v19 = vpop.f32.mrf.mxu1  ;;  %v6750_v54 = vpack.c.bf16 %v993_v35, %v991_v46  ;;  %v6752_v36 = vpack.c.bf16 %v1186_v0, %v1184_v34  ;;  %v981_v0 = vadd.f32 %v6351_v39, %v6325_v14 }
 0x1a3   : > { %v1103_v58 = vadd.f32 %v1102_v55, %v6327_v15  ;;  %v1296_v24 = vadd.f32 %v1295_v19, %v6329_v16  ;;  %v6742_v59 = vsel %vm6478_vm2, %v6371_v56, %v6728_v60  ;;  %v6748_v45 = vsel %vm6478_vm2, %v6373_v57, %v6730_v48 }
 0x1a4   : > { %v1106_v5 = vpop.f32.mrf.mxu0  ;;  %v1299_v62 = vpop.f32.mrf.mxu1 }
 0x1a5   : > { %v6754_v18 = vpack.c.bf16 %v1103_v58, %v1101_v11  ;;  %v6756_v61 = vpack.c.bf16 %v1296_v24, %v1294_v7  ;;  %v1300_v55 = vadd.f32 %v1299_v62, %v6321_v13  ;;  %v1107_v19 = vadd.f32 %v1106_v5, %v6325_v14 }
 0x1a6   : > { %v1108_v2 = vpop.f32.mrf.mxu0  ;;  %v1301_v22 = vpop.f32.mrf.mxu1  ;;  %v1176_v7 = vadd.f32 %v6361_v44, %v6329_v16  ;;  %v6804_v44 = vsel %vm6478_vm2, %v6654_v31, %v6387_v8 }
 0x1a7   : > { %v1109_v52 = vadd.f32 %v1108_v2, %v6327_v15  ;;  %v1302_v49 = vadd.f32 %v1301_v22, %v6329_v16  ;;  %v6766_v34 = vsel %vm6478_vm2, %v6750_v54, %v6754_v18  ;;  %v6772_v35 = vsel %vm6478_vm2, %v6752_v36, %v6756_v61  ;;  %8410 = vst [vmem:[#allocation51_spill] sm:$0xff] %v6804_v44 }
 0x1a8   : > { %8407 = vst [vmem:[#allocation48_spill] sm:$0xff] %v6772_v35  ;;  %v1174_v2 = vadd.f32 %v6353_v40, %v6321_v13  ;;  %v983_v22 = vadd.f32 %v6359_v43, %v6327_v15  ;;  %v1110_v46 = vpop.f32.mrf.mxu0  ;;  %v1303_v11 = vpop.f32.mrf.mxu1  ;;  %v6792_v40 = vsel %vm6478_vm2, %v6628_v9, %v6407_v50  ;;  %v6798_v43 = vsel %vm6478_vm2, %v6630_v17, %v6409_v51 }
 0x1a9   : > { %v6782_v58 = vpack.c.bf16 %v1109_v52, %v1107_v19  ;;  %v6784_v24 = vpack.c.bf16 %v1302_v49, %v1300_v55  ;;  %v1111_v5 = vadd.f32 %v1110_v46, %v6325_v14  ;;  %v1304_v62 = vadd.f32 %v1303_v11, %v6321_v13  ;;  %8408 = vst [vmem:[#allocation49_spill] sm:$0xff] %v6792_v40 }
 0x1aa   : > { %v1112_v39 = vpop.f32.mrf.mxu0  ;;  %v1305_v23 = vpop.f32.mrf.mxu1  ;;  %8409 = vst [vmem:[#allocation50_spill] sm:$0xff] %v6798_v43  ;;  %v6810_v49 = vsel %vm6478_vm2, %v6656_v32, %v6389_v10  ;;  %v6826_v17 = vpack.c.bf16 %v983_v22, %v981_v0  ;;  %v6828_v32 = vpack.c.bf16 %v1176_v7, %v1174_v2  ;;  %v973_v19 = vadd.f32 %v6343_v29, %v6327_v15 }
 0x1ab   : > { %8411 = vst [vmem:[#allocation52_spill] sm:$0xff] %v6810_v49  ;;  %v1113_v50 = vadd.f32 %v1112_v39, %v6327_v15  ;;  %v1306_v9 = vadd.f32 %v1305_v23, %v6329_v16  ;;  %v6818_v51 = vsel %vm6478_vm2, %v6355_v41, %v6782_v58  ;;  %v6824_v8 = vsel %vm6478_vm2, %v6357_v42, %v6784_v24 }
 0x1ac   : > { %v1116_v10 = vpop.f32.mrf.mxu0  ;;  %v1309_v31 = vpop.f32.mrf.mxu1  ;;  %v971_v29 = vadd.f32 %v6335_v25, %v6325_v14 }
 0x1ad   : > { %v6830_v52 = vpack.c.bf16 %v1113_v50, %v1111_v5  ;;  %v6832_v23 = vpack.c.bf16 %v1306_v9, %v1304_v62  ;;  %v1310_v55 = vadd.f32 %v1309_v31, %v6321_v13  ;;  %v1117_v46 = vadd.f32 %v1116_v10, %v6325_v14 }
 0x1ae   : > { %v1118_v11 = vpop.f32.mrf.mxu0  ;;  %v1311_v39 = vpop.f32.mrf.mxu1  ;;  %v1164_v5 = vadd.f32 %v6337_v26, %v6321_v13  ;;  %v1166_v62 = vadd.f32 %v6345_v30, %v6329_v16 }
 0x1af   : > { %v1119_v0 = vadd.f32 %v1118_v11, %v6327_v15  ;;  %v1312_v22 = vadd.f32 %v1311_v39, %v6329_v16  ;;  %v6844_v2 = vsel %vm6478_vm2, %v6826_v17, %v6830_v52  ;;  %v6850_v7 = vsel %vm6478_vm2, %v6828_v32, %v6832_v23 }
 0x1b0   : > { %v1120_v50 = vpop.f32.mrf.mxu0  ;;  %v1313_v9 = vpop.f32.mrf.mxu1  ;;  %v5061_v39 = vpack.c.bf16 %v973_v19, %v971_v29  ;;  %v2257_v37 = vunpack.c.h.bf16 %v6844_v2 }
 0x1b1   : > { %v5119_v10 = vpack.c.bf16 %v1119_v0, %v1117_v46  ;;  %v5120_v31 = vpack.c.bf16 %v1312_v22, %v1310_v55  ;;  %v1314_v11 = vadd.f32 %v1313_v9, %v6321_v13  ;;  %v1121_v49 = vadd.f32 %v1120_v50, %v6325_v14 }
 0x1b2   : > { %v1122_v44 = vpop.f32.mrf.mxu0  ;;  %v1315_v43 = vpop.f32.mrf.mxu1  ;;  %v5062_v55 = vpack.c.bf16 %v1166_v62, %v1164_v5 }
 0x1b3   : > { %v1123_v40 = vadd.f32 %v1122_v44, %v6327_v15  ;;  %v1316_v25 = vadd.f32 %v1315_v43, %v6329_v16  ;;  %v2063_v26 = vsel %vm6478_vm2, %v6339_v27, %v5119_v10  ;;  %v2064_v30 = vsel %vm6478_vm2, %v6341_v28, %v5120_v31 }
 0x1b4   : > { %v1995_v46 = vpop.f32.mrf.mxu0  ;;  %v2067_v13 = vunpack.c.l.bf16 %v2063_v26  ;;  %v2038_v19 = vpop.f32.mrf.mxu1  ;;  %v2069_v0 = vunpack.c.l.bf16 %v2064_v30  ;;  %v2068_v14 = vunpack.c.h.bf16 %v2063_v26  ;;  %v6872_v15 = vsel %vm6478_vm2, %v6680_v3, %v6676_v4 }
 0x1b5   : > { %v5121_v22 = vpack.c.bf16 %v1123_v40, %v1121_v49  ;;  %v5122_v29 = vpack.c.bf16 %v1316_v25, %v1314_v11  ;;  %8412 = vst [vmem:[#allocation53_spill] sm:$0xff] %v6872_v15  ;;  %v6878_v16 = vsel %vm6478_vm2, %v6682_v1, %v6678_v53 }
 0x1b6   : > { %8413 = vst [vmem:[#allocation54_spill] sm:$0xff] %v6878_v16  ;;  %v2075_v43 = vadd.f32 %v2067_v13, %v1995_v46  ;;  %v1997_v44 = vpop.f32.mrf.mxu0  ;;  %v2040_v62 = vpop.f32.mrf.mxu1  ;;  %v2077_v3 = vadd.f32 %v2069_v0, %v2038_v19  ;;  %v6894_v19 = vsel %vm6478_vm2, %v6730_v48, %v6373_v57  ;;  %v6912_v57 = vsel %vm6478_vm2, %v6782_v58, %v6355_v41 }
 0x1b7   : > { %v2076_v5 = vadd.f32 %v2068_v14, %v1997_v44  ;;  %v2065_v40 = vsel %vm6478_vm2, %v5061_v39, %v5121_v22  ;;  %v2066_v49 = vsel %vm6478_vm2, %v5062_v55, %v5122_v29  ;;  %v6888_v44 = vsel %vm6478_vm2, %v6728_v60, %v6371_v56  ;;  %8415 = vst [vmem:[#allocation56_spill] sm:$0xff] %v6894_v19 }
 0x1b8   : > { %v2083_v50 = vmul.f32 0.5, %v2075_v43  ;;  %v1999_v9 = vpop.f32.mrf.mxu0  ;;  %v2071_v4 = vunpack.c.l.bf16 %v2065_v40  ;;  %v2072_v25 = vunpack.c.h.bf16 %v2065_v40  ;;  %v2073_v53 = vunpack.c.l.bf16 %v2066_v49  ;;  %v2042_v46 = vpop.f32.mrf.mxu1  ;;  %8414 = vst [vmem:[#allocation55_spill] sm:$0xff] %v6888_v44  ;;  %8418 = vst [vmem:[#allocation59_spill] sm:$0xff] %v6912_v57 }
 0x1b9   : > { %v2091_v11 = vmul.f32 0.5, %v2076_v5  ;;  %v2070_v43 = vunpack.c.h.bf16 %v2064_v30  ;;  %v6900_v40 = vsel %vm6478_vm2, %v6754_v18, %v6750_v54  ;;  %v6906_v56 = vsel %vm6478_vm2, %v6756_v61, %v6752_v36 }
 0x1ba   : > { %5293 = vtanh.f32 %v2083_v50  ;;  %v2079_v26 = vadd.f32 %v2071_v4, %v1999_v9  ;;  %v2001_v1 = vpop.f32.mrf.mxu0  ;;  %v2081_v5 = vadd.f32 %v2073_v53, %v2042_v46  ;;  %8416 = vst [vmem:[#allocation57_spill] sm:$0xff] %v6900_v40  ;;  %8417 = vst [vmem:[#allocation58_spill] sm:$0xff] %v6906_v56  ;;  %v2074_v60 = vunpack.c.h.bf16 %v2066_v49  ;;  %v2044_v54 = vpop.f32.mrf.mxu1 }
 0x1bb   : > { %5295 = vtanh.f32 %v2091_v11  ;;  %v2080_v13 = vadd.f32 %v2072_v25, %v2001_v1  ;;  %v6918_v48 = vsel %vm6478_vm2, %v6784_v24, %v6357_v42  ;;  %v6924_v36 = vsel %vm6478_vm2, %v6830_v52, %v6826_v17 }
 0x1bc   : > { %v2084_v14 = vmul.f32 0.5, %v2079_v26  ;;  %5297 = vtanh.f32 %v2077_v3  ;;  %8419 = vst [vmem:[#allocation60_spill] sm:$0xff] %v6918_v48  ;;  %8420 = vst [vmem:[#allocation61_spill] sm:$0xff] %v6924_v36  ;;  %v6930_v41 = vsel %vm6478_vm2, %v6832_v23, %v6828_v32  ;;  %v2078_v18 = vadd.f32 %v2070_v43, %v2040_v62  ;;  %v5030_v36 = vld [vmem:[%s6019_s17 + $0xd0] sm:$0xff]  ;;  %v5031_v48 = vld [vmem:[%s6019_s17 + $0xd8] sm:$0xff] }
 0x1bd   : > { %v2092_v0 = vmul.f32 0.5, %v2080_v13  ;;  %8421 = vst [vmem:[#allocation62_spill] sm:$0xff] %v6930_v41  ;;  %v6935_v42 = vsel %vm6478_vm2, %v5119_v10, %v6339_v27  ;;  %v6940_v61 = vsel %vm6478_vm2, %v5120_v31, %v6341_v28  ;;  %v6944_v58 = vsel %vm6478_vm2, %v5121_v22, %v5061_v39  ;;  %v5029_v41 = vld [vmem:[%s6019_s17 + $0x28] sm:$0xff] }
 0x1be   : > { %5299 = vtanh.f32 %v2084_v14  ;;  %8422 = vst [vmem:[#allocation63_spill] sm:$0xff] %v6935_v42  ;;  %8423 = vst [vmem:[#allocation64_spill] sm:$0xff] %v6940_v61  ;;  %v6948_v24 = vsel %vm6478_vm2, %v5122_v29, %v5062_v55  ;;  %v2082_v17 = vadd.f32 %v2074_v60, %v2044_v54  ;;  %v2101_v30 = vmul.f32 0.5, %v2078_v18  ;;  %v7057_v61 = vld [vmem:[#allocation5 + $0xec] ss:$16 sps:$4 sm:$0xff]   ;;  %v5028_v42 = vld [vmem:[%s6019_s17 + $0x20] sm:$0xff]  ;;  %2502 = vperm.xlu1 %5180, %v5029_v41  }
 0x1bf   : > { %5301 = vtanh.f32 %v2092_v0  ;;  %8424 = vst [vmem:[#allocation65_spill] sm:$0xff] %v6944_v58  ;;  %8425 = vst [vmem:[#allocation66_spill] sm:$0xff] %v6948_v24  ;;  %v7051_v24 = vld [vmem:[#allocation5 + $0x8] ss:$16 sps:$4 sm:$0xff]   ;;  %v7054_v58 = vld [vmem:[#allocation5 + $0xe4] ss:$16 sps:$4 sm:$0xff]   ;;  %2497 = vperm.xlu0 %5179, %v5028_v42   ;;  %v2252_v57 = vunpack.c.l.bf16 %v6818_v51  ;;  %v2253_v44 = vunpack.c.h.bf16 %v6818_v51  ;;  %v2254_v16 = vunpack.c.l.bf16 %v6824_v8 }
 0x1c0   : > { %5303 = vtanh.f32 %v2081_v5  ;;  %v2102_v10 = vmul.f32 0.5, %v2082_v17  ;;  %v6962_v17 = vld [vmem:[#allocation5 + $0xe0] ss:$16 sps:$4 sm:$0xff]   ;;  %v2256_v42 = vunpack.c.l.bf16 %v6844_v2  ;;  %v2258_v51 = vunpack.c.l.bf16 %v6850_v7 }
 0x1c1   : > { %5305 = vtanh.f32 %v2101_v30  ;;  %v8426_v30 = vmov 0  }
 0x1c2   : > { %5307 = vtanh.f32 %v2102_v10  ;;  %v6979_v10 = vld [vmem:[#allocation5 + $0xc8] ss:$16 sps:$4 sm:$0xff]   ;;  %2512 = vperm.xlu1 %5180, %v5031_v48  }
 0x1c3   : > { %2507 = vperm.xlu0 %5179, %v5030_v36  }
 0x1c7   : > { %v5294_v32 = vpop.eup %5293 }
 0x1c8   : > { %v5296_v52 = vpop.eup %5295  ;;  %v2087_v23 = vmul.f32 0.5, %v5294_v32  ;;  %v6965_v32 = vld [vmem:[#allocation5 + $0xe8] ss:$16 sps:$4 sm:$0xff]  }
 0x1c9   : > { %v2095_v27 = vmul.f32 0.5, %v5296_v52  ;;  %v5298_v62 = vpop.eup %5297  ;;  %v6968_v52 = vld [vmem:[#allocation5 + $0xc4] ss:$16 sps:$4 sm:$0xff]  }
 0x1ca   : > { %v2089_v49 = vadd.f32 0.5, %v2087_v23  ;;  %v6971_v23 = vld [vmem:[#allocation5 + $0xcc] ss:$16 sps:$4 sm:$0xff]  }
 0x1cb   : > { %v5300_v50 = vpop.eup %5299  ;;  %v2097_v28 = vadd.f32 0.5, %v2095_v27  ;;  %v6976_v27 = vld [vmem:[#allocation5 + $0xc0] ss:$16 sps:$4 sm:$0xff]  }
 0x1cc   : > { %v5302_v31 = vpop.eup %5301  ;;  %v2111_v9 = vmul.f32 %v5298_v62, %v2089_v49  ;;  %v2088_v39 = vmul.f32 0.5, %v5300_v50  ;;  %v6982_v62 = vld [vmem:[#allocation5 + $0xa4] ss:$16 sps:$4 sm:$0xff]   ;;  %v6985_v49 = vld [vmem:[#allocation5 + $0xac] ss:$16 sps:$4 sm:$0xff]  }
 0x1cd   : > { %v2109_v22 = vmul.f32 0.0, %v2097_v28  ;;  %v2096_v4 = vmul.f32 0.5, %v5302_v31  ;;  %v5304_v55 = vpop.eup %5303  ;;  %v6988_v50 = vld [vmem:[#allocation5 + $0xa0] ss:$16 sps:$4 sm:$0xff]   ;;  %v6991_v28 = vld [vmem:[#allocation5 + $0xa8] ss:$16 sps:$4 sm:$0xff]  }
 0x1ce   : > { %v2090_v20 = vadd.f32 0.5, %v2088_v39  ;;  %v5306_v53 = vpop.eup %5305  ;;  %v6994_v31 = vld [vmem:[#allocation5 + $0x84] ss:$16 sps:$4 sm:$0xff]   ;;  %v7000_v39 = vld [vmem:[#allocation5 + $0x80] ss:$16 sps:$4 sm:$0xff]  }
 0x1cf   : > { %v6950_v29 = vadd.f32 %v2111_v9, %v2109_v22  ;;  %v2098_v3 = vadd.f32 0.5, %v2096_v4  ;;  %v5308_v1 = vpop.eup %5307  ;;  %v2105_v46 = vmul.f32 0.5, %v5306_v53  ;;  %v6997_v9 = vld [vmem:[#allocation5 + $0x8c] ss:$16 sps:$4 sm:$0xff]   ;;  %v7003_v22 = vld [vmem:[#allocation5 + $0x88] ss:$16 sps:$4 sm:$0xff]  }
 0x1d0   : > { %v2112_v11 = vmul.f32 %v5304_v55, %v2090_v20  ;;  %v2106_v13 = vmul.f32 0.5, %v5308_v1  ;;  %v7006_v4 = vld [vmem:[#allocation5 + $0x64] ss:$16 sps:$4 sm:$0xff]   ;;  %v7009_v20 = vld [vmem:[#allocation5 + $0x6c] ss:$16 sps:$4 sm:$0xff]  }
 0x1d1   : > { %v2110_v25 = vmul.f32 0.0, %v2098_v3  ;;  %5309 = vtanh.f32 %v6950_v29  ;;  %v2107_v0 = vadd.f32 0.5, %v2105_v46  ;;  %v7012_v55 = vld [vmem:[#allocation5 + $0x60] ss:$16 sps:$4 sm:$0xff]   ;;  %v7015_v3 = vld [vmem:[#allocation5 + $0x68] ss:$16 sps:$4 sm:$0xff]  }
 0x1d2   : > { %v2108_v43 = vadd.f32 0.5, %v2106_v13  ;;  %v7024_v53 = vld [vmem:[#allocation5 + $0x40] ss:$16 sps:$4 sm:$0xff]   ;;  %v7027_v1 = vld [vmem:[#allocation5 + $0x48] ss:$16 sps:$4 sm:$0xff]  }
 0x1d3   : > { %v6953_v26 = vadd.f32 %v2112_v11, %v2110_v25  ;;  %v7018_v11 = vld [vmem:[#allocation5 + $0x44] ss:$16 sps:$4 sm:$0xff]   ;;  %v7021_v25 = vld [vmem:[#allocation5 + $0x4c] ss:$16 sps:$4 sm:$0xff]  }
 0x1d4   : > { %v7030_v46 = vld [vmem:[#allocation5 + $0x24] ss:$16 sps:$4 sm:$0xff]   ;;  %v7033_v13 = vld [vmem:[#allocation5 + $0x2c] ss:$16 sps:$4 sm:$0xff]  }
 0x1d5   : > { %5311 = vtanh.f32 %v6953_v26 }
 0x1de   : > { %v5310_v14 = vpop.eup %5309 }
 0x1df   : > { %v6956_v60 = vmul.f32 %v5310_v14, %v2107_v0  ;;  %v7036_v14 = vld [vmem:[#allocation5 + $0x20] ss:$16 sps:$4 sm:$0xff]   ;;  %v7039_v0 = vld [vmem:[#allocation5 + $0x28] ss:$16 sps:$4 sm:$0xff]  }
 0x1e2   : > { %v5312_v5 = vpop.eup %5311 }
 0x1e3   : > { %v6958_v54 = vmul.f32 %v5312_v5, %v2108_v43  ;;  %v7042_v43 = vld [vmem:[#allocation5 + $0x4] ss:$16 sps:$4 sm:$0xff]   ;;  %v7045_v5 = vld [vmem:[#allocation5 + $0xc] ss:$16 sps:$4 sm:$0xff]  }
 0x1e5   : > { %v2151_v18 = vpack.c.bf16 %v6958_v54, %v6956_v60 }
 0x1e7   : > { %2185 = vmatmul.mubr.bf16.vlgmr.msra.gmra.mxu0 %v2151_v18  ;;  %2228 = vmatmul.mubr.bf16.vlgmr.msra.gmra.mxu1 %v2151_v18  ;;  %v7048_v18 = vld [vmem:[#allocation5] ss:$16 sps:$4 sm:$0xff]  }
 0x1e8   : > { %2338 = vmatpush1.bf16.msra.mxu0 %v6962_v17  ;;  %2381 = vmatpush1.bf16.msra.mxu1 %v6965_v32 }
 0x1e9   : > { %2339 = vmatprep.subr.bf16.mxu0 %v6968_v52  ;;  %2382 = vmatprep.subr.bf16.mxu1 %v6971_v23 }
 0x1ea   : > { %2369 = vmatprep.mubr.bf16.mxu0 %v8426_v30  ;;  %2412 = vmatprep.mubr.bf16.mxu1 %v8426_v30 }
 0x1ec   : > { %2340 = vmatpush1.bf16.msra.mxu0 %v6976_v27  ;;  %2383 = vmatpush1.bf16.msra.mxu1 %v6979_v10 }
 0x1ed   : > { %2341 = vmatprep.subr.bf16.mxu0 %v6982_v62  ;;  %2384 = vmatprep.subr.bf16.mxu1 %v6985_v49 }
 0x1f0   : > { %2342 = vmatpush1.bf16.msra.mxu0 %v6988_v50  ;;  %2385 = vmatpush1.bf16.msra.mxu1 %v6991_v28 }
 0x1f1   : > { %2343 = vmatprep.subr.bf16.mxu0 %v6994_v31  ;;  %2386 = vmatprep.subr.bf16.mxu1 %v6997_v9 }
 0x1f4   : > { %2344 = vmatpush1.bf16.msra.mxu0 %v7000_v39  ;;  %2387 = vmatpush1.bf16.msra.mxu1 %v7003_v22 }
 0x1f5   : > { %2345 = vmatprep.subr.bf16.mxu0 %v7006_v4  ;;  %2388 = vmatprep.subr.bf16.mxu1 %v7009_v20 }
 0x1f8   : > { %2346 = vmatpush1.bf16.msra.mxu0 %v7012_v55  ;;  %2389 = vmatpush1.bf16.msra.mxu1 %v7015_v3 }
 0x1f9   : > { %2347 = vmatprep.subr.bf16.mxu0 %v7018_v11  ;;  %2390 = vmatprep.subr.bf16.mxu1 %v7021_v25 }
 0x1fc   : > { %2348 = vmatpush1.bf16.msra.mxu0 %v7024_v53  ;;  %2391 = vmatpush1.bf16.msra.mxu1 %v7027_v1 }
 0x1fd   : > { %2349 = vmatprep.subr.bf16.mxu0 %v7030_v46  ;;  %2392 = vmatprep.subr.bf16.mxu1 %v7033_v13 }
 0x200   : > { %2350 = vmatpush1.bf16.msra.mxu0 %v7036_v14  ;;  %2393 = vmatpush1.bf16.msra.mxu1 %v7039_v0 }
 0x201   : > { %2351 = vmatprep.subr.bf16.mxu0 %v7042_v43  ;;  %2394 = vmatprep.subr.bf16.mxu1 %v7045_v5 }
 0x204   : > { %2352 = vmatpush1.bf16.msra.mxu0 %v7048_v18  ;;  %2395 = vmatpush1.bf16.msra.mxu1 %v7051_v24 }
 0x205   : > { %2522 = vmatprep.subr.bf16.mxu0 %v7054_v58  ;;  %2565 = vmatprep.subr.bf16.mxu1 %v7057_v61 }
 0x2a7   : > { %v2186_v56 = vpop.f32.mrf.mxu0  ;;  %v2229_v40 = vpop.f32.mrf.mxu1 }
 0x2a8   : > { %v2260_v19 = vadd.f32 %v2252_v57, %v2186_v56  ;;  %v2262_v41 = vadd.f32 %v2254_v16, %v2229_v40 }
 0x2a9   : > { %v2188_v15 = vpop.f32.mrf.mxu0  ;;  %v2231_v47 = vpop.f32.mrf.mxu1 }
 0x2aa   : > { %v2268_v38 = vmul.f32 0.5, %v2260_v19  ;;  %v2261_v63 = vadd.f32 %v2253_v44, %v2188_v15  ;;  %v2255_v44 = vunpack.c.h.bf16 %v6824_v8 }
 0x2ab   : > { %v2190_v33 = vpop.f32.mrf.mxu0  ;;  %v2233_v21 = vpop.f32.mrf.mxu1 }
 0x2ac   : > { %5313 = vtanh.f32 %v2268_v38  ;;  %v2276_v36 = vmul.f32 0.5, %v2261_v63  ;;  %v2264_v48 = vadd.f32 %v2256_v42, %v2190_v33  ;;  %v2266_v19 = vadd.f32 %v2258_v51, %v2233_v21 }
 0x2ad   : > { %v2192_v12 = vpop.f32.mrf.mxu0  ;;  %v2263_v16 = vadd.f32 %v2255_v44, %v2231_v47  ;;  %v2235_v63 = vpop.f32.mrf.mxu1  ;;  %v2259_v38 = vunpack.c.h.bf16 %v6850_v7 }
 0x2ae   : > { %5315 = vtanh.f32 %v2276_v36  ;;  %v2269_v56 = vmul.f32 0.5, %v2264_v48  ;;  %v2265_v57 = vadd.f32 %v2257_v37, %v2192_v12 }
 0x2af   : > { %5317 = vtanh.f32 %v2262_v41  ;;  %v2286_v33 = vmul.f32 0.5, %v2263_v16  ;;  %v2267_v2 = vadd.f32 %v2259_v38, %v2235_v63  ;;  %v7075_v63 = vpop.permute.xlu0 %2132 }
 0x2b0   : > { %5319 = vtanh.f32 %v2269_v56  ;;  %v2277_v15 = vmul.f32 0.5, %v2265_v57  ;;  %8427 = vst [vmem:[#allocation67_spill] sm:$0xff] %v7075_v63 }
 0x2b1   : > { %v2287_v37 = vmul.f32 0.5, %v2267_v2 }
 0x2b2   : > { %5321 = vtanh.f32 %v2277_v15 }
 0x2b3   : > { %5323 = vtanh.f32 %v2266_v19 }
 0x2b4   : > { %5325 = vtanh.f32 %v2286_v33 }
 0x2b5   : > { %5327 = vtanh.f32 %v2287_v37 }
 0x2b9   : > { %v5314_v40 = vpop.eup %5313 }
 0x2ba   : > { %v2272_v42 = vmul.f32 0.5, %v5314_v40 }
 0x2bb   : > { %v5316_v36 = vpop.eup %5315 }
 0x2bc   : > { %v5318_v48 = vpop.eup %5317  ;;  %v2274_v35 = vadd.f32 0.5, %v2272_v42  ;;  %v2280_v12 = vmul.f32 0.5, %v5316_v36 }
 0x2bd   : > { %v5320_v21 = vpop.eup %5319 }
 0x2be   : > { %v2282_v41 = vadd.f32 0.5, %v2280_v12  ;;  %v2296_v56 = vmul.f32 %v5318_v48, %v2274_v35  ;;  %v2273_v8 = vmul.f32 0.5, %v5320_v21  ;;  %v7081_v35 = vpop.permute.xlu1 %2142 }
 0x2bf   : > { %v5322_v51 = vpop.eup %5321  ;;  %8428 = vst [vmem:[#allocation68_spill] sm:$0xff] %v7081_v35 }
 0x2c0   : > { %v2294_v47 = vmul.f32 %v2282_v41, %v6950_v29  ;;  %v2275_v57 = vadd.f32 0.5, %v2273_v8  ;;  %v2281_v19 = vmul.f32 0.5, %v5322_v51  ;;  %v5324_v7 = vpop.eup %5323  ;;  %v7084_v29 = vpop.permute.xlu0 %2312 }
 0x2c1   : > { %8429 = vst [vmem:[#allocation69_spill] sm:$0xff] %v7084_v29  ;;  %v5326_v2 = vpop.eup %5325 }
 0x2c2   : > { %v7073_v15 = vadd.f32 %v2296_v56, %v2294_v47  ;;  %v2283_v44 = vadd.f32 0.5, %v2281_v19  ;;  %v2297_v16 = vmul.f32 %v5324_v7, %v2275_v57  ;;  %v2290_v40 = vmul.f32 0.5, %v5326_v2  ;;  %v7086_v42 = vpop.permute.xlu1 %2317  ;;  %v5328_v36 = vpop.eup %5327 }
 0x2c3   : > { %8430 = vst [vmem:[#allocation70_spill] sm:$0xff] %v7086_v42  ;;  %v2291_v37 = vmul.f32 0.5, %v5328_v36 }
 0x2c4   : > { %5329 = vtanh.f32 %v7073_v15  ;;  %v2295_v38 = vmul.f32 %v2283_v44, %v6953_v26  ;;  %v7088_v48 = vpop.permute.xlu0 %2322  ;;  %v2292_v12 = vadd.f32 0.5, %v2290_v40  ;;  %v8432_v26 = vld [vmem:[#allocation12_spill] sm:$0xff] }
 0x2c5   : > { %8431 = vst [vmem:[#allocation71_spill] sm:$0xff] %v7088_v48  ;;  %v2145_v56 = vsel %vm1800_vm0, %v8432_v26, %v6424_v6  ;;  %v2330_v8 = vsel %vm1800_vm0, %v7084_v29, %v7088_v48  ;;  %v2293_v19 = vadd.f32 0.5, %v2291_v37  ;;  %v5033_v37 = vld [vmem:[%s6019_s17 + $0x38] sm:$0xff]  ;;  %v5035_v26 = vld [vmem:[%s6019_s17 + $0xc8] sm:$0xff] }
 0x2c6   : > { %v7079_v33 = vadd.f32 %v2297_v16, %v2295_v38  ;;  %v7098_v47 = vpop.permute.xlu1 %2327  ;;  %v2147_v57 = vmul.f32 %v2145_v56, %v6956_v60  ;;  %v2146_v16 = vsel %vm1800_vm0, %v7075_v63, %v7081_v35  ;;  %2687 = vperm.xlu1 %5180, %v5033_v37   ;;  %v2437_v56 = vunpack.c.l.bf16 %v6742_v59 }
 0x2c7   : > { %8434 = vst [vmem:[#allocation12_spill] sm:$0xff] %v7098_v47  ;;  %v2331_v6 = vsel %vm1800_vm0, %v7086_v42, %v7098_v47  ;;  %v2148_v40 = vmul.f32 %v2146_v16, %v6958_v54  ;;  %v5032_v54 = vld [vmem:[%s6019_s17 + $0x30] sm:$0xff] }
 0x2c8   : > { %5331 = vtanh.f32 %v7079_v33  ;;  %2682 = vperm.xlu0 %5179, %v5032_v54  }
 0x2ca   : > { %2697 = vperm.xlu1 %5180, %v5035_v26  }
 0x2d1   : > { %v5330_v21 = vpop.eup %5329 }
 0x2d2   : > { %v2302_v51 = vmul.f32 %v5330_v21, %v2292_v12  ;;  %v5034_v21 = vld [vmem:[%s6019_s17 + $0xc0] sm:$0xff] }
 0x2d3   : > { %2692 = vperm.xlu0 %5179, %v5034_v21   ;;  %v2442_v21 = vunpack.c.h.bf16 %v6766_v34 }
 0x2d4   : > { %v2332_v7 = vmul.f32 %v2330_v8, %v2302_v51 }
 0x2d5   : > { %v5332_v44 = vpop.eup %5331 }
 0x2d6   : > { %v7109_v38 = vadd.f32 %v2332_v7, %v2147_v57  ;;  %v2303_v2 = vmul.f32 %v5332_v44, %v2293_v19  ;;  %v2438_v19 = vunpack.c.h.bf16 %v6742_v59  ;;  %v2439_v7 = vunpack.c.l.bf16 %v6748_v45  ;;  %v8435_v59 = vld [vmem:[#allocation48_spill] sm:$0xff] }
 0x2d8   : > { %v2333_v36 = vmul.f32 %v2331_v6, %v2303_v2  ;;  %v2336_v60 = vpack.c.bf16 %v2303_v2, %v2302_v51 }
 0x2da   : > { %v7112_v12 = vadd.f32 %v2333_v36, %v2148_v40  ;;  %2370 = vmatmul.mubr.bf16.vlgmr.msra.gmra.mxu0 %v2336_v60  ;;  %2413 = vmatmul.mubr.bf16.vlgmr.msra.gmra.mxu1 %v2336_v60  ;;  %v2441_v40 = vunpack.c.l.bf16 %v6766_v34 }
 0x2db   : > { %2523 = vmatpush1.bf16.msra.mxu0 %v6962_v17  ;;  %2566 = vmatpush1.bf16.msra.mxu1 %v6965_v32 }
 0x2dc   : > { %2524 = vmatprep.subr.bf16.mxu0 %v6968_v52  ;;  %2567 = vmatprep.subr.bf16.mxu1 %v6971_v23 }
 0x2dd   : > { %2554 = vmatprep.mubr.bf16.mxu0 %v8426_v30  ;;  %2597 = vmatprep.mubr.bf16.mxu1 %v8426_v30 }
 0x2df   : > { %2525 = vmatpush1.bf16.msra.mxu0 %v6976_v27  ;;  %2568 = vmatpush1.bf16.msra.mxu1 %v6979_v10 }
 0x2e0   : > { %2526 = vmatprep.subr.bf16.mxu0 %v6982_v62  ;;  %2569 = vmatprep.subr.bf16.mxu1 %v6985_v49 }
 0x2e3   : > { %2527 = vmatpush1.bf16.msra.mxu0 %v6988_v50  ;;  %2570 = vmatpush1.bf16.msra.mxu1 %v6991_v28 }
 0x2e4   : > { %2528 = vmatprep.subr.bf16.mxu0 %v6994_v31  ;;  %2571 = vmatprep.subr.bf16.mxu1 %v6997_v9 }
 0x2e7   : > { %2529 = vmatpush1.bf16.msra.mxu0 %v7000_v39  ;;  %2572 = vmatpush1.bf16.msra.mxu1 %v7003_v22 }
 0x2e8   : > { %2530 = vmatprep.subr.bf16.mxu0 %v7006_v4  ;;  %2573 = vmatprep.subr.bf16.mxu1 %v7009_v20 }
 0x2eb   : > { %2531 = vmatpush1.bf16.msra.mxu0 %v7012_v55  ;;  %2574 = vmatpush1.bf16.msra.mxu1 %v7015_v3 }
 0x2ec   : > { %2532 = vmatprep.subr.bf16.mxu0 %v7018_v11  ;;  %2575 = vmatprep.subr.bf16.mxu1 %v7021_v25 }
 0x2ef   : > { %2533 = vmatpush1.bf16.msra.mxu0 %v7024_v53  ;;  %2576 = vmatpush1.bf16.msra.mxu1 %v7027_v1 }
 0x2f0   : > { %2534 = vmatprep.subr.bf16.mxu0 %v7030_v46  ;;  %2577 = vmatprep.subr.bf16.mxu1 %v7033_v13 }
 0x2f3   : > { %2535 = vmatpush1.bf16.msra.mxu0 %v7036_v14  ;;  %2578 = vmatpush1.bf16.msra.mxu1 %v7039_v0 }
 0x2f4   : > { %2536 = vmatprep.subr.bf16.mxu0 %v7042_v43  ;;  %2579 = vmatprep.subr.bf16.mxu1 %v7045_v5 }
 0x2f7   : > { %2537 = vmatpush1.bf16.msra.mxu0 %v7048_v18  ;;  %2580 = vmatpush1.bf16.msra.mxu1 %v7051_v24 }
 0x2f8   : > { %2707 = vmatprep.subr.bf16.mxu0 %v7054_v58  ;;  %2750 = vmatprep.subr.bf16.mxu1 %v7057_v61 }
 0x39a   : > { %v2371_v8 = vpop.f32.mrf.mxu0  ;;  %v2414_v51 = vpop.f32.mrf.mxu1 }
 0x39b   : > { %v2445_v57 = vadd.f32 %v2437_v56, %v2371_v8  ;;  %v2447_v36 = vadd.f32 %v2439_v7, %v2414_v51  ;;  %v2443_v8 = vunpack.c.l.bf16 %v8435_v59 }
 0x39c   : > { %v2373_v44 = vpop.f32.mrf.mxu0  ;;  %v2416_v16 = vpop.f32.mrf.mxu1 }
 0x39d   : > { %v2453_v6 = vmul.f32 0.5, %v2445_v57  ;;  %v2446_v2 = vadd.f32 %v2438_v19, %v2373_v44  ;;  %v2440_v44 = vunpack.c.h.bf16 %v6748_v45 }
 0x39e   : > { %v2375_v60 = vpop.f32.mrf.mxu0  ;;  %v2418_v26 = vpop.f32.mrf.mxu1 }
 0x39f   : > { %5333 = vtanh.f32 %v2453_v6  ;;  %v2461_v54 = vmul.f32 0.5, %v2446_v2  ;;  %v2449_v37 = vadd.f32 %v2441_v40, %v2375_v60  ;;  %v2451_v57 = vadd.f32 %v2443_v8, %v2418_v26 }
 0x3a0   : > { %v2377_v35 = vpop.f32.mrf.mxu0  ;;  %v2448_v51 = vadd.f32 %v2440_v44, %v2416_v16  ;;  %v2420_v7 = vpop.f32.mrf.mxu1  ;;  %v2444_v6 = vunpack.c.h.bf16 %v8435_v59 }
 0x3a1   : > { %5335 = vtanh.f32 %v2461_v54  ;;  %v2454_v56 = vmul.f32 0.5, %v2449_v37  ;;  %v2450_v63 = vadd.f32 %v2442_v21, %v2377_v35 }
 0x3a2   : > { %5337 = vtanh.f32 %v2447_v36  ;;  %v2471_v34 = vmul.f32 0.5, %v2448_v51  ;;  %v2452_v2 = vadd.f32 %v2444_v6, %v2420_v7 }
 0x3a3   : > { %5339 = vtanh.f32 %v2454_v56  ;;  %v2462_v19 = vmul.f32 0.5, %v2450_v63 }
 0x3a4   : > { %v2472_v36 = vmul.f32 0.5, %v2452_v2  ;;  %v7170_v2 = vpop.permute.xlu1 %2502 }
 0x3a5   : > { %5341 = vtanh.f32 %v2462_v19  ;;  %8437 = vst [vmem:[#allocation48_spill] sm:$0xff] %v7170_v2 }
 0x3a6   : > { %5343 = vtanh.f32 %v2451_v57 }
 0x3a7   : > { %5345 = vtanh.f32 %v2471_v34 }
 0x3a8   : > { %5347 = vtanh.f32 %v2472_v36 }
 0x3ac   : > { %v5334_v40 = vpop.eup %5333 }
 0x3ad   : > { %v2457_v60 = vmul.f32 0.5, %v5334_v40 }
 0x3ae   : > { %v5336_v54 = vpop.eup %5335 }
 0x3af   : > { %v5338_v37 = vpop.eup %5337  ;;  %v2459_v47 = vadd.f32 0.5, %v2457_v60  ;;  %v2465_v35 = vmul.f32 0.5, %v5336_v54 }
 0x3b0   : > { %v5340_v21 = vpop.eup %5339 }
 0x3b1   : > { %v2467_v63 = vadd.f32 0.5, %v2465_v35  ;;  %v2481_v26 = vmul.f32 %v5338_v37, %v2459_v47  ;;  %v2458_v45 = vmul.f32 0.5, %v5340_v21  ;;  %v7168_v47 = vpop.permute.xlu0 %2497  ;;  %v7178_v21 = vpop.permute.xlu1 %2512 }
 0x3b2   : > { %v5342_v56 = vpop.eup %5341  ;;  %8436 = vst [vmem:[#allocation11_spill] sm:$0xff] %v7168_v47  ;;  %8439 = vst [vmem:[#allocation73_spill] sm:$0xff] %v7178_v21 }
 0x3b3   : > { %v2479_v16 = vmul.f32 %v2467_v63, %v7073_v15  ;;  %v2460_v8 = vadd.f32 0.5, %v2458_v45  ;;  %v2466_v57 = vmul.f32 0.5, %v5342_v56  ;;  %v5344_v59 = vpop.eup %5343  ;;  %v2516_v56 = vsel %vm1800_vm0, %v7170_v2, %v7178_v21 }
 0x3b4   : > { %v5346_v34 = vpop.eup %5345 }
 0x3b5   : > { %v7161_v19 = vadd.f32 %v2481_v26, %v2479_v16  ;;  %v2468_v44 = vadd.f32 0.5, %v2466_v57  ;;  %v2482_v51 = vmul.f32 %v5344_v59, %v2460_v8  ;;  %v2475_v15 = vmul.f32 0.5, %v5346_v34  ;;  %v5348_v40 = vpop.eup %5347  ;;  %v7172_v60 = vpop.permute.xlu0 %2507  ;;  %v8440_v34 = vld [vmem:[#allocation40_spill] sm:$0xff] }
 0x3b6   : > { %8438 = vst [vmem:[#allocation72_spill] sm:$0xff] %v7172_v60  ;;  %v2476_v37 = vmul.f32 0.5, %v5348_v40 }
 0x3b7   : > { %5349 = vtanh.f32 %v7161_v19  ;;  %v2480_v7 = vmul.f32 %v2468_v44, %v7079_v33  ;;  %v2477_v54 = vadd.f32 0.5, %v2475_v15  ;;  %v2515_v33 = vsel %vm1800_vm0, %v7168_v47, %v7172_v60 }
 0x3b8   : > { %v2478_v63 = vadd.f32 0.5, %v2476_v37  ;;  %v2622_v15 = vunpack.c.l.bf16 %v8440_v34 }
 0x3b9   : > { %v7165_v6 = vadd.f32 %v2482_v51, %v2480_v7  ;;  %v5038_v51 = vld [vmem:[%s6019_s17 + $0xb0] sm:$0xff]  ;;  %v5039_v7 = vld [vmem:[%s6019_s17 + $0xb8] sm:$0xff] }
 0x3bb   : > { %5351 = vtanh.f32 %v7165_v6 }
 0x3c4   : > { %v5350_v35 = vpop.eup %5349 }
 0x3c5   : > { %v2487_v36 = vmul.f32 %v5350_v35, %v2477_v54  ;;  %v2623_v35 = vunpack.c.h.bf16 %v8440_v34  ;;  %v8443_v34 = vld [vmem:[#allocation47_spill] sm:$0xff] }
 0x3c7   : > { %v2517_v26 = vmul.f32 %v2515_v33, %v2487_v36  ;;  %v8441_v33 = vld [vmem:[#allocation41_spill] sm:$0xff] }
 0x3c8   : > { %v5352_v45 = vpop.eup %5351 }
 0x3c9   : > { %v7185_v16 = vadd.f32 %v2517_v26, %v7109_v38  ;;  %v2488_v8 = vmul.f32 %v5352_v45, %v2478_v63  ;;  %v5036_v38 = vld [vmem:[%s6019_s17 + $0x40] sm:$0xff] }
 0x3ca   : > { %2867 = vperm.xlu0 %5179, %v5036_v38  }
 0x3cb   : > { %v2518_v57 = vmul.f32 %v2516_v56, %v2488_v8  ;;  %v2521_v59 = vpack.c.bf16 %v2488_v8, %v2487_v36  ;;  %v2624_v36 = vunpack.c.l.bf16 %v8441_v33  ;;  %v8442_v8 = vld [vmem:[#allocation46_spill] sm:$0xff] }
 0x3cd   : > { %v7188_v44 = vadd.f32 %v2518_v57, %v7112_v12  ;;  %2555 = vmatmul.mubr.bf16.vlgmr.msra.gmra.mxu0 %v2521_v59  ;;  %2598 = vmatmul.mubr.bf16.vlgmr.msra.gmra.mxu1 %v2521_v59  ;;  %v5037_v12 = vld [vmem:[%s6019_s17 + $0x48] sm:$0xff]  ;;  %v2626_v57 = vunpack.c.l.bf16 %v8442_v8 }
 0x3ce   : > { %2708 = vmatpush1.bf16.msra.mxu0 %v6962_v17  ;;  %2751 = vmatpush1.bf16.msra.mxu1 %v6965_v32 }
 0x3cf   : > { %2709 = vmatprep.subr.bf16.mxu0 %v6968_v52  ;;  %2752 = vmatprep.subr.bf16.mxu1 %v6971_v23 }
 0x3d0   : > { %2739 = vmatprep.mubr.bf16.mxu0 %v8426_v30  ;;  %2782 = vmatprep.mubr.bf16.mxu1 %v8426_v30 }
 0x3d1   : > { %2872 = vperm.xlu1 %5180, %v5037_v12   ;;  %2877 = vperm.xlu0 %5179, %v5038_v51  }
 0x3d2   : > { %2710 = vmatpush1.bf16.msra.mxu0 %v6976_v27  ;;  %2753 = vmatpush1.bf16.msra.mxu1 %v6979_v10 }
 0x3d3   : > { %2711 = vmatprep.subr.bf16.mxu0 %v6982_v62  ;;  %2754 = vmatprep.subr.bf16.mxu1 %v6985_v49 }
 0x3d5   : > { %2882 = vperm.xlu1 %5180, %v5039_v7   ;;  %v2627_v7 = vunpack.c.h.bf16 %v8442_v8 }
 0x3d6   : > { %2712 = vmatpush1.bf16.msra.mxu0 %v6988_v50  ;;  %2755 = vmatpush1.bf16.msra.mxu1 %v6991_v28 }
 0x3d7   : > { %2713 = vmatprep.subr.bf16.mxu0 %v6994_v31  ;;  %2756 = vmatprep.subr.bf16.mxu1 %v6997_v9 }
 0x3da   : > { %2714 = vmatpush1.bf16.msra.mxu0 %v7000_v39  ;;  %2757 = vmatpush1.bf16.msra.mxu1 %v7003_v22 }
 0x3db   : > { %2715 = vmatprep.subr.bf16.mxu0 %v7006_v4  ;;  %2758 = vmatprep.subr.bf16.mxu1 %v7009_v20 }
 0x3de   : > { %2716 = vmatpush1.bf16.msra.mxu0 %v7012_v55  ;;  %2759 = vmatpush1.bf16.msra.mxu1 %v7015_v3 }
 0x3df   : > { %2717 = vmatprep.subr.bf16.mxu0 %v7018_v11  ;;  %2760 = vmatprep.subr.bf16.mxu1 %v7021_v25 }
 0x3e2   : > { %2718 = vmatpush1.bf16.msra.mxu0 %v7024_v53  ;;  %2761 = vmatpush1.bf16.msra.mxu1 %v7027_v1 }
 0x3e3   : > { %2719 = vmatprep.subr.bf16.mxu0 %v7030_v46  ;;  %2762 = vmatprep.subr.bf16.mxu1 %v7033_v13 }
 0x3e6   : > { %2720 = vmatpush1.bf16.msra.mxu0 %v7036_v14  ;;  %2763 = vmatpush1.bf16.msra.mxu1 %v7039_v0 }
 0x3e7   : > { %2721 = vmatprep.subr.bf16.mxu0 %v7042_v43  ;;  %2764 = vmatprep.subr.bf16.mxu1 %v7045_v5 }
 0x3ea   : > { %2722 = vmatpush1.bf16.msra.mxu0 %v7048_v18  ;;  %2765 = vmatpush1.bf16.msra.mxu1 %v7051_v24 }
 0x3eb   : > { %2892 = vmatprep.subr.bf16.mxu0 %v7054_v58  ;;  %2935 = vmatprep.subr.bf16.mxu1 %v7057_v61 }
 0x48d   : > { %v2556_v40 = vpop.f32.mrf.mxu0  ;;  %v2599_v54 = vpop.f32.mrf.mxu1 }
 0x48e   : > { %v2630_v37 = vadd.f32 %v2622_v15, %v2556_v40  ;;  %v2632_v59 = vadd.f32 %v2624_v36, %v2599_v54  ;;  %v2628_v40 = vunpack.c.l.bf16 %v8443_v34 }
 0x48f   : > { %v2558_v63 = vpop.f32.mrf.mxu0  ;;  %v2601_v26 = vpop.f32.mrf.mxu1 }
 0x490   : > { %v2638_v45 = vmul.f32 0.5, %v2630_v37  ;;  %v2631_v56 = vadd.f32 %v2623_v35, %v2558_v63  ;;  %v2625_v63 = vunpack.c.h.bf16 %v8441_v33 }
 0x491   : > { %v2560_v38 = vpop.f32.mrf.mxu0  ;;  %v2603_v42 = vpop.f32.mrf.mxu1 }
 0x492   : > { %5353 = vtanh.f32 %v2638_v45  ;;  %v2646_v12 = vmul.f32 0.5, %v2631_v56  ;;  %v2634_v51 = vadd.f32 %v2626_v57, %v2560_v38  ;;  %v2636_v37 = vadd.f32 %v2628_v40, %v2603_v42 }
 0x493   : > { %v2562_v48 = vpop.f32.mrf.mxu0  ;;  %v2633_v54 = vadd.f32 %v2625_v63, %v2601_v26  ;;  %v2605_v36 = vpop.f32.mrf.mxu1  ;;  %v2629_v45 = vunpack.c.h.bf16 %v8443_v34 }
 0x494   : > { %5355 = vtanh.f32 %v2646_v12  ;;  %v2639_v15 = vmul.f32 0.5, %v2634_v51  ;;  %v2635_v29 = vadd.f32 %v2627_v7, %v2562_v48 }
 0x495   : > { %5357 = vtanh.f32 %v2632_v59  ;;  %v2656_v56 = vmul.f32 0.5, %v2633_v54  ;;  %v2637_v8 = vadd.f32 %v2629_v45, %v2605_v36 }
 0x496   : > { %5359 = vtanh.f32 %v2639_v15  ;;  %v2647_v35 = vmul.f32 0.5, %v2635_v29 }
 0x497   : > { %v2657_v59 = vmul.f32 0.5, %v2637_v8  ;;  %v7246_v8 = vpop.permute.xlu1 %2687 }
 0x498   : > { %5361 = vtanh.f32 %v2647_v35  ;;  %8445 = vst [vmem:[#allocation41_spill] sm:$0xff] %v7246_v8 }
 0x499   : > { %5363 = vtanh.f32 %v2636_v37 }
 0x49a   : > { %5365 = vtanh.f32 %v2656_v56 }
 0x49b   : > { %5367 = vtanh.f32 %v2657_v59 }
 0x49f   : > { %v5354_v57 = vpop.eup %5353 }
 0x4a0   : > { %v2642_v38 = vmul.f32 0.5, %v5354_v57 }
 0x4a1   : > { %v5356_v12 = vpop.eup %5355 }
 0x4a2   : > { %v5358_v51 = vpop.eup %5357  ;;  %v2644_v21 = vadd.f32 0.5, %v2642_v38  ;;  %v2650_v48 = vmul.f32 0.5, %v5356_v12 }
 0x4a3   : > { %v5360_v42 = vpop.eup %5359 }
 0x4a4   : > { %v2652_v29 = vadd.f32 0.5, %v2650_v48  ;;  %v2666_v7 = vmul.f32 %v5358_v51, %v2644_v21  ;;  %v2643_v33 = vmul.f32 0.5, %v5360_v42  ;;  %v7244_v21 = vpop.permute.xlu0 %2682  ;;  %v7254_v42 = vpop.permute.xlu1 %2697 }
 0x4a5   : > { %v5362_v15 = vpop.eup %5361  ;;  %8444 = vst [vmem:[#allocation40_spill] sm:$0xff] %v7244_v21  ;;  %8447 = vst [vmem:[#allocation47_spill] sm:$0xff] %v7254_v42 }
 0x4a6   : > { %v2664_v26 = vmul.f32 %v2652_v29, %v7161_v19  ;;  %v2645_v40 = vadd.f32 0.5, %v2643_v33  ;;  %v2651_v37 = vmul.f32 0.5, %v5362_v15  ;;  %v5364_v34 = vpop.eup %5363  ;;  %v2701_v15 = vsel %vm1800_vm0, %v7246_v8, %v7254_v42 }
 0x4a7   : > { %v5366_v56 = vpop.eup %5365 }
 0x4a8   : > { %v7237_v35 = vadd.f32 %v2666_v7, %v2664_v26  ;;  %v2653_v63 = vadd.f32 0.5, %v2651_v37  ;;  %v2667_v54 = vmul.f32 %v5364_v34, %v2645_v40  ;;  %v2660_v19 = vmul.f32 0.5, %v5366_v56  ;;  %v5368_v57 = vpop.eup %5367  ;;  %v7248_v38 = vpop.permute.xlu0 %2692  ;;  %v8448_v56 = vld [vmem:[#allocation36_spill] sm:$0xff] }
 0x4a9   : > { %8446 = vst [vmem:[#allocation46_spill] sm:$0xff] %v7248_v38  ;;  %v2661_v51 = vmul.f32 0.5, %v5368_v57 }
 0x4aa   : > { %5369 = vtanh.f32 %v7237_v35  ;;  %v2665_v36 = vmul.f32 %v2653_v63, %v7165_v6  ;;  %v2662_v12 = vadd.f32 0.5, %v2660_v19  ;;  %v2700_v6 = vsel %vm1800_vm0, %v7244_v21, %v7248_v38  ;;  %v8467_v38 = vld [vmem:[#allocation26_spill] sm:$0xff] }
 0x4ab   : > { %v2663_v29 = vadd.f32 0.5, %v2661_v51  ;;  %v2807_v19 = vunpack.c.l.bf16 %v8448_v56 }
 0x4ac   : > { %v7241_v45 = vadd.f32 %v2667_v54, %v2665_v36  ;;  %v5042_v54 = vld [vmem:[%s6019_s17 + $0xa0] sm:$0xff]  ;;  %v5043_v36 = vld [vmem:[%s6019_s17 + $0xa8] sm:$0xff] }
 0x4ae   : > { %5371 = vtanh.f32 %v7241_v45 }
 0x4b7   : > { %v5370_v48 = vpop.eup %5369 }
 0x4b8   : > { %v2672_v59 = vmul.f32 %v5370_v48, %v2662_v12  ;;  %v2808_v48 = vunpack.c.h.bf16 %v8448_v56  ;;  %v8451_v56 = vld [vmem:[#allocation39_spill] sm:$0xff] }
 0x4ba   : > { %v2702_v7 = vmul.f32 %v2700_v6, %v2672_v59  ;;  %v8449_v6 = vld [vmem:[#allocation37_spill] sm:$0xff] }
 0x4bb   : > { %v5372_v33 = vpop.eup %5371 }
 0x4bc   : > { %v7261_v26 = vadd.f32 %v2702_v7, %v7185_v16  ;;  %v2673_v40 = vmul.f32 %v5372_v33, %v2663_v29  ;;  %v5040_v16 = vld [vmem:[%s6019_s17 + $0x50] sm:$0xff] }
 0x4bd   : > { %3052 = vperm.xlu0 %5179, %v5040_v16  }
 0x4be   : > { %v2703_v37 = vmul.f32 %v2701_v15, %v2673_v40  ;;  %v2706_v34 = vpack.c.bf16 %v2673_v40, %v2672_v59  ;;  %v2809_v59 = vunpack.c.l.bf16 %v8449_v6  ;;  %v8450_v40 = vld [vmem:[#allocation38_spill] sm:$0xff] }
 0x4c0   : > { %v7264_v63 = vadd.f32 %v2703_v37, %v7188_v44  ;;  %2740 = vmatmul.mubr.bf16.vlgmr.msra.gmra.mxu0 %v2706_v34  ;;  %2783 = vmatmul.mubr.bf16.vlgmr.msra.gmra.mxu1 %v2706_v34  ;;  %v5041_v44 = vld [vmem:[%s6019_s17 + $0x58] sm:$0xff]  ;;  %v2811_v37 = vunpack.c.l.bf16 %v8450_v40 }
 0x4c1   : > { %2893 = vmatpush1.bf16.msra.mxu0 %v6962_v17  ;;  %2936 = vmatpush1.bf16.msra.mxu1 %v6965_v32 }
 0x4c2   : > { %2894 = vmatprep.subr.bf16.mxu0 %v6968_v52  ;;  %2937 = vmatprep.subr.bf16.mxu1 %v6971_v23 }
 0x4c3   : > { %2924 = vmatprep.mubr.bf16.mxu0 %v8426_v30  ;;  %2967 = vmatprep.mubr.bf16.mxu1 %v8426_v30 }
 0x4c4   : > { %3057 = vperm.xlu1 %5180, %v5041_v44   ;;  %3062 = vperm.xlu0 %5179, %v5042_v54  }
 0x4c5   : > { %2895 = vmatpush1.bf16.msra.mxu0 %v6976_v27  ;;  %2938 = vmatpush1.bf16.msra.mxu1 %v6979_v10 }
 0x4c6   : > { %2896 = vmatprep.subr.bf16.mxu0 %v6982_v62  ;;  %2939 = vmatprep.subr.bf16.mxu1 %v6985_v49 }
 0x4c8   : > { %3067 = vperm.xlu1 %5180, %v5043_v36   ;;  %v2812_v36 = vunpack.c.h.bf16 %v8450_v40 }
 0x4c9   : > { %2897 = vmatpush1.bf16.msra.mxu0 %v6988_v50  ;;  %2940 = vmatpush1.bf16.msra.mxu1 %v6991_v28 }
 0x4ca   : > { %2898 = vmatprep.subr.bf16.mxu0 %v6994_v31  ;;  %2941 = vmatprep.subr.bf16.mxu1 %v6997_v9 }
 0x4cd   : > { %2899 = vmatpush1.bf16.msra.mxu0 %v7000_v39  ;;  %2942 = vmatpush1.bf16.msra.mxu1 %v7003_v22 }
 0x4ce   : > { %2900 = vmatprep.subr.bf16.mxu0 %v7006_v4  ;;  %2943 = vmatprep.subr.bf16.mxu1 %v7009_v20 }
 0x4d1   : > { %2901 = vmatpush1.bf16.msra.mxu0 %v7012_v55  ;;  %2944 = vmatpush1.bf16.msra.mxu1 %v7015_v3 }
 0x4d2   : > { %2902 = vmatprep.subr.bf16.mxu0 %v7018_v11  ;;  %2945 = vmatprep.subr.bf16.mxu1 %v7021_v25 }
 0x4d5   : > { %2903 = vmatpush1.bf16.msra.mxu0 %v7024_v53  ;;  %2946 = vmatpush1.bf16.msra.mxu1 %v7027_v1 }
 0x4d6   : > { %2904 = vmatprep.subr.bf16.mxu0 %v7030_v46  ;;  %2947 = vmatprep.subr.bf16.mxu1 %v7033_v13 }
 0x4d9   : > { %2905 = vmatpush1.bf16.msra.mxu0 %v7036_v14  ;;  %2948 = vmatpush1.bf16.msra.mxu1 %v7039_v0 }
 0x4da   : > { %2906 = vmatprep.subr.bf16.mxu0 %v7042_v43  ;;  %2949 = vmatprep.subr.bf16.mxu1 %v7045_v5 }
 0x4dd   : > { %2907 = vmatpush1.bf16.msra.mxu0 %v7048_v18  ;;  %2950 = vmatpush1.bf16.msra.mxu1 %v7051_v24 }
 0x4de   : > { %3077 = vmatprep.subr.bf16.mxu0 %v7054_v58  ;;  %3120 = vmatprep.subr.bf16.mxu1 %v7057_v61 }
 0x580   : > { %v2741_v57 = vpop.f32.mrf.mxu0  ;;  %v2784_v12 = vpop.f32.mrf.mxu1 }
 0x581   : > { %v2815_v51 = vadd.f32 %v2807_v19, %v2741_v57  ;;  %v2817_v34 = vadd.f32 %v2809_v59, %v2784_v12  ;;  %v2813_v57 = vunpack.c.l.bf16 %v8451_v56 }
 0x582   : > { %v2743_v29 = vpop.f32.mrf.mxu0  ;;  %v2786_v7 = vpop.f32.mrf.mxu1 }
 0x583   : > { %v2823_v33 = vmul.f32 0.5, %v2815_v51  ;;  %v2816_v15 = vadd.f32 %v2808_v48, %v2743_v29  ;;  %v2810_v29 = vunpack.c.h.bf16 %v8449_v6 }
 0x584   : > { %v2745_v16 = vpop.f32.mrf.mxu0  ;;  %v2788_v2 = vpop.f32.mrf.mxu1 }
 0x585   : > { %5373 = vtanh.f32 %v2823_v33  ;;  %v2831_v44 = vmul.f32 0.5, %v2816_v15  ;;  %v2819_v54 = vadd.f32 %v2811_v37, %v2745_v16  ;;  %v2821_v51 = vadd.f32 %v2813_v57, %v2788_v2 }
 0x586   : > { %v2747_v60 = vpop.f32.mrf.mxu0  ;;  %v2818_v12 = vadd.f32 %v2810_v29, %v2786_v7  ;;  %v2790_v59 = vpop.f32.mrf.mxu1  ;;  %v2814_v33 = vunpack.c.h.bf16 %v8451_v56 }
 0x587   : > { %5375 = vtanh.f32 %v2831_v44  ;;  %v2824_v19 = vmul.f32 0.5, %v2819_v54  ;;  %v2820_v47 = vadd.f32 %v2812_v36, %v2747_v60 }
 0x588   : > { %5377 = vtanh.f32 %v2817_v34  ;;  %v2841_v15 = vmul.f32 0.5, %v2818_v12  ;;  %v2822_v40 = vadd.f32 %v2814_v33, %v2790_v59 }
 0x589   : > { %5379 = vtanh.f32 %v2824_v19  ;;  %v2832_v48 = vmul.f32 0.5, %v2820_v47 }
 0x58a   : > { %v2842_v34 = vmul.f32 0.5, %v2822_v40  ;;  %v7322_v40 = vpop.permute.xlu1 %2872 }
 0x58b   : > { %5381 = vtanh.f32 %v2832_v48  ;;  %8453 = vst [vmem:[#allocation37_spill] sm:$0xff] %v7322_v40 }
 0x58c   : > { %5383 = vtanh.f32 %v2821_v51 }
 0x58d   : > { %5385 = vtanh.f32 %v2841_v15 }
 0x58e   : > { %5387 = vtanh.f32 %v2842_v34 }
 0x592   : > { %v5374_v37 = vpop.eup %5373 }
 0x593   : > { %v2827_v16 = vmul.f32 0.5, %v5374_v37 }
 0x594   : > { %v5376_v44 = vpop.eup %5375 }
 0x595   : > { %v5378_v54 = vpop.eup %5377  ;;  %v2829_v42 = vadd.f32 0.5, %v2827_v16  ;;  %v2835_v60 = vmul.f32 0.5, %v5376_v44 }
 0x596   : > { %v5380_v2 = vpop.eup %5379 }
 0x597   : > { %v2837_v47 = vadd.f32 0.5, %v2835_v60  ;;  %v2851_v36 = vmul.f32 %v5378_v54, %v2829_v42  ;;  %v2828_v6 = vmul.f32 0.5, %v5380_v2  ;;  %v7320_v42 = vpop.permute.xlu0 %2867  ;;  %v7330_v2 = vpop.permute.xlu1 %2882 }
 0x598   : > { %v5382_v19 = vpop.eup %5381  ;;  %8452 = vst [vmem:[#allocation36_spill] sm:$0xff] %v7320_v42  ;;  %8455 = vst [vmem:[#allocation39_spill] sm:$0xff] %v7330_v2 }
 0x599   : > { %v2849_v7 = vmul.f32 %v2837_v47, %v7237_v35  ;;  %v2830_v57 = vadd.f32 0.5, %v2828_v6  ;;  %v2836_v51 = vmul.f32 0.5, %v5382_v19  ;;  %v5384_v56 = vpop.eup %5383  ;;  %v2886_v19 = vsel %vm1800_vm0, %v7322_v40, %v7330_v2 }
 0x59a   : > { %v5386_v15 = vpop.eup %5385  ;;  %v3182_v2 = vunpack.c.h.bf16 %v8467_v38 }
 0x59b   : > { %v7313_v48 = vadd.f32 %v2851_v36, %v2849_v7  ;;  %v2838_v29 = vadd.f32 0.5, %v2836_v51  ;;  %v2852_v12 = vmul.f32 %v5384_v56, %v2830_v57  ;;  %v2845_v35 = vmul.f32 0.5, %v5386_v15  ;;  %v5388_v37 = vpop.eup %5387  ;;  %v7324_v16 = vpop.permute.xlu0 %2877 }
 0x59c   : > { %8454 = vst [vmem:[#allocation38_spill] sm:$0xff] %v7324_v16  ;;  %v2846_v54 = vmul.f32 0.5, %v5388_v37 }
 0x59d   : > { %5389 = vtanh.f32 %v7313_v48  ;;  %v2850_v59 = vmul.f32 %v2838_v29, %v7241_v45  ;;  %v2847_v44 = vadd.f32 0.5, %v2845_v35  ;;  %v2885_v45 = vsel %vm1800_vm0, %v7320_v42, %v7324_v16 }
 0x59e   : > { %v2848_v47 = vadd.f32 0.5, %v2846_v54 }
 0x59f   : > { %v7317_v33 = vadd.f32 %v2852_v12, %v2850_v59 }
 0x5a1   : > { %5391 = vtanh.f32 %v7317_v33 }
 0x5aa   : > { %v5390_v60 = vpop.eup %5389 }
 0x5ab   : > { %v2857_v34 = vmul.f32 %v5390_v60, %v2847_v44 }
 0x5ad   : > { %v2887_v36 = vmul.f32 %v2885_v45, %v2857_v34 }
 0x5ae   : > { %v5392_v6 = vpop.eup %5391 }
 0x5af   : > { %v7337_v7 = vadd.f32 %v2887_v36, %v7261_v26  ;;  %v2858_v57 = vmul.f32 %v5392_v6, %v2848_v47 }
 0x5b1   : > { %v2888_v51 = vmul.f32 %v2886_v19, %v2858_v57  ;;  %v2891_v56 = vpack.c.bf16 %v2858_v57, %v2857_v34 }
 0x5b3   : > { %v7340_v29 = vadd.f32 %v2888_v51, %v7264_v63  ;;  %2925 = vmatmul.mubr.bf16.vlgmr.msra.gmra.mxu0 %v2891_v56  ;;  %2968 = vmatmul.mubr.bf16.vlgmr.msra.gmra.mxu1 %v2891_v56 }
 0x5b4   : > { %3078 = vmatpush1.bf16.msra.mxu0 %v6962_v17  ;;  %3121 = vmatpush1.bf16.msra.mxu1 %v6965_v32  ;;  %v5044_v17 = vld [vmem:[%s6019_s17 + $0x60] sm:$0xff]  ;;  %v5045_v32 = vld [vmem:[%s6019_s17 + $0x68] sm:$0xff] }
 0x5b5   : > { %3079 = vmatprep.subr.bf16.mxu0 %v6968_v52  ;;  %3122 = vmatprep.subr.bf16.mxu1 %v6971_v23  ;;  %v5046_v52 = vld [vmem:[%s6019_s17 + $0x90] sm:$0xff]  ;;  %v5047_v23 = vld [vmem:[%s6019_s17 + $0x98] sm:$0xff] }
 0x5b6   : > { %3109 = vmatprep.mubr.bf16.mxu0 %v8426_v30  ;;  %3152 = vmatprep.mubr.bf16.mxu1 %v8426_v30 }
 0x5b7   : > { %3237 = vperm.xlu0 %5179, %v5044_v17   ;;  %3242 = vperm.xlu1 %5180, %v5045_v32  }
 0x5b8   : > { %3080 = vmatpush1.bf16.msra.mxu0 %v6976_v27  ;;  %3123 = vmatpush1.bf16.msra.mxu1 %v6979_v10  ;;  %v8456_v27 = vld [vmem:[#allocation28_spill] sm:$0xff] }
 0x5b9   : > { %3081 = vmatprep.subr.bf16.mxu0 %v6982_v62  ;;  %3124 = vmatprep.subr.bf16.mxu1 %v6985_v49  ;;  %v2992_v10 = vunpack.c.l.bf16 %v8456_v27 }
 0x5bb   : > { %3247 = vperm.xlu0 %5179, %v5046_v52   ;;  %3252 = vperm.xlu1 %5180, %v5047_v23  }
 0x5bc   : > { %3082 = vmatpush1.bf16.msra.mxu0 %v6988_v50  ;;  %3125 = vmatpush1.bf16.msra.mxu1 %v6991_v28  ;;  %v2993_v28 = vunpack.c.h.bf16 %v8456_v27 }
 0x5bd   : > { %3083 = vmatprep.subr.bf16.mxu0 %v6994_v31  ;;  %3126 = vmatprep.subr.bf16.mxu1 %v6997_v9 }
 0x5c0   : > { %3084 = vmatpush1.bf16.msra.mxu0 %v7000_v39  ;;  %3127 = vmatpush1.bf16.msra.mxu1 %v7003_v22  ;;  %v8458_v22 = vld [vmem:[#allocation30_spill] sm:$0xff] }
 0x5c1   : > { %3085 = vmatprep.subr.bf16.mxu0 %v7006_v4  ;;  %3128 = vmatprep.subr.bf16.mxu1 %v7009_v20  ;;  %v2996_v4 = vunpack.c.l.bf16 %v8458_v22 }
 0x5c4   : > { %3086 = vmatpush1.bf16.msra.mxu0 %v7012_v55  ;;  %3129 = vmatpush1.bf16.msra.mxu1 %v7015_v3 }
 0x5c5   : > { %3087 = vmatprep.subr.bf16.mxu0 %v7018_v11  ;;  %3130 = vmatprep.subr.bf16.mxu1 %v7021_v25  ;;  %v2997_v25 = vunpack.c.h.bf16 %v8458_v22 }
 0x5c8   : > { %3088 = vmatpush1.bf16.msra.mxu0 %v7024_v53  ;;  %3131 = vmatpush1.bf16.msra.mxu1 %v7027_v1 }
 0x5c9   : > { %3089 = vmatprep.subr.bf16.mxu0 %v7030_v46  ;;  %3132 = vmatprep.subr.bf16.mxu1 %v7033_v13  ;;  %v8459_v13 = vld [vmem:[#allocation31_spill] sm:$0xff] }
 0x5ca   : > { %v2999_v12 = vunpack.c.h.bf16 %v8459_v13 }
 0x5cc   : > { %3090 = vmatpush1.bf16.msra.mxu0 %v7036_v14  ;;  %3133 = vmatpush1.bf16.msra.mxu1 %v7039_v0  ;;  %v2998_v14 = vunpack.c.l.bf16 %v8459_v13  ;;  %v7418_v13 = vld [vmem:[#allocation5 + $0xe0] ss:$16 sps:$4 sm:$0xff]  }
 0x5cd   : > { %3091 = vmatprep.subr.bf16.mxu0 %v7042_v43  ;;  %3134 = vmatprep.subr.bf16.mxu1 %v7045_v5 }
 0x5d0   : > { %3092 = vmatpush1.bf16.msra.mxu0 %v7048_v18  ;;  %3135 = vmatpush1.bf16.msra.mxu1 %v7051_v24  ;;  %v8457_v24 = vld [vmem:[#allocation29_spill] sm:$0xff] }
 0x5d1   : > { %3262 = vmatprep.subr.bf16.mxu0 %v7054_v58  ;;  %3305 = vmatprep.subr.bf16.mxu1 %v7057_v61  ;;  %v2994_v31 = vunpack.c.l.bf16 %v8457_v24  ;;  %v2995_v18 = vunpack.c.h.bf16 %v8457_v24 }
 0x673   : > { %v2926_v62 = vpop.f32.mrf.mxu0  ;;  %v2969_v49 = vpop.f32.mrf.mxu1 }
 0x674   : > { %v3000_v50 = vadd.f32 %v2992_v10, %v2926_v62  ;;  %v3002_v20 = vadd.f32 %v2994_v31, %v2969_v49  ;;  %v7396_v49 = vpop.permute.xlu0 %3052 }
 0x675   : > { %v2928_v58 = vpop.f32.mrf.mxu0  ;;  %v2971_v9 = vpop.f32.mrf.mxu1  ;;  %8460 = vst [vmem:[#allocation28_spill] sm:$0xff] %v7396_v49 }
 0x676   : > { %v3008_v61 = vmul.f32 0.5, %v3000_v50  ;;  %v3001_v39 = vadd.f32 %v2993_v28, %v2928_v58  ;;  %v3003_v26 = vadd.f32 %v2995_v18, %v2971_v9  ;;  %v7398_v28 = vpop.permute.xlu1 %3057  ;;  %v7441_v18 = vld [vmem:[#allocation5 + $0xac] ss:$16 sps:$4 sm:$0xff]  }
 0x677   : > { %v2930_v55 = vpop.f32.mrf.mxu0  ;;  %v2973_v53 = vpop.f32.mrf.mxu1  ;;  %8461 = vst [vmem:[#allocation29_spill] sm:$0xff] %v7398_v28 }
 0x678   : > { %5393 = vtanh.f32 %v3008_v61  ;;  %v3016_v3 = vmul.f32 0.5, %v3001_v39  ;;  %v3004_v11 = vadd.f32 %v2996_v4, %v2930_v55  ;;  %v3006_v43 = vadd.f32 %v2998_v14, %v2973_v53  ;;  %v7400_v31 = vpop.permute.xlu0 %3062  ;;  %v7421_v14 = vld [vmem:[#allocation5 + $0xe8] ss:$16 sps:$4 sm:$0xff]  }
 0x679   : > { %v2932_v1 = vpop.f32.mrf.mxu0  ;;  %v2975_v63 = vpop.f32.mrf.mxu1  ;;  %v3026_v59 = vmul.f32 0.5, %v3003_v26  ;;  %8462 = vst [vmem:[#allocation30_spill] sm:$0xff] %v7400_v31  ;;  %v7444_v26 = vld [vmem:[#allocation5 + $0xa0] ss:$16 sps:$4 sm:$0xff]  }
 0x67a   : > { %5395 = vtanh.f32 %v3016_v3  ;;  %v3009_v46 = vmul.f32 0.5, %v3004_v11  ;;  %v3005_v0 = vadd.f32 %v2997_v25, %v2932_v1  ;;  %v3007_v15 = vadd.f32 %v2999_v12, %v2975_v63  ;;  %v7406_v22 = vpop.permute.xlu1 %3067  ;;  %v7447_v63 = vld [vmem:[#allocation5 + $0xa8] ss:$16 sps:$4 sm:$0xff]   ;;  %v7450_v12 = vld [vmem:[#allocation5 + $0x84] ss:$16 sps:$4 sm:$0xff]  }
 0x67b   : > { %5397 = vtanh.f32 %v3002_v20  ;;  %8463 = vst [vmem:[#allocation31_spill] sm:$0xff] %v7406_v22  ;;  %v3071_v3 = vsel %vm1800_vm0, %v7398_v28, %v7406_v22 }
 0x67c   : > { %5399 = vtanh.f32 %v3009_v46  ;;  %v3017_v5 = vmul.f32 0.5, %v3005_v0  ;;  %v3027_v34 = vmul.f32 0.5, %v3007_v15  ;;  %v7424_v0 = vld [vmem:[#allocation5 + $0xc4] ss:$16 sps:$4 sm:$0xff]   ;;  %v7456_v15 = vld [vmem:[#allocation5 + $0x80] ss:$16 sps:$4 sm:$0xff]  }
 0x67e   : > { %5401 = vtanh.f32 %v3017_v5  ;;  %v7438_v5 = vld [vmem:[#allocation5 + $0xa4] ss:$16 sps:$4 sm:$0xff]  }
 0x67f   : > { %5403 = vtanh.f32 %v3006_v43  ;;  %v7435_v43 = vld [vmem:[#allocation5 + $0xc8] ss:$16 sps:$4 sm:$0xff]  }
 0x680   : > { %5405 = vtanh.f32 %v3026_v59  ;;  %v7453_v59 = vld [vmem:[#allocation5 + $0x8c] ss:$16 sps:$4 sm:$0xff]  }
 0x681   : > { %5407 = vtanh.f32 %v3027_v34  ;;  %v7477_v34 = vld [vmem:[#allocation5 + $0x4c] ss:$16 sps:$4 sm:$0xff]  }
 0x685   : > { %v5394_v35 = vpop.eup %5393 }
 0x686   : > { %v3012_v37 = vmul.f32 0.5, %v5394_v35  ;;  %v7459_v35 = vld [vmem:[#allocation5 + $0x88] ss:$16 sps:$4 sm:$0xff]  }
 0x687   : > { %v5396_v44 = vpop.eup %5395 }
 0x688   : > { %v5398_v54 = vpop.eup %5397  ;;  %v3014_v60 = vadd.f32 0.5, %v3012_v37  ;;  %v3020_v45 = vmul.f32 0.5, %v5396_v44  ;;  %v7462_v37 = vld [vmem:[#allocation5 + $0x64] ss:$16 sps:$4 sm:$0xff]   ;;  %v7465_v44 = vld [vmem:[#allocation5 + $0x6c] ss:$16 sps:$4 sm:$0xff]  }
 0x689   : > { %v5400_v47 = vpop.eup %5399 }
 0x68a   : > { %v3022_v36 = vadd.f32 0.5, %v3020_v45  ;;  %v3036_v6 = vmul.f32 %v5398_v54, %v3014_v60  ;;  %v3013_v19 = vmul.f32 0.5, %v5400_v47  ;;  %v7468_v54 = vld [vmem:[#allocation5 + $0x60] ss:$16 sps:$4 sm:$0xff]   ;;  %v7471_v60 = vld [vmem:[#allocation5 + $0x68] ss:$16 sps:$4 sm:$0xff]  }
 0x68b   : > { %v5402_v57 = vpop.eup %5401  ;;  %v7474_v45 = vld [vmem:[#allocation5 + $0x44] ss:$16 sps:$4 sm:$0xff]   ;;  %v7480_v47 = vld [vmem:[#allocation5 + $0x40] ss:$16 sps:$4 sm:$0xff]  }
 0x68c   : > { %v3034_v51 = vmul.f32 %v3022_v36, %v7313_v48  ;;  %v3015_v56 = vadd.f32 0.5, %v3013_v19  ;;  %v3021_v17 = vmul.f32 0.5, %v5402_v57  ;;  %v5404_v32 = vpop.eup %5403  ;;  %v7483_v36 = vld [vmem:[#allocation5 + $0x48] ss:$16 sps:$4 sm:$0xff]   ;;  %v7489_v19 = vld [vmem:[#allocation5 + $0x2c] ss:$16 sps:$4 sm:$0xff]  }
 0x68d   : > { %v5406_v50 = vpop.eup %5405  ;;  %v7492_v57 = vld [vmem:[#allocation5 + $0x20] ss:$16 sps:$4 sm:$0xff]  }
 0x68e   : > { %v7389_v52 = vadd.f32 %v3036_v6, %v3034_v51  ;;  %v3023_v23 = vadd.f32 0.5, %v3021_v17  ;;  %v3037_v27 = vmul.f32 %v5404_v32, %v3015_v56  ;;  %v3030_v48 = vmul.f32 0.5, %v5406_v50  ;;  %v5408_v24 = vpop.eup %5407  ;;  %v7486_v6 = vld [vmem:[#allocation5 + $0x24] ss:$16 sps:$4 sm:$0xff]   ;;  %v7495_v51 = vld [vmem:[#allocation5 + $0x28] ss:$16 sps:$4 sm:$0xff]  }
 0x68f   : > { %v3031_v9 = vmul.f32 0.5, %v5408_v24  ;;  %v7498_v56 = vld [vmem:[#allocation5 + $0x4] ss:$16 sps:$4 sm:$0xff]   ;;  %v7501_v17 = vld [vmem:[#allocation5 + $0xc] ss:$16 sps:$4 sm:$0xff]  }
 0x690   : > { %5409 = vtanh.f32 %v7389_v52  ;;  %v3035_v10 = vmul.f32 %v3023_v23, %v7317_v33  ;;  %v3032_v58 = vadd.f32 0.5, %v3030_v48  ;;  %v3070_v33 = vsel %vm1800_vm0, %v7396_v49, %v7400_v31  ;;  %v7504_v32 = vld [vmem:[#allocation5] ss:$16 sps:$4 sm:$0xff]   ;;  %v7507_v23 = vld [vmem:[#allocation5 + $0x8] ss:$16 sps:$4 sm:$0xff]  }
 0x691   : > { %v3033_v4 = vadd.f32 0.5, %v3031_v9  ;;  %v5048_v50 = vld [vmem:[%s6019_s17 + $0x70] sm:$0xff]  ;;  %v5049_v48 = vld [vmem:[%s6019_s17 + $0x78] sm:$0xff]  ;;  %v5050_v24 = vld [vmem:[%s6019_s17 + $0x80] sm:$0xff] }
 0x692   : > { %v7393_v62 = vadd.f32 %v3037_v27, %v3035_v10  ;;  %v7510_v27 = vld [vmem:[#allocation5 + $0xe4] ss:$16 sps:$4 sm:$0xff]   ;;  %v7513_v10 = vld [vmem:[#allocation5 + $0xec] ss:$16 sps:$4 sm:$0xff]   ;;  %3422 = vperm.xlu0 %5179, %v5048_v50   ;;  %3427 = vperm.xlu1 %5180, %v5049_v48   ;;  %v3181_v50 = vunpack.c.l.bf16 %v8467_v38 }
 0x693   : > { %8464 = vst [vmem:[#allocation74_spill] sm:$0xff] %v7513_v10  ;;  %v8465_v9 = vld [vmem:[#allocation20_spill] sm:$0xff] }
 0x694   : > { %5411 = vtanh.f32 %v7393_v62 }
 0x696   : > { %3432 = vperm.xlu0 %5179, %v5050_v24  }
 0x69d   : > { %v5410_v61 = vpop.eup %5409 }
 0x69e   : > { %v3042_v39 = vmul.f32 %v5410_v61, %v3032_v58  ;;  %v5051_v58 = vld [vmem:[%s6019_s17 + $0x88] sm:$0xff]  ;;  %v3177_v61 = vunpack.c.l.bf16 %v8465_v9 }
 0x69f   : > { %3437 = vperm.xlu1 %5180, %v5051_v58  }
 0x6a0   : > { %v3072_v20 = vmul.f32 %v3070_v33, %v3042_v39 }
 0x6a1   : > { %v5412_v55 = vpop.eup %5411 }
 0x6a2   : > { %v7413_v11 = vadd.f32 %v3072_v20, %v7337_v7  ;;  %v3043_v25 = vmul.f32 %v5412_v55, %v3033_v4  ;;  %v7427_v7 = vld [vmem:[#allocation5 + $0xcc] ss:$16 sps:$4 sm:$0xff]   ;;  %v3178_v20 = vunpack.c.h.bf16 %v8465_v9  ;;  %v8466_v55 = vld [vmem:[#allocation21_spill] sm:$0xff]  ;;  %v8468_v9 = vld [vmem:[#allocation27_spill] sm:$0xff] }
 0x6a4   : > { %v3073_v53 = vmul.f32 %v3071_v3, %v3043_v25  ;;  %v3076_v1 = vpack.c.bf16 %v3043_v25, %v3042_v39  ;;  %v3179_v3 = vunpack.c.l.bf16 %v8466_v55 }
 0x6a6   : > { %v7416_v46 = vadd.f32 %v3073_v53, %v7340_v29  ;;  %3110 = vmatmul.mubr.bf16.vlgmr.msra.gmra.mxu0 %v3076_v1  ;;  %3153 = vmatmul.mubr.bf16.vlgmr.msra.gmra.mxu1 %v3076_v1  ;;  %v7432_v29 = vld [vmem:[#allocation5 + $0xc0] ss:$16 sps:$4 sm:$0xff]  }
 0x6a7   : > { %3263 = vmatpush1.bf16.msra.mxu0 %v7418_v13  ;;  %3306 = vmatpush1.bf16.msra.mxu1 %v7421_v14 }
 0x6a8   : > { %3264 = vmatprep.subr.bf16.mxu0 %v7424_v0  ;;  %3307 = vmatprep.subr.bf16.mxu1 %v7427_v7 }
 0x6a9   : > { %3294 = vmatprep.mubr.bf16.mxu0 %v8426_v30  ;;  %3337 = vmatprep.mubr.bf16.mxu1 %v8426_v30 }
 0x6ab   : > { %3265 = vmatpush1.bf16.msra.mxu0 %v7432_v29  ;;  %3308 = vmatpush1.bf16.msra.mxu1 %v7435_v43 }
 0x6ac   : > { %3266 = vmatprep.subr.bf16.mxu0 %v7438_v5  ;;  %3309 = vmatprep.subr.bf16.mxu1 %v7441_v18 }
 0x6af   : > { %3267 = vmatpush1.bf16.msra.mxu0 %v7444_v26  ;;  %3310 = vmatpush1.bf16.msra.mxu1 %v7447_v63 }
 0x6b0   : > { %3268 = vmatprep.subr.bf16.mxu0 %v7450_v12  ;;  %3311 = vmatprep.subr.bf16.mxu1 %v7453_v59 }
 0x6b3   : > { %3269 = vmatpush1.bf16.msra.mxu0 %v7456_v15  ;;  %3312 = vmatpush1.bf16.msra.mxu1 %v7459_v35 }
 0x6b4   : > { %3270 = vmatprep.subr.bf16.mxu0 %v7462_v37  ;;  %3313 = vmatprep.subr.bf16.mxu1 %v7465_v44 }
 0x6b7   : > { %3271 = vmatpush1.bf16.msra.mxu0 %v7468_v54  ;;  %3314 = vmatpush1.bf16.msra.mxu1 %v7471_v60 }
 0x6b8   : > { %3272 = vmatprep.subr.bf16.mxu0 %v7474_v45  ;;  %3315 = vmatprep.subr.bf16.mxu1 %v7477_v34 }
 0x6bb   : > { %3273 = vmatpush1.bf16.msra.mxu0 %v7480_v47  ;;  %3316 = vmatpush1.bf16.msra.mxu1 %v7483_v36 }
 0x6bc   : > { %3274 = vmatprep.subr.bf16.mxu0 %v7486_v6  ;;  %3317 = vmatprep.subr.bf16.mxu1 %v7489_v19 }
 0x6bf   : > { %3275 = vmatpush1.bf16.msra.mxu0 %v7492_v57  ;;  %3318 = vmatpush1.bf16.msra.mxu1 %v7495_v51 }
 0x6c0   : > { %3276 = vmatprep.subr.bf16.mxu0 %v7498_v56  ;;  %3319 = vmatprep.subr.bf16.mxu1 %v7501_v17 }
 0x6c3   : > { %3277 = vmatpush1.bf16.msra.mxu0 %v7504_v32  ;;  %3320 = vmatpush1.bf16.msra.mxu1 %v7507_v23 }
 0x6c4   : > { %3447 = vmatprep.subr.bf16.mxu0 %v7510_v27  ;;  %3490 = vmatprep.subr.bf16.mxu1 %v7513_v10 }
 0x766   : > { %v3111_v33 = vpop.f32.mrf.mxu0  ;;  %v3154_v39 = vpop.f32.mrf.mxu1 }
 0x767   : > { %v3185_v4 = vadd.f32 %v3177_v61, %v3111_v33  ;;  %v3187_v48 = vadd.f32 %v3179_v3, %v3154_v39  ;;  %v3183_v33 = vunpack.c.l.bf16 %v8468_v9 }
 0x768   : > { %v3113_v25 = vpop.f32.mrf.mxu0  ;;  %v3156_v53 = vpop.f32.mrf.mxu1 }
 0x769   : > { %v3193_v1 = vmul.f32 0.5, %v3185_v4  ;;  %v3186_v8 = vadd.f32 %v3178_v20, %v3113_v25  ;;  %v3180_v25 = vunpack.c.h.bf16 %v8466_v55 }
 0x76a   : > { %v3115_v21 = vpop.f32.mrf.mxu0  ;;  %v3158_v40 = vpop.f32.mrf.mxu1 }
 0x76b   : > { %5413 = vtanh.f32 %v3193_v1  ;;  %v3201_v24 = vmul.f32 0.5, %v3186_v8  ;;  %v3189_v58 = vadd.f32 %v3181_v50, %v3115_v21  ;;  %v3191_v4 = vadd.f32 %v3183_v33, %v3158_v40 }
 0x76c   : > { %v3117_v16 = vpop.f32.mrf.mxu0  ;;  %v3188_v39 = vadd.f32 %v3180_v25, %v3156_v53  ;;  %v3160_v8 = vpop.f32.mrf.mxu1  ;;  %v3184_v21 = vunpack.c.h.bf16 %v8468_v9 }
 0x76d   : > { %5415 = vtanh.f32 %v3201_v24  ;;  %v3194_v61 = vmul.f32 0.5, %v3189_v58  ;;  %v3190_v42 = vadd.f32 %v3182_v2, %v3117_v16 }
 0x76e   : > { %5417 = vtanh.f32 %v3187_v48  ;;  %v3211_v38 = vmul.f32 0.5, %v3188_v39  ;;  %v3192_v3 = vadd.f32 %v3184_v21, %v3160_v8 }
 0x76f   : > { %5419 = vtanh.f32 %v3194_v61  ;;  %v3202_v20 = vmul.f32 0.5, %v3190_v42 }
 0x770   : > { %v3212_v2 = vmul.f32 0.5, %v3192_v3  ;;  %v7538_v3 = vpop.permute.xlu1 %3242 }
 0x771   : > { %5421 = vtanh.f32 %v3202_v20  ;;  %8470 = vst [vmem:[#allocation21_spill] sm:$0xff] %v7538_v3 }
 0x772   : > { %5423 = vtanh.f32 %v3191_v4 }
 0x773   : > { %5425 = vtanh.f32 %v3211_v38 }
 0x774   : > { %5427 = vtanh.f32 %v3212_v2 }
 0x778   : > { %v5414_v1 = vpop.eup %5413 }
 0x779   : > { %v3197_v50 = vmul.f32 0.5, %v5414_v1 }
 0x77a   : > { %v5416_v24 = vpop.eup %5415 }
 0x77b   : > { %v5418_v58 = vpop.eup %5417  ;;  %v3199_v22 = vadd.f32 0.5, %v3197_v50  ;;  %v3205_v16 = vmul.f32 0.5, %v5416_v24 }
 0x77c   : > { %v5420_v40 = vpop.eup %5419 }
 0x77d   : > { %v3207_v42 = vadd.f32 0.5, %v3205_v16  ;;  %v3221_v48 = vmul.f32 %v5418_v58, %v3199_v22  ;;  %v3198_v55 = vmul.f32 0.5, %v5420_v40  ;;  %v7536_v22 = vpop.permute.xlu0 %3237  ;;  %v7546_v40 = vpop.permute.xlu1 %3252 }
 0x77e   : > { %v5422_v61 = vpop.eup %5421  ;;  %8469 = vst [vmem:[#allocation20_spill] sm:$0xff] %v7536_v22  ;;  %8472 = vst [vmem:[#allocation27_spill] sm:$0xff] %v7546_v40 }
 0x77f   : > { %v3219_v53 = vmul.f32 %v3207_v42, %v7389_v52  ;;  %v3200_v33 = vadd.f32 0.5, %v3198_v55  ;;  %v3206_v4 = vmul.f32 0.5, %v5422_v61  ;;  %v5424_v9 = vpop.eup %5423  ;;  %v3256_v61 = vsel %vm1800_vm0, %v7538_v3, %v7546_v40 }
 0x780   : > { %v5426_v38 = vpop.eup %5425 }
 0x781   : > { %v7529_v20 = vadd.f32 %v3221_v48, %v3219_v53  ;;  %v3208_v25 = vadd.f32 0.5, %v3206_v4  ;;  %v3222_v39 = vmul.f32 %v5424_v9, %v3200_v33  ;;  %v3215_v52 = vmul.f32 0.5, %v5426_v38  ;;  %v5428_v1 = vpop.eup %5427  ;;  %v7540_v50 = vpop.permute.xlu0 %3247 }
 0x782   : > { %8471 = vst [vmem:[#allocation26_spill] sm:$0xff] %v7540_v50  ;;  %v3216_v58 = vmul.f32 0.5, %v5428_v1  ;;  %v8474_v1 = vld [vmem:[#allocation15_spill] sm:$0xff] }
 0x783   : > { %5429 = vtanh.f32 %v7529_v20  ;;  %v3220_v8 = vmul.f32 %v3208_v25, %v7393_v62  ;;  %v3217_v24 = vadd.f32 0.5, %v3215_v52  ;;  %v3255_v62 = vsel %vm1800_vm0, %v7536_v22, %v7540_v50 }
 0x784   : > { %v3218_v42 = vadd.f32 0.5, %v3216_v58 }
 0x785   : > { %v7533_v21 = vadd.f32 %v3222_v39, %v3220_v8 }
 0x787   : > { %5431 = vtanh.f32 %v7533_v21 }
 0x790   : > { %v5430_v16 = vpop.eup %5429 }
 0x791   : > { %v3227_v2 = vmul.f32 %v5430_v16, %v3217_v24  ;;  %v3364_v24 = vunpack.c.l.bf16 %v8474_v1 }
 0x793   : > { %v3257_v48 = vmul.f32 %v3255_v62, %v3227_v2 }
 0x794   : > { %v5432_v55 = vpop.eup %5431 }
 0x795   : > { %v7553_v53 = vadd.f32 %v3257_v48, %v7413_v11  ;;  %v3228_v33 = vmul.f32 %v5432_v55, %v3218_v42  ;;  %v8473_v11 = vld [vmem:[#allocation14_spill] sm:$0xff] }
 0x796   : > { %v3363_v52 = vunpack.c.h.bf16 %v8473_v11  ;;  %v8475_v42 = vld [vmem:[#allocation18_spill] sm:$0xff] }
 0x797   : > { %v3258_v4 = vmul.f32 %v3256_v61, %v3228_v33  ;;  %v3261_v9 = vpack.c.bf16 %v3228_v33, %v3227_v2  ;;  %v3366_v48 = vunpack.c.l.bf16 %v8475_v42 }
 0x799   : > { %v7556_v25 = vadd.f32 %v3258_v4, %v7416_v46  ;;  %3295 = vmatmul.mubr.bf16.vlgmr.msra.gmra.mxu0 %v3261_v9  ;;  %3338 = vmatmul.mubr.bf16.vlgmr.msra.gmra.mxu1 %v3261_v9  ;;  %v3362_v46 = vunpack.c.l.bf16 %v8473_v11  ;;  %v3367_v9 = vunpack.c.h.bf16 %v8475_v42  ;;  %v8476_v11 = vld [vmem:[#allocation19_spill] sm:$0xff] }
 0x79a   : > { %3448 = vmatpush1.bf16.msra.mxu0 %v7418_v13  ;;  %3491 = vmatpush1.bf16.msra.mxu1 %v7421_v14 }
 0x79b   : > { %3449 = vmatprep.subr.bf16.mxu0 %v7424_v0  ;;  %3492 = vmatprep.subr.bf16.mxu1 %v7427_v7 }
 0x79c   : > { %3479 = vmatprep.mubr.bf16.mxu0 %v8426_v30  ;;  %3522 = vmatprep.mubr.bf16.mxu1 %v8426_v30 }
 0x79e   : > { %3450 = vmatpush1.bf16.msra.mxu0 %v7432_v29  ;;  %3493 = vmatpush1.bf16.msra.mxu1 %v7435_v43 }
 0x79f   : > { %3451 = vmatprep.subr.bf16.mxu0 %v7438_v5  ;;  %3494 = vmatprep.subr.bf16.mxu1 %v7441_v18 }
 0x7a2   : > { %3452 = vmatpush1.bf16.msra.mxu0 %v7444_v26  ;;  %3495 = vmatpush1.bf16.msra.mxu1 %v7447_v63 }
 0x7a3   : > { %3453 = vmatprep.subr.bf16.mxu0 %v7450_v12  ;;  %3496 = vmatprep.subr.bf16.mxu1 %v7453_v59 }
 0x7a6   : > { %3454 = vmatpush1.bf16.msra.mxu0 %v7456_v15  ;;  %3497 = vmatpush1.bf16.msra.mxu1 %v7459_v35 }
 0x7a7   : > { %3455 = vmatprep.subr.bf16.mxu0 %v7462_v37  ;;  %3498 = vmatprep.subr.bf16.mxu1 %v7465_v44 }
 0x7aa   : > { %3456 = vmatpush1.bf16.msra.mxu0 %v7468_v54  ;;  %3499 = vmatpush1.bf16.msra.mxu1 %v7471_v60 }
 0x7ab   : > { %3457 = vmatprep.subr.bf16.mxu0 %v7474_v45  ;;  %3500 = vmatprep.subr.bf16.mxu1 %v7477_v34 }
 0x7ae   : > { %3458 = vmatpush1.bf16.msra.mxu0 %v7480_v47  ;;  %3501 = vmatpush1.bf16.msra.mxu1 %v7483_v36 }
 0x7af   : > { %3459 = vmatprep.subr.bf16.mxu0 %v7486_v6  ;;  %3502 = vmatprep.subr.bf16.mxu1 %v7489_v19 }
 0x7b2   : > { %3460 = vmatpush1.bf16.msra.mxu0 %v7492_v57  ;;  %3503 = vmatpush1.bf16.msra.mxu1 %v7495_v51 }
 0x7b3   : > { %3461 = vmatprep.subr.bf16.mxu0 %v7498_v56  ;;  %3504 = vmatprep.subr.bf16.mxu1 %v7501_v17 }
 0x7b6   : > { %3462 = vmatpush1.bf16.msra.mxu0 %v7504_v32  ;;  %3505 = vmatpush1.bf16.msra.mxu1 %v7507_v23 }
 0x7b7   : > { %3596 = vmatprep.subr.bf16.mxu0 %v7510_v27  ;;  %3639 = vmatprep.subr.bf16.mxu1 %v7513_v10 }
 0x859   : > { %v3296_v39 = vpop.f32.mrf.mxu0  ;;  %v3339_v8 = vpop.f32.mrf.mxu1 }
 0x85a   : > { %v3370_v38 = vadd.f32 %v3362_v46, %v3296_v39  ;;  %v3372_v55 = vadd.f32 %v3364_v24, %v3339_v8  ;;  %v3368_v39 = vunpack.c.l.bf16 %v8476_v11 }
 0x85b   : > { %v3298_v58 = vpop.f32.mrf.mxu0  ;;  %v3341_v16 = vpop.f32.mrf.mxu1 }
 0x85c   : > { %v3378_v62 = vmul.f32 0.5, %v3370_v38  ;;  %v3371_v2 = vadd.f32 %v3363_v52, %v3298_v58  ;;  %v3365_v58 = vunpack.c.h.bf16 %v8474_v1 }
 0x85d   : > { %v3300_v61 = vpop.f32.mrf.mxu0  ;;  %v3343_v28 = vpop.f32.mrf.mxu1 }
 0x85e   : > { %5433 = vtanh.f32 %v3378_v62  ;;  %v3386_v33 = vmul.f32 0.5, %v3371_v2  ;;  %v3374_v4 = vadd.f32 %v3366_v48, %v3300_v61  ;;  %v3376_v38 = vadd.f32 %v3368_v39, %v3343_v28 }
 0x85f   : > { %v3302_v31 = vpop.f32.mrf.mxu0  ;;  %v3373_v8 = vadd.f32 %v3365_v58, %v3341_v16  ;;  %v3345_v24 = vpop.f32.mrf.mxu1  ;;  %v3369_v62 = vunpack.c.h.bf16 %v8476_v11 }
 0x860   : > { %5435 = vtanh.f32 %v3386_v33  ;;  %v3379_v46 = vmul.f32 0.5, %v3374_v4  ;;  %v3375_v49 = vadd.f32 %v3367_v9, %v3302_v31 }
 0x861   : > { %5437 = vtanh.f32 %v3372_v55  ;;  %v3396_v2 = vmul.f32 0.5, %v3373_v8  ;;  %v3377_v42 = vadd.f32 %v3369_v62, %v3345_v24 }
 0x862   : > { %5439 = vtanh.f32 %v3379_v46  ;;  %v3387_v52 = vmul.f32 0.5, %v3375_v49 }
 0x863   : > { %v3397_v55 = vmul.f32 0.5, %v3377_v42  ;;  %v7610_v42 = vpop.permute.xlu1 %3427 }
 0x864   : > { %5441 = vtanh.f32 %v3387_v52 }
 0x865   : > { %5443 = vtanh.f32 %v3376_v38 }
 0x866   : > { %5445 = vtanh.f32 %v3396_v2 }
 0x867   : > { %5447 = vtanh.f32 %v3397_v55 }
 0x86b   : > { %v5434_v48 = vpop.eup %5433 }
 0x86c   : > { %v3382_v61 = vmul.f32 0.5, %v5434_v48 }
 0x86d   : > { %v5436_v33 = vpop.eup %5435 }
 0x86e   : > { %v5438_v4 = vpop.eup %5437  ;;  %v3384_v40 = vadd.f32 0.5, %v3382_v61  ;;  %v3390_v31 = vmul.f32 0.5, %v5436_v33 }
 0x86f   : > { %v5440_v28 = vpop.eup %5439 }
 0x870   : > { %v3392_v49 = vadd.f32 0.5, %v3390_v31  ;;  %v3406_v9 = vmul.f32 %v5438_v4, %v3384_v40  ;;  %v3383_v1 = vmul.f32 0.5, %v5440_v28  ;;  %v7608_v40 = vpop.permute.xlu0 %3422  ;;  %v7618_v28 = vpop.permute.xlu1 %3437 }
 0x871   : > { %v5442_v46 = vpop.eup %5441 }
 0x872   : > { %v3404_v16 = vmul.f32 %v3392_v49, %v7529_v20  ;;  %v3385_v39 = vadd.f32 0.5, %v3383_v1  ;;  %v3391_v38 = vmul.f32 0.5, %v5442_v46  ;;  %v5444_v11 = vpop.eup %5443  ;;  %v3441_v46 = vsel %vm1800_vm0, %v7610_v42, %v7618_v28 }
 0x873   : > { %v5446_v2 = vpop.eup %5445 }
 0x874   : > { %v7601_v52 = vadd.f32 %v3406_v9, %v3404_v16  ;;  %v3393_v58 = vadd.f32 0.5, %v3391_v38  ;;  %v3407_v8 = vmul.f32 %v5444_v11, %v3385_v39  ;;  %v3400_v20 = vmul.f32 0.5, %v5446_v2  ;;  %v5448_v48 = vpop.eup %5447  ;;  %v7612_v61 = vpop.permute.xlu0 %3432 }
 0x875   : > { %v3401_v4 = vmul.f32 0.5, %v5448_v48  ;;  %v8478_v48 = vld [vmem:[#allocation17_spill] sm:$0xff] }
 0x876   : > { %5449 = vtanh.f32 %v7601_v52  ;;  %v3405_v24 = vmul.f32 %v3393_v58, %v7533_v21  ;;  %v3402_v33 = vadd.f32 0.5, %v3400_v20  ;;  %v3440_v21 = vsel %vm1800_vm0, %v7608_v40, %v7612_v61 }
 0x877   : > { %v3403_v49 = vadd.f32 0.5, %v3401_v4 }
 0x878   : > { %v7605_v62 = vadd.f32 %v3407_v8, %v3405_v24 }
 0x87a   : > { %5451 = vtanh.f32 %v7605_v62 }
 0x883   : > { %v5450_v31 = vpop.eup %5449 }
 0x884   : > { %v3412_v55 = vmul.f32 %v5450_v31, %v3402_v33  ;;  %v3539_v33 = vunpack.c.l.bf16 %v8478_v48 }
 0x886   : > { %v3442_v9 = vmul.f32 %v3440_v21, %v3412_v55 }
 0x887   : > { %v5452_v1 = vpop.eup %5451 }
 0x888   : > { %v7625_v16 = vadd.f32 %v3442_v9, %v7553_v53  ;;  %v3413_v39 = vmul.f32 %v5452_v1, %v3403_v49  ;;  %v8477_v53 = vld [vmem:[#allocation16_spill] sm:$0xff]  ;;  %v8479_v49 = vld [vmem:[#allocation22_spill] sm:$0xff] }
 0x889   : > { %v3538_v20 = vunpack.c.h.bf16 %v8477_v53  ;;  %v3541_v9 = vunpack.c.l.bf16 %v8479_v49 }
 0x88a   : > { %v3443_v38 = vmul.f32 %v3441_v46, %v3413_v39  ;;  %v3446_v11 = vpack.c.bf16 %v3413_v39, %v3412_v55 }
 0x88c   : > { %v7628_v58 = vadd.f32 %v3443_v38, %v7556_v25  ;;  %3480 = vmatmul.mubr.bf16.vlgmr.msra.gmra.mxu0 %v3446_v11  ;;  %3523 = vmatmul.mubr.bf16.vlgmr.msra.gmra.mxu1 %v3446_v11  ;;  %v3537_v25 = vunpack.c.l.bf16 %v8477_v53  ;;  %v3542_v11 = vunpack.c.h.bf16 %v8479_v49  ;;  %v8480_v53 = vld [vmem:[#allocation23_spill] sm:$0xff] }
 0x88d   : > { %3597 = vmatpush1.bf16.msra.mxu0 %v7418_v13  ;;  %3640 = vmatpush1.bf16.msra.mxu1 %v7421_v14 }
 0x88e   : > { %3598 = vmatprep.subr.bf16.mxu0 %v7424_v0  ;;  %3641 = vmatprep.subr.bf16.mxu1 %v7427_v7 }
 0x88f   : > { %3628 = vmatprep.mubr.bf16.mxu0 %v8426_v30  ;;  %3671 = vmatprep.mubr.bf16.mxu1 %v8426_v30 }
 0x891   : > { %3599 = vmatpush1.bf16.msra.mxu0 %v7432_v29  ;;  %3642 = vmatpush1.bf16.msra.mxu1 %v7435_v43 }
 0x892   : > { %3600 = vmatprep.subr.bf16.mxu0 %v7438_v5  ;;  %3643 = vmatprep.subr.bf16.mxu1 %v7441_v18 }
 0x895   : > { %3601 = vmatpush1.bf16.msra.mxu0 %v7444_v26  ;;  %3644 = vmatpush1.bf16.msra.mxu1 %v7447_v63 }
 0x896   : > { %3602 = vmatprep.subr.bf16.mxu0 %v7450_v12  ;;  %3645 = vmatprep.subr.bf16.mxu1 %v7453_v59 }
 0x899   : > { %3603 = vmatpush1.bf16.msra.mxu0 %v7456_v15  ;;  %3646 = vmatpush1.bf16.msra.mxu1 %v7459_v35 }
 0x89a   : > { %3604 = vmatprep.subr.bf16.mxu0 %v7462_v37  ;;  %3647 = vmatprep.subr.bf16.mxu1 %v7465_v44 }
 0x89d   : > { %3605 = vmatpush1.bf16.msra.mxu0 %v7468_v54  ;;  %3648 = vmatpush1.bf16.msra.mxu1 %v7471_v60 }
 0x89e   : > { %3606 = vmatprep.subr.bf16.mxu0 %v7474_v45  ;;  %3649 = vmatprep.subr.bf16.mxu1 %v7477_v34 }
 0x8a1   : > { %3607 = vmatpush1.bf16.msra.mxu0 %v7480_v47  ;;  %3650 = vmatpush1.bf16.msra.mxu1 %v7483_v36 }
 0x8a2   : > { %3608 = vmatprep.subr.bf16.mxu0 %v7486_v6  ;;  %3651 = vmatprep.subr.bf16.mxu1 %v7489_v19 }
 0x8a5   : > { %3609 = vmatpush1.bf16.msra.mxu0 %v7492_v57  ;;  %3652 = vmatpush1.bf16.msra.mxu1 %v7495_v51 }
 0x8a6   : > { %3610 = vmatprep.subr.bf16.mxu0 %v7498_v56  ;;  %3653 = vmatprep.subr.bf16.mxu1 %v7501_v17 }
 0x8a9   : > { %3611 = vmatpush1.bf16.msra.mxu0 %v7504_v32  ;;  %3654 = vmatpush1.bf16.msra.mxu1 %v7507_v23 }
 0x8aa   : > { %3745 = vmatprep.subr.bf16.mxu0 %v7510_v27  ;;  %3788 = vmatprep.subr.bf16.mxu1 %v7513_v10 }
 0x94c   : > { %v3481_v8 = vpop.f32.mrf.mxu0  ;;  %v3524_v24 = vpop.f32.mrf.mxu1 }
 0x94d   : > { %v3545_v2 = vadd.f32 %v3537_v25, %v3481_v8  ;;  %v3547_v1 = vadd.f32 %v3539_v33, %v3524_v24  ;;  %v3543_v8 = vunpack.c.l.bf16 %v8480_v53 }
 0x94e   : > { %v3483_v4 = vpop.f32.mrf.mxu0  ;;  %v3526_v31 = vpop.f32.mrf.mxu1 }
 0x94f   : > { %v3553_v21 = vmul.f32 0.5, %v3545_v2  ;;  %v3546_v55 = vadd.f32 %v3538_v20, %v3483_v4  ;;  %v3540_v4 = vunpack.c.h.bf16 %v8478_v48 }
 0x950   : > { %v3485_v46 = vpop.f32.mrf.mxu0  ;;  %v3528_v3 = vpop.f32.mrf.mxu1 }
 0x951   : > { %5453 = vtanh.f32 %v3553_v21  ;;  %v3561_v39 = vmul.f32 0.5, %v3546_v55  ;;  %v3549_v38 = vadd.f32 %v3541_v9, %v3485_v46  ;;  %v3551_v2 = vadd.f32 %v3543_v8, %v3528_v3 }
 0x952   : > { %v3487_v50 = vpop.f32.mrf.mxu0  ;;  %v3548_v24 = vadd.f32 %v3540_v4, %v3526_v31  ;;  %v3530_v33 = vpop.f32.mrf.mxu1  ;;  %v3544_v21 = vunpack.c.h.bf16 %v8480_v53 }
 0x953   : > { %5455 = vtanh.f32 %v3561_v39  ;;  %v3554_v25 = vmul.f32 0.5, %v3549_v38  ;;  %v3550_v22 = vadd.f32 %v3542_v11, %v3487_v50 }
 0x954   : > { %5457 = vtanh.f32 %v3547_v1  ;;  %v3571_v55 = vmul.f32 0.5, %v3548_v24  ;;  %v3552_v49 = vadd.f32 %v3544_v21, %v3530_v33 }
 0x955   : > { %5459 = vtanh.f32 %v3554_v25  ;;  %v3562_v20 = vmul.f32 0.5, %v3550_v22 }
 0x956   : > { %v3572_v1 = vmul.f32 0.5, %v3552_v49 }
 0x957   : > { %5461 = vtanh.f32 %v3562_v20 }
 0x958   : > { %5463 = vtanh.f32 %v3551_v2 }
 0x959   : > { %5465 = vtanh.f32 %v3571_v55 }
 0x95a   : > { %5467 = vtanh.f32 %v3572_v1 }
 0x95e   : > { %v5454_v9 = vpop.eup %5453 }
 0x95f   : > { %v3557_v46 = vmul.f32 0.5, %v5454_v9 }
 0x960   : > { %v5456_v39 = vpop.eup %5455 }
 0x961   : > { %v5458_v38 = vpop.eup %5457  ;;  %v3559_v10 = vadd.f32 0.5, %v3557_v46  ;;  %v3565_v50 = vmul.f32 0.5, %v5456_v39  ;;  %v3589_v39 = vsel %vm1800_vm0, %v7612_v61, %v7608_v40  ;;  %v8481_v40 = vld [vmem:[#allocation74_spill] sm:$0xff] }
 0x962   : > { %v5460_v3 = vpop.eup %5459 }
 0x963   : > { %v3567_v22 = vadd.f32 0.5, %v3565_v50  ;;  %v3581_v11 = vmul.f32 %v5458_v38, %v3559_v10  ;;  %v3558_v48 = vmul.f32 0.5, %v5460_v3 }
 0x964   : > { %v5462_v25 = vpop.eup %5461 }
 0x965   : > { %v3579_v31 = vmul.f32 %v3567_v22, %v7601_v52  ;;  %v3560_v8 = vadd.f32 0.5, %v3558_v48  ;;  %v3566_v2 = vmul.f32 0.5, %v5462_v25  ;;  %v5464_v53 = vpop.eup %5463 }
 0x966   : > { %v5466_v10 = vpop.eup %5465 }
 0x967   : > { %v7673_v20 = vadd.f32 %v3581_v11, %v3579_v31  ;;  %v3568_v4 = vadd.f32 0.5, %v3566_v2  ;;  %v3582_v24 = vmul.f32 %v5464_v53, %v3560_v8  ;;  %v3575_v55 = vmul.f32 0.5, %v5466_v10  ;;  %v5468_v49 = vpop.eup %5467  ;;  %v8483_v2 = vld [vmem:[#allocation25_spill] sm:$0xff] }
 0x968   : > { %v3576_v9 = vmul.f32 0.5, %v5468_v49  ;;  %v3688_v53 = vunpack.c.l.bf16 %v8483_v2 }
 0x969   : > { %5469 = vtanh.f32 %v7673_v20  ;;  %v3580_v33 = vmul.f32 %v3568_v4, %v7605_v62  ;;  %v3577_v52 = vadd.f32 0.5, %v3575_v55  ;;  %v3590_v62 = vsel %vm1800_vm0, %v7618_v28, %v7610_v42  ;;  %v8482_v42 = vld [vmem:[#allocation24_spill] sm:$0xff] }
 0x96a   : > { %v3578_v1 = vadd.f32 0.5, %v3576_v9  ;;  %v3686_v61 = vunpack.c.l.bf16 %v8482_v42  ;;  %v3687_v8 = vunpack.c.h.bf16 %v8482_v42  ;;  %v8484_v55 = vld [vmem:[#allocation32_spill] sm:$0xff] }
 0x96b   : > { %v7677_v21 = vadd.f32 %v3582_v24, %v3580_v33  ;;  %v3690_v49 = vunpack.c.l.bf16 %v8484_v55 }
 0x96d   : > { %5471 = vtanh.f32 %v7677_v21 }
 0x976   : > { %v5470_v46 = vpop.eup %5469 }
 0x977   : > { %v3587_v38 = vmul.f32 %v5470_v46, %v3577_v52 }
 0x979   : > { %v3591_v50 = vmul.f32 %v3589_v39, %v3587_v38 }
 0x97a   : > { %v5472_v3 = vpop.eup %5471 }
 0x97b   : > { %v7689_v22 = vadd.f32 %v3591_v50, %v7625_v16  ;;  %v3588_v11 = vmul.f32 %v5472_v3, %v3578_v1 }
 0x97d   : > { %v3592_v48 = vmul.f32 %v3590_v62, %v3588_v11  ;;  %v3595_v25 = vpack.c.bf16 %v3588_v11, %v3587_v38  ;;  %v3691_v38 = vunpack.c.h.bf16 %v8484_v55  ;;  %v8485_v62 = vld [vmem:[#allocation33_spill] sm:$0xff] }
 0x97e   : > { %v3692_v11 = vunpack.c.l.bf16 %v8485_v62 }
 0x97f   : > { %v7692_v31 = vadd.f32 %v3592_v48, %v7628_v58  ;;  %3629 = vmatmul.mubr.bf16.vlgmr.msra.gmra.mxu0 %v3595_v25  ;;  %3672 = vmatmul.mubr.bf16.vlgmr.msra.gmra.mxu1 %v3595_v25 }
 0x980   : > { %3746 = vmatpush1.bf16.msra.mxu0 %v7418_v13  ;;  %3789 = vmatpush1.bf16.msra.mxu1 %v7421_v14 }
 0x981   : > { %3747 = vmatprep.subr.bf16.mxu0 %v7424_v0  ;;  %3790 = vmatprep.subr.bf16.mxu1 %v7427_v7 }
 0x982   : > { %3777 = vmatprep.mubr.bf16.mxu0 %v8426_v30  ;;  %3820 = vmatprep.mubr.bf16.mxu1 %v8426_v30 }
 0x984   : > { %3748 = vmatpush1.bf16.msra.mxu0 %v7432_v29  ;;  %3791 = vmatpush1.bf16.msra.mxu1 %v7435_v43 }
 0x985   : > { %3749 = vmatprep.subr.bf16.mxu0 %v7438_v5  ;;  %3792 = vmatprep.subr.bf16.mxu1 %v7441_v18 }
 0x988   : > { %3750 = vmatpush1.bf16.msra.mxu0 %v7444_v26  ;;  %3793 = vmatpush1.bf16.msra.mxu1 %v7447_v63 }
 0x989   : > { %3751 = vmatprep.subr.bf16.mxu0 %v7450_v12  ;;  %3794 = vmatprep.subr.bf16.mxu1 %v7453_v59 }
 0x98c   : > { %3752 = vmatpush1.bf16.msra.mxu0 %v7456_v15  ;;  %3795 = vmatpush1.bf16.msra.mxu1 %v7459_v35 }
 0x98d   : > { %3753 = vmatprep.subr.bf16.mxu0 %v7462_v37  ;;  %3796 = vmatprep.subr.bf16.mxu1 %v7465_v44 }
 0x990   : > { %3754 = vmatpush1.bf16.msra.mxu0 %v7468_v54  ;;  %3797 = vmatpush1.bf16.msra.mxu1 %v7471_v60 }
 0x991   : > { %3755 = vmatprep.subr.bf16.mxu0 %v7474_v45  ;;  %3798 = vmatprep.subr.bf16.mxu1 %v7477_v34 }
 0x994   : > { %3756 = vmatpush1.bf16.msra.mxu0 %v7480_v47  ;;  %3799 = vmatpush1.bf16.msra.mxu1 %v7483_v36 }
 0x995   : > { %3757 = vmatprep.subr.bf16.mxu0 %v7486_v6  ;;  %3800 = vmatprep.subr.bf16.mxu1 %v7489_v19 }
 0x998   : > { %3758 = vmatpush1.bf16.msra.mxu0 %v7492_v57  ;;  %3801 = vmatpush1.bf16.msra.mxu1 %v7495_v51 }
 0x999   : > { %3759 = vmatprep.subr.bf16.mxu0 %v7498_v56  ;;  %3802 = vmatprep.subr.bf16.mxu1 %v7501_v17 }
 0x99c   : > { %3760 = vmatpush1.bf16.msra.mxu0 %v7504_v32  ;;  %3803 = vmatpush1.bf16.msra.mxu1 %v7507_v23 }
 0x99d   : > { %3894 = vmatprep.subr.bf16.mxu0 %v7510_v27  ;;  %3937 = vmatprep.subr.bf16.mxu1 %v8481_v40 }
 0xa3f   : > { %v3630_v28 = vpop.f32.mrf.mxu0  ;;  %v3673_v16 = vpop.f32.mrf.mxu1 }
 0xa40   : > { %v3694_v58 = vadd.f32 %v3686_v61, %v3630_v28  ;;  %v3696_v52 = vadd.f32 %v3688_v53, %v3673_v16  ;;  %v3689_v61 = vunpack.c.h.bf16 %v8483_v2 }
 0xa41   : > { %v3632_v4 = vpop.f32.mrf.mxu0  ;;  %v3675_v24 = vpop.f32.mrf.mxu1 }
 0xa42   : > { %v3702_v33 = vmul.f32 0.5, %v3694_v58  ;;  %v3695_v10 = vadd.f32 %v3687_v8, %v3632_v4  ;;  %v3697_v28 = vadd.f32 %v3689_v61, %v3675_v24  ;;  %v3693_v58 = vunpack.c.h.bf16 %v8485_v62 }
 0xa43   : > { %v3634_v9 = vpop.f32.mrf.mxu0  ;;  %v3677_v50 = vpop.f32.mrf.mxu1 }
 0xa44   : > { %5473 = vtanh.f32 %v3702_v33  ;;  %v3710_v46 = vmul.f32 0.5, %v3695_v10  ;;  %v3698_v39 = vadd.f32 %v3690_v49, %v3634_v9  ;;  %v3700_v25 = vadd.f32 %v3692_v11, %v3677_v50 }
 0xa45   : > { %v3636_v1 = vpop.f32.mrf.mxu0  ;;  %v3679_v16 = vpop.f32.mrf.mxu1  ;;  %v3720_v8 = vmul.f32 0.5, %v3697_v28 }
 0xa46   : > { %5475 = vtanh.f32 %v3710_v46  ;;  %v3703_v3 = vmul.f32 0.5, %v3698_v39  ;;  %v3699_v48 = vadd.f32 %v3691_v38, %v3636_v1  ;;  %v3701_v53 = vadd.f32 %v3693_v58, %v3679_v16 }
 0xa47   : > { %5477 = vtanh.f32 %v3696_v52 }
 0xa48   : > { %5479 = vtanh.f32 %v3703_v3  ;;  %v3711_v42 = vmul.f32 0.5, %v3699_v48  ;;  %v3721_v52 = vmul.f32 0.5, %v3701_v53 }
 0xa4a   : > { %5481 = vtanh.f32 %v3711_v42 }
 0xa4b   : > { %5483 = vtanh.f32 %v3700_v25 }
 0xa4c   : > { %5485 = vtanh.f32 %v3720_v8 }
 0xa4d   : > { %5487 = vtanh.f32 %v3721_v52 }
 0xa51   : > { %v5474_v4 = vpop.eup %5473 }
 0xa52   : > { %v3706_v33 = vmul.f32 0.5, %v5474_v4  ;;  %v8486_v4 = vld [vmem:[#allocation20_spill] sm:$0xff] }
 0xa53   : > { %v5476_v10 = vpop.eup %5475 }
 0xa54   : > { %v5478_v55 = vpop.eup %5477  ;;  %v3708_v49 = vadd.f32 0.5, %v3706_v33  ;;  %v3714_v9 = vmul.f32 0.5, %v5476_v10  ;;  %v8487_v33 = vld [vmem:[#allocation26_spill] sm:$0xff] }
 0xa55   : > { %v5480_v46 = vpop.eup %5479  ;;  %v3738_v10 = vsel %vm1800_vm0, %v8487_v33, %v8486_v4 }
 0xa56   : > { %v3716_v39 = vadd.f32 0.5, %v3714_v9  ;;  %v3730_v38 = vmul.f32 %v5478_v55, %v3708_v49  ;;  %v3707_v2 = vmul.f32 0.5, %v5480_v46  ;;  %v8489_v46 = vld [vmem:[#allocation27_spill] sm:$0xff] }
 0xa57   : > { %v5482_v50 = vpop.eup %5481 }
 0xa58   : > { %v3728_v24 = vmul.f32 %v3716_v39, %v7673_v20  ;;  %v3709_v1 = vadd.f32 0.5, %v3707_v2  ;;  %v3715_v3 = vmul.f32 0.5, %v5482_v50  ;;  %v5484_v62 = vpop.eup %5483 }
 0xa59   : > { %v5486_v28 = vpop.eup %5485 }
 0xa5a   : > { %v7737_v11 = vadd.f32 %v3730_v38, %v3728_v24  ;;  %v3717_v48 = vadd.f32 0.5, %v3715_v3  ;;  %v3731_v25 = vmul.f32 %v5484_v62, %v3709_v1  ;;  %v3724_v16 = vmul.f32 0.5, %v5486_v28  ;;  %v5488_v58 = vpop.eup %5487 }
 0xa5b   : > { %v3725_v8 = vmul.f32 0.5, %v5488_v58 }
 0xa5c   : > { %5489 = vtanh.f32 %v7737_v11  ;;  %v3729_v42 = vmul.f32 %v3717_v48, %v7677_v21  ;;  %v3726_v20 = vadd.f32 0.5, %v3724_v16  ;;  %v8488_v21 = vld [vmem:[#allocation21_spill] sm:$0xff] }
 0xa5d   : > { %v3727_v9 = vadd.f32 0.5, %v3725_v8  ;;  %v3739_v39 = vsel %vm1800_vm0, %v8489_v46, %v8488_v21 }
 0xa5e   : > { %v7741_v61 = vadd.f32 %v3731_v25, %v3729_v42 }
 0xa60   : > { %5491 = vtanh.f32 %v7741_v61 }
 0xa69   : > { %v5490_v53 = vpop.eup %5489 }
 0xa6a   : > { %v3736_v55 = vmul.f32 %v5490_v53, %v3726_v20 }
 0xa6c   : > { %v3740_v49 = vmul.f32 %v3738_v10, %v3736_v55 }
 0xa6d   : > { %v5492_v52 = vpop.eup %5491 }
 0xa6e   : > { %v7753_v38 = vadd.f32 %v3740_v49, %v7689_v22  ;;  %v3737_v2 = vmul.f32 %v5492_v52, %v3727_v9 }
 0xa70   : > { %v3741_v50 = vmul.f32 %v3739_v39, %v3737_v2  ;;  %v3744_v24 = vpack.c.bf16 %v3737_v2, %v3736_v55 }
 0xa72   : > { %v7756_v1 = vadd.f32 %v3741_v50, %v7692_v31  ;;  %3778 = vmatmul.mubr.bf16.vlgmr.msra.gmra.mxu0 %v3744_v24  ;;  %3821 = vmatmul.mubr.bf16.vlgmr.msra.gmra.mxu1 %v3744_v24 }
 0xa73   : > { %3895 = vmatpush1.bf16.msra.mxu0 %v7418_v13  ;;  %3938 = vmatpush1.bf16.msra.mxu1 %v7421_v14  ;;  %v8490_v13 = vld [vmem:[#allocation34_spill] sm:$0xff] }
 0xa74   : > { %3896 = vmatprep.subr.bf16.mxu0 %v7424_v0  ;;  %3939 = vmatprep.subr.bf16.mxu1 %v7427_v7  ;;  %v3835_v14 = vunpack.c.l.bf16 %v8490_v13 }
 0xa75   : > { %3926 = vmatprep.mubr.bf16.mxu0 %v8426_v30  ;;  %3969 = vmatprep.mubr.bf16.mxu1 %v8426_v30 }
 0xa77   : > { %3897 = vmatpush1.bf16.msra.mxu0 %v7432_v29  ;;  %3940 = vmatpush1.bf16.msra.mxu1 %v7435_v43  ;;  %v3836_v43 = vunpack.c.h.bf16 %v8490_v13 }
 0xa78   : > { %3898 = vmatprep.subr.bf16.mxu0 %v7438_v5  ;;  %3941 = vmatprep.subr.bf16.mxu1 %v7441_v18  ;;  %v8491_v5 = vld [vmem:[#allocation35_spill] sm:$0xff] }
 0xa79   : > { %v3837_v18 = vunpack.c.l.bf16 %v8491_v5 }
 0xa7b   : > { %3899 = vmatpush1.bf16.msra.mxu0 %v7444_v26  ;;  %3942 = vmatpush1.bf16.msra.mxu1 %v7447_v63 }
 0xa7c   : > { %3900 = vmatprep.subr.bf16.mxu0 %v7450_v12  ;;  %3943 = vmatprep.subr.bf16.mxu1 %v7453_v59 }
 0xa7f   : > { %3901 = vmatpush1.bf16.msra.mxu0 %v7456_v15  ;;  %3944 = vmatpush1.bf16.msra.mxu1 %v7459_v35  ;;  %v8492_v15 = vld [vmem:[#allocation42_spill] sm:$0xff] }
 0xa80   : > { %3902 = vmatprep.subr.bf16.mxu0 %v7462_v37  ;;  %3945 = vmatprep.subr.bf16.mxu1 %v7465_v44  ;;  %v3839_v35 = vunpack.c.l.bf16 %v8492_v15 }
 0xa83   : > { %3903 = vmatpush1.bf16.msra.mxu0 %v7468_v54  ;;  %3946 = vmatpush1.bf16.msra.mxu1 %v7471_v60 }
 0xa84   : > { %3904 = vmatprep.subr.bf16.mxu0 %v7474_v45  ;;  %3947 = vmatprep.subr.bf16.mxu1 %v7477_v34  ;;  %v3840_v45 = vunpack.c.h.bf16 %v8492_v15 }
 0xa87   : > { %3905 = vmatpush1.bf16.msra.mxu0 %v7480_v47  ;;  %3948 = vmatpush1.bf16.msra.mxu1 %v7483_v36 }
 0xa88   : > { %3906 = vmatprep.subr.bf16.mxu0 %v7486_v6  ;;  %3949 = vmatprep.subr.bf16.mxu1 %v7489_v19  ;;  %v8493_v6 = vld [vmem:[#allocation43_spill] sm:$0xff] }
 0xa89   : > { %v3841_v19 = vunpack.c.l.bf16 %v8493_v6 }
 0xa8b   : > { %3907 = vmatpush1.bf16.msra.mxu0 %v7492_v57  ;;  %3950 = vmatpush1.bf16.msra.mxu1 %v7495_v51 }
 0xa8c   : > { %3908 = vmatprep.subr.bf16.mxu0 %v7498_v56  ;;  %3951 = vmatprep.subr.bf16.mxu1 %v7501_v17  ;;  %v3838_v17 = vunpack.c.h.bf16 %v8491_v5 }
 0xa8f   : > { %3909 = vmatpush1.bf16.msra.mxu0 %v7504_v32  ;;  %3952 = vmatpush1.bf16.msra.mxu1 %v7507_v23 }
 0xa90   : > { %4043 = vmatprep.subr.bf16.mxu0 %v7510_v27  ;;  %4086 = vmatprep.subr.bf16.mxu1 %v8481_v40  ;;  %v3842_v27 = vunpack.c.h.bf16 %v8493_v6  ;;  %v7851_v6 = vld [vmem:[#allocation5 + $0xa8] ss:$16 sps:$4 sm:$0xff]  }
 0xb32   : > { %v3779_v0 = vpop.f32.mrf.mxu0  ;;  %v3822_v7 = vpop.f32.mrf.mxu1 }
 0xb33   : > { %v3843_v29 = vadd.f32 %v3835_v14, %v3779_v0  ;;  %v3845_v37 = vadd.f32 %v3837_v18, %v3822_v7  ;;  %v8494_v14 = vld [vmem:[#allocation28_spill] sm:$0xff]  ;;  %v8495_v0 = vld [vmem:[#allocation30_spill] sm:$0xff] }
 0xb34   : > { %v3781_v26 = vpop.f32.mrf.mxu0  ;;  %v3824_v63 = vpop.f32.mrf.mxu1  ;;  %v3887_v7 = vsel %vm1800_vm0, %v8495_v0, %v8494_v14 }
 0xb35   : > { %v3851_v12 = vmul.f32 0.5, %v3843_v29  ;;  %v3844_v59 = vadd.f32 %v3836_v43, %v3781_v26  ;;  %v3846_v32 = vadd.f32 %v3838_v17, %v3824_v63  ;;  %v8497_v26 = vld [vmem:[#allocation31_spill] sm:$0xff] }
 0xb36   : > { %v3783_v44 = vpop.f32.mrf.mxu0  ;;  %v3826_v34 = vpop.f32.mrf.mxu1  ;;  %v7866_v17 = vld [vmem:[#allocation5 + $0x64] ss:$16 sps:$4 sm:$0xff]  }
 0xb37   : > { %5493 = vtanh.f32 %v3851_v12  ;;  %v3859_v54 = vmul.f32 0.5, %v3844_v59  ;;  %v3847_v60 = vadd.f32 %v3839_v35, %v3783_v44  ;;  %v3849_v51 = vadd.f32 %v3841_v19, %v3826_v34  ;;  %v7822_v44 = vld [vmem:[#allocation5 + $0xe0] ss:$16 sps:$4 sm:$0xff]   ;;  %v7842_v34 = vld [vmem:[#allocation5 + $0xa4] ss:$16 sps:$4 sm:$0xff]  }
 0xb38   : > { %v3785_v47 = vpop.f32.mrf.mxu0  ;;  %v3828_v23 = vpop.f32.mrf.mxu1  ;;  %v3869_v22 = vmul.f32 0.5, %v3846_v32  ;;  %v7854_v19 = vld [vmem:[#allocation5 + $0x84] ss:$16 sps:$4 sm:$0xff]   ;;  %v7869_v32 = vld [vmem:[#allocation5 + $0x6c] ss:$16 sps:$4 sm:$0xff]  }
 0xb39   : > { %5495 = vtanh.f32 %v3859_v54  ;;  %v3852_v36 = vmul.f32 0.5, %v3847_v60  ;;  %v3848_v57 = vadd.f32 %v3840_v45, %v3785_v47  ;;  %v3850_v31 = vadd.f32 %v3842_v27, %v3828_v23  ;;  %v7825_v54 = vld [vmem:[#allocation5 + $0xe8] ss:$16 sps:$4 sm:$0xff]   ;;  %v7828_v60 = vld [vmem:[#allocation5 + $0xc4] ss:$16 sps:$4 sm:$0xff]  }
 0xb3a   : > { %5497 = vtanh.f32 %v3845_v37  ;;  %v7839_v45 = vld [vmem:[#allocation5 + $0xc8] ss:$16 sps:$4 sm:$0xff]   ;;  %v7845_v47 = vld [vmem:[#allocation5 + $0xac] ss:$16 sps:$4 sm:$0xff]   ;;  %v7872_v23 = vld [vmem:[#allocation5 + $0x60] ss:$16 sps:$4 sm:$0xff]  }
 0xb3b   : > { %5499 = vtanh.f32 %v3852_v36  ;;  %v3860_v56 = vmul.f32 0.5, %v3848_v57  ;;  %v3870_v28 = vmul.f32 0.5, %v3850_v31  ;;  %v7848_v36 = vld [vmem:[#allocation5 + $0xa0] ss:$16 sps:$4 sm:$0xff]   ;;  %v7857_v57 = vld [vmem:[#allocation5 + $0x8c] ss:$16 sps:$4 sm:$0xff]  }
 0xb3c   : > { %v7875_v27 = vld [vmem:[#allocation5 + $0x68] ss:$16 sps:$4 sm:$0xff]   ;;  %v7881_v31 = vld [vmem:[#allocation5 + $0x4c] ss:$16 sps:$4 sm:$0xff]  }
 0xb3d   : > { %5501 = vtanh.f32 %v3860_v56  ;;  %v7863_v56 = vld [vmem:[#allocation5 + $0x88] ss:$16 sps:$4 sm:$0xff]  }
 0xb3e   : > { %5503 = vtanh.f32 %v3849_v51  ;;  %v7860_v51 = vld [vmem:[#allocation5 + $0x80] ss:$16 sps:$4 sm:$0xff]  }
 0xb3f   : > { %5505 = vtanh.f32 %v3869_v22  ;;  %v7878_v22 = vld [vmem:[#allocation5 + $0x44] ss:$16 sps:$4 sm:$0xff]  }
 0xb40   : > { %5507 = vtanh.f32 %v3870_v28  ;;  %v7902_v28 = vld [vmem:[#allocation5 + $0x4] ss:$16 sps:$4 sm:$0xff]  }
 0xb44   : > { %v5494_v40 = vpop.eup %5493 }
 0xb45   : > { %v3855_v3 = vmul.f32 0.5, %v5494_v40  ;;  %v7884_v40 = vld [vmem:[#allocation5 + $0x40] ss:$16 sps:$4 sm:$0xff]  }
 0xb46   : > { %v5496_v62 = vpop.eup %5495 }
 0xb47   : > { %v5498_v48 = vpop.eup %5497  ;;  %v3857_v25 = vadd.f32 0.5, %v3855_v3  ;;  %v3863_v42 = vmul.f32 0.5, %v5496_v62  ;;  %v7887_v3 = vld [vmem:[#allocation5 + $0x48] ss:$16 sps:$4 sm:$0xff]   ;;  %v7890_v62 = vld [vmem:[#allocation5 + $0x24] ss:$16 sps:$4 sm:$0xff]  }
 0xb48   : > { %v5500_v16 = vpop.eup %5499 }
 0xb49   : > { %v3865_v58 = vadd.f32 0.5, %v3863_v42  ;;  %v3879_v20 = vmul.f32 %v5498_v48, %v3857_v25  ;;  %v3856_v8 = vmul.f32 0.5, %v5500_v16  ;;  %v7893_v48 = vld [vmem:[#allocation5 + $0x2c] ss:$16 sps:$4 sm:$0xff]   ;;  %v7896_v25 = vld [vmem:[#allocation5 + $0x20] ss:$16 sps:$4 sm:$0xff]  }
 0xb4a   : > { %v5502_v53 = vpop.eup %5501  ;;  %v7899_v42 = vld [vmem:[#allocation5 + $0x28] ss:$16 sps:$4 sm:$0xff]   ;;  %v7905_v16 = vld [vmem:[#allocation5 + $0xc] ss:$16 sps:$4 sm:$0xff]  }
 0xb4b   : > { %v3877_v4 = vmul.f32 %v3865_v58, %v7737_v11  ;;  %v3858_v33 = vadd.f32 0.5, %v3856_v8  ;;  %v3864_v10 = vmul.f32 0.5, %v5502_v53  ;;  %v5504_v55 = vpop.eup %5503  ;;  %v7908_v58 = vld [vmem:[#allocation5] ss:$16 sps:$4 sm:$0xff]   ;;  %v7914_v8 = vld [vmem:[#allocation5 + $0xe4] ss:$16 sps:$4 sm:$0xff]  }
 0xb4c   : > { %v5506_v39 = vpop.eup %5505  ;;  %v7917_v53 = vld [vmem:[#allocation5 + $0xec] ss:$16 sps:$4 sm:$0xff]  }
 0xb4d   : > { %v7801_v49 = vadd.f32 %v3879_v20, %v3877_v4  ;;  %v3866_v9 = vadd.f32 0.5, %v3864_v10  ;;  %v3880_v52 = vmul.f32 %v5504_v55, %v3858_v33  ;;  %v3873_v2 = vmul.f32 0.5, %v5506_v39  ;;  %v5508_v50 = vpop.eup %5507  ;;  %v7911_v20 = vld [vmem:[#allocation5 + $0x8] ss:$16 sps:$4 sm:$0xff]  }
 0xb4e   : > { %v3874_v24 = vmul.f32 0.5, %v5508_v50  ;;  %v8498_v4 = vld [vmem:[#allocation44_spill] sm:$0xff] }
 0xb4f   : > { %5509 = vtanh.f32 %v7801_v49  ;;  %v3878_v21 = vmul.f32 %v3866_v9, %v7741_v61  ;;  %v3875_v11 = vadd.f32 0.5, %v3873_v2  ;;  %v8496_v61 = vld [vmem:[#allocation29_spill] sm:$0xff]  ;;  %v3984_v33 = vunpack.c.l.bf16 %v8498_v4 }
 0xb50   : > { %v3876_v5 = vadd.f32 0.5, %v3874_v24  ;;  %v3888_v63 = vsel %vm1800_vm0, %v8497_v26, %v8496_v61 }
 0xb51   : > { %v7805_v46 = vadd.f32 %v3880_v52, %v3878_v21  ;;  %v3985_v52 = vunpack.c.h.bf16 %v8498_v4  ;;  %v8499_v21 = vld [vmem:[#allocation45_spill] sm:$0xff] }
 0xb52   : > { %v3986_v39 = vunpack.c.l.bf16 %v8499_v21 }
 0xb53   : > { %5511 = vtanh.f32 %v7805_v46 }
 0xb5c   : > { %v5510_v13 = vpop.eup %5509 }
 0xb5d   : > { %v3885_v29 = vmul.f32 %v5510_v13, %v3875_v11  ;;  %v8500_v13 = vld [vmem:[#allocation49_spill] sm:$0xff] }
 0xb5e   : > { %v3988_v14 = vunpack.c.l.bf16 %v8500_v13 }
 0xb5f   : > { %v3889_v43 = vmul.f32 %v3887_v7, %v3885_v29 }
 0xb60   : > { %v5512_v18 = vpop.eup %5511 }
 0xb61   : > { %v7817_v12 = vadd.f32 %v3889_v43, %v7753_v38  ;;  %v3886_v59 = vmul.f32 %v5512_v18, %v3876_v5  ;;  %v7831_v38 = vld [vmem:[#allocation5 + $0xcc] ss:$16 sps:$4 sm:$0xff]   ;;  %v3989_v5 = vunpack.c.h.bf16 %v8500_v13 }
 0xb63   : > { %v3890_v15 = vmul.f32 %v3888_v63, %v3886_v59  ;;  %v3893_v35 = vpack.c.bf16 %v3886_v59, %v3885_v29  ;;  %v8501_v63 = vld [vmem:[#allocation50_spill] sm:$0xff] }
 0xb64   : > { %v3990_v59 = vunpack.c.l.bf16 %v8501_v63 }
 0xb65   : > { %v7820_v37 = vadd.f32 %v3890_v15, %v7756_v1  ;;  %3927 = vmatmul.mubr.bf16.vlgmr.msra.gmra.mxu0 %v3893_v35  ;;  %3970 = vmatmul.mubr.bf16.vlgmr.msra.gmra.mxu1 %v3893_v35  ;;  %v7836_v1 = vld [vmem:[#allocation5 + $0xc0] ss:$16 sps:$4 sm:$0xff]  }
 0xb66   : > { %4044 = vmatpush1.bf16.msra.mxu0 %v7822_v44  ;;  %4087 = vmatpush1.bf16.msra.mxu1 %v7825_v54 }
 0xb67   : > { %4045 = vmatprep.subr.bf16.mxu0 %v7828_v60  ;;  %4088 = vmatprep.subr.bf16.mxu1 %v7831_v38 }
 0xb68   : > { %4075 = vmatprep.mubr.bf16.mxu0 %v8426_v30  ;;  %4118 = vmatprep.mubr.bf16.mxu1 %v8426_v30 }
 0xb6a   : > { %4046 = vmatpush1.bf16.msra.mxu0 %v7836_v1  ;;  %4089 = vmatpush1.bf16.msra.mxu1 %v7839_v45 }
 0xb6b   : > { %4047 = vmatprep.subr.bf16.mxu0 %v7842_v34  ;;  %4090 = vmatprep.subr.bf16.mxu1 %v7845_v47 }
 0xb6e   : > { %4048 = vmatpush1.bf16.msra.mxu0 %v7848_v36  ;;  %4091 = vmatpush1.bf16.msra.mxu1 %v7851_v6 }
 0xb6f   : > { %4049 = vmatprep.subr.bf16.mxu0 %v7854_v19  ;;  %4092 = vmatprep.subr.bf16.mxu1 %v7857_v57 }
 0xb72   : > { %4050 = vmatpush1.bf16.msra.mxu0 %v7860_v51  ;;  %4093 = vmatpush1.bf16.msra.mxu1 %v7863_v56 }
 0xb73   : > { %4051 = vmatprep.subr.bf16.mxu0 %v7866_v17  ;;  %4094 = vmatprep.subr.bf16.mxu1 %v7869_v32 }
 0xb76   : > { %4052 = vmatpush1.bf16.msra.mxu0 %v7872_v23  ;;  %4095 = vmatpush1.bf16.msra.mxu1 %v7875_v27 }
 0xb77   : > { %4053 = vmatprep.subr.bf16.mxu0 %v7878_v22  ;;  %4096 = vmatprep.subr.bf16.mxu1 %v7881_v31 }
 0xb7a   : > { %4054 = vmatpush1.bf16.msra.mxu0 %v7884_v40  ;;  %4097 = vmatpush1.bf16.msra.mxu1 %v7887_v3 }
 0xb7b   : > { %4055 = vmatprep.subr.bf16.mxu0 %v7890_v62  ;;  %4098 = vmatprep.subr.bf16.mxu1 %v7893_v48 }
 0xb7e   : > { %4056 = vmatpush1.bf16.msra.mxu0 %v7896_v25  ;;  %4099 = vmatpush1.bf16.msra.mxu1 %v7899_v42 }
 0xb7f   : > { %4057 = vmatprep.subr.bf16.mxu0 %v7902_v28  ;;  %4100 = vmatprep.subr.bf16.mxu1 %v7905_v16 }
 0xb82   : > { %4058 = vmatpush1.bf16.msra.mxu0 %v7908_v58  ;;  %4101 = vmatpush1.bf16.msra.mxu1 %v7911_v20 }
 0xb83   : > { %4192 = vmatprep.subr.bf16.mxu0 %v7914_v8  ;;  %4235 = vmatprep.subr.bf16.mxu1 %v7917_v53 }
 0xc25   : > { %v3928_v10 = vpop.f32.mrf.mxu0  ;;  %v3971_v55 = vpop.f32.mrf.mxu1 }
 0xc26   : > { %v3992_v9 = vadd.f32 %v3984_v33, %v3928_v10  ;;  %v3994_v0 = vadd.f32 %v3986_v39, %v3971_v55  ;;  %v3987_v33 = vunpack.c.h.bf16 %v8499_v21 }
 0xc27   : > { %v3930_v2 = vpop.f32.mrf.mxu0  ;;  %v3973_v50 = vpop.f32.mrf.mxu1 }
 0xc28   : > { %v4000_v11 = vmul.f32 0.5, %v3992_v9  ;;  %v3993_v24 = vadd.f32 %v3985_v52, %v3930_v2  ;;  %v3995_v10 = vadd.f32 %v3987_v33, %v3973_v50  ;;  %v3991_v9 = vunpack.c.h.bf16 %v8501_v63 }
 0xc29   : > { %v3932_v7 = vpop.f32.mrf.mxu0  ;;  %v3975_v18 = vpop.f32.mrf.mxu1 }
 0xc2a   : > { %5513 = vtanh.f32 %v4000_v11  ;;  %v4008_v29 = vmul.f32 0.5, %v3993_v24  ;;  %v3996_v43 = vadd.f32 %v3988_v14, %v3932_v7  ;;  %v3998_v35 = vadd.f32 %v3990_v59, %v3975_v18 }
 0xc2b   : > { %v3934_v61 = vpop.f32.mrf.mxu0  ;;  %v3977_v55 = vpop.f32.mrf.mxu1  ;;  %v4018_v52 = vmul.f32 0.5, %v3995_v10 }
 0xc2c   : > { %5515 = vtanh.f32 %v4008_v29  ;;  %v4001_v26 = vmul.f32 0.5, %v3996_v43  ;;  %v3997_v15 = vadd.f32 %v3989_v5, %v3934_v61  ;;  %v3999_v39 = vadd.f32 %v3991_v9, %v3977_v55 }
 0xc2d   : > { %5517 = vtanh.f32 %v3994_v0 }
 0xc2e   : > { %5519 = vtanh.f32 %v4001_v26  ;;  %v4009_v4 = vmul.f32 0.5, %v3997_v15  ;;  %v4019_v0 = vmul.f32 0.5, %v3999_v39 }
 0xc30   : > { %5521 = vtanh.f32 %v4009_v4 }
 0xc31   : > { %5523 = vtanh.f32 %v3998_v35 }
 0xc32   : > { %5525 = vtanh.f32 %v4018_v52 }
 0xc33   : > { %5527 = vtanh.f32 %v4019_v0 }
 0xc37   : > { %v5514_v2 = vpop.eup %5513 }
 0xc38   : > { %v4004_v11 = vmul.f32 0.5, %v5514_v2  ;;  %v8502_v2 = vld [vmem:[#allocation36_spill] sm:$0xff] }
 0xc39   : > { %v5516_v24 = vpop.eup %5515 }
 0xc3a   : > { %v5518_v13 = vpop.eup %5517  ;;  %v4006_v14 = vadd.f32 0.5, %v4004_v11  ;;  %v4012_v7 = vmul.f32 0.5, %v5516_v24  ;;  %v8503_v11 = vld [vmem:[#allocation38_spill] sm:$0xff] }
 0xc3b   : > { %v5520_v29 = vpop.eup %5519  ;;  %v4036_v24 = vsel %vm1800_vm0, %v8503_v11, %v8502_v2 }
 0xc3c   : > { %v4014_v43 = vadd.f32 0.5, %v4012_v7  ;;  %v4028_v5 = vmul.f32 %v5518_v13, %v4006_v14  ;;  %v4005_v21 = vmul.f32 0.5, %v5520_v29  ;;  %v8505_v29 = vld [vmem:[#allocation39_spill] sm:$0xff] }
 0xc3d   : > { %v5522_v18 = vpop.eup %5521 }
 0xc3e   : > { %v4026_v50 = vmul.f32 %v4014_v43, %v7801_v49  ;;  %v4007_v61 = vadd.f32 0.5, %v4005_v21  ;;  %v4013_v26 = vmul.f32 0.5, %v5522_v18  ;;  %v5524_v63 = vpop.eup %5523 }
 0xc3f   : > { %v5526_v10 = vpop.eup %5525 }
 0xc40   : > { %v7929_v59 = vadd.f32 %v4028_v5, %v4026_v50  ;;  %v4015_v15 = vadd.f32 0.5, %v4013_v26  ;;  %v4029_v35 = vmul.f32 %v5524_v63, %v4007_v61  ;;  %v4022_v55 = vmul.f32 0.5, %v5526_v10  ;;  %v5528_v9 = vpop.eup %5527 }
 0xc41   : > { %v4023_v52 = vmul.f32 0.5, %v5528_v9 }
 0xc42   : > { %5529 = vtanh.f32 %v7929_v59  ;;  %v4027_v4 = vmul.f32 %v4015_v15, %v7805_v46  ;;  %v4024_v49 = vadd.f32 0.5, %v4022_v55  ;;  %v8504_v46 = vld [vmem:[#allocation37_spill] sm:$0xff] }
 0xc43   : > { %v4025_v7 = vadd.f32 0.5, %v4023_v52  ;;  %v4037_v43 = vsel %vm1800_vm0, %v8505_v29, %v8504_v46 }
 0xc44   : > { %v7933_v33 = vadd.f32 %v4029_v35, %v4027_v4  ;;  %v8507_v4 = vld [vmem:[#allocation52_spill] sm:$0xff] }
 0xc45   : > { %v4135_v10 = vunpack.c.l.bf16 %v8507_v4 }
 0xc46   : > { %5531 = vtanh.f32 %v7933_v33 }
 0xc4f   : > { %v5530_v39 = vpop.eup %5529 }
 0xc50   : > { %v4034_v13 = vmul.f32 %v5530_v39, %v4024_v49  ;;  %v8508_v39 = vld [vmem:[#allocation53_spill] sm:$0xff] }
 0xc51   : > { %v4137_v2 = vunpack.c.l.bf16 %v8508_v39 }
 0xc52   : > { %v4038_v14 = vmul.f32 %v4036_v24, %v4034_v13 }
 0xc53   : > { %v5532_v0 = vpop.eup %5531 }
 0xc54   : > { %v7945_v5 = vadd.f32 %v4038_v14, %v7817_v12  ;;  %v4035_v21 = vmul.f32 %v5532_v0, %v4025_v7  ;;  %v8506_v12 = vld [vmem:[#allocation51_spill] sm:$0xff]  ;;  %v4138_v7 = vunpack.c.h.bf16 %v8508_v39 }
 0xc55   : > { %v4134_v35 = vunpack.c.h.bf16 %v8506_v12 }
 0xc56   : > { %v4039_v18 = vmul.f32 %v4037_v43, %v4035_v21  ;;  %v4042_v50 = vpack.c.bf16 %v4035_v21, %v4034_v13  ;;  %v8509_v43 = vld [vmem:[#allocation54_spill] sm:$0xff] }
 0xc57   : > { %v4139_v21 = vunpack.c.l.bf16 %v8509_v43 }
 0xc58   : > { %v7948_v61 = vadd.f32 %v4039_v18, %v7820_v37  ;;  %4076 = vmatmul.mubr.bf16.vlgmr.msra.gmra.mxu0 %v4042_v50  ;;  %4119 = vmatmul.mubr.bf16.vlgmr.msra.gmra.mxu1 %v4042_v50  ;;  %v4133_v37 = vunpack.c.l.bf16 %v8506_v12 }
 0xc59   : > { %4193 = vmatpush1.bf16.msra.mxu0 %v7822_v44  ;;  %4236 = vmatpush1.bf16.msra.mxu1 %v7825_v54 }
 0xc5a   : > { %4194 = vmatprep.subr.bf16.mxu0 %v7828_v60  ;;  %4237 = vmatprep.subr.bf16.mxu1 %v7831_v38 }
 0xc5b   : > { %4224 = vmatprep.mubr.bf16.mxu0 %v8426_v30  ;;  %4267 = vmatprep.mubr.bf16.mxu1 %v8426_v30 }
 0xc5d   : > { %4195 = vmatpush1.bf16.msra.mxu0 %v7836_v1  ;;  %4238 = vmatpush1.bf16.msra.mxu1 %v7839_v45 }
 0xc5e   : > { %4196 = vmatprep.subr.bf16.mxu0 %v7842_v34  ;;  %4239 = vmatprep.subr.bf16.mxu1 %v7845_v47 }
 0xc61   : > { %4197 = vmatpush1.bf16.msra.mxu0 %v7848_v36  ;;  %4240 = vmatpush1.bf16.msra.mxu1 %v7851_v6 }
 0xc62   : > { %4198 = vmatprep.subr.bf16.mxu0 %v7854_v19  ;;  %4241 = vmatprep.subr.bf16.mxu1 %v7857_v57 }
 0xc65   : > { %4199 = vmatpush1.bf16.msra.mxu0 %v7860_v51  ;;  %4242 = vmatpush1.bf16.msra.mxu1 %v7863_v56 }
 0xc66   : > { %4200 = vmatprep.subr.bf16.mxu0 %v7866_v17  ;;  %4243 = vmatprep.subr.bf16.mxu1 %v7869_v32 }
 0xc69   : > { %4201 = vmatpush1.bf16.msra.mxu0 %v7872_v23  ;;  %4244 = vmatpush1.bf16.msra.mxu1 %v7875_v27 }
 0xc6a   : > { %4202 = vmatprep.subr.bf16.mxu0 %v7878_v22  ;;  %4245 = vmatprep.subr.bf16.mxu1 %v7881_v31 }
 0xc6d   : > { %4203 = vmatpush1.bf16.msra.mxu0 %v7884_v40  ;;  %4246 = vmatpush1.bf16.msra.mxu1 %v7887_v3 }
 0xc6e   : > { %4204 = vmatprep.subr.bf16.mxu0 %v7890_v62  ;;  %4247 = vmatprep.subr.bf16.mxu1 %v7893_v48 }
 0xc71   : > { %4205 = vmatpush1.bf16.msra.mxu0 %v7896_v25  ;;  %4248 = vmatpush1.bf16.msra.mxu1 %v7899_v42 }
 0xc72   : > { %4206 = vmatprep.subr.bf16.mxu0 %v7902_v28  ;;  %4249 = vmatprep.subr.bf16.mxu1 %v7905_v16 }
 0xc75   : > { %4207 = vmatpush1.bf16.msra.mxu0 %v7908_v58  ;;  %4250 = vmatpush1.bf16.msra.mxu1 %v7911_v20 }
 0xc76   : > { %4341 = vmatprep.subr.bf16.mxu0 %v7914_v8  ;;  %4384 = vmatprep.subr.bf16.mxu1 %v7917_v53 }
 0xd18   : > { %v4077_v26 = vpop.f32.mrf.mxu0  ;;  %v4120_v63 = vpop.f32.mrf.mxu1 }
 0xd19   : > { %v4141_v15 = vadd.f32 %v4133_v37, %v4077_v26  ;;  %v4143_v11 = vadd.f32 %v4135_v10, %v4120_v63  ;;  %v4136_v37 = vunpack.c.h.bf16 %v8507_v4 }
 0xd1a   : > { %v4079_v55 = vpop.f32.mrf.mxu0  ;;  %v4122_v9 = vpop.f32.mrf.mxu1 }
 0xd1b   : > { %v4149_v49 = vmul.f32 0.5, %v4141_v15  ;;  %v4142_v52 = vadd.f32 %v4134_v35, %v4079_v55  ;;  %v4144_v26 = vadd.f32 %v4136_v37, %v4122_v9  ;;  %v4140_v15 = vunpack.c.h.bf16 %v8509_v43 }
 0xd1c   : > { %v4081_v24 = vpop.f32.mrf.mxu0  ;;  %v4124_v0 = vpop.f32.mrf.mxu1 }
 0xd1d   : > { %5533 = vtanh.f32 %v4149_v49  ;;  %v4157_v13 = vmul.f32 0.5, %v4142_v52  ;;  %v4145_v14 = vadd.f32 %v4137_v2, %v4081_v24  ;;  %v4147_v50 = vadd.f32 %v4139_v21, %v4124_v0 }
 0xd1e   : > { %v4083_v46 = vpop.f32.mrf.mxu0  ;;  %v4126_v63 = vpop.f32.mrf.mxu1  ;;  %v4167_v35 = vmul.f32 0.5, %v4144_v26 }
 0xd1f   : > { %5535 = vtanh.f32 %v4157_v13  ;;  %v4150_v29 = vmul.f32 0.5, %v4145_v14  ;;  %v4146_v18 = vadd.f32 %v4138_v7, %v4083_v46  ;;  %v4148_v10 = vadd.f32 %v4140_v15, %v4126_v63 }
 0xd20   : > { %5537 = vtanh.f32 %v4143_v11 }
 0xd21   : > { %5539 = vtanh.f32 %v4150_v29  ;;  %v4158_v12 = vmul.f32 0.5, %v4146_v18  ;;  %v4168_v11 = vmul.f32 0.5, %v4148_v10 }
 0xd23   : > { %5541 = vtanh.f32 %v4158_v12 }
 0xd24   : > { %5543 = vtanh.f32 %v4147_v50 }
 0xd25   : > { %5545 = vtanh.f32 %v4167_v35 }
 0xd26   : > { %5547 = vtanh.f32 %v4168_v11 }
 0xd2a   : > { %v5534_v55 = vpop.eup %5533 }
 0xd2b   : > { %v4153_v49 = vmul.f32 0.5, %v5534_v55  ;;  %v8510_v55 = vld [vmem:[#allocation40_spill] sm:$0xff] }
 0xd2c   : > { %v5536_v52 = vpop.eup %5535 }
 0xd2d   : > { %v5538_v39 = vpop.eup %5537  ;;  %v4155_v2 = vadd.f32 0.5, %v4153_v49  ;;  %v4161_v24 = vmul.f32 0.5, %v5536_v52  ;;  %v8511_v49 = vld [vmem:[#allocation46_spill] sm:$0xff] }
 0xd2e   : > { %v5540_v13 = vpop.eup %5539  ;;  %v4185_v52 = vsel %vm1800_vm0, %v8511_v49, %v8510_v55 }
 0xd2f   : > { %v4163_v14 = vadd.f32 0.5, %v4161_v24  ;;  %v4177_v7 = vmul.f32 %v5538_v39, %v4155_v2  ;;  %v4154_v4 = vmul.f32 0.5, %v5540_v13  ;;  %v8513_v13 = vld [vmem:[#allocation47_spill] sm:$0xff] }
 0xd30   : > { %v5542_v0 = vpop.eup %5541 }
 0xd31   : > { %v4175_v9 = vmul.f32 %v4163_v14, %v7929_v59  ;;  %v4156_v46 = vadd.f32 0.5, %v4154_v4  ;;  %v4162_v29 = vmul.f32 0.5, %v5542_v0  ;;  %v5544_v43 = vpop.eup %5543 }
 0xd32   : > { %v5546_v26 = vpop.eup %5545 }
 0xd33   : > { %v7993_v21 = vadd.f32 %v4177_v7, %v4175_v9  ;;  %v4164_v18 = vadd.f32 0.5, %v4162_v29  ;;  %v4178_v50 = vmul.f32 %v5544_v43, %v4156_v46  ;;  %v4171_v63 = vmul.f32 0.5, %v5546_v26  ;;  %v5548_v15 = vpop.eup %5547 }
 0xd34   : > { %v4172_v35 = vmul.f32 0.5, %v5548_v15 }
 0xd35   : > { %5549 = vtanh.f32 %v7993_v21  ;;  %v4176_v12 = vmul.f32 %v4164_v18, %v7933_v33  ;;  %v4173_v59 = vadd.f32 0.5, %v4171_v63  ;;  %v8512_v33 = vld [vmem:[#allocation41_spill] sm:$0xff] }
 0xd36   : > { %v4174_v24 = vadd.f32 0.5, %v4172_v35  ;;  %v4186_v14 = vsel %vm1800_vm0, %v8513_v13, %v8512_v33  ;;  %v8517_v33 = vld [vmem:[#allocation58_spill] sm:$0xff] }
 0xd37   : > { %v7997_v37 = vadd.f32 %v4178_v50, %v4176_v12  ;;  %v8515_v12 = vld [vmem:[#allocation56_spill] sm:$0xff]  ;;  %v4288_v13 = vunpack.c.l.bf16 %v8517_v33 }
 0xd38   : > { %v4284_v26 = vunpack.c.l.bf16 %v8515_v12 }
 0xd39   : > { %5551 = vtanh.f32 %v7997_v37 }
 0xd42   : > { %v5550_v10 = vpop.eup %5549 }
 0xd43   : > { %v4183_v39 = vmul.f32 %v5550_v10, %v4173_v59  ;;  %v8516_v10 = vld [vmem:[#allocation57_spill] sm:$0xff] }
 0xd44   : > { %v4286_v55 = vunpack.c.l.bf16 %v8516_v10 }
 0xd45   : > { %v4187_v2 = vmul.f32 %v4185_v52, %v4183_v39 }
 0xd46   : > { %v5552_v11 = vpop.eup %5551 }
 0xd47   : > { %v8009_v7 = vadd.f32 %v4187_v2, %v7945_v5  ;;  %v4184_v4 = vmul.f32 %v5552_v11, %v4174_v24  ;;  %v8514_v5 = vld [vmem:[#allocation55_spill] sm:$0xff] }
 0xd48   : > { %v4283_v50 = vunpack.c.h.bf16 %v8514_v5 }
 0xd49   : > { %v4188_v0 = vmul.f32 %v4186_v14, %v4184_v4  ;;  %v4191_v9 = vpack.c.bf16 %v4184_v4, %v4183_v39  ;;  %v4287_v39 = vunpack.c.h.bf16 %v8516_v10 }
 0xd4b   : > { %v8012_v46 = vadd.f32 %v4188_v0, %v7948_v61  ;;  %4225 = vmatmul.mubr.bf16.vlgmr.msra.gmra.mxu0 %v4191_v9  ;;  %4268 = vmatmul.mubr.bf16.vlgmr.msra.gmra.mxu1 %v4191_v9  ;;  %v4282_v61 = vunpack.c.l.bf16 %v8514_v5  ;;  %v4285_v9 = vunpack.c.h.bf16 %v8515_v12 }
 0xd4c   : > { %4342 = vmatpush1.bf16.msra.mxu0 %v7822_v44  ;;  %4385 = vmatpush1.bf16.msra.mxu1 %v7825_v54 }
 0xd4d   : > { %4343 = vmatprep.subr.bf16.mxu0 %v7828_v60  ;;  %4386 = vmatprep.subr.bf16.mxu1 %v7831_v38 }
 0xd4e   : > { %4373 = vmatprep.mubr.bf16.mxu0 %v8426_v30  ;;  %4416 = vmatprep.mubr.bf16.mxu1 %v8426_v30 }
 0xd50   : > { %4344 = vmatpush1.bf16.msra.mxu0 %v7836_v1  ;;  %4387 = vmatpush1.bf16.msra.mxu1 %v7839_v45 }
 0xd51   : > { %4345 = vmatprep.subr.bf16.mxu0 %v7842_v34  ;;  %4388 = vmatprep.subr.bf16.mxu1 %v7845_v47 }
 0xd54   : > { %4346 = vmatpush1.bf16.msra.mxu0 %v7848_v36  ;;  %4389 = vmatpush1.bf16.msra.mxu1 %v7851_v6 }
 0xd55   : > { %4347 = vmatprep.subr.bf16.mxu0 %v7854_v19  ;;  %4390 = vmatprep.subr.bf16.mxu1 %v7857_v57 }
 0xd58   : > { %4348 = vmatpush1.bf16.msra.mxu0 %v7860_v51  ;;  %4391 = vmatpush1.bf16.msra.mxu1 %v7863_v56 }
 0xd59   : > { %4349 = vmatprep.subr.bf16.mxu0 %v7866_v17  ;;  %4392 = vmatprep.subr.bf16.mxu1 %v7869_v32 }
 0xd5c   : > { %4350 = vmatpush1.bf16.msra.mxu0 %v7872_v23  ;;  %4393 = vmatpush1.bf16.msra.mxu1 %v7875_v27 }
 0xd5d   : > { %4351 = vmatprep.subr.bf16.mxu0 %v7878_v22  ;;  %4394 = vmatprep.subr.bf16.mxu1 %v7881_v31 }
 0xd60   : > { %4352 = vmatpush1.bf16.msra.mxu0 %v7884_v40  ;;  %4395 = vmatpush1.bf16.msra.mxu1 %v7887_v3 }
 0xd61   : > { %4353 = vmatprep.subr.bf16.mxu0 %v7890_v62  ;;  %4396 = vmatprep.subr.bf16.mxu1 %v7893_v48 }
 0xd64   : > { %4354 = vmatpush1.bf16.msra.mxu0 %v7896_v25  ;;  %4397 = vmatpush1.bf16.msra.mxu1 %v7899_v42 }
 0xd65   : > { %4355 = vmatprep.subr.bf16.mxu0 %v7902_v28  ;;  %4398 = vmatprep.subr.bf16.mxu1 %v7905_v16 }
 0xd68   : > { %4356 = vmatpush1.bf16.msra.mxu0 %v7908_v58  ;;  %4399 = vmatpush1.bf16.msra.mxu1 %v7911_v20 }
 0xd69   : > { %4490 = vmatprep.subr.bf16.mxu0 %v7914_v8  ;;  %4533 = vmatprep.subr.bf16.mxu1 %v7917_v53 }
 0xe0b   : > { %v4226_v29 = vpop.f32.mrf.mxu0  ;;  %v4269_v43 = vpop.f32.mrf.mxu1 }
 0xe0c   : > { %v4290_v18 = vadd.f32 %v4282_v61, %v4226_v29  ;;  %v4292_v49 = vadd.f32 %v4284_v26, %v4269_v43  ;;  %v4289_v29 = vunpack.c.h.bf16 %v8517_v33 }
 0xe0d   : > { %v4228_v63 = vpop.f32.mrf.mxu0  ;;  %v4271_v15 = vpop.f32.mrf.mxu1 }
 0xe0e   : > { %v4298_v59 = vmul.f32 0.5, %v4290_v18  ;;  %v4291_v35 = vadd.f32 %v4283_v50, %v4228_v63  ;;  %v4293_v5 = vadd.f32 %v4285_v9, %v4271_v15 }
 0xe0f   : > { %v4230_v52 = vpop.f32.mrf.mxu0  ;;  %v4273_v2 = vpop.f32.mrf.mxu1 }
 0xe10   : > { %5553 = vtanh.f32 %v4298_v59  ;;  %v4306_v8 = vmul.f32 0.5, %v4291_v35  ;;  %v4294_v53 = vadd.f32 %v4286_v55, %v4230_v52  ;;  %v4296_v4 = vadd.f32 %v4288_v13, %v4273_v2 }
 0xe11   : > { %v4232_v24 = vpop.f32.mrf.mxu0  ;;  %v4275_v61 = vpop.f32.mrf.mxu1  ;;  %v4316_v43 = vmul.f32 0.5, %v4293_v5 }
 0xe12   : > { %5555 = vtanh.f32 %v4306_v8  ;;  %v4299_v11 = vmul.f32 0.5, %v4294_v53  ;;  %v4295_v14 = vadd.f32 %v4287_v39, %v4232_v24  ;;  %v4297_v18 = vadd.f32 %v4289_v29, %v4275_v61 }
 0xe13   : > { %5557 = vtanh.f32 %v4292_v49 }
 0xe14   : > { %5559 = vtanh.f32 %v4299_v11  ;;  %v4307_v0 = vmul.f32 0.5, %v4295_v14  ;;  %v4317_v55 = vmul.f32 0.5, %v4297_v18  ;;  %v8519_v18 = vld [vmem:[#allocation72_spill] sm:$0xff] }
 0xe16   : > { %5561 = vtanh.f32 %v4307_v0 }
 0xe17   : > { %5563 = vtanh.f32 %v4296_v4 }
 0xe18   : > { %5565 = vtanh.f32 %v4316_v43  ;;  %v8518_v43 = vld [vmem:[#allocation11_spill] sm:$0xff] }
 0xe19   : > { %5567 = vtanh.f32 %v4317_v55 }
 0xe1d   : > { %v5554_v50 = vpop.eup %5553 }
 0xe1e   : > { %v4302_v26 = vmul.f32 0.5, %v5554_v50  ;;  %v4334_v50 = vsel %vm1800_vm0, %v8519_v18, %v8518_v43  ;;  %v4654_v18 = vld [vmem:[%s6019_s17 + $0x80] sm:$0xff] }
 0xe1f   : > { %v5556_v63 = vpop.eup %5555 }
 0xe20   : > { %v5558_v59 = vpop.eup %5557  ;;  %v4304_v35 = vadd.f32 0.5, %v4302_v26  ;;  %v4310_v10 = vmul.f32 0.5, %v5556_v63 }
 0xe21   : > { %v5560_v49 = vpop.eup %5559 }
 0xe22   : > { %v4312_v52 = vadd.f32 0.5, %v4310_v10  ;;  %v4326_v8 = vmul.f32 %v5558_v59, %v4304_v35  ;;  %v4303_v12 = vmul.f32 0.5, %v5560_v49  ;;  %v8521_v10 = vld [vmem:[#allocation73_spill] sm:$0xff] }
 0xe23   : > { %v5562_v53 = vpop.eup %5561 }
 0xe24   : > { %v4324_v15 = vmul.f32 %v4312_v52, %v7993_v21  ;;  %v4305_v39 = vadd.f32 0.5, %v4303_v12  ;;  %v4311_v2 = vmul.f32 0.5, %v5562_v53  ;;  %v5564_v24 = vpop.eup %5563 }
 0xe25   : > { %v5566_v0 = vpop.eup %5565 }
 0xe26   : > { %v8057_v11 = vadd.f32 %v4326_v8, %v4324_v15  ;;  %v4313_v33 = vadd.f32 0.5, %v4311_v2  ;;  %v4327_v13 = vmul.f32 %v5564_v24, %v4305_v39  ;;  %v4320_v9 = vmul.f32 0.5, %v5566_v0  ;;  %v5568_v5 = vpop.eup %5567  ;;  %v4650_v2 = vld [vmem:[%s6019_s17 + $0x60] sm:$0xff] }
 0xe27   : > { %v4321_v61 = vmul.f32 0.5, %v5568_v5 }
 0xe28   : > { %5569 = vtanh.f32 %v8057_v11  ;;  %v4325_v14 = vmul.f32 %v4313_v33, %v7997_v37  ;;  %v4322_v21 = vadd.f32 0.5, %v4320_v9  ;;  %v8520_v37 = vld [vmem:[#allocation48_spill] sm:$0xff]  ;;  %v4657_v33 = vld [vmem:[%s6019_s17 + $0x98] sm:$0xff]  ;;  %v4652_v9 = vld [vmem:[%s6019_s17 + $0x70] sm:$0xff] }
 0xe29   : > { %v4323_v59 = vadd.f32 0.5, %v4321_v61  ;;  %v4335_v55 = vsel %vm1800_vm0, %v8521_v10, %v8520_v37  ;;  %v4719_v43 = vsel %vm4670_vm3, %v4657_v33, 0.0  ;;  %v4656_v37 = vld [vmem:[%s6019_s17 + $0x90] sm:$0xff]  ;;  %v8522_v33 = vld [vmem:[#allocation59_spill] sm:$0xff] }
 0xe2a   : > { %v8061_v4 = vadd.f32 %v4327_v13, %v4325_v14 }
 0xe2c   : > { %5571 = vtanh.f32 %v8061_v4 }
 0xe35   : > { %v5570_v29 = vpop.eup %5569 }
 0xe36   : > { %v4332_v26 = vmul.f32 %v5570_v29, %v4322_v21  ;;  %v4659_v21 = vld [vmem:[%s6019_s17 + $0xa8] sm:$0xff]  ;;  %v4682_v29 = vsel %vm4670_vm3, %v4650_v2, 0.0 }
 0xe38   : > { %v4336_v63 = vmul.f32 %v4334_v50, %v4332_v26 }
 0xe39   : > { %v5572_v35 = vpop.eup %5571 }
 0xe3a   : > { %v8073_v49 = vadd.f32 %v4336_v63, %v8009_v7  ;;  %v4333_v52 = vmul.f32 %v5572_v35, %v4323_v59  ;;  %v4655_v7 = vld [vmem:[%s6019_s17 + $0x88] sm:$0xff]  ;;  %v4684_v59 = vsel %vm4670_vm3, %v4652_v9, 0.0  ;;  %v4721_v35 = vsel %vm4670_vm3, %v4659_v21, 0.0 }
 0xe3b   : > { %v4717_v0 = vsel %vm4670_vm3, %v4655_v7, 0.0  ;;  %v8523_v21 = vld [vmem:[#allocation60_spill] sm:$0xff] }
 0xe3c   : > { %v4337_v8 = vmul.f32 %v4335_v55, %v4333_v52  ;;  %v4340_v12 = vpack.c.bf16 %v4333_v52, %v4332_v26  ;;  %v4661_v26 = vld [vmem:[%s6019_s17 + $0xb8] sm:$0xff]  ;;  %v4663_v55 = vld [vmem:[%s6019_s17 + $0xc8] sm:$0xff] }
 0xe3e   : > { %v8076_v53 = vadd.f32 %v4337_v8, %v8012_v46  ;;  %4374 = vmatmul.mubr.bf16.vlgmr.msra.gmra.mxu0 %v4340_v12  ;;  %4417 = vmatmul.mubr.bf16.vlgmr.msra.gmra.mxu1 %v4340_v12  ;;  %v4686_v8 = vsel %vm4670_vm3, %v4654_v18, 0.0  ;;  %v4723_v12 = vsel %vm4670_vm3, %v4661_v26, 0.0  ;;  %v8524_v26 = vld [vmem:[#allocation61_spill] sm:$0xff] }
 0xe3f   : > { %4491 = vmatpush1.bf16.msra.mxu0 %v7822_v44  ;;  %4534 = vmatpush1.bf16.msra.mxu1 %v7825_v54  ;;  %v4641_v44 = vld [vmem:[%s6019_s17 + $0x18] sm:$0xff]  ;;  %v4643_v54 = vld [vmem:[%s6019_s17 + $0x28] sm:$0xff] }
 0xe40   : > { %4492 = vmatprep.subr.bf16.mxu0 %v7828_v60  ;;  %4535 = vmatprep.subr.bf16.mxu1 %v7831_v38  ;;  %v4645_v60 = vld [vmem:[%s6019_s17 + $0x38] sm:$0xff] }
 0xe41   : > { %4522 = vmatprep.mubr.bf16.mxu0 %v8426_v30  ;;  %4565 = vmatprep.mubr.bf16.mxu1 %v8426_v30  ;;  %v4639_v30 = vld [vmem:[%s6019_s17 + $0x8] sm:$0xff] }
 0xe42   : > { %v4702_v38 = vsel %vm4670_vm3, %v4639_v30, 0.0  ;;  %v4658_v30 = vld [vmem:[%s6019_s17 + $0xa0] sm:$0xff] }
 0xe43   : > { %4493 = vmatpush1.bf16.msra.mxu0 %v7836_v1  ;;  %4536 = vmatpush1.bf16.msra.mxu1 %v7839_v45  ;;  %v4703_v1 = vsel %vm4670_vm3, %v4641_v44, 0.0  ;;  %v4705_v45 = vsel %vm4670_vm3, %v4643_v54, 0.0  ;;  %v4665_v54 = vld [vmem:[%s6019_s17 + $0xd8] sm:$0xff] }
 0xe44   : > { %4494 = vmatprep.subr.bf16.mxu0 %v7842_v34  ;;  %4537 = vmatprep.subr.bf16.mxu1 %v7845_v47  ;;  %v4647_v34 = vld [vmem:[%s6019_s17 + $0x48] sm:$0xff]  ;;  %v4704_v47 = vadd.f32 %v4703_v1, %v4702_v38  ;;  %v4688_v38 = vsel %vm4670_vm3, %v4656_v37, 0.0  ;;  %v4725_v1 = vsel %vm4670_vm3, %v4663_v55, 0.0  ;;  %v4436_v55 = vunpack.c.h.bf16 %v8524_v26 }
 0xe47   : > { %4495 = vmatpush1.bf16.msra.mxu0 %v7848_v36  ;;  %4538 = vmatpush1.bf16.msra.mxu1 %v7851_v6  ;;  %v4707_v36 = vsel %vm4670_vm3, %v4645_v60, 0.0  ;;  %v4649_v6 = vld [vmem:[%s6019_s17 + $0x58] sm:$0xff] }
 0xe48   : > { %4496 = vmatprep.subr.bf16.mxu0 %v7854_v19  ;;  %4539 = vmatprep.subr.bf16.mxu1 %v7857_v57  ;;  %v4706_v19 = vadd.f32 %v4705_v45, %v4704_v47  ;;  %v4709_v57 = vsel %vm4670_vm3, %v4647_v34, 0.0  ;;  %v4660_v45 = vld [vmem:[%s6019_s17 + $0xb0] sm:$0xff]  ;;  %v4667_v47 = vld [vmem:[%s6019_s17 + $0xe8] sm:$0xff] }
 0xe4b   : > { %4497 = vmatpush1.bf16.msra.mxu0 %v7860_v51  ;;  %4540 = vmatpush1.bf16.msra.mxu1 %v7863_v56  ;;  %v4638_v51 = vld [vmem:[%s6019_s17] sm:$0xff]  ;;  %v4640_v56 = vld [vmem:[%s6019_s17 + $0x10] sm:$0xff] }
 0xe4c   : > { %4498 = vmatprep.subr.bf16.mxu0 %v7866_v17  ;;  %4541 = vmatprep.subr.bf16.mxu1 %v7869_v32  ;;  %v4651_v17 = vld [vmem:[%s6019_s17 + $0x68] sm:$0xff]  ;;  %v4708_v32 = vadd.f32 %v4707_v36, %v4706_v19  ;;  %v4727_v19 = vsel %vm4670_vm3, %v4665_v54, 0.0 }
 0xe4f   : > { %4499 = vmatpush1.bf16.msra.mxu0 %v7872_v23  ;;  %4542 = vmatpush1.bf16.msra.mxu1 %v7875_v27  ;;  %v4642_v23 = vld [vmem:[%s6019_s17 + $0x20] sm:$0xff]  ;;  %v4644_v27 = vld [vmem:[%s6019_s17 + $0x30] sm:$0xff] }
 0xe50   : > { %4500 = vmatprep.subr.bf16.mxu0 %v7878_v22  ;;  %4543 = vmatprep.subr.bf16.mxu1 %v7881_v31  ;;  %v4671_v22 = vsel %vm4670_vm3, %v4638_v51, 0.0  ;;  %v4672_v31 = vsel %vm4670_vm3, %v4640_v56, 0.0  ;;  %v4669_v56 = vld [vmem:[%s6019_s17 + $0xf8] sm:$0xff] }
 0xe53   : > { %4501 = vmatpush1.bf16.msra.mxu0 %v7884_v40  ;;  %4544 = vmatpush1.bf16.msra.mxu1 %v7887_v3  ;;  %v4711_v40 = vsel %vm4670_vm3, %v4649_v6, 0.0  ;;  %v4646_v3 = vld [vmem:[%s6019_s17 + $0x40] sm:$0xff]  ;;  %v4690_v6 = vsel %vm4670_vm3, %v4658_v30, 0.0  ;;  %v8525_v30 = vld [vmem:[#allocation62_spill] sm:$0xff] }
 0xe54   : > { %4502 = vmatprep.subr.bf16.mxu0 %v7890_v62  ;;  %4545 = vmatprep.subr.bf16.mxu1 %v7893_v48  ;;  %v4673_v62 = vadd.f32 %v4672_v31, %v4671_v22  ;;  %v4674_v48 = vsel %vm4670_vm3, %v4642_v23, 0.0  ;;  %v4678_v15 = vsel %vm4670_vm3, %v4646_v3, 0.0  ;;  %v4729_v23 = vsel %vm4670_vm3, %v4667_v47, 0.0 }
 0xe55   : > { %v4731_v3 = vsel %vm4670_vm3, %v4669_v56, 0.0  ;;  %v4438_v47 = vunpack.c.h.bf16 %v8525_v30 }
 0xe57   : > { %4503 = vmatpush1.bf16.msra.mxu0 %v7896_v25  ;;  %4546 = vmatpush1.bf16.msra.mxu1 %v7899_v42  ;;  %v4653_v25 = vld [vmem:[%s6019_s17 + $0x78] sm:$0xff]  ;;  %v4710_v42 = vadd.f32 %v4709_v57, %v4708_v32  ;;  %v4662_v57 = vld [vmem:[%s6019_s17 + $0xc0] sm:$0xff]  ;;  %v4692_v32 = vsel %vm4670_vm3, %v4660_v45, 0.0 }
 0xe58   : > { %4504 = vmatprep.subr.bf16.mxu0 %v7902_v28  ;;  %4547 = vmatprep.subr.bf16.mxu1 %v7905_v16  ;;  %v4676_v28 = vsel %vm4670_vm3, %v4644_v27, 0.0  ;;  %v4713_v16 = vsel %vm4670_vm3, %v4651_v17, 0.0  ;;  %v4715_v39 = vsel %vm4670_vm3, %v4653_v25, 0.0  ;;  %v4664_v27 = vld [vmem:[%s6019_s17 + $0xd0] sm:$0xff] }
 0xe59   : > { %v4712_v46 = vadd.f32 %v4711_v40, %v4710_v42  ;;  %v4694_v40 = vsel %vm4670_vm3, %v4662_v57, 0.0  ;;  %v4696_v42 = vsel %vm4670_vm3, %v4664_v27, 0.0 }
 0xe5b   : > { %4505 = vmatpush1.bf16.msra.mxu0 %v7908_v58  ;;  %4548 = vmatpush1.bf16.msra.mxu1 %v7911_v20  ;;  %v4648_v58 = vld [vmem:[%s6019_s17 + $0x50] sm:$0xff]  ;;  %v4675_v20 = vadd.f32 %v4674_v48, %v4673_v62  ;;  %v4714_v13 = vadd.f32 %v4713_v16, %v4712_v46  ;;  %v4666_v62 = vld [vmem:[%s6019_s17 + $0xe0] sm:$0xff] }
 0xe5c   : > { %v4680_v14 = vsel %vm4670_vm3, %v4648_v58, 0.0 }
 0xe5d   : > { %v4677_v24 = vadd.f32 %v4676_v28, %v4675_v20  ;;  %v4716_v61 = vadd.f32 %v4715_v39, %v4714_v13  ;;  %v4668_v28 = vld [vmem:[%s6019_s17 + $0xf0] sm:$0xff]  ;;  %v4698_v20 = vsel %vm4670_vm3, %v4666_v62, 0.0  ;;  %v4431_v13 = vunpack.c.l.bf16 %v8522_v33  ;;  %s4877_s17 = sshll.u32 %s6013_s13, 4 }
 0xe5e   : > { %s585_s23 = scalar_lea.vmem [#allocation8], %s4877_s17 }
 0xe5f   : > { %v4679_v5 = vadd.f32 %v4678_v15, %v4677_v24  ;;  %v4718_v63 = vadd.f32 %v4717_v0, %v4716_v61  ;;  %v4700_v15 = vsel %vm4670_vm3, %v4668_v28, 0.0  ;;  %v4433_v61 = vunpack.c.l.bf16 %v8523_v21  ;;  %s4765_s25 = sshll.u32 %s585_s23, 4  ;;  %s8228_s25 = int_to_ptr.vmem [resolvable:$true] %s4765_s25 }
 0xe60   : > { %s5739_s22 = scalar_lea.vmem %s8228_s25, 256  ;;  %p5746_p12 = scmp.lt.s32.totalorder %s8228_s25, %s5744_s11 }
 0xe61   : > { %v4681_v50 = vadd.f32 %v4680_v14, %v4679_v5  ;;  %v4720_v52 = vadd.f32 %v4719_v43, %v4718_v63  ;;  %v4432_v5 = vunpack.c.h.bf16 %v8522_v33  ;;  %v4435_v63 = vunpack.c.l.bf16 %v8524_v26  ;;  %v8526_v33 = vld [vmem:[#allocation69_spill] sm:$0xff]  ;;  %p5740_p5 = scmp.ne.s32.totalorder %s8228_s25, %s5739_s22  ;;  %p5747_p13 = scmp.lt.s32.totalorder %s5745_s12, %s5739_s22 }
 0xe63   : > { %v4683_v10 = vadd.f32 %v4682_v29, %v4681_v50  ;;  %v4722_v60 = vadd.f32 %v4721_v35, %v4720_v52  ;;  %p5741_p10 = pnand %p5740_p5, %p8537_p6  ;;  %p5748_p0 = por %p5747_p13, %p5746_p12 }
 0xe65   : > { %v4685_v44 = vadd.f32 %v4684_v59, %v4683_v10  ;;  %v4724_v36 = vadd.f32 %v4723_v12, %v4722_v60  ;;  %p5742_p11 = pneg %p5741_p10 }
 0xe67   : > { %v4687_v34 = vadd.f32 %v4686_v8, %v4685_v44  ;;  %v4726_v17 = vadd.f32 %v4725_v1, %v4724_v36  ;;  %v4437_v44 = vunpack.c.l.bf16 %v8525_v30  ;;  %v4434_v1 = vunpack.c.h.bf16 %v8523_v21  ;;  %p5749_p1 = pnand %p5748_p0, %p5742_p11 }
 0xe69   : > { %v4689_v51 = vadd.f32 %v4688_v38, %v4687_v34  ;;  %v4728_v31 = vadd.f32 %v4727_v19, %v4726_v17 }
 0xe6b   : > { %v4691_v22 = vadd.f32 %v4690_v6, %v4689_v51  ;;  %v4730_v25 = vadd.f32 %v4729_v23, %v4728_v31 }
 0xe6d   : > { %v4693_v48 = vadd.f32 %v4692_v32, %v4691_v22  ;;  %v4732_v58 = vadd.f32 %v4731_v3, %v4730_v25 }
 0xe6f   : > { %v4695_v16 = vadd.f32 %v4694_v40, %v4693_v48  ;;  %v4734_v46 = vmax.f32 %v4732_v58, 1.0 }
 0xe71   : > { %v4697_v7 = vadd.f32 %v4696_v42, %v4695_v16  ;;  %4742 = vperm.xlu1 %5180, %v4734_v46  }
 0xe73   : > { %v4699_v39 = vadd.f32 %v4698_v20, %v4697_v7 }
 0xe75   : > { %v4701_v2 = vadd.f32 %v4700_v15, %v4699_v39 }
 0xe77   : > { %v4733_v24 = vmax.f32 %v4701_v2, 1.0 }
 0xe79   : > { %4737 = vperm.xlu0 %5179, %v4733_v24  }
 0xefe   : > { %v4375_v14 = vpop.f32.mrf.mxu0  ;;  %v4418_v0 = vpop.f32.mrf.mxu1 }
 0xeff   : > { %v4439_v9 = vadd.f32 %v4431_v13, %v4375_v14  ;;  %v4441_v59 = vadd.f32 %v4433_v61, %v4418_v0  ;;  %v8527_v13 = vld [vmem:[#allocation71_spill] sm:$0xff]  ;;  %v8529_v61 = vld [vmem:[#allocation12_spill] sm:$0xff] }
 0xf00   : > { %v4377_v29 = vpop.f32.mrf.mxu0  ;;  %v4420_v43 = vpop.f32.mrf.mxu1  ;;  %v4483_v14 = vsel %vm1800_vm0, %v8527_v13, %v8526_v33 }
 0xf01   : > { %v4447_v18 = vmul.f32 0.5, %v4439_v9  ;;  %v4440_v50 = vadd.f32 %v4432_v5, %v4377_v29  ;;  %v4442_v45 = vadd.f32 %v4434_v1, %v4420_v43 }
 0xf02   : > { %v4379_v35 = vpop.f32.mrf.mxu0  ;;  %v4422_v52 = vpop.f32.mrf.mxu1 }
 0xf03   : > { %5573 = vtanh.f32 %v4447_v18  ;;  %v4455_v37 = vmul.f32 0.5, %v4440_v50  ;;  %v4443_v10 = vadd.f32 %v4435_v63, %v4379_v35  ;;  %v4445_v60 = vadd.f32 %v4437_v44, %v4422_v52 }
 0xf04   : > { %v4381_v8 = vpop.f32.mrf.mxu0  ;;  %v4424_v34 = vpop.f32.mrf.mxu1  ;;  %v4465_v36 = vmul.f32 0.5, %v4442_v45 }
 0xf05   : > { %5575 = vtanh.f32 %v4455_v37  ;;  %v4448_v12 = vmul.f32 0.5, %v4443_v10  ;;  %v4444_v54 = vadd.f32 %v4436_v55, %v4381_v8  ;;  %v4446_v6 = vadd.f32 %v4438_v47, %v4424_v34  ;;  %v8531_v8 = vld [vmem:[#allocation64_spill] sm:$0xff] }
 0xf06   : > { %5577 = vtanh.f32 %v4441_v59  ;;  %v8530_v59 = vld [vmem:[#allocation63_spill] sm:$0xff] }
 0xf07   : > { %5579 = vtanh.f32 %v4448_v12  ;;  %v4456_v38 = vmul.f32 0.5, %v4444_v54  ;;  %v4466_v23 = vmul.f32 0.5, %v4446_v6  ;;  %v4580_v35 = vunpack.c.l.bf16 %v8530_v59 }
 0xf08   : > { %v4581_v52 = vunpack.c.h.bf16 %v8530_v59  ;;  %v4582_v12 = vunpack.c.l.bf16 %v8531_v8 }
 0xf09   : > { %5581 = vtanh.f32 %v4456_v38 }
 0xf0a   : > { %5583 = vtanh.f32 %v4445_v60  ;;  %v8532_v60 = vld [vmem:[#allocation65_spill] sm:$0xff] }
 0xf0b   : > { %5585 = vtanh.f32 %v4465_v36  ;;  %v4584_v38 = vunpack.c.l.bf16 %v8532_v60  ;;  %v4585_v47 = vunpack.c.h.bf16 %v8532_v60 }
 0xf0c   : > { %5587 = vtanh.f32 %v4466_v23  ;;  %v4583_v23 = vunpack.c.h.bf16 %v8531_v8 }
 0xf10   : > { %v5574_v19 = vpop.eup %5573 }
 0xf11   : > { %v4451_v57 = vmul.f32 0.5, %v5574_v19 }
 0xf12   : > { %v5576_v51 = vpop.eup %5575 }
 0xf13   : > { %v5578_v56 = vpop.eup %5577  ;;  %v4453_v17 = vadd.f32 0.5, %v4451_v57  ;;  %v4459_v32 = vmul.f32 0.5, %v5576_v51  ;;  %v8533_v57 = vld [vmem:[#allocation66_spill] sm:$0xff] }
 0xf14   : > { %v5580_v27 = vpop.eup %5579  ;;  %v4586_v51 = vunpack.c.l.bf16 %v8533_v57 }
 0xf15   : > { %v4461_v22 = vadd.f32 0.5, %v4459_v32  ;;  %v4475_v31 = vmul.f32 %v5578_v56, %v4453_v17  ;;  %v4452_v40 = vmul.f32 0.5, %v5580_v27 }
 0xf16   : > { %v5582_v3 = vpop.eup %5581 }
 0xf17   : > { %v4473_v62 = vmul.f32 %v4461_v22, %v8057_v11  ;;  %v4454_v48 = vadd.f32 0.5, %v4452_v40  ;;  %v4460_v25 = vmul.f32 0.5, %v5582_v3  ;;  %v5584_v42 = vpop.eup %5583 }
 0xf18   : > { %v5586_v46 = vpop.eup %5585 }
 0xf19   : > { %v8183_v28 = vadd.f32 %v4475_v31, %v4473_v62  ;;  %v4462_v16 = vadd.f32 0.5, %v4460_v25  ;;  %v4476_v58 = vmul.f32 %v5584_v42, %v4454_v48  ;;  %v4469_v15 = vmul.f32 0.5, %v5586_v46  ;;  %v5588_v39 = vpop.eup %5587 }
 0xf1a   : > { %v4470_v2 = vmul.f32 0.5, %v5588_v39  ;;  %v4587_v31 = vunpack.c.h.bf16 %v8533_v57 }
 0xf1b   : > { %5589 = vtanh.f32 %v8183_v28  ;;  %v4474_v20 = vmul.f32 %v4462_v16, %v8061_v4  ;;  %v4471_v11 = vadd.f32 0.5, %v4469_v15  ;;  %v8528_v4 = vld [vmem:[#allocation70_spill] sm:$0xff] }
 0xf1c   : > { %v4472_v5 = vadd.f32 0.5, %v4470_v2  ;;  %v4484_v29 = vsel %vm1800_vm0, %v8529_v61, %v8528_v4  ;;  %v4738_v61 = vpop.permute.xlu0 %4737 }
 0xf1d   : > { %v8187_v7 = vadd.f32 %v4476_v58, %v4474_v20 }
 0xf1f   : > { %5591 = vtanh.f32 %v8187_v7 }
 0xf28   : > { %v5590_v24 = vpop.eup %5589 }
 0xf29   : > { %v4481_v0 = vmul.f32 %v5590_v24, %v4471_v11 }
 0xf2b   : > { %v4485_v9 = vmul.f32 %v4483_v14, %v4481_v0 }
 0xf2c   : > { %v5592_v21 = vpop.eup %5591 }
 0xf2d   : > { %v8199_v43 = vadd.f32 %v4485_v9, %v8073_v49  ;;  %v4482_v18 = vmul.f32 %v5592_v21, %v4472_v5 }
 0xf2f   : > { %v4486_v50 = vmul.f32 %v4484_v29, %v4482_v18  ;;  %v4489_v26 = vpack.c.bf16 %v4482_v18, %v4481_v0  ;;  %v4743_v18 = vpop.permute.xlu1 %4742 }
 0xf31   : > { %v8202_v63 = vadd.f32 %v4486_v50, %v8076_v53  ;;  %4523 = vmatmul.mubr.bf16.vlgmr.msra.gmra.mxu0 %v4489_v26  ;;  %4566 = vmatmul.mubr.bf16.vlgmr.msra.gmra.mxu1 %v4489_v26 }
 0xff1   : > { %v4524_v37 = vpop.f32.mrf.mxu0  ;;  %v4567_v10 = vpop.f32.mrf.mxu1 }
 0xff2   : > { %v4588_v55 = vadd.f32 %v4580_v35, %v4524_v37  ;;  %v4590_v1 = vadd.f32 %v4582_v12, %v4567_v10  ;;  %v8534_v10 = vld [vmem:[#allocation13_spill] sm:$0xff] }
 0xff3   : > { %v4526_v30 = vpop.f32.mrf.mxu0  ;;  %v4569_v49 = vpop.f32.mrf.mxu1 }
 0xff4   : > { %v4596_v44 = vmul.f32 0.5, %v4588_v55  ;;  %v4589_v54 = vadd.f32 %v4581_v52, %v4526_v30  ;;  %v4591_v27 = vadd.f32 %v4583_v23, %v4569_v49  ;;  %v8535_v49 = vld [vmem:[#allocation67_spill] sm:$0xff] }
 0xff5   : > { %v4528_v53 = vpop.f32.mrf.mxu0  ;;  %v4571_v36 = vpop.f32.mrf.mxu1 }
 0xff6   : > { %5593 = vtanh.f32 %v4596_v44  ;;  %v4604_v45 = vmul.f32 0.5, %v4589_v54  ;;  %v4592_v34 = vadd.f32 %v4584_v38, %v4528_v53  ;;  %v4594_v17 = vadd.f32 %v4586_v51, %v4571_v36  ;;  %v8536_v44 = vld [vmem:[#allocation68_spill] sm:$0xff] }
 0xff7   : > { %v4530_v6 = vpop.f32.mrf.mxu0  ;;  %v4573_v22 = vpop.f32.mrf.mxu1  ;;  %v4614_v40 = vmul.f32 0.5, %v4591_v27  ;;  %v4633_v54 = vsel %vm1800_vm0, %v8536_v44, %v8535_v49 }
 0xff8   : > { %5595 = vtanh.f32 %v4604_v45  ;;  %v4597_v19 = vmul.f32 0.5, %v4592_v34  ;;  %v4593_v56 = vadd.f32 %v4585_v47, %v4530_v6  ;;  %v4595_v3 = vadd.f32 %v4587_v31, %v4573_v22 }
 0xff9   : > { %5597 = vtanh.f32 %v4590_v1 }
 0xffa   : > { %5599 = vtanh.f32 %v4597_v19  ;;  %v4605_v32 = vmul.f32 0.5, %v4593_v56  ;;  %v4615_v20 = vmul.f32 0.5, %v4595_v3 }
 0xffc   : > { %5601 = vtanh.f32 %v4605_v32 }
 0xffd   : > { %5603 = vtanh.f32 %v4594_v17 }
 0xffe   : > { %5605 = vtanh.f32 %v4614_v40 }
 0xfff   : > { %5607 = vtanh.f32 %v4615_v20 }
0x1003   : > { %v5594_v62 = vpop.eup %5593 }
0x1004   : > { %v4600_v48 = vmul.f32 0.5, %v5594_v62 }
0x1005   : > { %v5596_v25 = vpop.eup %5595 }
0x1006   : > { %v5598_v42 = vpop.eup %5597  ;;  %v4602_v16 = vadd.f32 0.5, %v4600_v48  ;;  %v4608_v58 = vmul.f32 0.5, %v5596_v25 }
0x1007   : > { %v5600_v46 = vpop.eup %5599 }
0x1008   : > { %v4610_v15 = vadd.f32 0.5, %v4608_v58  ;;  %v4624_v39 = vmul.f32 %v5598_v42, %v4602_v16  ;;  %v4601_v11 = vmul.f32 0.5, %v5600_v46 }
0x1009   : > { %v5602_v2 = vpop.eup %5601 }
0x100a   : > { %v4622_v24 = vmul.f32 %v4610_v15, %v8183_v28  ;;  %v4603_v33 = vadd.f32 0.5, %v4601_v11  ;;  %v4609_v13 = vmul.f32 0.5, %v5602_v2  ;;  %v5604_v14 = vpop.eup %5603 }
0x100b   : > { %v5606_v29 = vpop.eup %5605 }
0x100c   : > { %v4626_v0 = vadd.f32 %v4624_v39, %v4622_v24  ;;  %v4611_v9 = vadd.f32 0.5, %v4609_v13  ;;  %v4625_v5 = vmul.f32 %v5604_v14, %v4603_v33  ;;  %v4618_v50 = vmul.f32 0.5, %v5606_v29  ;;  %v5608_v26 = vpop.eup %5607 }
0x100d   : > { %v4619_v59 = vmul.f32 0.5, %v5608_v26 }
0x100e   : > { %5609 = vtanh.f32 %v4626_v0  ;;  %v4623_v21 = vmul.f32 %v4611_v9, %v8187_v7  ;;  %v4620_v28 = vadd.f32 0.5, %v4618_v50 }
0x100f   : > { %v4621_v52 = vadd.f32 0.5, %v4619_v59 }
0x1010   : > { %v4627_v4 = vadd.f32 %v4625_v5, %v4623_v21 }
0x1012   : > { %5611 = vtanh.f32 %v4627_v4 }
0x1013   : > { %5613 = vrcp.f32 %v4738_v61 }
0x1014   : > { %5615 = vrcp.f32 %v4743_v18 }
0x101b   : > { %v5610_v35 = vpop.eup %5609 }
0x101c   : > { %v4630_v37 = vmul.f32 %v5610_v35, %v4620_v28 }
0x101e   : > { %v4634_v55 = vmul.f32 %v8534_v10, %v4630_v37 }
0x101f   : > { %v5612_v7 = vpop.eup %5611 }
0x1020   : > { %v4636_v8 = vadd.f32 %v4634_v55, %v8199_v43  ;;  %v4631_v12 = vmul.f32 %v5612_v7, %v4621_v52  ;;  %v5614_v30 = vpop.eup %5613 }
0x1021   : > { %v5616_v53 = vpop.eup %5615 }
0x1022   : > { %v4746_v60 = vmul.f32 %v5614_v30, %v4636_v8  ;;  %v4635_v38 = vmul.f32 %v4633_v54, %v4631_v12 }
0x1024   : > { %v4637_v1 = vadd.f32 %v4635_v38, %v8202_v63  ;;  %4749 = vst [vmem:[%s585_s23] sm:$0xff] %v4746_v60 }
0x1026   : > { %v4748_v41 = vmul.f32 %v5616_v53, %v4637_v1 }
0x1028   : > { %4750 = vst [vmem:[%s585_s23 + $0x8] sm:$0xff] %v4748_v41 }
0x1029   : > { %5752 = shalt.err (!%p5749_p1)
}
0x102a   : > { %s5753_s28 = scalar_lea.hbm %s8226_s8, 256  ;;  %s5757_s15 = scalar_lea.hbm %s8276_s5, 512 }
0x102b   : > { %p5754_p2 = scmp.ne.s32.totalorder %s8226_s8, %s5753_s28  ;;  %p5758_p7 = scmp.lt.s32.totalorder %s8226_s8, %s8276_s5 }
0x102c   : > { %p5759_p8 = scmp.lt.s32.totalorder %s5757_s15, %s5753_s28 }
0x102d   : > { %p5755_p3 = pnand %p5754_p2, %p8537_p6 }
0x102e   : > { %p5760_p5 = por %p5759_p8, %p5758_p7 }
0x102f   : > { %p5756_p4 = pneg %p5755_p3 }
0x1031   : > { %p5761_p10 = pnand %p5760_p5, %p5756_p4 }
0x1033   : > { %5764 = shalt.err (!%p5761_p10)
}
0x1034   : > { %s5810_s23 = smov 128   ;;  %s5811_s26 = smov 8  }
0x1035   : > { %5128 = dma.vmem_to_hbm [thread:$0]  (%p8537_p6), %s8228_s25, 256, %s8226_s8, %s4752_s9, %s5810_s23, %s5810_s23, %s5811_s26  }
0x1036 PF: > { %s4780_s7 = sand.u32 1, %s5791_s18   ;;  %p8538_p11 = scmp.ne.s32.totalorder %s8366_s30, 0 }
0x1037   : > { %s4781_s22 = scalar_lea.sflag [#allocation7], %s4780_s7 }
0x1038   : > { %p5135_p12 = pnand %p4866_p9, %p8538_p11 }
0x103a   : > { %p5136_p13 = pneg %p5135_p12 }
0x103c   : > { %5786 = dma.done.wait (%p5136_p13), %s4781_s22, 256  }
0x103d   : > { %5788 = vsyncadd (%p5136_p13), %s4781_s22, 4294967040  ;;  %p16_p0 = scmp.ge.s32.totalorder %s5867_s24, 4   ;;  %s8539_s18 = smov %s5795_s19 }
0x103e   : > { %s8540_s19 = smov %s5799_s20  ;;  %s8541_s20 = smov %s5879_s27 }
0x103f   : > { %s8542_s21 = smov %s5867_s24  ;;  %18 = sbr.rel (!%p16_p0) target bundleno = 4 (0x4), region = 202 }
0x1044   :  { %4786 = vsyncpa [#allocation6], 1 }
0x1045   :  { %4788 = vsyncpa [#allocation6 + $0x1], 1 }
0x1046   :  { %4789 = vsyncpa [#allocation7], 1 }
0x1047   :  { %4791 = vsyncpa [#allocation7 + $0x1], 1 }

</bundles_post_ra>
